<compile_context>
chip_gen: v6e
topology: v6e:2x2x1
jax: 0.10.0
libtpu: 0.0.40
codegen_flags: <defaults>
</compile_context>

<pallas_src>
import functools

import jax
import jax.numpy as jnp
from jax.experimental import pallas as pl
from jax.experimental.pallas import tpu as pltpu

MAX_K = 15            # largest Inception branch kernel size
MAX_KP = 16           # taps padded to a sublane multiple (extra zero tap)
PAD1 = MAX_K // 2     # 7
SUB = 8               # sublane alignment


def _pnngs_kernel(sml_ref, x_ref, w1_ref, b1_ref, w2_ref, pb2_ref, fcm_ref,
                  o_ref, *, L, nb, compute_dtype):
    """One grid step: nb batch elements folded into the lane axis (nb*L lanes)."""
    NBL = nb * L
    f32 = jnp.float32

    # Position of each lane inside its length-L batch segment (hoisted once).
    pos = jax.lax.broadcasted_iota(jnp.int32, (1, NBL), 1) % L

    def shifted_rows(y, taps, pad, pad_to):
        """Tap-major im2col of a 'same'-padded 1-D conv over the lane-folded layout.

        Row block k holds y shifted by (k - pad) inside every length-L segment
        (zero where the window leaves the segment).  Shifts use pltpu.roll (XLU)
        plus a lane mask, so no lane-unaligned VMEM copies are generated.  Extra
        zero row blocks pad the sublane extent to `pad_to` blocks.
        """
        rows = []
        for k in range(taps):
            d = k - pad
            if d == 0:
                rows.append(y)
                continue
            r = pltpu.roll(y, shift=(-d) % NBL, axis=1)        # r[:, j] = y[:, j + d]
            if d < 0:
                r = jnp.where(pos >= -d, r, jnp.zeros_like(r))   # left edge of segment
            else:
                r = jnp.where(pos < L - d, r, jnp.zeros_like(r))  # right edge of segment
            rows.append(r)
        for _ in range(pad_to - taps):                           # zero tap padding (8-align)
            rows.append(jnp.zeros_like(y))
        return jnp.concatenate(rows, axis=0)

    sm = sml_ref[...]                        # (1, 4): conv3 taps w3_0..2, fused fc bias
    x = x_ref[...]                           # (C, NBL)

    # ---- conv1: all Inception branches fused into one 16-tap conv == one matmul
    cols1 = shifted_rows(x, MAX_K, PAD1, MAX_KP)                     # (16*C, NBL)
    y = jnp.dot(w1_ref[...], cols1, preferred_element_type=f32)      # (O1p, NBL)
    y = jnp.maximum(y + b1_ref[...], 0.0)                            # bias + ReLU (padded rows stay 0)
    # Dropout(0.5): identity in eval.  BatchNorm1d (eval) folded into w2 / pb2.
    y = y.astype(compute_dtype)

    # ---- conv2: (O1p -> 1, k=3) as one matmul, contraction = 3*O1p (8-aligned)
    cols2 = shifted_rows(y, 3, 1, 3)                                 # (3*O1p, NBL)
    z = jnp.dot(w2_ref[...], cols2, preferred_element_type=f32)      # (1, NBL)
    z = jnp.maximum(z + pb2_ref[...], 0.0)                           # BN-shift-thru-conv2 + conv2_b, ReLU
    # Dropout(0.5): identity in eval.

    # ---- conv3: (1 -> 1, k=3) on the VPU with XLU rolls (no degenerate matmul)
    left = jnp.where(pos >= 1, pltpu.roll(z, shift=1, axis=1), 0.0)            # z[j-1]
    right = jnp.where(pos < L - 1, pltpu.roll(z, shift=NBL - 1, axis=1), 0.0)  # z[j+1]
    z3 = sm[:, 0:1] * left + sm[:, 1:2] * z + sm[:, 2:3] * right     # conv3 (bias folded into fc)

    # ---- flatten + fc: one MXU dot against the block-diagonal fc matrix
    out = jnp.dot(z3, fcm_ref[...], preferred_element_type=f32) + sm[:, 3:4]   # (1, nb)
    o_ref[...] = jnp.transpose(out, (1, 0)).astype(o_ref.dtype)                # (nb, 1)


def _choose_grid_steps(N, per_elem_bytes, requested=None, vmem_budget=20 << 20):
    """Fewest grid steps whose per-step working set fits the VMEM budget.

    One fat step is best on single-TC v5e/v6e.  Pass requested=2 on v7x (2 TCs per
    chip) so both TensorCores get an equal share of the "parallel" grid axis.
    """
    if requested is None:
        candidates = [s for s in range(1, N + 1)
                      if N % s == 0 and (s == 1 or (N // s) % 8 == 0)]
        requested = next((s for s in candidates
                          if (N // s) * per_elem_bytes <= vmem_budget),
                         candidates[-1])
    assert N % requested == 0, "batch size must be a multiple of grid_steps"
    nb = N // requested
    assert requested == 1 or nb % 8 == 0, \
        "per-step batch tile must be a multiple of 8 when grid_steps > 1"
    return requested


def pnngs_model1_forward(x, params, *, parallel_number, grid_steps=None,
                         compute_dtype=jnp.float32):
    """x: (N, C_in, L) float32 -> (N, 1) float32 (PNNGSModel1 forward, eval mode).

    compute_dtype=jnp.bfloat16 halves im2col VMEM / vreg traffic on v6e/v7x (f32
    accumulation is kept); leave f32 on v5e (no native bf16 VPU).
    """
    N, C, L = x.shape
    assert L % 128 == 0, "L must be a multiple of 128 (lane-dense tiles)"

    ws = params["branch_w"][:parallel_number]
    bs = params["branch_b"][:parallel_number]

    # --- Inception1d fused into ONE (O1p, 16*C) weight, tap-major, sublane padded
    fused = []
    for w in ws:
        k = w.shape[-1]
        off = (MAX_K - k) // 2
        fused.append(jnp.pad(w, ((0, 0), (0, 0), (off, off))))
    w1 = jnp.concatenate(fused, axis=0)                              # (O1, C, 15)
    O1 = w1.shape[0]
    O1p = ((O1 + SUB - 1) // SUB) * SUB                              # 36 -> 40
    w1 = jnp.pad(w1, ((0, O1p - O1), (0, 0), (0, MAX_KP - MAX_K)))   # zero channels + zero tap
    w1f = jnp.transpose(w1, (0, 2, 1)).reshape(O1p, MAX_KP * C)      # tap-major
    b1 = jnp.concatenate(bs, axis=0)
    b1 = jnp.pad(b1, (0, O1p - O1)).reshape(O1p, 1).astype(jnp.float32)

    # --- BatchNorm1d (eval) folded entirely into conv2 ------------------------
    inv = 1.0 / jnp.sqrt(params["bn_var"] + params["bn_eps"])
    bn_s = params["bn_gamma"] * inv                                  # (O1,)
    bn_t = params["bn_beta"] - params["bn_mean"] * bn_s              # (O1,)
    w2 = params["conv2_w"] * bn_s[None, :, None]                     # scale -> conv2 weights
    w2 = jnp.pad(w2, ((0, 0), (0, O1p - O1), (0, 0)))                # (1, O1p, 3)
    w2f = jnp.transpose(w2, (0, 2, 1)).reshape(1, 3 * O1p)           # tap-major (1, 120)

    # --- grid: fold nb batch elements into the lane axis per step -------------
    itemsize = jnp.dtype(compute_dtype).itemsize
    per_elem_bytes = L * (itemsize * (MAX_KP * C + 3 * O1p) + 4 * (O1p + 8))
    steps = _choose_grid_steps(N, per_elem_bytes, grid_steps)
    nb = N // steps
    NBL = nb * L

    # BN shift pushed through conv2 -> (1, L) positional bias (edge taps differ),
    # merged with conv2_b and tiled across the nb lane-folded segments.
    const_sig = jnp.broadcast_to(bn_t[None, :, None], (1, O1, L)).astype(jnp.float32)
    pb = jax.lax.conv_general_dilated(
        const_sig, params["conv2_w"], (1,), [(1, 1)],
        dimension_numbers=("NCH", "OIH", "NCH"),
        precision=jax.lax.Precision.HIGHEST)                         # (1, 1, L)
    pb2 = jnp.tile(pb.reshape(1, L) + params["conv2_b"].reshape(1, 1),
                   (1, nb)).astype(jnp.float32)                      # (1, NBL)

    # conv3 taps + fused fc bias packed into one tiny block.
    fc_w = params["fc_w"].reshape(L).astype(jnp.float32)
    fc_b_eff = (params["fc_b"].reshape(()) +
                params["conv3_b"].reshape(()) * jnp.sum(fc_w))       # conv3 bias folded into fc
    smalls = jnp.concatenate([params["conv3_w"].reshape(3).astype(jnp.float32),
                              fc_b_eff.reshape(1)]).reshape(1, 4)

    # Block-diagonal fc matrix: out[b] = sum_l fc_w[l] * z3[b*L + l] (one MXU dot).
    fcm = jnp.kron(jnp.eye(nb, dtype=jnp.float32), fc_w.reshape(L, 1))   # (NBL, nb)

    # Fold batch into the lane axis (layout plumbing only).
    x_lanes = jnp.transpose(x, (1, 0, 2)).reshape(C, N * L).astype(compute_dtype)
    w1f = w1f.astype(compute_dtype)
    w2f = w2f.astype(compute_dtype)

    kernel = functools.partial(_pnngs_kernel, L=L, nb=nb, compute_dtype=compute_dtype)

    out = pl.pallas_call(
        kernel,
        out_shape=jax.ShapeDtypeStruct((N, 1), jnp.float32),
        grid_spec=pltpu.PrefetchScalarGridSpec(
            num_scalar_prefetch=0,
            grid=(steps,),
            in_specs=[
                pl.BlockSpec((1, 4), lambda b: (0, 0)),              # conv3 taps + fc bias
                pl.BlockSpec((C, NBL), lambda b: (0, b)),            # x, lane-folded batch
                pl.BlockSpec((O1p, MAX_KP * C), lambda b: (0, 0)),   # fused conv1 weight
                pl.BlockSpec((O1p, 1), lambda b: (0, 0)),            # conv1 bias
                pl.BlockSpec((1, 3 * O1p), lambda b: (0, 0)),        # conv2 weight (BN-scaled)
                pl.BlockSpec((1, NBL), lambda b: (0, 0)),            # conv2 positional bias
                pl.BlockSpec((NBL, nb), lambda b: (0, 0)),           # block-diagonal fc matrix
            ],
            out_specs=pl.BlockSpec((nb, 1), lambda b: (b, 0)),
        ),
        compiler_params=pltpu.CompilerParams(
            dimension_semantics=("parallel",)),
    )(smalls, x_lanes, w1f, b1, w2f, pb2, fcm)
    return out


def _reference(x, params, parallel_number):
    """Plain-JAX mirror of the PyTorch forward (eval mode), for verification."""
    prec = jax.lax.Precision.HIGHEST
    outs = []
    for w, b in zip(params["branch_w"][:parallel_number],
                    params["branch_b"][:parallel_number]):
        k = w.shape[-1]
        pad = k // 2
        y = jax.lax.conv_general_dilated(
            x, w, window_strides=(1,), padding=[(pad, pad)],
            dimension_numbers=("NCH", "OIH", "NCH"), precision=prec)
        outs.append(y + b[None, :, None])
    y = jnp.concatenate(outs, axis=1)                        # (N, O1, L)
    y = jnp.maximum(y, 0.0)                                  # ReLU (dropout = identity)
    inv = 1.0 / jnp.sqrt(params["bn_var"] + params["bn_eps"])
    y = ((y - params["bn_mean"][None, :, None]) * (params["bn_gamma"] * inv)[None, :, None]
         + params["bn_beta"][None, :, None])                 # BatchNorm1d (eval)
    y = jax.lax.conv_general_dilated(
        y, params["conv2_w"], (1,), [(1, 1)],
        dimension_numbers=("NCH", "OIH", "NCH"), precision=prec)
    y = jnp.maximum(y + params["conv2_b"][None, :, None], 0.0)
    y = jax.lax.conv_general_dilated(
        y, params["conv3_w"], (1,), [(1, 1)],
        dimension_numbers=("NCH", "OIH", "NCH"), precision=prec)
    y = y + params["conv3_b"][None, :, None]
    y = y.reshape(y.shape[0], -1)                            # flatten
    return jnp.dot(y, params["fc_w"].T, precision=prec) + params["fc_b"]


if __name__ == "__main__":
    key = jax.random.PRNGKey(0)

    parallel_number = 8
    in_channels = 1            # PNNGSModel1 uses Inception1d(in_channels=1)
    N, L = 16, 128             # L == X_train.shape[1]; multiple of 128 -> lane-dense tiles

    branch_out = [1] + [5] * 7
    kernel_sizes = [1, 3, 5, 7, 9, 11, 13, 15]
    O1 = sum(branch_out[:parallel_number])    # 36 channels after Inception1d concat
    # TODO(synk): the PyTorch spec sizes BatchNorm1d / conv2 with 3*parallel_number-2
    # channels, which mismatches Inception1d's actual concat width 1 + 5*(p-1);
    # they are sized to the actual tensor here so the forward runs.

    keys = jax.random.split(key, 40)
    kit = iter(keys)

    def nrm(shape, scale=0.1):
        return scale * jax.random.normal(next(kit), shape, dtype=jnp.float32)

    params = {
        "branch_w": [nrm((branch_out[i], in_channels, kernel_sizes[i]))
                     for i in range(parallel_number)],
        "branch_b": [nrm((branch_out[i],)) for i in range(parallel_number)],
        "bn_gamma": 1.0 + nrm((O1,)),
        "bn_beta": nrm((O1,)),
        "bn_mean": nrm((O1,)),
        "bn_var": 1.0 + jnp.abs(nrm((O1,))),
        "bn_eps": 1e-5,
        "conv2_w": nrm((1, O1, 3)),
        "conv2_b": nrm((1,)),
        "conv3_w": nrm((1, 1, 3)),
        "conv3_b": nrm((1,)),
        "fc_w": nrm((1, L)),
        "fc_b": nrm((1,)),
    }

    x = jax.random.normal(next(kit), (N, in_channels, L), dtype=jnp.float32)

    out = pnngs_model1_forward(x, params, parallel_number=parallel_number)
    out = jax.block_until_ready(out)

    ref = _reference(x, params, parallel_number)
    assert out.shape == ref.shape == (N, 1)
    max_err = float(jnp.max(jnp.abs(out - ref)))
    assert jnp.allclose(out, ref, atol=1e-3, rtol=1e-3), f"max abs err {max_err}"

    print("KERNEL_OK")
</pallas_src>

<mosaic_0001>
module attributes {stable_mosaic.version = 11 : i64} {
  func.func @_pnngs_kernel(%arg0: i32, %arg1: memref<1x4xf32, #tpu.memory_space<vmem>>, %arg2: memref<1x2048xf32, #tpu.memory_space<vmem>>, %arg3: memref<40x16xf32, #tpu.memory_space<vmem>>, %arg4: memref<40x1xf32, #tpu.memory_space<vmem>>, %arg5: memref<1x120xf32, #tpu.memory_space<vmem>>, %arg6: memref<1x2048xf32, #tpu.memory_space<vmem>>, %arg7: memref<2048x16xf32, #tpu.memory_space<vmem>>, %arg8: memref<16x1xf32, #tpu.memory_space<vmem>>) attributes {dimension_semantics = [#tpu.dimension_semantics<parallel>], iteration_bounds = array<i64: 1>, scalar_prefetch = 0 : i64, scratch_operands = 0 : i64, tpu.core_type = #tpu.core_type<tc>, window_params = [{pipeline_mode = #tpu.pipeline_mode<synchronous>, transform_indices = @transform_0, window_bounds = array<i64: 1, 4>}, {transform_indices = @transform_1, window_bounds = array<i64: 1, 2048>}, {pipeline_mode = #tpu.pipeline_mode<synchronous>, transform_indices = @transform_2, window_bounds = array<i64: 40, 16>}, {pipeline_mode = #tpu.pipeline_mode<synchronous>, transform_indices = @transform_3, window_bounds = array<i64: 40, 1>}, {pipeline_mode = #tpu.pipeline_mode<synchronous>, transform_indices = @transform_4, window_bounds = array<i64: 1, 120>}, {pipeline_mode = #tpu.pipeline_mode<synchronous>, transform_indices = @transform_5, window_bounds = array<i64: 1, 2048>}, {pipeline_mode = #tpu.pipeline_mode<synchronous>, transform_indices = @transform_6, window_bounds = array<i64: 2048, 16>}, {transform_indices = @transform_7, window_bounds = array<i64: 16, 1>}]} {
    %0 = tpu.iota {dimensions = array<i32: 1>} : vector<1x2048xi32>
    %c128_i32 = arith.constant 128 : i32
    %c0_i32 = arith.constant 0 : i32
    %1 = arith.cmpi eq, %c128_i32, %c0_i32 : i32
    %c1_i32 = arith.constant 1 : i32
    %2 = arith.select %1, %c1_i32, %c128_i32 : i32
    %3 = vector.broadcast %2 : i32 to vector<1x2048xi32>
    %4 = arith.remsi %0, %3 : vector<1x2048xi32>
    %c0_i32_0 = arith.constant 0 : i32
    %5 = vector.broadcast %c0_i32_0 : i32 to vector<1x2048xi32>
    %6 = arith.cmpi ne, %4, %5 : vector<1x2048xi32>
    %c0_i32_1 = arith.constant 0 : i32
    %7 = vector.broadcast %c0_i32_1 : i32 to vector<1x2048xi32>
    %8 = arith.cmpi slt, %4, %7 : vector<1x2048xi32>
    %c0_i32_2 = arith.constant 0 : i32
    %9 = arith.cmpi slt, %2, %c0_i32_2 : i32
    %10 = vector.broadcast %9 : i1 to vector<1x2048xi1>
    %11 = vector.broadcast %10 : vector<1x2048xi1> to vector<1x2048xi1>
    %12 = arith.xori %8, %11 : vector<1x2048xi1>
    %13 = arith.andi %12, %6 : vector<1x2048xi1>
    %14 = vector.broadcast %2 : i32 to vector<1x2048xi32>
    %15 = arith.addi %4, %14 : vector<1x2048xi32>
    %16 = arith.select %13, %15, %4 : vector<1x2048xi1>, vector<1x2048xi32>
    %c0 = arith.constant 0 : index
    %c0_3 = arith.constant 0 : index
    %17 = vector.load %arg1[%c0, %c0_3] : memref<1x4xf32, #tpu.memory_space<vmem>>, vector<1x4xf32>
    %c0_4 = arith.constant 0 : index
    %c0_5 = arith.constant 0 : index
    %18 = vector.load %arg2[%c0_4, %c0_5] : memref<1x2048xf32, #tpu.memory_space<vmem>>, vector<1x2048xf32>
    %c7_i32 = arith.constant 7 : i32
    %19 = tpu.dynamic_rotate %18 by %c7_i32 dim 1 : vector<1x2048xf32>, i32 -> vector<1x2048xf32>
    %c7_i32_6 = arith.constant 7 : i32
    %20 = vector.broadcast %c7_i32_6 : i32 to vector<1x2048xi32>
    %21 = arith.cmpi sge, %16, %20 : vector<1x2048xi32>
    %cst = arith.constant 0.000000e+00 : f32
    %22 = vector.broadcast %cst : f32 to vector<1x2048xf32>
    %23 = arith.select %21, %19, %22 : vector<1x2048xi1>, vector<1x2048xf32>
    %c6_i32 = arith.constant 6 : i32
    %24 = tpu.dynamic_rotate %18 by %c6_i32 dim 1 : vector<1x2048xf32>, i32 -> vector<1x2048xf32>
    %c6_i32_7 = arith.constant 6 : i32
    %25 = vector.broadcast %c6_i32_7 : i32 to vector<1x2048xi32>
    %26 = arith.cmpi sge, %16, %25 : vector<1x2048xi32>
    %cst_8 = arith.constant 0.000000e+00 : f32
    %27 = vector.broadcast %cst_8 : f32 to vector<1x2048xf32>
    %28 = arith.select %26, %24, %27 : vector<1x2048xi1>, vector<1x2048xf32>
    %c5_i32 = arith.constant 5 : i32
    %29 = tpu.dynamic_rotate %18 by %c5_i32 dim 1 : vector<1x2048xf32>, i32 -> vector<1x2048xf32>
    %c5_i32_9 = arith.constant 5 : i32
    %30 = vector.broadcast %c5_i32_9 : i32 to vector<1x2048xi32>
    %31 = arith.cmpi sge, %16, %30 : vector<1x2048xi32>
    %cst_10 = arith.constant 0.000000e+00 : f32
    %32 = vector.broadcast %cst_10 : f32 to vector<1x2048xf32>
    %33 = arith.select %31, %29, %32 : vector<1x2048xi1>, vector<1x2048xf32>
    %c4_i32 = arith.constant 4 : i32
    %34 = tpu.dynamic_rotate %18 by %c4_i32 dim 1 : vector<1x2048xf32>, i32 -> vector<1x2048xf32>
    %c4_i32_11 = arith.constant 4 : i32
    %35 = vector.broadcast %c4_i32_11 : i32 to vector<1x2048xi32>
    %36 = arith.cmpi sge, %16, %35 : vector<1x2048xi32>
    %cst_12 = arith.constant 0.000000e+00 : f32
    %37 = vector.broadcast %cst_12 : f32 to vector<1x2048xf32>
    %38 = arith.select %36, %34, %37 : vector<1x2048xi1>, vector<1x2048xf32>
    %c3_i32 = arith.constant 3 : i32
    %39 = tpu.dynamic_rotate %18 by %c3_i32 dim 1 : vector<1x2048xf32>, i32 -> vector<1x2048xf32>
    %c3_i32_13 = arith.constant 3 : i32
    %40 = vector.broadcast %c3_i32_13 : i32 to vector<1x2048xi32>
    %41 = arith.cmpi sge, %16, %40 : vector<1x2048xi32>
    %cst_14 = arith.constant 0.000000e+00 : f32
    %42 = vector.broadcast %cst_14 : f32 to vector<1x2048xf32>
    %43 = arith.select %41, %39, %42 : vector<1x2048xi1>, vector<1x2048xf32>
    %c2_i32 = arith.constant 2 : i32
    %44 = tpu.dynamic_rotate %18 by %c2_i32 dim 1 : vector<1x2048xf32>, i32 -> vector<1x2048xf32>
    %c2_i32_15 = arith.constant 2 : i32
    %45 = vector.broadcast %c2_i32_15 : i32 to vector<1x2048xi32>
    %46 = arith.cmpi sge, %16, %45 : vector<1x2048xi32>
    %cst_16 = arith.constant 0.000000e+00 : f32
    %47 = vector.broadcast %cst_16 : f32 to vector<1x2048xf32>
    %48 = arith.select %46, %44, %47 : vector<1x2048xi1>, vector<1x2048xf32>
    %c1_i32_17 = arith.constant 1 : i32
    %49 = tpu.dynamic_rotate %18 by %c1_i32_17 dim 1 : vector<1x2048xf32>, i32 -> vector<1x2048xf32>
    %c1_i32_18 = arith.constant 1 : i32
    %50 = vector.broadcast %c1_i32_18 : i32 to vector<1x2048xi32>
    %51 = arith.cmpi sge, %16, %50 : vector<1x2048xi32>
    %cst_19 = arith.constant 0.000000e+00 : f32
    %52 = vector.broadcast %cst_19 : f32 to vector<1x2048xf32>
    %53 = arith.select %51, %49, %52 : vector<1x2048xi1>, vector<1x2048xf32>
    %c2047_i32 = arith.constant 2047 : i32
    %54 = tpu.dynamic_rotate %18 by %c2047_i32 dim 1 : vector<1x2048xf32>, i32 -> vector<1x2048xf32>
    %c127_i32 = arith.constant 127 : i32
    %55 = vector.broadcast %c127_i32 : i32 to vector<1x2048xi32>
    %56 = arith.cmpi slt, %16, %55 : vector<1x2048xi32>
    %cst_20 = arith.constant 0.000000e+00 : f32
    %57 = vector.broadcast %cst_20 : f32 to vector<1x2048xf32>
    %58 = arith.select %56, %54, %57 : vector<1x2048xi1>, vector<1x2048xf32>
    %c2046_i32 = arith.constant 2046 : i32
    %59 = tpu.dynamic_rotate %18 by %c2046_i32 dim 1 : vector<1x2048xf32>, i32 -> vector<1x2048xf32>
    %c126_i32 = arith.constant 126 : i32
    %60 = vector.broadcast %c126_i32 : i32 to vector<1x2048xi32>
    %61 = arith.cmpi slt, %16, %60 : vector<1x2048xi32>
    %cst_21 = arith.constant 0.000000e+00 : f32
    %62 = vector.broadcast %cst_21 : f32 to vector<1x2048xf32>
    %63 = arith.select %61, %59, %62 : vector<1x2048xi1>, vector<1x2048xf32>
    %c2045_i32 = arith.constant 2045 : i32
    %64 = tpu.dynamic_rotate %18 by %c2045_i32 dim 1 : vector<1x2048xf32>, i32 -> vector<1x2048xf32>
    %c125_i32 = arith.constant 125 : i32
    %65 = vector.broadcast %c125_i32 : i32 to vector<1x2048xi32>
    %66 = arith.cmpi slt, %16, %65 : vector<1x2048xi32>
    %cst_22 = arith.constant 0.000000e+00 : f32
    %67 = vector.broadcast %cst_22 : f32 to vector<1x2048xf32>
    %68 = arith.select %66, %64, %67 : vector<1x2048xi1>, vector<1x2048xf32>
    %c2044_i32 = arith.constant 2044 : i32
    %69 = tpu.dynamic_rotate %18 by %c2044_i32 dim 1 : vector<1x2048xf32>, i32 -> vector<1x2048xf32>
    %c124_i32 = arith.constant 124 : i32
    %70 = vector.broadcast %c124_i32 : i32 to vector<1x2048xi32>
    %71 = arith.cmpi slt, %16, %70 : vector<1x2048xi32>
    %cst_23 = arith.constant 0.000000e+00 : f32
    %72 = vector.broadcast %cst_23 : f32 to vector<1x2048xf32>
    %73 = arith.select %71, %69, %72 : vector<1x2048xi1>, vector<1x2048xf32>
    %c2043_i32 = arith.constant 2043 : i32
    %74 = tpu.dynamic_rotate %18 by %c2043_i32 dim 1 : vector<1x2048xf32>, i32 -> vector<1x2048xf32>
    %c123_i32 = arith.constant 123 : i32
    %75 = vector.broadcast %c123_i32 : i32 to vector<1x2048xi32>
    %76 = arith.cmpi slt, %16, %75 : vector<1x2048xi32>
    %cst_24 = arith.constant 0.000000e+00 : f32
    %77 = vector.broadcast %cst_24 : f32 to vector<1x2048xf32>
    %78 = arith.select %76, %74, %77 : vector<1x2048xi1>, vector<1x2048xf32>
    %c2042_i32 = arith.constant 2042 : i32
    %79 = tpu.dynamic_rotate %18 by %c2042_i32 dim 1 : vector<1x2048xf32>, i32 -> vector<1x2048xf32>
    %c122_i32 = arith.constant 122 : i32
    %80 = vector.broadcast %c122_i32 : i32 to vector<1x2048xi32>
    %81 = arith.cmpi slt, %16, %80 : vector<1x2048xi32>
    %cst_25 = arith.constant 0.000000e+00 : f32
    %82 = vector.broadcast %cst_25 : f32 to vector<1x2048xf32>
    %83 = arith.select %81, %79, %82 : vector<1x2048xi1>, vector<1x2048xf32>
    %c2041_i32 = arith.constant 2041 : i32
    %84 = tpu.dynamic_rotate %18 by %c2041_i32 dim 1 : vector<1x2048xf32>, i32 -> vector<1x2048xf32>
    %c121_i32 = arith.constant 121 : i32
    %85 = vector.broadcast %c121_i32 : i32 to vector<1x2048xi32>
    %86 = arith.cmpi slt, %16, %85 : vector<1x2048xi32>
    %cst_26 = arith.constant 0.000000e+00 : f32
    %87 = vector.broadcast %cst_26 : f32 to vector<1x2048xf32>
    %88 = arith.select %86, %84, %87 : vector<1x2048xi1>, vector<1x2048xf32>
    %cst_27 = arith.constant 0.000000e+00 : f32
    %89 = vector.broadcast %cst_27 : f32 to vector<1x2048xf32>
    %90 = tpu.concatenate %23, %28, %33, %38, %43, %48, %53, %18, %58, %63, %68, %73, %78, %83, %88, %89 in 0 : vector<1x2048xf32>, vector<1x2048xf32>, vector<1x2048xf32>, vector<1x2048xf32>, vector<1x2048xf32>, vector<1x2048xf32>, vector<1x2048xf32>, vector<1x2048xf32>, vector<1x2048xf32>, vector<1x2048xf32>, vector<1x2048xf32>, vector<1x2048xf32>, vector<1x2048xf32>, vector<1x2048xf32>, vector<1x2048xf32>, vector<1x2048xf32> -> vector<16x2048xf32>
    %c0_28 = arith.constant 0 : index
    %c0_29 = arith.constant 0 : index
    %91 = vector.load %arg3[%c0_28, %c0_29] : memref<40x16xf32, #tpu.memory_space<vmem>>, vector<40x16xf32>
    %cst_30 = arith.constant dense<0.000000e+00> : vector<40x2048xf32>
    %92 = tpu.matmul %91, %90, %cst_30 {dimension_numbers = #tpu.dot_dimension_numbers<[1], [0], [0], [1], [0, 0, 1, 1], [], []>} : vector<40x16xf32>, vector<16x2048xf32>, vector<40x2048xf32> -> vector<40x2048xf32>
    %c0_31 = arith.constant 0 : index
    %c0_32 = arith.constant 0 : index
    %93 = vector.load %arg4[%c0_31, %c0_32] : memref<40x1xf32, #tpu.memory_space<vmem>>, vector<40x1xf32>
    %94 = vector.broadcast %93 : vector<40x1xf32> to vector<40x2048xf32>
    %95 = arith.addf %92, %94 : vector<40x2048xf32>
    %cst_33 = arith.constant 0.000000e+00 : f32
    %96 = vector.broadcast %cst_33 : f32 to vector<40x2048xf32>
    %97 = arith.maximumf %95, %96 : vector<40x2048xf32>
    %c1_i32_34 = arith.constant 1 : i32
    %98 = tpu.dynamic_rotate %97 by %c1_i32_34 dim 1 : vector<40x2048xf32>, i32 -> vector<40x2048xf32>
    %c1_i32_35 = arith.constant 1 : i32
    %99 = vector.broadcast %c1_i32_35 : i32 to vector<1x2048xi32>
    %100 = arith.cmpi sge, %16, %99 : vector<1x2048xi32>
    %cst_36 = arith.constant 0.000000e+00 : f32
    %101 = vector.broadcast %cst_36 : f32 to vector<40x2048xf32>
    %102 = vector.shape_cast %100 : vector<1x2048xi1> to vector<1x2048xi1>
    %103 = vector.broadcast %102 : vector<1x2048xi1> to vector<40x2048xi1>
    %104 = arith.select %103, %98, %101 : vector<40x2048xi1>, vector<40x2048xf32>
    %c2047_i32_37 = arith.constant 2047 : i32
    %105 = tpu.dynamic_rotate %97 by %c2047_i32_37 dim 1 : vector<40x2048xf32>, i32 -> vector<40x2048xf32>
    %c127_i32_38 = arith.constant 127 : i32
    %106 = vector.broadcast %c127_i32_38 : i32 to vector<1x2048xi32>
    %107 = arith.cmpi slt, %16, %106 : vector<1x2048xi32>
    %cst_39 = arith.constant 0.000000e+00 : f32
    %108 = vector.broadcast %cst_39 : f32 to vector<40x2048xf32>
    %109 = vector.shape_cast %107 : vector<1x2048xi1> to vector<1x2048xi1>
    %110 = vector.broadcast %109 : vector<1x2048xi1> to vector<40x2048xi1>
    %111 = arith.select %110, %105, %108 : vector<40x2048xi1>, vector<40x2048xf32>
    %112 = tpu.concatenate %104, %97, %111 in 0 : vector<40x2048xf32>, vector<40x2048xf32>, vector<40x2048xf32> -> vector<120x2048xf32>
    %c0_40 = arith.constant 0 : index
    %c0_41 = arith.constant 0 : index
    %113 = vector.load %arg5[%c0_40, %c0_41] : memref<1x120xf32, #tpu.memory_space<vmem>>, vector<1x120xf32>
    %cst_42 = arith.constant dense<0.000000e+00> : vector<1x2048xf32>
    %114 = tpu.matmul %113, %112, %cst_42 {dimension_numbers = #tpu.dot_dimension_numbers<[1], [0], [0], [1], [0, 0, 1, 1], [], []>} : vector<1x120xf32>, vector<120x2048xf32>, vector<1x2048xf32> -> vector<1x2048xf32>
    %c0_43 = arith.constant 0 : index
    %c0_44 = arith.constant 0 : index
    %115 = vector.load %arg6[%c0_43, %c0_44] : memref<1x2048xf32, #tpu.memory_space<vmem>>, vector<1x2048xf32>
    %116 = arith.addf %114, %115 : vector<1x2048xf32>
    %cst_45 = arith.constant 0.000000e+00 : f32
    %117 = vector.broadcast %cst_45 : f32 to vector<1x2048xf32>
    %118 = arith.maximumf %116, %117 : vector<1x2048xf32>
    %c1_i32_46 = arith.constant 1 : i32
    %119 = vector.broadcast %c1_i32_46 : i32 to vector<1x2048xi32>
    %120 = arith.cmpi sge, %16, %119 : vector<1x2048xi32>
    %c1_i32_47 = arith.constant 1 : i32
    %121 = tpu.dynamic_rotate %118 by %c1_i32_47 dim 1 : vector<1x2048xf32>, i32 -> vector<1x2048xf32>
    %cst_48 = arith.constant 0.000000e+00 : f32
    %122 = vector.broadcast %cst_48 : f32 to vector<1x2048xf32>
    %123 = arith.select %120, %121, %122 : vector<1x2048xi1>, vector<1x2048xf32>
    %c127_i32_49 = arith.constant 127 : i32
    %124 = vector.broadcast %c127_i32_49 : i32 to vector<1x2048xi32>
    %125 = arith.cmpi slt, %16, %124 : vector<1x2048xi32>
    %c2047_i32_50 = arith.constant 2047 : i32
    %126 = tpu.dynamic_rotate %118 by %c2047_i32_50 dim 1 : vector<1x2048xf32>, i32 -> vector<1x2048xf32>
    %cst_51 = arith.constant 0.000000e+00 : f32
    %127 = vector.broadcast %cst_51 : f32 to vector<1x2048xf32>
    %128 = arith.select %125, %126, %127 : vector<1x2048xi1>, vector<1x2048xf32>
    %129 = vector.extract_strided_slice %17 {offsets = [0, 0], sizes = [1, 1], strides = [1, 1]} : vector<1x4xf32> to vector<1x1xf32>
    %130 = vector.broadcast %129 : vector<1x1xf32> to vector<1x2048xf32>
    %131 = arith.mulf %130, %123 : vector<1x2048xf32>
    %132 = vector.extract_strided_slice %17 {offsets = [0, 1], sizes = [1, 1], strides = [1, 1]} : vector<1x4xf32> to vector<1x1xf32>
    %133 = vector.broadcast %132 : vector<1x1xf32> to vector<1x2048xf32>
    %134 = arith.mulf %133, %118 : vector<1x2048xf32>
    %135 = arith.addf %131, %134 : vector<1x2048xf32>
    %136 = vector.extract_strided_slice %17 {offsets = [0, 2], sizes = [1, 1], strides = [1, 1]} : vector<1x4xf32> to vector<1x1xf32>
    %137 = vector.broadcast %136 : vector<1x1xf32> to vector<1x2048xf32>
    %138 = arith.mulf %137, %128 : vector<1x2048xf32>
    %139 = arith.addf %135, %138 : vector<1x2048xf32>
    %c0_52 = arith.constant 0 : index
    %c0_53 = arith.constant 0 : index
    %140 = vector.load %arg7[%c0_52, %c0_53] : memref<2048x16xf32, #tpu.memory_space<vmem>>, vector<2048x16xf32>
    %cst_54 = arith.constant dense<0.000000e+00> : vector<1x16xf32>
    %141 = tpu.matmul %139, %140, %cst_54 {dimension_numbers = #tpu.dot_dimension_numbers<[1], [0], [0], [1], [0, 0, 1, 1], [], []>} : vector<1x2048xf32>, vector<2048x16xf32>, vector<1x16xf32> -> vector<1x16xf32>
    %142 = vector.extract_strided_slice %17 {offsets = [0, 3], sizes = [1, 1], strides = [1, 1]} : vector<1x4xf32> to vector<1x1xf32>
    %143 = vector.broadcast %142 : vector<1x1xf32> to vector<1x16xf32>
    %144 = arith.addf %141, %143 : vector<1x16xf32>
    %145 = tpu.transpose %144, [1, 0] : vector<1x16xf32> -> vector<16x1xf32>
    %c0_55 = arith.constant 0 : index
    %c0_56 = arith.constant 0 : index
    %146 = vector.load %arg8[%c0_55, %c0_56] : memref<16x1xf32, #tpu.memory_space<vmem>>, vector<16x1xf32>
    tpu.vector_store %arg8[%c0_55, %c0_56], %145 {strides = array<i32>} : memref<16x1xf32, #tpu.memory_space<vmem>>, vector<16x1xf32>,
    return
  }
  func.func @transform_0(%arg0: i32) -> (i32, i32) {
    %c0_i32 = arith.constant 0 : i32
    %c0_i32_0 = arith.constant 0 : i32
    %c0_i32_1 = arith.constant 0 : i32
    return %c0_i32, %c0_i32_0 : i32, i32
  }
  func.func @transform_1(%arg0: i32) -> (i32, i32) {
    %c0_i32 = arith.constant 0 : i32
    %c0_i32_0 = arith.constant 0 : i32
    return %c0_i32, %arg0 : i32, i32
  }
  func.func @transform_2(%arg0: i32) -> (i32, i32) {
    %c0_i32 = arith.constant 0 : i32
    %c0_i32_0 = arith.constant 0 : i32
    %c0_i32_1 = arith.constant 0 : i32
    return %c0_i32, %c0_i32_0 : i32, i32
  }
  func.func @transform_3(%arg0: i32) -> (i32, i32) {
    %c0_i32 = arith.constant 0 : i32
    %c0_i32_0 = arith.constant 0 : i32
    %c0_i32_1 = arith.constant 0 : i32
    return %c0_i32, %c0_i32_0 : i32, i32
  }
  func.func @transform_4(%arg0: i32) -> (i32, i32) {
    %c0_i32 = arith.constant 0 : i32
    %c0_i32_0 = arith.constant 0 : i32
    %c0_i32_1 = arith.constant 0 : i32
    return %c0_i32, %c0_i32_0 : i32, i32
  }
  func.func @transform_5(%arg0: i32) -> (i32, i32) {
    %c0_i32 = arith.constant 0 : i32
    %c0_i32_0 = arith.constant 0 : i32
    %c0_i32_1 = arith.constant 0 : i32
    return %c0_i32, %c0_i32_0 : i32, i32
  }
  func.func @transform_6(%arg0: i32) -> (i32, i32) {
    %c0_i32 = arith.constant 0 : i32
    %c0_i32_0 = arith.constant 0 : i32
    %c0_i32_1 = arith.constant 0 : i32
    return %c0_i32, %c0_i32_0 : i32, i32
  }
  func.func @transform_7(%arg0: i32) -> (i32, i32) {
    %c0_i32 = arith.constant 0 : i32
    %c0_i32_0 = arith.constant 0 : i32
    return %arg0, %c0_i32 : i32, i32
  }
}

</mosaic_0001>

<bundles_post_ra>
// kernel: tpu_custom_call.1
= control target key start
LH: loop header
LB: loop body
LE: loop exit
PB: predicated region body
PF: predicated region fallthrough
CT: control target
= control target key end

     0   :  { %v26_v0 = vlaneseq  ;;  %s6166_s26 = smov 126   ;;  %s6167_s27 = smov 6   ;;  %s12358_s1 = inlined_call_operand.vmem [shape: f32[1,2048], index: 1, kind: input, shape index: {}]   ;;  %s12359_s2 = inlined_call_operand.vmem [shape: f32[40,16], index: 2, kind: input, shape index: {}]   ;;  %s12360_s3 = inlined_call_operand.vmem [shape: f32[40,1], index: 3, kind: input, shape index: {}]   ;;  %s12361_s4 = inlined_call_operand.vmem [shape: f32[1,120], index: 4, kind: input, shape index: {}]   ;;  %s12362_s0 = inlined_call_operand.vmem [shape: f32[1,4], index: 0, kind: input, shape index: {}]   ;;  %s12363_s5 = inlined_call_operand.vmem [shape: f32[1,2048], index: 5, kind: input, shape index: {}]   ;;  %s12364_s6 = inlined_call_operand.vmem [shape: f32[2048,16], index: 6, kind: input, shape index: {}]   ;;  %s12365_s7 = inlined_call_operand.vmem [shape: f32[16,1], index: 7, kind: output, shape index: {}]  }
   0x1   :  { %v6231_v2 = vld [vmem:[%s12358_s1] sm:$0xff]  ;;  %v6268_v10 = vld [vmem:[%s12358_s1 + $0x8] sm:$0xff]  ;;  %s6168_s30 = smov 125   ;;  %s6169_s8 = smov 5  }
   0x2   :  { %v6226_v1 = vshrl.u32 %v26_v0, 7  ;;  %s6170_s9 = smov 127   ;;  %s6171_s10 = smov 124   ;;  %v6495_v42 = vand.u32 127, %v26_v0 }
   0x3   :  { %s6172_s11 = smov 7   ;;  %s6173_s12 = smov 4  }
   0x4   :  { %v6234_v3 = vsub.s32 1, %v6226_v1  ;;  %v6237_v4 = vsub.s32 0, %v6226_v1  ;;  %v6240_v5 = vsub.s32 2, %v6226_v1  ;;  %v6263_v9 = vsub.s32 7, %v6226_v1  ;;  %s6174_s13 = smov 123   ;;  %s6175_s14 = smov 3  }
   0x5   :  { %s6176_s15 = smov 122   ;;  %s6177_s16 = smov 2   ;;  %v6347_v12 = vsub.s32 3, %v6226_v1  ;;  %v6350_v13 = vsub.s32 4, %v6226_v1  ;;  %v6381_v16 = vsub.s32 5, %v6226_v1  ;;  %v6384_v17 = vsub.s32 6, %v6226_v1 }
   0x6   :  { %12601 = vst [vmem:[#allocation2_spill] sm:$0xff] %v6234_v3  ;;  %12602 = vst [vmem:[#allocation3_spill] sm:$0xff] %v6237_v4  ;;  %v6244_v6 = vrot.slane %v6231_v2, %v6234_v3  ;;  %v6248_v7 = vrot.slane %v6231_v2, %v6237_v4  ;;  %v6256_v8 = vrot.slane %v6231_v2, %v6240_v5  ;;  %s6178_s17 = smov 121   ;;  %s6179_s18 = smov 1   ;;  %v28_v45 = vadd.s32 128, %v6495_v42 }
   0x7   :  { %12603 = vst [vmem:[#allocation4_spill] sm:$0xff] %v6240_v5  ;;  %12605 = vst [vmem:[#allocation6_spill] sm:$0xff] %v6263_v9  ;;  %v6276_v11 = vrot.slane %v6268_v10, %v6263_v9  ;;  %v6358_v14 = vrot.slane %v6231_v2, %v6347_v12  ;;  %v6362_v15 = vrot.slane %v6231_v2, %v6350_v13  ;;  %vm12367_vm0 = vcmp.lt.s32.totalorder %v6495_v42, 126 }
   0x8   :  { %970 = vrot.lane.b32.xlu0 %v6244_v6, %s6166_s26  ;;  %401 = vrot.lane.b32.xlu1 %v6248_v7, %s6167_s27  ;;  %12604 = vst [vmem:[#allocation5_spill] sm:$0xff] %v6256_v8  ;;  %12607 = vst [vmem:[#allocation8_spill] sm:$0xff] %v6347_v12  ;;  %v6392_v18 = vrot.slane %v6231_v2, %v6381_v16  ;;  %v6396_v19 = vrot.slane %v6231_v2, %v6384_v17  ;;  %v6514_v48 = vand.u32 127, %v28_v45 }
   0x9   :  { %12606 = vst [vmem:[#allocation7_spill] sm:$0xff] %v6276_v11  ;;  %12608 = vst [vmem:[#allocation9_spill] sm:$0xff] %v6350_v13  ;;  %vm12366_vm1 = vcmp.lt.s32.totalorder %v6495_v42, 6  ;;  %vm12376_vm3 = vcmp.lt.s32.totalorder %v6495_v42, 125  ;;  %vm12374_vm5 = vcmp.lt.s32.totalorder %v6495_v42, 5  ;;  %vm12375_vm9 = vcmp.lt.s32.totalorder %v6495_v42, 127 }
   0xa   :  { %12609 = vst [vmem:[#allocation10_spill] sm:$0xff] %v6358_v14  ;;  %12610 = vst [vmem:[#allocation11_spill] sm:$0xff] %v6362_v15  ;;  %vm1018_vm2 = vcmp.lt.s32.totalorder %v6514_v48, 126  ;;  %vm451_vm6 = vcmp.ge.s32.totalorder %v6514_v48, 6  ;;  %vm1099_vm7 = vcmp.lt.s32.totalorder %v6514_v48, 125  ;;  %vm12431_vm12 = vcmp.lt.s32.totalorder %v6495_v42, 124 }
   0xb   :  { %12611 = vst [vmem:[#allocation12_spill] sm:$0xff] %v6381_v16  ;;  %12612 = vst [vmem:[#allocation13_spill] sm:$0xff] %v6384_v17  ;;  %vm370_vm15 = vcmp.ge.s32.totalorder %v6514_v48, 7  ;;  %vm531_vm11 = vcmp.ge.s32.totalorder %v6495_v42, 5  ;;  %vm12420_vm8 = vcmp.lt.s32.totalorder %v6495_v42, 4  ;;  %vm12419_vm4 = vcmp.lt.s32.totalorder %v6495_v42, 123 }
   0xc   :  { %972 = vrot.lane.b32.xlu0 %v6256_v8, %s6166_s26  ;;  %403 = vrot.lane.b32.xlu1 %v6244_v6, %s6167_s27  ;;  %12613 = vst [vmem:[#allocation14_spill] sm:$0xff] %v6392_v18  ;;  %12614 = vst [vmem:[#allocation15_spill] sm:$0xff] %v6396_v19  ;;  %vm1261_vm10 = vcmp.lt.s32.totalorder %v6514_v48, 123  ;;  %vm12418_vm14 = vcmp.lt.s32.totalorder %v6495_v42, 122  ;;  %vm1423_vm13 = vcmp.lt.s32.totalorder %v6514_v48, 121  ;;  %v32_v17 = vadd.s32 640, %v6495_v42 }
   0xd   :  { %12623 = vst [vmem:[#allocation24_spill] sm:$0xff] %v6514_v48 }
  0x10   :  { %968 = vrot.lane.b32.xlu0 %v6248_v7, %s6166_s26  ;;  %1051 = vrot.lane.b32.xlu1 %v6244_v6, %s6168_s30 }
  0x14   :  { %1053 = vrot.lane.b32.xlu0 %v6256_v8, %s6168_s30  ;;  %431 = vrot.lane.b32.xlu1 %v6276_v11, %s6167_s27 }
  0x18   :  { %482 = vrot.lane.b32.xlu0 %v6248_v7, %s6169_s8  ;;  %484 = vrot.lane.b32.xlu1 %v6244_v6, %s6169_s8 }
  0x1c   :  { %889 = vrot.lane.b32.xlu0 %v6244_v6, %s6170_s9  ;;  %891 = vrot.lane.b32.xlu1 %v6256_v8, %s6170_s9 }
  0x20   :  { %1049 = vrot.lane.b32.xlu0 %v6248_v7, %s6168_s30  ;;  %1132 = vrot.lane.b32.xlu1 %v6244_v6, %s6171_s10 }
  0x24   :  { %1134 = vrot.lane.b32.xlu0 %v6256_v8, %s6171_s10  ;;  %320 = vrot.lane.b32.xlu1 %v6248_v7, %s6172_s11 }
  0x28   :  { %322 = vrot.lane.b32.xlu0 %v6244_v6, %s6172_s11  ;;  %512 = vrot.lane.b32.xlu1 %v6276_v11, %s6169_s8 }
  0x2c   :  { %563 = vrot.lane.b32.xlu0 %v6248_v7, %s6173_s12  ;;  %565 = vrot.lane.b32.xlu1 %v6244_v6, %s6173_s12 }
  0x30   :  { %887 = vrot.lane.b32.xlu0 %v6248_v7, %s6170_s9  ;;  %1130 = vrot.lane.b32.xlu1 %v6248_v7, %s6171_s10 }
  0x34   :  { %1213 = vrot.lane.b32.xlu0 %v6244_v6, %s6174_s13  ;;  %1215 = vrot.lane.b32.xlu1 %v6256_v8, %s6174_s13 }
  0x38   :  { %350 = vrot.lane.b32.xlu0 %v6276_v11, %s6172_s11  ;;  %593 = vrot.lane.b32.xlu1 %v6276_v11, %s6173_s12 }
  0x3c   :  { %644 = vrot.lane.b32.xlu0 %v6248_v7, %s6175_s14  ;;  %646 = vrot.lane.b32.xlu1 %v6244_v6, %s6175_s14 }
  0x40   :  { %1211 = vrot.lane.b32.xlu0 %v6248_v7, %s6174_s13  ;;  %1294 = vrot.lane.b32.xlu1 %v6244_v6, %s6176_s15 }
  0x44   :  { %1296 = vrot.lane.b32.xlu0 %v6256_v8, %s6176_s15  ;;  %674 = vrot.lane.b32.xlu1 %v6276_v11, %s6175_s14 }
  0x48   :  { %725 = vrot.lane.b32.xlu0 %v6248_v7, %s6177_s16  ;;  %727 = vrot.lane.b32.xlu1 %v6244_v6, %s6177_s16 }
  0x4c   :  { %1292 = vrot.lane.b32.xlu0 %v6248_v7, %s6176_s15  ;;  %1375 = vrot.lane.b32.xlu1 %v6244_v6, %s6178_s17 }
  0x50   :  { %1377 = vrot.lane.b32.xlu0 %v6256_v8, %s6178_s17  ;;  %755 = vrot.lane.b32.xlu1 %v6276_v11, %s6177_s16 }
  0x54   :  { %806 = vrot.lane.b32.xlu0 %v6248_v7, %s6179_s18  ;;  %808 = vrot.lane.b32.xlu1 %v6244_v6, %s6179_s18 }
  0x58   :  { %1373 = vrot.lane.b32.xlu0 %v6248_v7, %s6178_s17  ;;  %836 = vrot.lane.b32.xlu1 %v6276_v11, %s6179_s18  ;;  %v31_v11 = vadd.s32 512, %v6495_v42 }
  0x5c   :  { %974 = vrot.lane.b32.xlu0 %v6358_v14, %s6166_s26  ;;  %976 = vrot.lane.b32.xlu1 %v6362_v15, %s6166_s26 }
  0x60   :  { %405 = vrot.lane.b32.xlu0 %v6256_v8, %s6167_s27  ;;  %407 = vrot.lane.b32.xlu1 %v6358_v14, %s6167_s27 }
  0x64   :  { %1055 = vrot.lane.b32.xlu0 %v6358_v14, %s6168_s30  ;;  %1057 = vrot.lane.b32.xlu1 %v6362_v15, %s6168_s30 }
  0x68   :  { %486 = vrot.lane.b32.xlu0 %v6256_v8, %s6169_s8  ;;  %488 = vrot.lane.b32.xlu1 %v6358_v14, %s6169_s8 }
  0x6c   :  { %893 = vrot.lane.b32.xlu0 %v6358_v14, %s6170_s9  ;;  %895 = vrot.lane.b32.xlu1 %v6362_v15, %s6170_s9 }
  0x70   :  { %978 = vrot.lane.b32.xlu0 %v6392_v18, %s6166_s26  ;;  %980 = vrot.lane.b32.xlu1 %v6396_v19, %s6166_s26 }
  0x74   :  { %1136 = vrot.lane.b32.xlu0 %v6358_v14, %s6171_s10  ;;  %1138 = vrot.lane.b32.xlu1 %v6362_v15, %s6171_s10 }
  0x78   :  { %324 = vrot.lane.b32.xlu0 %v6256_v8, %s6172_s11  ;;  %326 = vrot.lane.b32.xlu1 %v6358_v14, %s6172_s11 }
  0x7a   :  { %v6410_v20 = vpop.permute.xlu0 %970  ;;  %v6412_v21 = vpop.permute.xlu1 %401 }
  0x7c   :  { %409 = vrot.lane.b32.xlu0 %v6362_v15, %s6167_s27  ;;  %411 = vrot.lane.b32.xlu1 %v6392_v18, %s6167_s27 }
  0x7e   :  { %v6418_v22 = vpop.permute.xlu0 %972  ;;  %v6420_v23 = vpop.permute.xlu1 %403 }
  0x7f   :  { %v1014_v51 = vsel %vm12367_vm0, %v6410_v20, %v6418_v22  ;;  %v448_v52 = vsel %vm12366_vm1, %v6412_v21, %v6420_v23 }
  0x80   :  { %567 = vrot.lane.b32.xlu0 %v6256_v8, %s6173_s12  ;;  %569 = vrot.lane.b32.xlu1 %v6358_v14, %s6173_s12  ;;  %v1034_v58 = vsel %vm1018_vm2, %v1014_v51, 0.0  ;;  %v6580_v59 = vsel %vm451_vm6, %v448_v52, 0.0  ;;  %vm12626_vm6 = vcmp.lt.s32.totalorder %v6514_v48, 127  ;;  %v6618_v51 = vrot.slane %v6268_v10, %v6237_v4 }
  0x81   :  { %v1759_v52 = vrot.slane %v1034_v58, 7  ;;  %vm12417_vm2 = vcmask 1043456  }
  0x82   :  { %v6426_v24 = vpop.permute.xlu0 %968  ;;  %v6428_v25 = vpop.permute.xlu1 %1051  ;;  %12628 = vst [vmem:[#allocation28_spill] sm:$0xff] %v6618_v51 }
  0x83   :  { %12615 = vst [vmem:[#allocation16_spill] sm:$0xff] %v6426_v24  ;;  %v1015_v53 = vsel %vm12367_vm0, %v6426_v24, %v6410_v20 }
  0x84   :  { %1059 = vrot.lane.b32.xlu0 %v6392_v18, %s6168_s30  ;;  %1061 = vrot.lane.b32.xlu1 %v6396_v19, %s6168_s30  ;;  %v6584_v60 = vsel %vm12367_vm0, %v1015_v53, 0.0  ;;  %v1471_v53 = vrot.slane %v6580_v59, 7  ;;  %vm12631_vm0 = vcmp.ge.s32.totalorder %v6514_v48, 5 }
  0x86   :  { %v6434_v26 = vpop.permute.xlu0 %1053  ;;  %v6436_v27 = vpop.permute.xlu1 %431 }
  0x87   :  { %12616 = vst [vmem:[#allocation17_spill] sm:$0xff] %v6436_v27  ;;  %v1095_v56 = vsel %vm12376_vm3, %v6428_v25, %v6434_v26  ;;  %v449_v62 = vsel %vm12366_vm1, %v6436_v27, %v6412_v21  ;;  %v6614_v21 = vrot.slane %v6231_v2, %v6263_v9  ;;  %vm12632_vm1 = vcmask 1040384  }
  0x88   :  { %1217 = vrot.lane.b32.xlu0 %v6358_v14, %s6174_s13  ;;  %1219 = vrot.lane.b32.xlu1 %v6362_v15, %s6174_s13  ;;  %v6589_v61 = vsel %vm1099_vm7, %v1095_v56, 0.0  ;;  %v1758_v56 = vrot.slane %v6584_v60, 7  ;;  %vm12629_vm7 = vcmp.ge.s32.totalorder %v6495_v42, 6 }
  0x89   :  { %12627 = vst [vmem:[#allocation27_spill] sm:$0xff] %v6614_v21  ;;  %v1807_v2 = vrot.slane %v6589_v61, 6  ;;  %v6636_v58 = vsel %vm12629_vm7, %v449_v62, 0.0  ;;  %vm12633_vm7 = vcmp.lt.s32.totalorder %v6495_v42, 7 }
  0x8a   :  { %v6442_v28 = vpop.permute.xlu0 %482  ;;  %v6444_v29 = vpop.permute.xlu1 %484 }
  0x8b   :  { %v529_v20 = vsel %vm12374_vm5, %v6442_v28, %v6444_v29 }
  0x8c   :  { %490 = vrot.lane.b32.xlu0 %v6362_v15, %s6169_s8  ;;  %492 = vrot.lane.b32.xlu1 %v6392_v18, %s6169_s8  ;;  %v6647_v60 = vsel %vm12631_vm0, %v529_v20, 0.0  ;;  %vm693_vm0 = vcmp.ge.s32.totalorder %v6495_v42, 3 }
  0x8e   :  { %v6450_v30 = vpop.permute.xlu0 %889  ;;  %v6452_v31 = vpop.permute.xlu1 %891 }
  0x8f   :  { %v933_v57 = vsel %vm12375_vm9, %v6450_v30, %v6452_v31 }
  0x90   :  { %648 = vrot.lane.b32.xlu0 %v6256_v8, %s6175_s14  ;;  %650 = vrot.lane.b32.xlu1 %v6358_v14, %s6175_s14  ;;  %v953_v45 = vsel %vm12626_vm6, %v933_v57, 0.0  ;;  %vm12630_vm6 = vcmp.lt.s32.totalorder %v6514_v48, 124 }
  0x91   :  { %v2150_v61 = vsel %vm12632_vm1, %v953_v45, %v1759_v52  ;;  %vm775_vm1 = vcmp.ge.s32.totalorder %v6514_v48, 2 }
  0x92   :  { %v6458_v32 = vpop.permute.xlu0 %1049  ;;  %v6460_v33 = vpop.permute.xlu1 %1132 }
  0x93   :  { %12617 = vst [vmem:[#allocation18_spill] sm:$0xff] %v6458_v32 }
  0x94   :  { %897 = vrot.lane.b32.xlu0 %v6392_v18, %s6170_s9  ;;  %899 = vrot.lane.b32.xlu1 %v6396_v19, %s6170_s9 }
  0x96   :  { %v6466_v34 = vpop.permute.xlu0 %1134  ;;  %v6468_v35 = vpop.permute.xlu1 %320 }
  0x97   :  { %v1176_v63 = vsel %vm12431_vm12, %v6460_v33, %v6466_v34 }
  0x98   :  { %1140 = vrot.lane.b32.xlu0 %v6392_v18, %s6171_s10  ;;  %1142 = vrot.lane.b32.xlu1 %v6396_v19, %s6171_s10  ;;  %v1196_v59 = vsel %vm12630_vm6, %v1176_v63, 0.0  ;;  %vm694_vm6 = vcmp.ge.s32.totalorder %v6514_v48, 3 }
  0x9a   :  { %v6474_v36 = vpop.permute.xlu0 %322  ;;  %v6476_v37 = vpop.permute.xlu1 %512 }
  0x9b   :  { %12618 = vst [vmem:[#allocation19_spill] sm:$0xff] %v6476_v37  ;;  %v367_v62 = vsel %vm12633_vm7, %v6468_v35, %v6474_v36  ;;  %v530_v20 = vsel %vm12374_vm5, %v6476_v37, %v6442_v28  ;;  %vm774_vm5 = vcmp.ge.s32.totalorder %v6495_v42, 2  ;;  %vm12634_vm7 = vcmp.ge.s32.totalorder %v6514_v48, 4 }
  0x9c   :  { %1298 = vrot.lane.b32.xlu0 %v6358_v14, %s6176_s15  ;;  %1300 = vrot.lane.b32.xlu1 %v6362_v15, %s6176_s15 }
  0x9e   :  { %v6482_v38 = vpop.permute.xlu0 %563  ;;  %v6484_v39 = vpop.permute.xlu1 %565 }
  0x9f   :  { %v610_v45 = vsel %vm12420_vm8, %v6482_v38, %v6484_v39 }
  0xa0   :  { %328 = vrot.lane.b32.xlu0 %v6362_v15, %s6172_s11  ;;  %330 = vrot.lane.b32.xlu1 %v6392_v18, %s6172_s11 }
  0xa2   :  { %v6490_v40 = vpop.permute.xlu0 %887  ;;  %v6492_v41 = vpop.permute.xlu1 %1130 }
  0xa3   :  { %12619 = vst [vmem:[#allocation20_spill] sm:$0xff] %v6490_v40  ;;  %12620 = vst [vmem:[#allocation21_spill] sm:$0xff] %v6492_v41  ;;  %v934_v57 = vsel %vm12375_vm9, %v6490_v40, %v6450_v30  ;;  %v1096_v30 = vsel %vm12376_vm3, %v6458_v32, %v6428_v25  ;;  %v1177_v4 = vsel %vm12431_vm12, %v6492_v41, %v6460_v33  ;;  %v1855_v40 = vrot.slane %v1196_v59, 5 }
  0xa4   :  { %571 = vrot.lane.b32.xlu0 %v6362_v15, %s6173_s12  ;;  %573 = vrot.lane.b32.xlu1 %v6392_v18, %s6173_s12  ;;  %v952_v52 = vsel %vm12375_vm9, %v934_v57, 0.0  ;;  %v1114_v28 = vsel %vm12376_vm3, %v1096_v30, 0.0  ;;  %v1470_v33 = vrot.slane %v6636_v58, 7  ;;  %v386_v30 = vsel %vm370_vm15, %v367_v62, 0.0 }
  0xa5   :  { %vm12412_vm3 = vcmp.ge.s32.totalorder %v6514_v48, 1  ;;  %v12380_v41 = vmov 0.0   ;;  %v547_v32 = vsel %vm531_vm11, %v530_v20, 0.0  ;;  %v6702_v58 = vsel %vm12634_vm7, %v610_v45, 0.0 }
  0xa6   :  { %v6501_v43 = vpop.permute.xlu0 %1213  ;;  %v6503_v44 = vpop.permute.xlu1 %1215  ;;  %2376 = vmatprep.mubr.f32.mxu0 %v12380_v41  ;;  %2471 = vmatprep.mubr.f32.mxu1 %v12380_v41  ;;  %vm12635_vm9 = vcmask 1040384   ;;  %v6707_v62 = vsel %vm12431_vm12, %v1177_v4, 0.0  ;;  %vm12637_vm15 = vcmask 1041408   ;;  %v1806_v24 = vrot.slane %v1114_v28, 6 }
  0xa7   :  { %v1257_v25 = vsel %vm12419_vm4, %v6501_v43, %v6503_v44  ;;  %v2149_v57 = vsel %vm12635_vm9, %v952_v52, %v1758_v56  ;;  %v2166_v41 = vsel %vm12637_vm15, %v2150_v61, %v1807_v2  ;;  %vm12638_vm11 = vcmp.lt.s32.totalorder %v6495_v42, 7 }
  0xa8   :  { %729 = vrot.lane.b32.xlu0 %v6256_v8, %s6177_s16  ;;  %731 = vrot.lane.b32.xlu1 %v6358_v14, %s6177_s16  ;;  %v1277_v59 = vsel %vm1261_vm10, %v1257_v25, 0.0  ;;  %vm12416_vm10 = vcmask 1046528   ;;  %vm12639_vm7 = vcmp.lt.s32.totalorder %v6514_v48, 122  ;;  %v2032_v45 = vsel %vm12635_vm9, %v386_v30, %v1471_v53 }
  0xa9   :  { %v1903_v4 = vrot.slane %v1277_v59, 4  ;;  %vm12640_vm15 = vcmask 1042432   ;;  %v1567_v61 = vrot.slane %v6702_v58, 5  ;;  %v1854_v53 = vrot.slane %v6707_v62, 5 }
  0xaa   :  { %v6510_v46 = vpop.permute.xlu0 %350  ;;  %v6512_v47 = vpop.permute.xlu1 %593  ;;  %v2182_v2 = vsel %vm12640_vm15, %v2166_v41, %v1855_v40  ;;  %vm12643_vm9 = vcmp.lt.s32.totalorder %v6495_v42, 3  ;;  %vm12645_vm15 = vcmp.ge.s32.totalorder %v6495_v42, 4 }
  0xab   :  { %12621 = vst [vmem:[#allocation22_spill] sm:$0xff] %v6510_v46  ;;  %12622 = vst [vmem:[#allocation23_spill] sm:$0xff] %v6512_v47  ;;  %v368_v20 = vsel %vm12638_vm11, %v6510_v46, %v6468_v35  ;;  %v611_v52 = vsel %vm12420_vm8, %v6512_v47, %v6482_v38  ;;  %v1518_v35 = vrot.slane %v547_v32, 6  ;;  %vm12641_vm11 = vcmask 1041408  }
  0xac   :  { %1221 = vrot.lane.b32.xlu0 %v6392_v18, %s6174_s13  ;;  %1223 = vrot.lane.b32.xlu1 %v6396_v19, %s6174_s13 }
  0xae   :  { %v6522_v49 = vpop.permute.xlu0 %644  ;;  %v6524_v50 = vpop.permute.xlu1 %646 }
  0xaf   :  { %v691_v38 = vsel %vm12643_vm9, %v6522_v49, %v6524_v50 }
  0xb0   :  { %1379 = vrot.lane.b32.xlu0 %v6358_v14, %s6178_s17  ;;  %1381 = vrot.lane.b32.xlu1 %v6362_v15, %s6178_s17 }
  0xb2   :  { %v6554_v54 = vpop.permute.xlu0 %1211  ;;  %v6556_v55 = vpop.permute.xlu1 %1294 }
  0xb3   :  { %12624 = vst [vmem:[#allocation25_spill] sm:$0xff] %v6554_v54  ;;  %v1258_v40 = vsel %vm12419_vm4, %v6554_v54, %v6501_v43 }
  0xb4   :  { %652 = vrot.lane.b32.xlu0 %v6362_v15, %s6175_s14  ;;  %654 = vrot.lane.b32.xlu1 %v6392_v18, %s6175_s14 }
  0xb6   :  { %v6600_v0 = vpop.permute.xlu0 %1296  ;;  %v6602_v1 = vpop.permute.xlu1 %674 }
  0xb7   :  { %12625 = vst [vmem:[#allocation26_spill] sm:$0xff] %v6602_v1  ;;  %v1338_v37 = vsel %vm12418_vm14, %v6556_v55, %v6600_v0 }
  0xb8   :  { %810 = vrot.lane.b32.xlu0 %v6256_v8, %s6179_s18  ;;  %812 = vrot.lane.b32.xlu1 %v6358_v14, %s6179_s18  ;;  %v1358_v56 = vsel %vm12639_vm7, %v1338_v37, 0.0  ;;  %v2165_v37 = vsel %vm12641_vm11, %v2149_v57, %v1806_v24  ;;  %vm12642_vm7 = vcmp.ge.s32.totalorder %v6495_v42, 7  ;;  %v628_v24 = vsel %vm12645_vm15, %v611_v52, 0.0  ;;  %vm12646_vm11 = vmmov %vm12643_vm9 }
  0xb9   :  { %v385_v28 = vsel %vm12642_vm7, %v368_v20, 0.0  ;;  %v1951_v32 = vrot.slane %v1358_v56, 3  ;;  %v692_v57 = vsel %vm12646_vm11, %v6602_v1, %v6522_v49  ;;  %vm12647_vm7 = vcmp.lt.s32.totalorder %v6495_v42, 2 }
  0xba   :  { %v726_v63 = vpop.permute.xlu0 %725  ;;  %v6659_v9 = vpop.permute.xlu1 %727  ;;  %vm12648_vm9 = vcmp.lt.s32.totalorder %v6495_v42, 121  ;;  %vm12649_vm15 = vmmov %vm12647_vm7  ;;  %v2198_v20 = vsel %vm12417_vm2, %v2182_v2, %v1903_v4  ;;  %vm12650_vm11 = vcmask 1040384   ;;  %v1276_v52 = vsel %vm12419_vm4, %v1258_v40, 0.0 }
  0xbb   :  { %v772_v59 = vsel %vm12647_vm7, %v726_v63, %v6659_v9  ;;  %v2031_v56 = vsel %vm12650_vm11, %v385_v28, %v1470_v33  ;;  %vm12654_vm7 = vcmask 1045504   ;;  %vm12662_vm11 = vcmp.lt.s32.totalorder %v6495_v42, 121 }
  0xbc   :  { %1302 = vrot.lane.b32.xlu0 %v6392_v18, %s6176_s15  ;;  %1304 = vrot.lane.b32.xlu1 %v6396_v19, %s6176_s15 }
  0xbe   :  { %v6709_v25 = vpop.permute.xlu0 %1292  ;;  %v6711_v27 = vpop.permute.xlu1 %1375 }
  0xbf   :  { %12636 = vst [vmem:[#allocation29_spill] sm:$0xff] %v6709_v25  ;;  %v1339_v58 = vsel %vm12418_vm14, %v6709_v25, %v6556_v55  ;;  %v710_v55 = vsel %vm694_vm6, %v691_v38, 0.0  ;;  %v1566_v25 = vrot.slane %v628_v24, 5  ;;  %vm12653_vm6 = vcmp.lt.s32.totalorder %v6495_v42, 1 }
  0xc0   :  { %733 = vrot.lane.b32.xlu0 %v6362_v15, %s6177_s16  ;;  %735 = vrot.lane.b32.xlu1 %v6392_v18, %s6177_s16  ;;  %v1357_v33 = vsel %vm12418_vm14, %v1339_v58, 0.0  ;;  %v1615_v24 = vrot.slane %v710_v55, 4 }
  0xc2   :  { %v6743_v41 = vpop.permute.xlu0 %1377  ;;  %v6745_v30 = vpop.permute.xlu1 %755 }
  0xc3   :  { %12644 = vst [vmem:[#allocation30_spill] sm:$0xff] %v6745_v30  ;;  %v1419_v43 = vsel %vm12648_vm9, %v6711_v27, %v6743_v41  ;;  %v773_v49 = vsel %vm12649_vm15, %v6745_v30, %v726_v63  ;;  %v709_v63 = vsel %vm693_vm0, %v692_v57, 0.0  ;;  %v791_v30 = vsel %vm775_vm1, %v772_v59, 0.0 }
  0xc4   :  { %v1439_v62 = vsel %vm1423_vm13, %v1419_v43, 0.0  ;;  %1383 = vrot.lane.b32.xlu0 %v6392_v18, %s6178_s17  ;;  %1385 = vrot.lane.b32.xlu1 %v6396_v19, %s6178_s17  ;;  %vm12652_vm13 = vcmask 1044480   ;;  %v790_v2 = vsel %vm774_vm5, %v773_v49, 0.0  ;;  %vm12655_vm0 = vcmask 1041408  }
  0xc5   :  { %v1999_v43 = vrot.slane %v1439_v62, 2  ;;  %v2214_v4 = vsel %vm12652_vm13, %v2198_v20, %v1951_v32  ;;  %v2048_v40 = vsel %vm12655_vm0, %v2031_v56, %v1518_v35  ;;  %v1902_v57 = vrot.slane %v1276_v52, 4  ;;  %vm12657_vm5 = vmmov %vm12655_vm0 }
  0xc6   :  { %v807_v1 = vpop.permute.xlu0 %806  ;;  %v6783_v54 = vpop.permute.xlu1 %808  ;;  %v12656_v32 = vrot.slane %v6647_v60, 6  ;;  %v1614_v62 = vrot.slane %v709_v63, 4  ;;  %v1663_v49 = vrot.slane %v791_v30, 3  ;;  %vm12411_vm1 = vcmp.ge.s32.totalorder %v6495_v42, 1  ;;  %vm12663_vm13 = vmmov %vm12653_vm6 }
  0xc7   :  { %12651 = vst [vmem:[#allocation31_spill] sm:$0xff] %v6783_v54  ;;  %v853_v28 = vsel %vm12653_vm6, %v807_v1, %v6783_v54  ;;  %v2230_v38 = vsel %vm12654_vm7, %v2214_v4, %v1999_v43  ;;  %vm12658_vm9 = vcmask 1042432   ;;  %v1950_v20 = vrot.slane %v1357_v33, 3  ;;  %vm12665_vm7 = vmmov %vm12662_vm11 }
  0xc8   :  { %v872_v59 = vsel %vm12412_vm3, %v853_v28, 0.0  ;;  %814 = vrot.lane.b32.xlu0 %v6362_v15, %s6179_s18  ;;  %816 = vrot.lane.b32.xlu1 %v6392_v18, %s6179_s18  ;;  %v2049_v58 = vsel %vm12657_vm5, %v2032_v45, %v12656_v32  ;;  %v1662_v56 = vrot.slane %v790_v2, 3  ;;  %vm12661_vm15 = vmmov %vm12658_vm9  ;;  %vm12666_vm0 = vcmask 1044480  }
  0xc9   :  { %5625 = vmatprep.subr.msk.mxu0 %vm12416_vm10, %v2230_v38  ;;  %v2066_v35 = vsel %vm12658_vm9, %v2049_v58, %v1567_v61  ;;  %v1711_v55 = vrot.slane %v872_v59, 2  ;;  %v2065_v4 = vsel %vm12661_vm15, %v2048_v40, %v1566_v25  ;;  %vm12664_vm6 = vmmov %vm12658_vm9  ;;  %vm12668_vm9 = vcmask 1045504  }
  0xca   :  { %v6807_v52 = vpop.permute.xlu0 %1373  ;;  %v6809_v43 = vpop.permute.xlu1 %836  ;;  %v2181_v61 = vsel %vm12664_vm6, %v2165_v37, %v1854_v53  ;;  %v2083_v25 = vsel %vm12417_vm2, %v2066_v35, %v1615_v24  ;;  %v2082_v53 = vsel %vm12417_vm2, %v2065_v4, %v1614_v62  ;;  %vm12667_vm5 = vmmov %vm12666_vm0  ;;  %v6857_v35 = vld [vmem:[%s12359_s2] sm:$0xff]  ;;  %vm12415_vm6 = vcmask 130048  }
  0xcb   :  { %12659 = vst [vmem:[#allocation32_spill] sm:$0xff] %v6807_v52  ;;  %12660 = vst [vmem:[#allocation33_spill] sm:$0xff] %v6809_v43  ;;  %v1420_v60 = vsel %vm12662_vm11, %v6807_v52, %v6711_v27  ;;  %v854_v45 = vsel %vm12663_vm13, %v6809_v43, %v807_v1  ;;  %v2197_v27 = vsel %vm12417_vm2, %v2181_v61, %v1902_v57  ;;  %v29_v43 = vadd.s32 256, %v6495_v42 }
  0xcc   :  { %v1438_v30 = vsel %vm12665_vm7, %v1420_v60, 0.0  ;;  %v871_v63 = vsel %vm12411_vm1, %v854_v45, 0.0  ;;  %982 = vrot.lane.b32.xlu0 %v6614_v21, %s6166_s26  ;;  %984 = vrot.lane.b32.xlu1 %v6618_v51, %s6166_s26  ;;  %v2100_v37 = vsel %vm12666_vm0, %v2083_v25, %v1663_v49  ;;  %v2213_v38 = vsel %vm12667_vm5, %v2197_v27, %v1950_v20  ;;  %vm12669_vm15 = vmmov %vm12666_vm0  ;;  %12672 = vst [vmem:[#allocation34_spill] sm:$0xff] %v6857_v35  ;;  %v6905_v27 = vld [vmem:[%s12359_s2 + $0x8] sm:$0xff] }
  0xcd   :  { %v1998_v33 = vrot.slane %v1438_v30, 2  ;;  %v1710_v1 = vrot.slane %v871_v63, 2  ;;  %v2117_v40 = vsel %vm12668_vm9, %v2100_v37, %v1711_v55  ;;  %v2099_v59 = vsel %vm12669_vm15, %v2082_v53, %v1662_v56  ;;  %vm12670_vm11 = vmmov %vm12668_vm9  ;;  %12677 = vst [vmem:[#allocation38_spill] sm:$0xff] %v6905_v27 }
  0xce   :  { %v6832_v2 = vpop.permute.xlu0 %974  ;;  %v6834_v28 = vpop.permute.xlu1 %976  ;;  %vm12671_vm13 = vmmov %vm12668_vm9  ;;  %v2134_v58 = vsel %vm12416_vm10, %v2117_v40, %v6244_v6  ;;  %v12673_v20 = vmov 0.0   ;;  %v6884_v4 = vrot.slane %v6268_v10, %v6234_v3  ;;  %v6888_v60 = vrot.slane %v6268_v10, %v6240_v5 }
  0xcf   :  { %v2229_v57 = vsel %vm12670_vm11, %v2213_v38, %v1998_v33  ;;  %v2116_v24 = vsel %vm12671_vm13, %v2099_v59, %v1710_v1  ;;  %v6921_v1 = vld [vmem:[%s12359_s2 + $0x10] sm:$0xff]  ;;  %v6937_v38 = vld [vmem:[%s12359_s2 + $0x18] sm:$0xff]  ;;  %v30_v52 = vadd.s32 384, %v6495_v42  ;;  %v6998_v16 = vand.u32 127, %v29_v43 }
  0xd0   :  { %413 = vrot.lane.b32.xlu0 %v6396_v19, %s6167_s27  ;;  %415 = vrot.lane.b32.xlu1 %v6614_v21, %s6167_s27  ;;  %v2133_v32 = vsel %vm12416_vm10, %v2116_v24, %v6248_v7  ;;  %12674 = vst [vmem:[#allocation35_spill] sm:$0xff] %v6884_v4  ;;  %12675 = vst [vmem:[#allocation36_spill] sm:$0xff] %v6888_v60  ;;  %vm12685_vm15 = vcmp.lt.s32.totalorder %v6495_v42, 126  ;;  %vm12687_vm3 = vcmp.lt.s32.totalorder %v6495_v42, 6 }
  0xd1   :  { %5626 = vmatpush1.msk.msra.mxu0 %vm12416_vm10, %v2229_v57  ;;  %12678 = vst [vmem:[#allocation39_spill] sm:$0xff] %v6921_v1  ;;  %12679 = vst [vmem:[#allocation40_spill] sm:$0xff] %v6937_v38  ;;  %v6953_v57 = vld [vmem:[%s12359_s2 + $0x20] sm:$0xff]  ;;  %vm1019_vm7 = vcmp.lt.s32.totalorder %v6998_v16, 126  ;;  %vm452_vm5 = vcmp.ge.s32.totalorder %v6998_v16, 6  ;;  %vm1100_vm13 = vcmp.lt.s32.totalorder %v6998_v16, 125 }
  0xd2   :  { %2342 = vmatprep.subr.mxu0 %v2134_v58  ;;  %v6850_v62 = vpop.permute.xlu0 %405  ;;  %v6852_v49 = vpop.permute.xlu1 %407  ;;  %12680 = vst [vmem:[#allocation41_spill] sm:$0xff] %v6953_v57  ;;  %12681 = vst [vmem:[#allocation42_spill] sm:$0xff] %v6998_v16  ;;  %vm1181_vm4 = vcmp.lt.s32.totalorder %v6998_v16, 124 }
  0xd3   :  { %2343 = vmatpush1.msra.mxu0 %v2133_v32  ;;  %vm12686_vm11 = vmmov %vm12685_vm15 }
  0xd4   :  { %1063 = vrot.lane.b32.xlu0 %v6614_v21, %s6168_s30  ;;  %1065 = vrot.lane.b32.xlu1 %v6618_v51, %s6168_s30 }
  0xd5   :  { %5627 = vmatmul.mubr.msk.f32.vlgmr.msra.gmra.mxu0 %vm12415_vm6, %v6857_v35 }
  0xd6   :  { %v6865_v6 = vpop.permute.xlu0 %1055  ;;  %v6867_v7 = vpop.permute.xlu1 %1057  ;;  %2382 = vmatprep.mubr.f32.mxu0 %v12673_v20 }
  0xd8   :  { %494 = vrot.lane.b32.xlu0 %v6396_v19, %s6169_s8  ;;  %496 = vrot.lane.b32.xlu1 %v6614_v21, %s6169_s8 }
  0xd9   :  { %5628 = vmatmul.mubr.msk.f32.gmra.mxu0 %vm12415_vm6, %v6905_v27  ;;  %v447_v27 = vsel %vm12687_vm3, %v6420_v23, %v6850_v62 }
  0xda   :  { %v6874_v56 = vpop.permute.xlu0 %486  ;;  %v6876_v55 = vpop.permute.xlu1 %488  ;;  %2388 = vmatprep.mubr.f32.mxu0 %v12673_v20 }
  0xdc   :  { %901 = vrot.lane.b32.xlu0 %v6614_v21, %s6170_s9  ;;  %903 = vrot.lane.b32.xlu1 %v6618_v51, %s6170_s9 }
  0xdd   :  { %5629 = vmatmul.mubr.msk.f32.gmra.mxu0 %vm12415_vm6, %v6921_v1  ;;  %v7012_v1 = vand.u32 127, %v32_v17  ;;  %v1012_v17 = vsel %vm12686_vm11, %v6832_v2, %v6834_v28  ;;  %vm12688_vm11 = vmmov %vm12687_vm3 }
  0xde   :  { %v6890_v45 = vpop.permute.xlu0 %893  ;;  %v6892_v61 = vpop.permute.xlu1 %895  ;;  %2394 = vmatprep.mubr.f32.mxu0 %v12673_v20 }
  0xdf   :  { %12684 = vst [vmem:[#allocation45_spill] sm:$0xff] %v7012_v1 }
  0xe0   :  { %986 = vrot.lane.b32.xlu0 %v6884_v4, %s6166_s26  ;;  %988 = vrot.lane.b32.xlu1 %v6888_v60, %s6166_s26 }
  0xe1   :  { %5630 = vmatmul.mubr.msk.f32.gmra.mxu0 %vm12415_vm6, %v6937_v38  ;;  %v7010_v38 = vand.u32 127, %v31_v11  ;;  %v1013_v11 = vsel %vm12685_vm15, %v6418_v22, %v6832_v2  ;;  %vm12434_vm15 = vcmp.lt.s32.totalorder %v6998_v16, 127  ;;  %v446_v22 = vsel %vm12688_vm11, %v6850_v62, %v6852_v49 }
  0xe2   :  { %v6898_v30 = vpop.permute.xlu0 %978  ;;  %v6900_v63 = vpop.permute.xlu1 %980  ;;  %2400 = vmatprep.mubr.f32.mxu0 %v12673_v20  ;;  %v1035_v23 = vsel %vm1019_vm7, %v1013_v11, 0.0  ;;  %v7062_v62 = vsel %vm452_vm5, %v447_v27, 0.0  ;;  %vm12690_vm11 = vcmp.lt.s32.totalorder %v6495_v42, 125  ;;  %vm371_vm7 = vcmp.ge.s32.totalorder %v6998_v16, 7 }
  0xe3   :  { %12676 = vst [vmem:[#allocation37_spill] sm:$0xff] %v6900_v63  ;;  %12683 = vst [vmem:[#allocation44_spill] sm:$0xff] %v7010_v38  ;;  %vm1021_vm3 = vcmp.lt.s32.totalorder %v7010_v38, 126  ;;  %v1094_v11 = vsel %vm12690_vm11, %v6434_v26, %v6865_v6  ;;  %v7085_v26 = vrot.slane %v6268_v10, %v6347_v12  ;;  %v7089_v27 = vrot.slane %v6268_v10, %v6350_v13 }
  0xe4   :  { %1144 = vrot.lane.b32.xlu0 %v6614_v21, %s6171_s10  ;;  %1146 = vrot.lane.b32.xlu1 %v6618_v51, %s6171_s10  ;;  %vm12691_vm14 = vmmov %vm12690_vm11  ;;  %v1472_v12 = vrot.slane %v7062_v62, 7  ;;  %v1116_v10 = vsel %vm1100_vm13, %v1094_v11, 0.0  ;;  %vm12696_vm5 = vcmp.lt.s32.totalorder %v6495_v42, 5  ;;  %vm1262_vm13 = vcmp.lt.s32.totalorder %v6998_v16, 123 }
  0xe5   :  { %5631 = vmatmul.mubr.msk.f32.gmra.mxu0 %vm12415_vm6, %v6953_v57  ;;  %v7000_v57 = vand.u32 127, %v30_v52  ;;  %vm533_vm6 = vcmp.ge.s32.totalorder %v6998_v16, 5  ;;  %v1093_v8 = vsel %vm12691_vm14, %v6865_v6, %v6867_v7  ;;  %12692 = vst [vmem:[#allocation47_spill] sm:$0xff] %v7085_v26  ;;  %12693 = vst [vmem:[#allocation48_spill] sm:$0xff] %v7089_v27  ;;  %vm12694_vm14 = vcmp.lt.s32.totalorder %v6495_v42, 127 }
  0xe6   :  { %v6913_v25 = vpop.permute.xlu0 %1136  ;;  %v6915_v33 = vpop.permute.xlu1 %1138  ;;  %2566 = vmatprep.mubr.f32.mxu0 %v12673_v20  ;;  %v932_v6 = vsel %vm12694_vm14, %v6452_v31, %v6890_v45 }
  0xe7   :  { %12682 = vst [vmem:[#allocation43_spill] sm:$0xff] %v7000_v57  ;;  %vm1020_vm0 = vcmp.lt.s32.totalorder %v7000_v57, 126  ;;  %vm453_vm9 = vcmp.ge.s32.totalorder %v7000_v57, 6  ;;  %vm1101_vm1 = vcmp.lt.s32.totalorder %v7000_v57, 125  ;;  %vm534_vm10 = vcmp.ge.s32.totalorder %v7000_v57, 5 }
  0xe8   :  { %332 = vrot.lane.b32.xlu0 %v6396_v19, %s6172_s11  ;;  %334 = vrot.lane.b32.xlu1 %v6614_v21, %s6172_s11  ;;  %vm12437_vm2 = vcmp.lt.s32.totalorder %v7000_v57, 127  ;;  %v1036_v2 = vsel %vm1020_vm0, %v1012_v17, 0.0  ;;  %vm1182_vm8 = vcmp.lt.s32.totalorder %v7000_v57, 124  ;;  %vm372_vm0 = vcmp.ge.s32.totalorder %v7000_v57, 7 }
  0xe9   :  { %v7072_v17 = vsel %vm453_vm9, %v446_v22, 0.0  ;;  %v1760_v22 = vrot.slane %v1035_v23, 7  ;;  %v1761_v14 = vrot.slane %v1036_v2, 7  ;;  %vm12695_vm9 = vmmov %vm12694_vm14  ;;  %vm615_vm11 = vcmp.ge.s32.totalorder %v7000_v57, 4 }
  0xea   :  { %v6929_v37 = vpop.permute.xlu0 %324  ;;  %v6931_v53 = vpop.permute.xlu1 %326  ;;  %v931_v54 = vsel %vm12695_vm9, %v6890_v45, %v6892_v61  ;;  %v528_v23 = vsel %vm12696_vm5, %v6444_v29, %v6874_v56  ;;  %vm12697_vm14 = vmmov %vm12696_vm5  ;;  %v1473_v13 = vrot.slane %v7072_v17, 7  ;;  %v1117_v62 = vsel %vm1101_vm1, %v1093_v8, 0.0 }
  0xeb   :  { %v527_v31 = vsel %vm12697_vm14, %v6874_v56, %v6876_v55  ;;  %v1175_v11 = vsel %vm12431_vm12, %v6466_v34, %v6913_v25  ;;  %v1174_v29 = vsel %vm12431_vm12, %v6913_v25, %v6915_v33  ;;  %vm1263_vm5 = vcmp.lt.s32.totalorder %v7000_v57, 123 }
  0xec   :  { %417 = vrot.lane.b32.xlu0 %v6618_v51, %s6167_s27  ;;  %419 = vrot.lane.b32.xlu1 %v6884_v4, %s6167_s27  ;;  %v954_v56 = vsel %vm12434_vm15, %v932_v6, 0.0  ;;  %v955_v8 = vsel %vm12437_vm2, %v931_v54, 0.0  ;;  %vm12698_vm1 = vcmp.lt.s32.totalorder %v6495_v42, 126  ;;  %vm12699_vm9 = vcmp.lt.s32.totalorder %v6495_v42, 7 }
  0xed   :  { %v1011_v34 = vsel %vm12698_vm1, %v6834_v28, %v6898_v30  ;;  %v366_v25 = vsel %vm12699_vm9, %v6474_v36, %v6929_v37  ;;  %vm454_vm14 = vcmp.ge.s32.totalorder %v7010_v38, 6  ;;  %vm455_vm12 = vcmp.ge.s32.totalorder %v7012_v1, 6 }
  0xee   :  { %v6945_v40 = vpop.permute.xlu0 %409  ;;  %v6947_v59 = vpop.permute.xlu1 %411  ;;  %v1808_v54 = vrot.slane %v1116_v10, 6  ;;  %v549_v17 = vsel %vm533_vm6, %v528_v23, 0.0  ;;  %v550_v28 = vsel %vm534_vm10, %v527_v31, 0.0  ;;  %v1010_v36 = vsel %vm12698_vm1, %v6898_v30, %v6900_v63 }
  0xef   :  { %vm1102_vm9 = vcmp.lt.s32.totalorder %v7010_v38, 125  ;;  %v1809_v6 = vrot.slane %v1117_v62, 6  ;;  %v1197_v27 = vsel %vm1181_vm4, %v1175_v11, 0.0  ;;  %v1198_v10 = vsel %vm1182_vm8, %v1174_v29, 0.0 }
  0xf0   :  { %575 = vrot.lane.b32.xlu0 %v6396_v19, %s6173_s12  ;;  %577 = vrot.lane.b32.xlu1 %v6614_v21, %s6173_s12  ;;  %vm12700_vm6 = vcmp.lt.s32.totalorder %v6495_v42, 7  ;;  %vm1103_vm10 = vcmp.lt.s32.totalorder %v7012_v1, 125  ;;  %vm12701_vm1 = vcmask 1040384   ;;  %v7172_v11 = vsel %vm1021_vm3, %v1011_v34, 0.0 }
  0xf1   :  { %v365_v23 = vsel %vm12700_vm6, %v6929_v37, %v6931_v53  ;;  %v2151_v30 = vsel %vm12701_vm1, %v954_v56, %v1760_v22  ;;  %vm12702_vm15 = vmmov %vm12701_vm1  ;;  %v387_v29 = vsel %vm371_vm7, %v366_v25, 0.0  ;;  %v1520_v63 = vrot.slane %v549_v17, 6 }
  0xf2   :  { %v6961_v24 = vpop.permute.xlu0 %567  ;;  %v6963_v32 = vpop.permute.xlu1 %569  ;;  %v2152_v62 = vsel %vm12702_vm15, %v955_v8, %v1761_v14  ;;  %vm12703_vm4 = vcmp.lt.s32.totalorder %v7012_v1, 126  ;;  %vm12704_vm8 = vcmp.lt.s32.totalorder %v6495_v42, 4  ;;  %vm695_vm15 = vcmp.ge.s32.totalorder %v6998_v16, 3 }
  0xf3   :  { %v7178_v37 = vsel %vm12703_vm4, %v1010_v36, 0.0  ;;  %v609_v22 = vsel %vm12704_vm8, %v6484_v39, %v6961_v24  ;;  %vm1343_vm6 = vcmp.lt.s32.totalorder %v6998_v16, 122  ;;  %v1856_v14 = vrot.slane %v1197_v27, 5  ;;  %vm12705_vm7 = vmmov %vm12704_vm8 }
  0xf4   :  { %1067 = vrot.lane.b32.xlu0 %v6884_v4, %s6168_s30  ;;  %1069 = vrot.lane.b32.xlu1 %v6888_v60, %s6168_s30  ;;  %v1857_v56 = vrot.slane %v1198_v10, 5  ;;  %v388_v8 = vsel %vm372_vm0, %v365_v23, 0.0  ;;  %v608_v39 = vsel %vm12705_vm7, %v6961_v24, %v6963_v32  ;;  %vm696_vm1 = vcmp.ge.s32.totalorder %v7000_v57, 3 }
  0xf5   :  { %vm12706_vm4 = vcmask 1041408   ;;  %v1762_v17 = vrot.slane %v7172_v11, 7  ;;  %vm12708_vm2 = vcmask 1040384   ;;  %v1763_v10 = vrot.slane %v7178_v37, 7 }
  0xf6   :  { %v6970_v58 = vpop.permute.xlu0 %1059  ;;  %v6972_v3 = vpop.permute.xlu1 %1061  ;;  %v2167_v34 = vsel %vm12706_vm4, %v2151_v30, %v1808_v54  ;;  %vm12707_vm8 = vmmov %vm12706_vm4  ;;  %vm12709_vm0 = vcmp.ge.s32.totalorder %v6998_v16, 4  ;;  %vm12710_vm7 = vcmp.lt.s32.totalorder %v6495_v42, 123  ;;  %vm12712_vm4 = vcmask 1040384  }
  0xf7   :  { %v2168_v25 = vsel %vm12707_vm8, %v2152_v62, %v1809_v6  ;;  %v630_v24 = vsel %vm12709_vm0, %v609_v22, 0.0  ;;  %v2034_v6 = vsel %vm12712_vm4, %v388_v8, %v1473_v13  ;;  %vm12713_vm8 = vcmp.lt.s32.totalorder %v6495_v42, 6 }
  0xf8   :  { %1225 = vrot.lane.b32.xlu0 %v6614_v21, %s6174_s13  ;;  %1227 = vrot.lane.b32.xlu1 %v6618_v51, %s6174_s13  ;;  %v445_v23 = vsel %vm12713_vm8, %v6852_v49, %v6945_v40  ;;  %vm12714_vm0 = vmmov %vm12713_vm8  ;;  %vm12716_vm4 = vcmp.lt.s32.totalorder %v6495_v42, 125  ;;  %vm1424_vm8 = vcmp.lt.s32.totalorder %v6998_v16, 121  ;;  %v1568_v62 = vrot.slane %v630_v24, 5 }
  0xf9   :  { %v444_v30 = vsel %vm12714_vm0, %v6945_v40, %v6947_v59  ;;  %v1092_v13 = vsel %vm12716_vm4, %v6867_v7, %v6970_v58  ;;  %vm1425_vm0 = vcmp.lt.s32.totalorder %v7000_v57, 121  ;;  %vm12719_vm3 = vmmov %vm12716_vm4  ;;  %vm12720_vm4 = vcmask 1041408  }
  0xfa   :  { %v6978_v5 = vpop.permute.xlu0 %1217  ;;  %v6980_v48 = vpop.permute.xlu1 %1219 }
  0xfb   :  { %v1256_v54 = vsel %vm12710_vm7, %v6503_v44, %v6978_v5  ;;  %v631_v44 = vsel %vm615_vm11, %v608_v39, 0.0  ;;  %vm12717_vm11 = vcmask 1042432  }
  0xfc   :  { %498 = vrot.lane.b32.xlu0 %v6618_v51, %s6169_s8  ;;  %500 = vrot.lane.b32.xlu1 %v6884_v4, %s6169_s8  ;;  %v2184_v49 = vsel %vm12717_vm11, %v2168_v25, %v1857_v56  ;;  %v1569_v39 = vrot.slane %v631_v44, 5 }
  0xfe   :  { %v6988_v47 = vpop.permute.xlu0 %490  ;;  %v6990_v46 = vpop.permute.xlu1 %492 }
 0x100   :  { %656 = vrot.lane.b32.xlu0 %v6396_v19, %s6175_s14  ;;  %658 = vrot.lane.b32.xlu1 %v6614_v21, %s6175_s14 }
 0x102   :  { %v7002_v15 = vpop.permute.xlu0 %648  ;;  %v7004_v18 = vpop.permute.xlu1 %650 }
 0x104   :  { %905 = vrot.lane.b32.xlu0 %v6884_v4, %s6170_s9  ;;  %907 = vrot.lane.b32.xlu1 %v6888_v60, %s6170_s9 }
 0x106   :  { %v7018_v52 = vpop.permute.xlu0 %897  ;;  %v7020_v43 = vpop.permute.xlu1 %899 }
 0x108   :  { %1148 = vrot.lane.b32.xlu0 %v6884_v4, %s6171_s10  ;;  %1150 = vrot.lane.b32.xlu1 %v6888_v60, %s6171_s10 }
 0x10a   :  { %v7056_v20 = vpop.permute.xlu0 %1140  ;;  %v7058_v35 = vpop.permute.xlu1 %1142 }
 0x10b   :  { %12689 = vst [vmem:[#allocation46_spill] sm:$0xff] %v7058_v35  ;;  %v1521_v35 = vrot.slane %v550_v28, 6  ;;  %v2033_v28 = vsel %vm12708_vm2, %v387_v29, %v1472_v12  ;;  %vm12711_vm2 = vmmov %vm12710_vm7  ;;  %v1091_v29 = vsel %vm12719_vm3, %v6970_v58, %v6972_v3  ;;  %v7261_v58 = vsel %vm455_vm12, %v444_v30, 0.0 }
 0x10c   :  { %1306 = vrot.lane.b32.xlu0 %v6614_v21, %s6176_s15  ;;  %1308 = vrot.lane.b32.xlu1 %v6618_v51, %s6176_s15  ;;  %v1255_v12 = vsel %vm12711_vm2, %v6978_v5, %v6980_v48  ;;  %vm12715_vm2 = vcmask 1041408   ;;  %vm12718_vm7 = vmmov %vm12717_vm11  ;;  %vm536_vm3 = vcmp.ge.s32.totalorder %v7012_v1, 5  ;;  %vm1183_vm11 = vcmp.lt.s32.totalorder %v7010_v38, 124 }
 0x10d   :  { %v2050_v5 = vsel %vm12715_vm2, %v2033_v28, %v1520_v63  ;;  %v2183_v40 = vsel %vm12718_vm7, %v2167_v34, %v1856_v14  ;;  %v1278_v63 = vsel %vm1262_vm13, %v1256_v54, 0.0  ;;  %v1279_v7 = vsel %vm1263_vm5, %v1255_v12, 0.0 }
 0x10e   :  { %v7111_v2 = vpop.permute.xlu0 %1298  ;;  %v7113_v45 = vpop.permute.xlu1 %1300  ;;  %vm12438_vm2 = vcmp.lt.s32.totalorder %v7012_v1, 127  ;;  %v2051_v56 = vsel %vm12720_vm4, %v2034_v6, %v1521_v35  ;;  %v7257_v14 = vsel %vm454_vm14, %v445_v23, 0.0  ;;  %v7265_v34 = vsel %vm1102_vm9, %v1092_v13, 0.0 }
 0x10f   :  { %vm12721_vm13 = vcmp.lt.s32.totalorder %v6495_v42, 3  ;;  %vm12722_vm5 = vcmp.lt.s32.totalorder %v6495_v42, 122  ;;  %vm776_vm14 = vcmp.ge.s32.totalorder %v6998_v16, 2  ;;  %vm777_vm9 = vcmp.ge.s32.totalorder %v7000_v57, 2 }
 0x110   :  { %336 = vrot.lane.b32.xlu0 %v6618_v51, %s6172_s11  ;;  %338 = vrot.lane.b32.xlu1 %v6884_v4, %s6172_s11  ;;  %v690_v25 = vsel %vm12721_vm13, %v6524_v50, %v7002_v15  ;;  %v1337_v35 = vsel %vm12722_vm5, %v6600_v0, %v7111_v2  ;;  %vm12723_vm12 = vmmov %vm12722_vm5  ;;  %v7287_v50 = vsel %vm1103_vm10, %v1091_v29, 0.0  ;;  %v1904_v0 = vrot.slane %v1278_v63, 4 }
 0x111   :  { %v1336_v28 = vsel %vm12723_vm12, %v7111_v2, %v7113_v45  ;;  %v1905_v24 = vrot.slane %v1279_v7, 4  ;;  %vm12724_vm7 = vmmov %vm12721_vm13  ;;  %v1474_v54 = vrot.slane %v7257_v14, 7  ;;  %v1475_v12 = vrot.slane %v7261_v58, 7 }
 0x112   :  { %v7164_v31 = vpop.permute.xlu0 %328  ;;  %v7166_v26 = vpop.permute.xlu1 %330  ;;  %v689_v2 = vsel %vm12724_vm7, %v7002_v15, %v7004_v18  ;;  %vm12725_vm4 = vcmask 1042432   ;;  %vm12726_vm10 = vcmp.lt.s32.totalorder %v6495_v42, 5  ;;  %vm1184_vm13 = vcmp.lt.s32.totalorder %v7012_v1, 124 }
 0x113   :  { %v7298_v6 = vsel %vm12725_vm4, %v2050_v5, %v1568_v62  ;;  %v526_v23 = vsel %vm12726_vm10, %v6876_v55, %v6988_v47  ;;  %vm12727_vm5 = vmmov %vm12725_vm4  ;;  %v7314_v13 = vsel %vm695_vm15, %v690_v25, 0.0  ;;  %v1359_v5 = vsel %vm1343_vm6, %v1337_v35, 0.0 }
 0x114   :  { %579 = vrot.lane.b32.xlu0 %v6618_v51, %s6173_s12  ;;  %581 = vrot.lane.b32.xlu1 %v6884_v4, %s6173_s12  ;;  %v7310_v15 = vsel %vm12727_vm5, %v2051_v56, %v1569_v39  ;;  %vm12728_vm12 = vcmp.lt.s32.totalorder %v7000_v57, 122  ;;  %v1810_v55 = vrot.slane %v7265_v34, 6  ;;  %v1811_v29 = vrot.slane %v7287_v50, 6  ;;  %vm12731_vm6 = vmmov %vm12726_vm10 }
 0x115   :  { %v1360_v62 = vsel %vm12728_vm12, %v1336_v28, 0.0  ;;  %v712_v63 = vsel %vm696_vm1, %v689_v2, 0.0  ;;  %vm12729_vm7 = vcmp.lt.s32.totalorder %v6495_v42, 127  ;;  %vm12730_vm15 = vcmp.ge.s32.totalorder %v7010_v38, 5 }
 0x116   :  { %v7203_v27 = vpop.permute.xlu0 %571  ;;  %v7205_v36 = vpop.permute.xlu1 %573  ;;  %v930_v7 = vsel %vm12729_vm7, %v6892_v61, %v7018_v52  ;;  %v7334_v56 = vsel %vm12730_vm15, %v526_v23, 0.0  ;;  %v525_v39 = vsel %vm12731_vm6, %v6988_v47, %v6990_v46  ;;  %vm373_vm1 = vcmp.ge.s32.totalorder %v7010_v38, 7 }
 0x117   :  { %vm12732_vm4 = vcmask 1043456   ;;  %vm12439_vm5 = vcmp.ge.s32.totalorder %v6998_v16, 1  ;;  %vm12440_vm12 = vcmp.ge.s32.totalorder %v7000_v57, 1  ;;  %v1616_v25 = vrot.slane %v7314_v13, 4 }
 0x118   :  { %737 = vrot.lane.b32.xlu0 %v6396_v19, %s6177_s16  ;;  %739 = vrot.lane.b32.xlu1 %v6614_v21, %s6177_s16  ;;  %v2200_v34 = vsel %vm12732_vm4, %v2184_v49, %v1905_v24  ;;  %vm12733_vm10 = vmmov %vm12732_vm4  ;;  %v929_v35 = vsel %vm12729_vm7, %v7018_v52, %v7020_v43  ;;  %v1952_v28 = vrot.slane %v1359_v5, 3  ;;  %v1953_v2 = vrot.slane %v1360_v62, 3 }
 0x119   :  { %v2199_v61 = vsel %vm12733_vm10, %v2183_v40, %v1904_v0  ;;  %v1617_v49 = vrot.slane %v712_v63, 4  ;;  %vm12734_vm6 = vcmp.lt.s32.totalorder %v7010_v38, 127  ;;  %vm12735_vm4 = vcmp.lt.s32.totalorder %v6495_v42, 121 }
 0x11a   :  { %v730_v22 = vpop.permute.xlu0 %729  ;;  %v7252_v8 = vpop.permute.xlu1 %731  ;;  %v956_v40 = vsel %vm12734_vm6, %v930_v7, 0.0  ;;  %vm12736_vm10 = vmmov %vm12735_vm4  ;;  %vm12737_vm7 = vcmp.lt.s32.totalorder %v6495_v42, 2  ;;  %vm12739_vm6 = vcmp.lt.s32.totalorder %v6495_v42, 124 }
 0x11b   :  { %v771_v52 = vsel %vm12737_vm7, %v6659_v9, %v730_v22  ;;  %vm12738_vm15 = vmmov %vm12737_vm7  ;;  %v1173_v9 = vsel %vm12739_vm6, %v6915_v33, %v7056_v20 }
 0x11c   :  { %1229 = vrot.lane.b32.xlu0 %v6884_v4, %s6174_s13  ;;  %1231 = vrot.lane.b32.xlu1 %v6888_v60, %s6174_s13  ;;  %v770_v13 = vsel %vm12738_vm15, %v730_v22, %v7252_v8  ;;  %vm1264_vm15 = vcmp.lt.s32.totalorder %v7010_v38, 123  ;;  %v792_v11 = vsel %vm776_vm14, %v771_v52, 0.0  ;;  %vm1346_vm14 = vcmp.lt.s32.totalorder %v7012_v1, 122 }
 0x11e   :  { %v7305_v30 = vpop.permute.xlu0 %1221  ;;  %v7307_v44 = vpop.permute.xlu1 %1223 }
 0x120   :  { %1387 = vrot.lane.b32.xlu0 %v6614_v21, %s6178_s17  ;;  %1389 = vrot.lane.b32.xlu1 %v6618_v51, %s6178_s17 }
 0x122   :  { %v1380_v47 = vpop.permute.xlu0 %1379  ;;  %v7351_v23 = vpop.permute.xlu1 %1381 }
 0x123   :  { %v1418_v0 = vsel %vm12735_vm4, %v6743_v41, %v1380_v47  ;;  %v1417_v24 = vsel %vm12736_vm10, %v1380_v47, %v7351_v23  ;;  %v957_v41 = vsel %vm12438_vm2, %v929_v35, 0.0  ;;  %v12741_v47 = vld [vmem:[#allocation46_spill] sm:$0xff]  ;;  %vm1265_vm4 = vcmp.lt.s32.totalorder %v7012_v1, 123 }
 0x124   :  { %v1440_v5 = vsel %vm1424_vm8, %v1418_v0, 0.0  ;;  %v1441_v62 = vsel %vm1425_vm0, %v1417_v24, 0.0  ;;  %660 = vrot.lane.b32.xlu0 %v6618_v51, %s6175_s14  ;;  %662 = vrot.lane.b32.xlu1 %v6884_v4, %s6175_s14  ;;  %vm12740_vm8 = vcmask 1040384   ;;  %vm12742_vm0 = vmmov %vm12739_vm6  ;;  %vm12743_vm10 = vcmask 1044480  }
 0x125   :  { %v2000_v22 = vrot.slane %v1440_v5, 2  ;;  %v2001_v63 = vrot.slane %v1441_v62, 2  ;;  %v2153_v7 = vsel %vm12740_vm8, %v956_v40, %v1762_v17  ;;  %v1172_v0 = vsel %vm12742_vm0, %v7056_v20, %v12741_v47  ;;  %vm12744_vm7 = vmmov %vm12743_vm10 }
 0x126   :  { %v7390_v35 = vpop.permute.xlu0 %652  ;;  %v7392_v24 = vpop.permute.xlu1 %654  ;;  %v2216_v33 = vsel %vm12743_vm10, %v2200_v34, %v1953_v2  ;;  %v2215_v5 = vsel %vm12744_vm7, %v2199_v61, %v1952_v28  ;;  %vm616_vm6 = vcmp.ge.s32.totalorder %v7010_v38, 4  ;;  %vm617_vm8 = vcmp.ge.s32.totalorder %v7012_v1, 4 }
 0x127   :  { %v793_v20 = vsel %vm777_vm9, %v770_v13, 0.0  ;;  %vm12745_vm0 = vcmask 1045504   ;;  %v1522_v62 = vrot.slane %v7334_v56, 6  ;;  %v7407_v34 = vsel %vm536_vm3, %v525_v39, 0.0 }
 0x128   :  { %v2232_v17 = vsel %vm12745_vm0, %v2216_v33, %v2001_v63  ;;  %vm12746_vm2 = vmmov %vm12745_vm0  ;;  %vm12747_vm10 = vcmask 1040384   ;;  %v1199_v28 = vsel %vm1183_vm11, %v1173_v9, 0.0  ;;  %818 = vrot.lane.b32.xlu0 %v6396_v19, %s6179_s18  ;;  %820 = vrot.lane.b32.xlu1 %v6614_v21, %s6179_s18  ;;  %v1200_v39 = vsel %vm1184_vm13, %v1172_v0, 0.0 }
 0x129   :  { %v2231_v40 = vsel %vm12746_vm2, %v2215_v5, %v2000_v22  ;;  %v2154_v61 = vsel %vm12747_vm10, %v957_v41, %v1763_v10  ;;  %vm1345_vm2 = vcmp.lt.s32.totalorder %v7010_v38, 122  ;;  %vm12748_vm9 = vcmp.lt.s32.totalorder %v6495_v42, 7 }
 0x12a   :  { %v364_v37 = vsel %vm12748_vm9, %v6931_v53, %v7164_v31  ;;  %vm12749_vm3 = vcmask 1046528   ;;  %vm12750_vm11 = vcmask 1043456   ;;  %vm12752_vm0 = vcmask 1041408   ;;  %vm12753_vm10 = vmmov %vm12748_vm9  ;;  %v811_v53 = vpop.permute.xlu0 %810  ;;  %v7437_v22 = vpop.permute.xlu1 %812 }
 0x12b   :  { %5632 = vmatprep.subr.msk.mxu1 %vm12749_vm3, %v2232_v17  ;;  %v2085_v10 = vsel %vm12750_vm11, %v7310_v15, %v1617_v49  ;;  %vm12751_vm7 = vmmov %vm12750_vm11  ;;  %v2169_v52 = vsel %vm12752_vm0, %v2153_v7, %v1810_v55  ;;  %v363_v13 = vsel %vm12753_vm10, %v7164_v31, %v7166_v26  ;;  %v1664_v41 = vrot.slane %v792_v11, 3 }
 0x12c   :  { %v2084_v2 = vsel %vm12751_vm7, %v7298_v6, %v1616_v25  ;;  %v1665_v9 = vrot.slane %v793_v20, 3  ;;  %vm12754_vm13 = vmmov %vm12749_vm3  ;;  %v1858_v49 = vrot.slane %v1199_v28, 5  ;;  %vm697_vm3 = vcmp.ge.s32.totalorder %v7010_v38, 3  ;;  %v12756_v6 = vld [vmem:[#allocation31_spill] sm:$0xff]  ;;  %1310 = vrot.lane.b32.xlu0 %v6884_v4, %s6176_s15  ;;  %1312 = vrot.lane.b32.xlu1 %v6888_v60, %s6176_s15 }
 0x12d   :  { %5633 = vmatpush1.msk.msra.mxu1 %vm12754_vm13, %v2231_v40  ;;  %vm12755_vm9 = vmmov %vm12752_vm0  ;;  %vm698_vm11 = vcmp.ge.s32.totalorder %v7012_v1, 3  ;;  %vm12757_vm7 = vcmp.lt.s32.totalorder %v6495_v42, 1  ;;  %v1859_v25 = vrot.slane %v1200_v39, 5  ;;  %v389_v63 = vsel %vm373_vm1, %v364_v37, 0.0 }
 0x12e   :  { %v2170_v15 = vsel %vm12755_vm9, %v2154_v61, %v1811_v29  ;;  %v852_v31 = vsel %vm12757_vm7, %v12756_v6, %v811_v53  ;;  %vm12758_vm0 = vmmov %vm12757_vm7  ;;  %vm778_vm10 = vcmp.ge.s32.totalorder %v7010_v38, 2  ;;  %vm12759_vm9 = vcmp.ge.s32.totalorder %v7012_v1, 7  ;;  %v1303_v17 = vpop.permute.xlu0 %1302  ;;  %v7478_v40 = vpop.permute.xlu1 %1304 }
 0x12f   :  { %v851_v55 = vsel %vm12758_vm0, %v811_v53, %v7437_v22  ;;  %v873_v50 = vsel %vm12439_vm5, %v852_v31, 0.0  ;;  %v390_v7 = vsel %vm12759_vm9, %v363_v13, 0.0  ;;  %vm12760_vm1 = vcmp.lt.s32.totalorder %v6495_v42, 4 }
 0x130   :  { %v874_v29 = vsel %vm12440_vm12, %v851_v55, 0.0  ;;  %v607_v0 = vsel %vm12760_vm1, %v6963_v32, %v7203_v27  ;;  %v1712_v33 = vrot.slane %v873_v50, 2  ;;  %vm12761_vm5 = vcmp.lt.s32.totalorder %v6495_v42, 123  ;;  %741 = vrot.lane.b32.xlu0 %v6618_v51, %s6177_s16  ;;  %743 = vrot.lane.b32.xlu1 %v6884_v4, %s6177_s16 }
 0x131   :  { %v1713_v5 = vrot.slane %v874_v29, 2  ;;  %v1254_v11 = vsel %vm12761_vm5, %v6980_v48, %v7305_v30  ;;  %vm12762_vm9 = vmmov %vm12761_vm5  ;;  %vm12763_vm1 = vcmask 1044480   ;;  %vm12765_vm0 = vcmp.lt.s32.totalorder %v6495_v42, 4 }
 0x132   :  { %v1253_v20 = vsel %vm12762_vm9, %v7305_v30, %v7307_v44  ;;  %v2102_v32 = vsel %vm12763_vm1, %v2085_v10, %v1665_v9  ;;  %vm12764_vm12 = vmmov %vm12763_vm1  ;;  %v606_v28 = vsel %vm12765_vm0, %v7203_v27, %v7205_v36  ;;  %vm12766_vm5 = vcmp.lt.s32.totalorder %v6495_v42, 122  ;;  %v12770_v27 = vld [vmem:[#allocation10_spill] sm:$0xff]  ;;  %v734_v31 = vpop.permute.xlu0 %733  ;;  %v7521_v55 = vpop.permute.xlu1 %735 }
 0x133   :  { %v2101_v61 = vsel %vm12764_vm12, %v2084_v2, %v1664_v41  ;;  %v1335_v48 = vsel %vm12766_vm5, %v7113_v45, %v1303_v17  ;;  %vm12767_vm7 = vcmask 1045504   ;;  %v1523_v37 = vrot.slane %v7407_v34, 6  ;;  %vm12769_vm9 = vmmov %vm12766_vm5  ;;  %v12772_v45 = vld [vmem:[#allocation5_spill] sm:$0xff] }
 0x134   :  { %v2119_v39 = vsel %vm12767_vm7, %v2102_v32, %v1713_v5  ;;  %vm12768_vm13 = vmmov %vm12767_vm7  ;;  %v1334_v10 = vsel %vm12769_vm9, %v1303_v17, %v7478_v40  ;;  %vm12771_vm12 = vcmask 1046528   ;;  %vm12774_vm7 = vcmask 1042432   ;;  %1391 = vrot.lane.b32.xlu0 %v6884_v4, %s6178_s17  ;;  %1393 = vrot.lane.b32.xlu1 %v6888_v60, %s6178_s17 }
 0x135   :  { %v2118_v30 = vsel %vm12768_vm13, %v2101_v61, %v1712_v33  ;;  %v2136_v2 = vsel %vm12771_vm12, %v2119_v39, %v12770_v27  ;;  %vm12773_vm0 = vmmov %vm12771_vm12  ;;  %v2185_v41 = vsel %vm12774_vm7, %v2169_v52, %v1858_v49  ;;  %v1280_v9 = vsel %vm1264_vm15, %v1254_v11, 0.0  ;;  %v12790_v39 = vld [vmem:[#allocation38_spill] sm:$0xff] }
 0x136   :  { %v2135_v13 = vsel %vm12773_vm0, %v2118_v30, %v12772_v45  ;;  %vm12775_vm13 = vmmov %vm12774_vm7  ;;  %v1281_v53 = vsel %vm1265_vm4, %v1253_v20, 0.0  ;;  %2437 = vmatprep.subr.mxu1 %v2136_v2  ;;  %vm12449_vm1 = vcmp.ge.s32.totalorder %v7010_v38, 1  ;;  %vm12451_vm5 = vcmp.ge.s32.totalorder %v7012_v1, 1  ;;  %v1384_v32 = vpop.permute.xlu0 %1383  ;;  %v7556_v61 = vpop.permute.xlu1 %1385 }
 0x137   :  { %v2186_v34 = vsel %vm12775_vm13, %v2170_v15, %v1859_v25  ;;  %vm12776_vm9 = vcmask 1040384   ;;  %v632_v15 = vsel %vm616_vm6, %v607_v0, 0.0  ;;  %v633_v49 = vsel %vm617_vm8, %v606_v28, 0.0  ;;  %2438 = vmatpush1.msra.mxu1 %v2135_v13  ;;  %v12780_v25 = vld [vmem:[#allocation34_spill] sm:$0xff] }
 0x138   :  { %v2035_v6 = vsel %vm12776_vm9, %v389_v63, %v1474_v54  ;;  %vm12777_vm12 = vmmov %vm12776_vm9  ;;  %vm12778_vm15 = vcmp.lt.s32.totalorder %v6495_v42, 3  ;;  %v1361_v54 = vsel %vm1345_vm2, %v1335_v48, 0.0  ;;  %vm12781_vm6 = vcmask 130048   ;;  %822 = vrot.lane.b32.xlu0 %v6618_v51, %s6179_s18  ;;  %824 = vrot.lane.b32.xlu1 %v6884_v4, %s6179_s18 }
 0x139   :  { %v2036_v52 = vsel %vm12777_vm12, %v390_v7, %v1475_v12  ;;  %v688_v14 = vsel %vm12778_vm15, %v7004_v18, %v7390_v35  ;;  %vm12779_vm4 = vmmov %vm12778_vm15  ;;  %v1362_v12 = vsel %vm1346_vm14, %v1334_v10, 0.0  ;;  %5634 = vmatmul.mubr.msk.f32.vlgmr.msra.gmra.mxu1 %vm12781_vm6, %v12780_v25  ;;  %v1906_v63 = vrot.slane %v1280_v9, 4 }
 0x13a   :  { %v687_v58 = vsel %vm12779_vm4, %v7390_v35, %v7392_v24  ;;  %v1907_v50 = vrot.slane %v1281_v53, 4  ;;  %vm12782_vm8 = vcmp.lt.s32.totalorder %v6495_v42, 2  ;;  %vm12784_vm2 = vcmask 1041408   ;;  %v815_v53 = vpop.permute.xlu0 %814 }
 0x13b   :  { %v769_v18 = vsel %vm12782_vm8, %v7252_v8, %v734_v31  ;;  %vm12783_vm0 = vmmov %vm12782_vm8  ;;  %v2052_v35 = vsel %vm12784_vm2, %v2035_v6, %v1522_v62  ;;  %v1570_v0 = vrot.slane %v632_v15, 5  ;;  %v1571_v33 = vrot.slane %v633_v49, 5  ;;  %v7581_v6 = vpop.permute.xlu1 %816 }
 0x13c   :  { %v768_v29 = vsel %vm12783_vm0, %v734_v31, %v7521_v55  ;;  %vm12785_vm14 = vmmov %vm12784_vm2  ;;  %v12786_v5 = vmov 0.0   ;;  %v713_v8 = vsel %vm697_vm3, %v688_v14, 0.0  ;;  %v714_v11 = vsel %vm698_vm11, %v687_v58, 0.0  ;;  %12796 = vst [vmem:[#allocation46_spill] sm:$0xff] %v7581_v6  ;;  %v12803_v58 = vld [vmem:[#allocation39_spill] sm:$0xff] }
 0x13d   :  { %v2053_v7 = vsel %vm12785_vm14, %v2036_v52, %v1523_v37  ;;  %2477 = vmatprep.mubr.f32.mxu1 %v12786_v5  ;;  %v1954_v20 = vrot.slane %v1361_v54, 3  ;;  %v1955_v17 = vrot.slane %v1362_v12, 3  ;;  %v794_v56 = vsel %vm778_vm10, %v769_v18, 0.0  ;;  %vm12791_vm11 = vmmov %vm12781_vm6  ;;  %v12808_v18 = vld [vmem:[#allocation48_spill] sm:$0xff] }
 0x13e   :  { %vm12787_vm7 = vcmp.ge.s32.totalorder %v7012_v1, 2  ;;  %vm12788_vm13 = vcmp.lt.s32.totalorder %v6495_v42, 121  ;;  %5635 = vmatmul.mubr.msk.f32.gmra.mxu1 %vm12791_vm11, %v12790_v39  ;;  %vm12792_vm9 = vcmask 1043456   ;;  %vm12793_vm12 = vcmp.lt.s32.totalorder %v7010_v38, 121  ;;  %992 = vrot.lane.b32.xlu1 %v12808_v18, %s6166_s26  ;;  %v12838_v38 = vld [vmem:[#allocation37_spill] sm:$0xff] }
 0x13f   :  { %v795_v62 = vsel %vm12787_vm7, %v768_v29, 0.0  ;;  %v1416_v28 = vsel %vm12788_vm13, %v7351_v23, %v1384_v32  ;;  %vm12789_vm3 = vmmov %vm12788_vm13  ;;  %v2201_v30 = vsel %vm12792_vm9, %v2185_v41, %v1906_v63  ;;  %vm12794_vm10 = vcmp.lt.s32.totalorder %v7012_v1, 121  ;;  %2483 = vmatprep.mubr.f32.mxu1 %v12786_v5 }
 0x140   :  { %v1415_v48 = vsel %vm12789_vm3, %v1384_v32, %v7556_v61  ;;  %v1442_v37 = vsel %vm12793_vm12, %v1416_v28, 0.0  ;;  %vm12795_vm15 = vmmov %vm12792_vm9  ;;  %v1618_v27 = vrot.slane %v713_v8, 4  ;;  %v1619_v2 = vrot.slane %v714_v11, 4 }
 0x141   :  { %v1443_v10 = vsel %vm12794_vm10, %v1415_v48, 0.0  ;;  %v2202_v23 = vsel %vm12795_vm15, %v2186_v34, %v1907_v50  ;;  %v2002_v45 = vrot.slane %v1442_v37, 2  ;;  %v1666_v41 = vrot.slane %v794_v56, 3  ;;  %vm12804_vm7 = vmmov %vm12791_vm11  ;;  %v12807_v50 = vld [vmem:[#allocation47_spill] sm:$0xff]  ;;  %v12816_v56 = vld [vmem:[#allocation40_spill] sm:$0xff] }
 0x142   :  { %v2003_v13 = vrot.slane %v1443_v10, 2  ;;  %v1667_v9 = vrot.slane %v795_v62, 3  ;;  %vm12797_vm4 = vcmask 1044480   ;;  %vm12799_vm8 = vcmp.lt.s32.totalorder %v6495_v42, 1  ;;  %5636 = vmatmul.mubr.msk.f32.gmra.mxu1 %vm12804_vm7, %v12803_v58  ;;  %990 = vrot.lane.b32.xlu0 %v12807_v50, %s6166_s26  ;;  %vm12809_vm11 = vmmov %vm12792_vm9  ;;  %v12818_v62 = vld [vmem:[#allocation14_spill] sm:$0xff]  ;;  %v12820_v48 = vld [vmem:[#allocation11_spill] sm:$0xff] }
 0x143   :  { %v2218_v52 = vsel %vm12797_vm4, %v2202_v23, %v1955_v17  ;;  %vm12798_vm6 = vmmov %vm12797_vm4  ;;  %v850_v49 = vsel %vm12799_vm8, %v7437_v22, %v815_v53  ;;  %vm12801_vm2 = vcmask 1045504   ;;  %vm12805_vm13 = vcmask 1042432   ;;  %2489 = vmatprep.mubr.f32.mxu1 %v12786_v5  ;;  %423 = vrot.lane.b32.xlu1 %v12807_v50, %s6167_s27  ;;  %v12823_v23 = vld [vmem:[#allocation41_spill] sm:$0xff] }
 0x144   :  { %v2217_v15 = vsel %vm12798_vm6, %v2201_v30, %v1954_v20  ;;  %vm12800_vm0 = vmmov %vm12799_vm8  ;;  %v2234_v31 = vsel %vm12801_vm2, %v2218_v52, %v2003_v13  ;;  %v2069_v54 = vsel %vm12805_vm13, %v2052_v35, %v1570_v0  ;;  %v875_v63 = vsel %vm12449_vm1, %v850_v49, 0.0  ;;  %v7612_v0 = vpop.permute.xlu1 %984 }
 0x145   :  { %v849_v34 = vsel %vm12800_vm0, %v815_v53, %v7581_v6  ;;  %vm12802_vm14 = vmmov %vm12801_vm2  ;;  %v2086_v29 = vsel %vm12809_vm11, %v2069_v54, %v1618_v27  ;;  %v1714_v8 = vrot.slane %v875_v63, 2  ;;  %vm12810_vm9 = vcmask 1046528   ;;  %v12829_v53 = vld [vmem:[#allocation13_spill] sm:$0xff] }
 0x146   :  { %v2233_v14 = vsel %vm12802_vm14, %v2217_v15, %v2002_v45  ;;  %vm12806_vm3 = vmmov %vm12805_vm13  ;;  %v876_v22 = vsel %vm12451_vm5, %v849_v34, 0.0  ;;  %5639 = vmatprep.subr.msk.mxu0 %vm12810_vm9, %v2234_v31  ;;  %v2103_v20 = vsel %vm12797_vm4, %v2086_v29, %v1666_v41  ;;  %421 = vrot.lane.b32.xlu0 %v6888_v60, %s6167_s27  ;;  %v12827_v41 = vld [vmem:[#allocation12_spill] sm:$0xff]  ;;  %vm12848_vm5 = vcmp.lt.s32.totalorder %v6495_v42, 5 }
 0x147   :  { %v2070_v12 = vsel %vm12806_vm3, %v2053_v7, %v1571_v33  ;;  %v1715_v11 = vrot.slane %v876_v22, 2  ;;  %vm12811_vm12 = vmmov %vm12809_vm11  ;;  %v7610_v7 = vpop.permute.xlu0 %982  ;;  %1073 = vrot.lane.b32.xlu1 %v12808_v18, %s6168_s30 }
 0x148   :  { %v2087_v35 = vsel %vm12811_vm12, %v2070_v12, %v1619_v2  ;;  %vm12812_vm10 = vmmov %vm12810_vm9  ;;  %v7631_v10 = vpop.permute.xlu1 %415 }
 0x149   :  { %5640 = vmatpush1.msk.msra.mxu0 %vm12812_vm10, %v2233_v14  ;;  %vm12813_vm15 = vmmov %vm12797_vm4 }
 0x14a   :  { %v2104_v33 = vsel %vm12813_vm15, %v2087_v35, %v1667_v9  ;;  %vm12814_vm6 = vmmov %vm12801_vm2  ;;  %1071 = vrot.lane.b32.xlu0 %v12807_v50, %s6168_s30 }
 0x14b   :  { %v2121_v17 = vsel %vm12814_vm6, %v2104_v33, %v1715_v11  ;;  %vm12815_vm8 = vmmov %vm12801_vm2  ;;  %v7629_v37 = vpop.permute.xlu0 %413  ;;  %504 = vrot.lane.b32.xlu1 %v12807_v50, %s6169_s8  ;;  %vm12839_vm6 = vcmp.lt.s32.totalorder %v6495_v42, 126 }
 0x14c   :  { %v2120_v32 = vsel %vm12815_vm8, %v2103_v20, %v1714_v8  ;;  %vm12817_vm0 = vmmov %vm12804_vm7  ;;  %v7645_v2 = vpop.permute.xlu1 %1065  ;;  %v1009_v1 = vsel %vm12839_vm6, %v12838_v38, %v7610_v7 }
 0x14d   :  { %5637 = vmatmul.mubr.msk.f32.gmra.mxu1 %vm12817_vm0, %v12816_v56  ;;  %vm12819_vm2 = vmmov %vm12810_vm9 }
 0x14e   :  { %v2138_v28 = vsel %vm12819_vm2, %v2121_v17, %v12818_v62  ;;  %vm12821_vm14 = vmmov %vm12819_vm2  ;;  %2495 = vmatprep.mubr.f32.mxu1 %v12786_v5  ;;  %502 = vrot.lane.b32.xlu0 %v6888_v60, %s6169_s8  ;;  %v33_v17 = vadd.s32 768, %v6495_v42 }
 0x14f   :  { %v2137_v30 = vsel %vm12821_vm14, %v2120_v32, %v12820_v48  ;;  %2532 = vmatprep.subr.mxu0 %v2138_v28  ;;  %vm12822_vm7 = vmmov %vm12817_vm0  ;;  %v7643_v27 = vpop.permute.xlu0 %1063  ;;  %911 = vrot.lane.b32.xlu1 %v12808_v18, %s6170_s9  ;;  %v34_v32 = vadd.s32 896, %v6495_v42  ;;  %vm12841_vm14 = vcmp.lt.s32.totalorder %v6495_v42, 6 }
 0x150   :  { %2533 = vmatpush1.msra.mxu0 %v2137_v30  ;;  %vm12824_vm13 = vmmov %vm12817_vm0  ;;  %v7656_v13 = vpop.permute.xlu1 %496  ;;  %v7754_v28 = vand.u32 127, %v33_v17  ;;  %v35_v30 = vadd.s32 1024, %v6495_v42 }
 0x151   :  { %5641 = vmatmul.mubr.msk.f32.vlgmr.msra.gmra.mxu0 %vm12822_vm7, %v12780_v25  ;;  %5638 = vmatmul.mubr.msk.f32.gmra.mxu1 %vm12824_vm13, %v12823_v23  ;;  %vm12825_vm3 = vmmov %vm12817_vm0  ;;  %v6181_v25 = vmov 0   ;;  %v7756_v48 = vand.u32 127, %v34_v32 }
 0x152   :  { %2572 = vmatprep.mubr.f32.mxu0 %v12786_v5  ;;  %2661 = vmatprep.mubr.f32.mxu1 %v12786_v5  ;;  %vm12826_vm11 = vmmov %vm12817_vm0  ;;  %12834 = vst [vmem:[#allocation34_spill] sm:$0xff] %v7754_v28  ;;  %vm1023_vm10 = vcmp.lt.s32.totalorder %v7754_v28, 126  ;;  %vm456_vm4 = vcmp.ge.s32.totalorder %v7754_v28, 6  ;;  %v7771_v17 = vand.u32 127, %v35_v30  ;;  %vm1104_vm2 = vcmp.lt.s32.totalorder %v7754_v28, 125 }
 0x153   :  { %6148 = vset.pattern.permute.xlu0 %v6181_v25  ;;  %v7654_v45 = vpop.permute.xlu0 %494  ;;  %6149 = vset.pattern.permute.xlu1 %v6181_v25  ;;  %vm12831_vm9 = vmmov %vm12817_vm0  ;;  %12835 = vst [vmem:[#allocation38_spill] sm:$0xff] %v7756_v48  ;;  %vm1024_vm15 = vcmp.lt.s32.totalorder %v7756_v48, 126  ;;  %v443_v30 = vsel %vm12841_vm14, %v6947_v59, %v7629_v37  ;;  %vm1105_vm7 = vcmp.lt.s32.totalorder %v7756_v48, 125  ;;  %vm537_vm13 = vcmp.ge.s32.totalorder %v7754_v28, 5 }
 0x154   :  { %909 = vrot.lane.b32.xlu0 %v12807_v50, %s6170_s9  ;;  %v7676_v49 = vpop.permute.xlu1 %903  ;;  %vm12833_vm12 = vmmov %vm12817_vm0  ;;  %12836 = vst [vmem:[#allocation39_spill] sm:$0xff] %v7771_v17  ;;  %vm457_vm0 = vcmp.ge.s32.totalorder %v7756_v48, 6  ;;  %v1039_v59 = vsel %vm1023_vm10, %v1009_v1, 0.0  ;;  %vm1186_vm10 = vcmp.lt.s32.totalorder %v7756_v48, 124 }
 0x155   :  { %5642 = vmatmul.mubr.msk.f32.gmra.mxu0 %vm12825_vm3, %v12790_v39  ;;  %v6153_v39 = vld [vmem:[%s12358_s1 + $0x8] sm:$0xff]  ;;  %vm12840_vm8 = vmmov %vm12839_vm6  ;;  %vm538_vm3 = vcmp.ge.s32.totalorder %v7756_v48, 5  ;;  %vm1185_vm6 = vcmp.lt.s32.totalorder %v7754_v28, 124 }
 0x156   :  { %2578 = vmatprep.mubr.f32.mxu0 %v12786_v5  ;;  %v7668_v9 = vrot.slane %v6153_v39, %v12827_v41  ;;  %v7671_v52 = vrot.slane %v6153_v39, %v12829_v53  ;;  %v1008_v16 = vsel %vm12840_vm8, %v7610_v7, %v7612_v0  ;;  %vm1025_vm8 = vcmp.lt.s32.totalorder %v7771_v17, 126 }
 0x157   :  { %v7674_v15 = vpop.permute.xlu0 %901  ;;  %v1040_v7 = vsel %vm1024_vm15, %v1008_v16, 0.0  ;;  %vm375_vm15 = vcmp.ge.s32.totalorder %v7754_v28, 7 }
 0x158   :  { %12828 = vst [vmem:[#allocation31_spill] sm:$0xff] %v7668_v9  ;;  %12830 = vst [vmem:[#allocation10_spill] sm:$0xff] %v7671_v52  ;;  %994 = vrot.lane.b32.xlu0 %v7668_v9, %s6166_s26  ;;  %996 = vrot.lane.b32.xlu1 %v7671_v52, %s6166_s26  ;;  %v7687_v31 = vpop.permute.xlu1 %988 }
 0x159   :  { %5643 = vmatmul.mubr.msk.f32.gmra.mxu0 %vm12826_vm11, %v12803_v58  ;;  %12832 = vst [vmem:[#allocation5_spill] sm:$0xff] %v7687_v31  ;;  %vm12842_vm11 = vmmov %vm12841_vm14 }
 0x15a   :  { %2584 = vmatprep.mubr.f32.mxu0 %v12786_v5  ;;  %v442_v38 = vsel %vm12842_vm11, %v7629_v37, %v7631_v10  ;;  %v7819_v37 = vsel %vm456_vm4, %v443_v30, 0.0  ;;  %vm12844_vm11 = vcmp.lt.s32.totalorder %v6495_v42, 125  ;;  %vm376_vm4 = vcmp.ge.s32.totalorder %v7756_v48, 7 }
 0x15b   :  { %v7685_v34 = vpop.permute.xlu0 %986  ;;  %v1090_v1 = vsel %vm12844_vm11, %v6972_v3, %v7643_v27  ;;  %v7829_v16 = vsel %vm457_vm0, %v442_v38, 0.0  ;;  %vm12845_vm1 = vmmov %vm12844_vm11  ;;  %v1764_v3 = vrot.slane %v1039_v59, 7  ;;  %v1765_v30 = vrot.slane %v1040_v7, 7 }
 0x15c   :  { %1152 = vrot.lane.b32.xlu0 %v12807_v50, %s6171_s10  ;;  %1154 = vrot.lane.b32.xlu1 %v12808_v18, %s6171_s10  ;;  %v7698_v58 = vpop.permute.xlu1 %1146  ;;  %v1089_v51 = vsel %vm12845_vm1, %v7643_v27, %v7645_v2  ;;  %vm12846_vm0 = vcmp.lt.s32.totalorder %v6495_v42, 127  ;;  %vm619_vm11 = vcmp.ge.s32.totalorder %v7756_v48, 4  ;;  %v1476_v4 = vrot.slane %v7819_v37, 7 }
 0x15d   :  { %5644 = vmatmul.mubr.msk.f32.gmra.mxu0 %vm12831_vm9, %v12816_v56  ;;  %vm12457_vm9 = vcmp.lt.s32.totalorder %v7754_v28, 127  ;;  %v928_v38 = vsel %vm12846_vm0, %v7020_v43, %v7674_v15  ;;  %vm12847_vm1 = vmmov %vm12846_vm0  ;;  %v524_v59 = vsel %vm12848_vm5, %v6990_v46, %v7654_v45  ;;  %v1477_v19 = vrot.slane %v7829_v16, 7 }
 0x15e   :  { %2590 = vmatprep.mubr.f32.mxu0 %v12786_v5  ;;  %v927_v27 = vsel %vm12847_vm1, %v7674_v15, %v7676_v49  ;;  %vm12849_vm0 = vmmov %vm12848_vm5  ;;  %v1121_v37 = vsel %vm1105_vm7, %v1089_v51, 0.0  ;;  %vm1266_vm1 = vcmp.lt.s32.totalorder %v7754_v28, 123  ;;  %vm12852_vm7 = vcmp.lt.s32.totalorder %v6495_v42, 126 }
 0x15f   :  { %v7696_v14 = vpop.permute.xlu0 %1144  ;;  %v523_v43 = vsel %vm12849_vm0, %v7654_v45, %v7656_v13  ;;  %v958_v45 = vsel %vm12457_vm9, %v928_v38, 0.0  ;;  %v553_v38 = vsel %vm537_vm13, %v524_v59, 0.0  ;;  %vm12854_vm13 = vcmp.lt.s32.totalorder %v6495_v42, 7 }
 0x160   :  { %340 = vrot.lane.b32.xlu0 %v6888_v60, %s6172_s11  ;;  %342 = vrot.lane.b32.xlu1 %v12807_v50, %s6172_s11  ;;  %v7706_v12 = vpop.permute.xlu1 %334 }
 0x161   :  { %5645 = vmatmul.mubr.msk.f32.gmra.mxu0 %vm12833_vm12, %v12823_v23  ;;  %v36_v23 = vadd.s32 1152, %v6495_v42  ;;  %vm12460_vm12 = vcmp.lt.s32.totalorder %v7756_v48, 127 }
 0x162   :  { %2756 = vmatprep.mubr.f32.mxu0 %v12786_v5  ;;  %v1120_v5 = vsel %vm1104_vm2, %v1090_v1, 0.0  ;;  %vm12850_vm2 = vcmp.lt.s32.totalorder %v6495_v42, 124  ;;  %v959_v51 = vsel %vm12460_vm12, %v927_v27, 0.0  ;;  %v1813_v27 = vrot.slane %v1121_v37, 6 }
 0x163   :  { %v7704_v54 = vpop.permute.xlu0 %332  ;;  %v7773_v32 = vand.u32 127, %v36_v23  ;;  %v1171_v1 = vsel %vm12850_vm2, %v12741_v47, %v7696_v14  ;;  %vm12851_vm5 = vmmov %vm12850_vm2  ;;  %v1007_v47 = vsel %vm12852_vm7, %v7612_v0, %v7685_v34  ;;  %vm12853_vm2 = vcmp.lt.s32.totalorder %v6495_v42, 7 }
 0x164   :  { %425 = vrot.lane.b32.xlu0 %v12808_v18, %s6167_s27  ;;  %427 = vrot.lane.b32.xlu1 %v7668_v9, %s6167_s27  ;;  %v7714_v22 = vpop.permute.xlu1 %419  ;;  %v1170_v46 = vsel %vm12851_vm5, %v7696_v14, %v7698_v58  ;;  %v362_v14 = vsel %vm12853_vm2, %v7166_v26, %v7704_v54  ;;  %vm458_vm5 = vcmp.ge.s32.totalorder %v7771_v17, 6  ;;  %v1812_v16 = vrot.slane %v1120_v5, 6 }
 0x165   :  { %12837 = vst [vmem:[#allocation47_spill] sm:$0xff] %v7773_v32  ;;  %vm1026_vm14 = vcmp.lt.s32.totalorder %v7773_v32, 126  ;;  %vm459_vm0 = vcmp.ge.s32.totalorder %v7773_v32, 6  ;;  %v554_v0 = vsel %vm538_vm3, %v523_v43, 0.0  ;;  %v1006_v26 = vsel %vm12852_vm7, %v7685_v34, %v7687_v31 }
 0x166   :  { %vm1106_vm2 = vcmp.lt.s32.totalorder %v7771_v17, 125  ;;  %v1201_v21 = vsel %vm1185_vm6, %v1171_v1, 0.0  ;;  %v1202_v5 = vsel %vm1186_vm10, %v1170_v46, 0.0  ;;  %v361_v59 = vsel %vm12854_vm13, %v7704_v54, %v7706_v12 }
 0x167   :  { %v7712_v63 = vpop.permute.xlu0 %417  ;;  %vm1107_vm3 = vcmp.lt.s32.totalorder %v7773_v32, 125  ;;  %vm12855_vm7 = vcmask 1040384   ;;  %v7922_v1 = vsel %vm1025_vm8, %v1007_v47, 0.0  ;;  %v391_v46 = vsel %vm375_vm15, %v362_v14, 0.0 }
 0x168   :  { %583 = vrot.lane.b32.xlu0 %v6888_v60, %s6173_s12  ;;  %585 = vrot.lane.b32.xlu1 %v12807_v50, %s6173_s12  ;;  %v7722_v8 = vpop.permute.xlu1 %577  ;;  %v2155_v34 = vsel %vm12855_vm7, %v958_v45, %v1764_v3  ;;  %vm12856_vm9 = vmmov %vm12855_vm7  ;;  %v1524_v31 = vrot.slane %v553_v38, 6  ;;  %v7928_v54 = vsel %vm1026_vm14, %v1006_v26, 0.0  ;;  %vm12857_vm6 = vcmp.lt.s32.totalorder %v6495_v42, 4 }
 0x169   :  { %v2156_v37 = vsel %vm12856_vm9, %v959_v51, %v1765_v30  ;;  %vm699_vm9 = vcmp.ge.s32.totalorder %v7754_v28, 3  ;;  %vm1347_vm10 = vcmp.lt.s32.totalorder %v7754_v28, 122  ;;  %vm1348_vm8 = vcmp.lt.s32.totalorder %v7756_v48, 122  ;;  %vm12858_vm14 = vmmov %vm12857_vm6 }
 0x16a   :  { %v1860_v30 = vrot.slane %v1201_v21, 5  ;;  %v1861_v45 = vrot.slane %v1202_v5, 5  ;;  %v392_v51 = vsel %vm376_vm4, %v361_v59, 0.0  ;;  %vm700_vm15 = vcmp.ge.s32.totalorder %v7756_v48, 3 }
 0x16b   :  { %v7720_v29 = vpop.permute.xlu0 %575  ;;  %vm12859_vm13 = vcmask 1041408   ;;  %v1766_v38 = vrot.slane %v7922_v1, 7  ;;  %v1767_v5 = vrot.slane %v7928_v54, 7  ;;  %vm12862_vm4 = vcmp.ge.s32.totalorder %v7754_v28, 4 }
 0x16c   :  { %1075 = vrot.lane.b32.xlu0 %v7668_v9, %s6168_s30  ;;  %1077 = vrot.lane.b32.xlu1 %v7671_v52, %s6168_s30  ;;  %v7730_v35 = vpop.permute.xlu1 %1069  ;;  %v605_v3 = vsel %vm12857_vm6, %v7205_v36, %v7720_v29  ;;  %v604_v36 = vsel %vm12858_vm14, %v7720_v29, %v7722_v8  ;;  %v2171_v47 = vsel %vm12859_vm13, %v2155_v34, %v1812_v16  ;;  %vm12860_vm7 = vmmov %vm12859_vm13  ;;  %vm12861_vm6 = vcmask 1040384  }
 0x16d   :  { %v2172_v14 = vsel %vm12860_vm7, %v2156_v37, %v1813_v27  ;;  %v634_v29 = vsel %vm12862_vm4, %v605_v3, 0.0  ;;  %vm12863_vm14 = vcmp.lt.s32.totalorder %v6495_v42, 123  ;;  %vm12865_vm7 = vmmov %vm12861_vm6 }
 0x16e   :  { %vm12864_vm13 = vmmov %vm12863_vm14  ;;  %v2038_v27 = vsel %vm12865_vm7, %v392_v51, %v1477_v19  ;;  %v1572_v37 = vrot.slane %v634_v29, 5 }
 0x16f   :  { %v7728_v11 = vpop.permute.xlu0 %1067 }
 0x170   :  { %1233 = vrot.lane.b32.xlu0 %v12807_v50, %s6174_s13  ;;  %1235 = vrot.lane.b32.xlu1 %v12808_v18, %s6174_s13  ;;  %v7738_v20 = vpop.permute.xlu1 %1227 }
 0x173   :  { %v7736_v33 = vpop.permute.xlu0 %1225 }
 0x174   :  { %506 = vrot.lane.b32.xlu0 %v12808_v18, %s6169_s8  ;;  %508 = vrot.lane.b32.xlu1 %v7668_v9, %s6169_s8  ;;  %v7748_v62 = vpop.permute.xlu1 %500  ;;  %v1252_v16 = vsel %vm12863_vm14, %v7307_v44, %v7736_v33  ;;  %v635_v44 = vsel %vm619_vm11, %v604_v36, 0.0  ;;  %vm1428_vm11 = vcmp.lt.s32.totalorder %v7754_v28, 121  ;;  %vm1429_vm14 = vcmp.lt.s32.totalorder %v7756_v48, 121 }
 0x175   :  { %v1282_v3 = vsel %vm1266_vm1, %v1252_v16, 0.0  ;;  %v1573_v36 = vrot.slane %v635_v44, 5  ;;  %vm12875_vm1 = vcmp.lt.s32.totalorder %v6495_v42, 122 }
 0x177   :  { %v7746_v56 = vpop.permute.xlu0 %498 }
 0x178   :  { %664 = vrot.lane.b32.xlu0 %v6888_v60, %s6175_s14  ;;  %666 = vrot.lane.b32.xlu1 %v12807_v50, %s6175_s14  ;;  %v7762_v39 = vpop.permute.xlu1 %658 }
 0x17b   :  { %v7760_v25 = vpop.permute.xlu0 %656 }
 0x17c   :  { %913 = vrot.lane.b32.xlu0 %v7668_v9, %s6170_s9  ;;  %915 = vrot.lane.b32.xlu1 %v7671_v52, %s6170_s9  ;;  %v7777_v41 = vpop.permute.xlu1 %907 }
 0x17f   :  { %v7775_v53 = vpop.permute.xlu0 %905 }
 0x180   :  { %1156 = vrot.lane.b32.xlu0 %v7668_v9, %s6171_s10  ;;  %1158 = vrot.lane.b32.xlu1 %v7671_v52, %s6171_s10  ;;  %v7815_v57 = vpop.permute.xlu1 %1150 }
 0x181   :  { %12843 = vst [vmem:[#allocation40_spill] sm:$0xff] %v7815_v57  ;;  %v1525_v57 = vrot.slane %v554_v0, 6  ;;  %v2037_v0 = vsel %vm12861_vm6, %v391_v46, %v1476_v4  ;;  %v1251_v4 = vsel %vm12864_vm13, %v7736_v33, %v7738_v20  ;;  %vm12866_vm6 = vcmp.lt.s32.totalorder %v6495_v42, 6 }
 0x182   :  { %v441_v59 = vsel %vm12866_vm6, %v7631_v10, %v7712_v63  ;;  %vm12867_vm4 = vmmov %vm12866_vm6  ;;  %vm12868_vm13 = vcmask 1042432   ;;  %vm12870_vm6 = vcmask 1041408  }
 0x183   :  { %v7813_v23 = vpop.permute.xlu0 %1148  ;;  %v440_v34 = vsel %vm12867_vm4, %v7712_v63, %v7714_v22  ;;  %v2187_v19 = vsel %vm12868_vm13, %v2171_v47, %v1860_v30  ;;  %vm12869_vm7 = vmmov %vm12868_vm13  ;;  %v2054_v33 = vsel %vm12870_vm6, %v2037_v0, %v1524_v31  ;;  %vm12871_vm4 = vcmp.lt.s32.totalorder %v6495_v42, 125 }
 0x184   :  { %1314 = vrot.lane.b32.xlu0 %v12807_v50, %s6176_s15  ;;  %1316 = vrot.lane.b32.xlu1 %v12808_v18, %s6176_s15  ;;  %v7863_v15 = vpop.permute.xlu1 %1308  ;;  %v2188_v10 = vsel %vm12869_vm7, %v2172_v14, %v1861_v45  ;;  %v1088_v63 = vsel %vm12871_vm4, %v7645_v2, %v7728_v11  ;;  %vm12872_vm12 = vmmov %vm12871_vm4  ;;  %vm12873_vm13 = vcmp.lt.s32.totalorder %v7756_v48, 123  ;;  %vm12461_vm7 = vcmp.lt.s32.totalorder %v7773_v32, 127 }
 0x185   :  { %v1087_v46 = vsel %vm12872_vm12, %v7728_v11, %v7730_v35  ;;  %v1283_v31 = vsel %vm12873_vm13, %v1251_v4, 0.0  ;;  %v2055_v45 = vsel %vm12870_vm6, %v2038_v27, %v1525_v57  ;;  %v8007_v51 = vsel %vm458_vm5, %v441_v59, 0.0 }
 0x186   :  { %v8011_v11 = vsel %vm459_vm0, %v440_v34, 0.0  ;;  %v8015_v47 = vsel %vm1106_vm2, %v1088_v63, 0.0  ;;  %vm12874_vm12 = vcmp.lt.s32.totalorder %v6495_v42, 3  ;;  %vm12876_vm0 = vmmov %vm12875_vm1  ;;  %vm780_vm5 = vcmp.ge.s32.totalorder %v7754_v28, 2 }
 0x187   :  { %v7861_v7 = vpop.permute.xlu0 %1306  ;;  %v686_v14 = vsel %vm12874_vm12, %v7392_v24, %v7760_v25  ;;  %vm781_vm2 = vcmp.ge.s32.totalorder %v7756_v48, 2  ;;  %v8037_v24 = vsel %vm1107_vm3, %v1087_v46, 0.0  ;;  %v1909_v29 = vrot.slane %v1283_v31, 4  ;;  %vm12877_vm13 = vmmov %vm12874_vm12 }
 0x188   :  { %344 = vrot.lane.b32.xlu0 %v12808_v18, %s6172_s11  ;;  %346 = vrot.lane.b32.xlu1 %v7668_v9, %s6172_s11  ;;  %v7916_v6 = vpop.permute.xlu1 %338  ;;  %v1333_v57 = vsel %vm12875_vm1, %v7478_v40, %v7861_v7  ;;  %v1332_v0 = vsel %vm12876_vm0, %v7861_v7, %v7863_v15  ;;  %v1908_v40 = vrot.slane %v1282_v3, 4  ;;  %vm540_vm4 = vcmp.ge.s32.totalorder %v7773_v32, 5 }
 0x189   :  { %v685_v7 = vsel %vm12877_vm13, %v7760_v25, %v7762_v39  ;;  %vm1187_vm6 = vcmp.lt.s32.totalorder %v7771_v17, 124  ;;  %v1478_v16 = vrot.slane %v8007_v51, 7  ;;  %v1479_v4 = vrot.slane %v8011_v11, 7 }
 0x18a   :  { %vm12878_vm12 = vcmask 1042432   ;;  %vm12879_vm3 = vcmp.lt.s32.totalorder %v6495_v42, 5  ;;  %vm1188_vm1 = vcmp.lt.s32.totalorder %v7773_v32, 124  ;;  %v715_v63 = vsel %vm699_vm9, %v686_v14, 0.0 }
 0x18b   :  { %v7914_v43 = vpop.permute.xlu0 %336  ;;  %v8048_v27 = vsel %vm12878_vm12, %v2054_v33, %v1572_v37  ;;  %v522_v59 = vsel %vm12879_vm3, %v7656_v13, %v7746_v56  ;;  %vm12880_vm0 = vmmov %vm12878_vm12  ;;  %v1363_v33 = vsel %vm1347_vm10, %v1333_v57, 0.0  ;;  %v1364_v37 = vsel %vm1348_vm8, %v1332_v0, 0.0 }
 0x18c   :  { %587 = vrot.lane.b32.xlu0 %v12808_v18, %s6173_s12  ;;  %589 = vrot.lane.b32.xlu1 %v7668_v9, %s6173_s12  ;;  %v7955_v26 = vpop.permute.xlu1 %581  ;;  %v8060_v25 = vsel %vm12880_vm0, %v2055_v45, %v1573_v36  ;;  %v1814_v13 = vrot.slane %v8015_v47, 6  ;;  %v1815_v46 = vrot.slane %v8037_v24, 6  ;;  %v716_v3 = vsel %vm700_vm15, %v685_v7, 0.0  ;;  %vm12884_vm8 = vmmov %vm12879_vm3 }
 0x18d   :  { %vm12881_vm13 = vcmp.lt.s32.totalorder %v6495_v42, 127  ;;  %vm12882_vm9 = vcmask 1043456   ;;  %vm12883_vm10 = vcmp.ge.s32.totalorder %v7771_v17, 5  ;;  %v521_v47 = vsel %vm12884_vm8, %v7746_v56, %v7748_v62 }
 0x18e   :  { %v926_v31 = vsel %vm12881_vm13, %v7676_v49, %v7775_v53  ;;  %v2203_v45 = vsel %vm12882_vm9, %v2187_v19, %v1908_v40  ;;  %v8083_v36 = vsel %vm12883_vm10, %v522_v59, 0.0  ;;  %vm377_vm15 = vcmp.ge.s32.totalorder %v7771_v17, 7  ;;  %vm12885_vm12 = vmmov %vm12882_vm9 }
 0x18f   :  { %v7953_v21 = vpop.permute.xlu0 %579  ;;  %v2204_v49 = vsel %vm12885_vm12, %v2188_v10, %v1909_v29  ;;  %vm12462_vm3 = vcmp.ge.s32.totalorder %v7754_v28, 1  ;;  %vm12463_vm0 = vcmp.ge.s32.totalorder %v7756_v48, 1  ;;  %v1620_v14 = vrot.slane %v715_v63, 4 }
 0x190   :  { %745 = vrot.lane.b32.xlu0 %v6888_v60, %s6177_s16  ;;  %747 = vrot.lane.b32.xlu1 %v12807_v50, %s6177_s16  ;;  %v8002_v2 = vpop.permute.xlu1 %739  ;;  %v925_v19 = vsel %vm12881_vm13, %v7775_v53, %v7777_v41  ;;  %v1956_v57 = vrot.slane %v1363_v33, 3  ;;  %v1957_v0 = vrot.slane %v1364_v37, 3  ;;  %v1621_v7 = vrot.slane %v716_v3, 4 }
 0x191   :  { %vm12886_vm10 = vcmp.lt.s32.totalorder %v7771_v17, 127  ;;  %vm12887_vm8 = vcmp.lt.s32.totalorder %v6495_v42, 121  ;;  %vm12889_vm13 = vcmp.lt.s32.totalorder %v6495_v42, 2 }
 0x192   :  { %v960_v10 = vsel %vm12886_vm10, %v926_v31, 0.0  ;;  %vm12888_vm12 = vmmov %vm12887_vm8  ;;  %vm12891_vm10 = vcmp.lt.s32.totalorder %v6495_v42, 124 }
 0x193   :  { %v738_v30 = vpop.permute.xlu0 %737  ;;  %vm12890_vm9 = vmmov %vm12889_vm13 }
 0x194   :  { %1237 = vrot.lane.b32.xlu0 %v7668_v9, %s6174_s13  ;;  %1239 = vrot.lane.b32.xlu1 %v7671_v52, %s6174_s13  ;;  %v8057_v44 = vpop.permute.xlu1 %1231  ;;  %v767_v53 = vsel %vm12889_vm13, %v7521_v55, %v738_v30  ;;  %v766_v63 = vsel %vm12890_vm9, %v738_v30, %v8002_v2  ;;  %v1169_v55 = vsel %vm12891_vm10, %v7698_v58, %v7813_v23  ;;  %vm1268_vm9 = vcmp.lt.s32.totalorder %v7771_v17, 123 }
 0x195   :  { %v796_v1 = vsel %vm780_vm5, %v767_v53, 0.0  ;;  %vm1350_vm5 = vcmp.lt.s32.totalorder %v7773_v32, 122 }
 0x197   :  { %v8055_v34 = vpop.permute.xlu0 %1229 }
 0x198   :  { %1395 = vrot.lane.b32.xlu0 %v12807_v50, %s6178_s17  ;;  %1397 = vrot.lane.b32.xlu1 %v12808_v18, %s6178_s17  ;;  %v8098_v56 = vpop.permute.xlu1 %1389 }
 0x19b   :  { %v1388_v40 = vpop.permute.xlu0 %1387 }
 0x19c   :  { %v1414_v29 = vsel %vm12887_vm8, %v7556_v61, %v1388_v40  ;;  %v1413_v59 = vsel %vm12888_vm12, %v1388_v40, %v8098_v56  ;;  %668 = vrot.lane.b32.xlu0 %v12808_v18, %s6175_s14  ;;  %670 = vrot.lane.b32.xlu1 %v7668_v9, %s6175_s14  ;;  %v961_v61 = vsel %vm12461_vm7, %v925_v19, 0.0  ;;  %v12893_v40 = vld [vmem:[#allocation40_spill] sm:$0xff]  ;;  %vm1269_vm8 = vcmp.lt.s32.totalorder %v7773_v32, 123 }
 0x19d   :  { %v1444_v33 = vsel %vm1428_vm11, %v1414_v29, 0.0  ;;  %v1445_v37 = vsel %vm1429_vm14, %v1413_v59, 0.0  ;;  %vm12892_vm11 = vcmask 1040384   ;;  %vm12894_vm14 = vmmov %vm12891_vm10  ;;  %v8139_v59 = vpop.permute.xlu1 %662  ;;  %vm12895_vm12 = vcmask 1044480  }
 0x19e   :  { %v2004_v30 = vrot.slane %v1444_v33, 2  ;;  %v2005_v3 = vrot.slane %v1445_v37, 2  ;;  %v2157_v31 = vsel %vm12892_vm11, %v960_v10, %v1766_v38  ;;  %v1168_v29 = vsel %vm12894_vm14, %v7813_v23, %v12893_v40  ;;  %vm12896_vm13 = vmmov %vm12895_vm12 }
 0x19f   :  { %v8137_v19 = vpop.permute.xlu0 %660  ;;  %v2220_v58 = vsel %vm12895_vm12, %v2204_v49, %v1957_v0  ;;  %v2219_v33 = vsel %vm12896_vm13, %v2203_v45, %v1956_v57  ;;  %vm620_vm10 = vcmp.ge.s32.totalorder %v7771_v17, 4  ;;  %vm621_vm11 = vcmp.ge.s32.totalorder %v7773_v32, 4 }
 0x1a0   :  { %v797_v23 = vsel %vm781_vm2, %v766_v63, 0.0  ;;  %vm12897_vm14 = vcmask 1045504   ;;  %v1526_v37 = vrot.slane %v8083_v36, 6  ;;  %v8154_v49 = vsel %vm540_vm4, %v521_v47, 0.0  ;;  %826 = vrot.lane.b32.xlu0 %v6888_v60, %s6179_s18  ;;  %828 = vrot.lane.b32.xlu1 %v12807_v50, %s6179_s18 }
 0x1a1   :  { %v2236_v38 = vsel %vm12897_vm14, %v2220_v58, %v2005_v3  ;;  %vm12898_vm7 = vmmov %vm12897_vm14  ;;  %vm12899_vm12 = vcmask 1040384   ;;  %v1203_v57 = vsel %vm1187_vm6, %v1169_v55, 0.0  ;;  %vm12900_vm2 = vcmask 1043456   ;;  %v8184_v55 = vpop.permute.xlu1 %820 }
 0x1a2   :  { %v2235_v10 = vsel %vm12898_vm7, %v2219_v33, %v2004_v30  ;;  %v2158_v45 = vsel %vm12899_vm12, %v961_v61, %v1767_v5  ;;  %vm1349_vm7 = vcmp.lt.s32.totalorder %v7771_v17, 122  ;;  %v2088_v47 = vsel %vm12900_vm2, %v8048_v27, %v1620_v14  ;;  %vm12903_vm13 = vmmov %vm12900_vm2 }
 0x1a3   :  { %v1204_v54 = vsel %vm1188_vm1, %v1168_v29, 0.0  ;;  %vm12901_vm4 = vcmp.lt.s32.totalorder %v6495_v42, 7  ;;  %vm12902_vm6 = vcmask 1046528   ;;  %v2089_v0 = vsel %vm12903_vm13, %v8060_v25, %v1621_v7  ;;  %v819_v61 = vpop.permute.xlu0 %818  ;;  %v12908_v25 = vld [vmem:[#allocation46_spill] sm:$0xff] }
 0x1a4   :  { %v360_v5 = vsel %vm12901_vm4, %v7706_v12, %v7914_v43  ;;  %5646 = vmatprep.subr.msk.mxu1 %vm12902_vm6, %v2236_v38  ;;  %vm12904_vm14 = vcmask 1041408   ;;  %vm12905_vm12 = vmmov %vm12901_vm4  ;;  %v1668_v14 = vrot.slane %v796_v1, 3  ;;  %v1669_v63 = vrot.slane %v797_v23, 3  ;;  %1318 = vrot.lane.b32.xlu0 %v7668_v9, %s6176_s15 }
 0x1a5   :  { %v2173_v53 = vsel %vm12904_vm14, %v2157_v31, %v1814_v13  ;;  %v359_v27 = vsel %vm12905_vm12, %v7914_v43, %v7916_v6  ;;  %vm12906_vm1 = vmmov %vm12902_vm6  ;;  %v1862_v30 = vrot.slane %v1203_v57, 5  ;;  %vm701_vm4 = vcmp.ge.s32.totalorder %v7771_v17, 3  ;;  %1320 = vrot.lane.b32.xlu1 %v7671_v52, %s6176_s15 }
 0x1a6   :  { %5647 = vmatpush1.msk.msra.mxu1 %vm12906_vm1, %v2235_v10  ;;  %vm12907_vm2 = vmmov %vm12904_vm14  ;;  %vm702_vm6 = vcmp.ge.s32.totalorder %v7773_v32, 3  ;;  %vm12909_vm13 = vcmp.lt.s32.totalorder %v6495_v42, 1  ;;  %v1863_v7 = vrot.slane %v1204_v54, 5  ;;  %v393_v3 = vsel %vm377_vm15, %v360_v5, 0.0  ;;  %v8225_v10 = vpop.permute.xlu1 %1312 }
 0x1a7   :  { %v2174_v12 = vsel %vm12907_vm2, %v2158_v45, %v1815_v46  ;;  %v848_v43 = vsel %vm12909_vm13, %v12908_v25, %v819_v61  ;;  %vm12910_vm14 = vmmov %vm12909_vm13  ;;  %vm782_vm12 = vcmp.ge.s32.totalorder %v7771_v17, 2  ;;  %vm12911_vm2 = vcmp.ge.s32.totalorder %v7773_v32, 7  ;;  %v1311_v38 = vpop.permute.xlu0 %1310 }
 0x1a8   :  { %v847_v13 = vsel %vm12910_vm14, %v819_v61, %v8184_v55  ;;  %v877_v24 = vsel %vm12462_vm3, %v848_v43, 0.0  ;;  %v394_v31 = vsel %vm12911_vm2, %v359_v27, 0.0  ;;  %vm12912_vm15 = vcmp.lt.s32.totalorder %v6495_v42, 4  ;;  %749 = vrot.lane.b32.xlu0 %v12808_v18, %s6177_s16 }
 0x1a9   :  { %v878_v46 = vsel %vm12463_vm0, %v847_v13, 0.0  ;;  %v603_v29 = vsel %vm12912_vm15, %v7722_v8, %v7953_v21  ;;  %v1716_v58 = vrot.slane %v877_v24, 2  ;;  %vm12913_vm3 = vcmp.lt.s32.totalorder %v6495_v42, 123  ;;  %751 = vrot.lane.b32.xlu1 %v7668_v9, %s6177_s16 }
 0x1aa   :  { %v1717_v33 = vrot.slane %v878_v46, 2  ;;  %v1250_v1 = vsel %vm12913_vm3, %v7738_v20, %v8055_v34  ;;  %vm12914_vm2 = vmmov %vm12913_vm3  ;;  %vm12915_vm15 = vcmask 1044480   ;;  %vm12917_vm14 = vcmp.lt.s32.totalorder %v6495_v42, 4  ;;  %v8268_v13 = vpop.permute.xlu1 %743 }
 0x1ab   :  { %v1249_v23 = vsel %vm12914_vm2, %v8055_v34, %v8057_v44  ;;  %v2106_v8 = vsel %vm12915_vm15, %v2089_v0, %v1669_v63  ;;  %vm12916_vm0 = vmmov %vm12915_vm15  ;;  %v602_v57 = vsel %vm12917_vm14, %v7953_v21, %v7955_v26  ;;  %vm12918_vm3 = vcmp.lt.s32.totalorder %v6495_v42, 122  ;;  %v12922_v21 = vld [vmem:[#allocation27_spill] sm:$0xff]  ;;  %v742_v43 = vpop.permute.xlu0 %741 }
 0x1ac   :  { %v2105_v45 = vsel %vm12916_vm0, %v2088_v47, %v1668_v14  ;;  %v1331_v20 = vsel %vm12918_vm3, %v7863_v15, %v1311_v38  ;;  %vm12919_vm13 = vcmask 1045504   ;;  %v1527_v5 = vrot.slane %v8154_v49, 6  ;;  %vm12921_vm2 = vmmov %vm12918_vm3  ;;  %v12924_v15 = vld [vmem:[#allocation15_spill] sm:$0xff]  ;;  %1399 = vrot.lane.b32.xlu0 %v7668_v9, %s6178_s17 }
 0x1ad   :  { %v2123_v54 = vsel %vm12919_vm13, %v2106_v8, %v1717_v33  ;;  %vm12920_vm1 = vmmov %vm12919_vm13  ;;  %v1330_v0 = vsel %vm12921_vm2, %v1311_v38, %v8225_v10  ;;  %vm12923_vm0 = vcmask 1046528   ;;  %vm12926_vm13 = vcmask 1042432   ;;  %1401 = vrot.lane.b32.xlu1 %v7671_v52, %s6178_s17 }
 0x1ae   :  { %v2122_v34 = vsel %vm12920_vm1, %v2105_v45, %v1716_v58  ;;  %v2140_v47 = vsel %vm12923_vm0, %v2123_v54, %v12922_v21  ;;  %vm12925_vm14 = vmmov %vm12923_vm0  ;;  %v2189_v14 = vsel %vm12926_vm13, %v2173_v53, %v1862_v30  ;;  %v1284_v63 = vsel %vm1268_vm9, %v1250_v1, 0.0  ;;  %v8308_v45 = vpop.permute.xlu1 %1393  ;;  %v8323_v54 = vld [vmem:[%s12359_s2 + $0x8] sm:$0xff] }
 0x1af   :  { %v2139_v27 = vsel %vm12925_vm14, %v2122_v34, %v12924_v15  ;;  %vm12927_vm1 = vmmov %vm12926_vm13  ;;  %v1285_v61 = vsel %vm1269_vm8, %v1249_v23, 0.0  ;;  %2627 = vmatprep.subr.mxu1 %v2140_v47  ;;  %vm12474_vm15 = vcmp.ge.s32.totalorder %v7771_v17, 1  ;;  %vm12477_vm3 = vcmp.ge.s32.totalorder %v7773_v32, 1  ;;  %v1392_v8 = vpop.permute.xlu0 %1391  ;;  %12942 = vst [vmem:[#allocation11_spill] sm:$0xff] %v8323_v54 }
 0x1b0   :  { %v2190_v49 = vsel %vm12927_vm1, %v2174_v12, %v1863_v7  ;;  %vm12928_vm2 = vcmask 1040384   ;;  %v636_v12 = vsel %vm620_vm10, %v603_v29, 0.0  ;;  %v637_v30 = vsel %vm621_vm11, %v602_v57, 0.0  ;;  %2628 = vmatpush1.msra.mxu1 %v2139_v27  ;;  %v8285_v7 = vld [vmem:[%s12359_s2] sm:$0xff]  ;;  %830 = vrot.lane.b32.xlu0 %v12808_v18, %s6179_s18 }
 0x1b1   :  { %v2039_v25 = vsel %vm12928_vm2, %v393_v3, %v1478_v16  ;;  %vm12929_vm0 = vmmov %vm12928_vm2  ;;  %vm12930_vm9 = vcmp.lt.s32.totalorder %v6495_v42, 3  ;;  %v1365_v16 = vsel %vm1349_vm7, %v1331_v20, 0.0  ;;  %12932 = vst [vmem:[#allocation14_spill] sm:$0xff] %v8285_v7  ;;  %vm12933_vm10 = vcmask 130048   ;;  %832 = vrot.lane.b32.xlu1 %v7668_v9, %s6179_s18 }
 0x1b2   :  { %v2040_v53 = vsel %vm12929_vm0, %v394_v31, %v1479_v4  ;;  %v684_v51 = vsel %vm12930_vm9, %v7762_v39, %v8137_v19  ;;  %vm12931_vm8 = vmmov %vm12930_vm9  ;;  %v1366_v4 = vsel %vm1350_vm5, %v1330_v0, 0.0  ;;  %5648 = vmatmul.mubr.msk.f32.vlgmr.msra.gmra.mxu1 %vm12933_vm10, %v8285_v7  ;;  %v1910_v39 = vrot.slane %v1284_v63, 4 }
 0x1b3   :  { %v683_v11 = vsel %vm12931_vm8, %v8137_v19, %v8139_v59  ;;  %v1911_v3 = vrot.slane %v1285_v61, 4  ;;  %vm12934_vm11 = vcmp.lt.s32.totalorder %v6495_v42, 2  ;;  %vm12936_vm5 = vcmask 1041408   ;;  %v823_v61 = vpop.permute.xlu0 %822 }
 0x1b4   :  { %v765_v19 = vsel %vm12934_vm11, %v8002_v2, %v742_v43  ;;  %vm12935_vm7 = vmmov %vm12934_vm11  ;;  %v2056_v46 = vsel %vm12936_vm5, %v2039_v25, %v1526_v37  ;;  %v1574_v29 = vrot.slane %v636_v12, 5  ;;  %v1575_v58 = vrot.slane %v637_v30, 5  ;;  %v8338_v25 = vpop.permute.xlu1 %824 }
 0x1b5   :  { %v764_v24 = vsel %vm12935_vm7, %v742_v43, %v8268_v13  ;;  %vm12937_vm14 = vmmov %vm12936_vm5  ;;  %v12938_v33 = vmov 0.0   ;;  %v717_v2 = vsel %vm701_vm4, %v684_v51, 0.0  ;;  %v718_v1 = vsel %vm702_vm6, %v683_v11, 0.0  ;;  %v8353_v11 = vld [vmem:[%s12359_s2 + $0x10] sm:$0xff]  ;;  %429 = vrot.lane.b32.xlu1 %v7671_v52, %s6167_s27 }
 0x1b6   :  { %v2057_v31 = vsel %vm12937_vm14, %v2040_v53, %v1527_v5  ;;  %2667 = vmatprep.mubr.f32.mxu1 %v12938_v33  ;;  %v1958_v23 = vrot.slane %v1365_v16, 3  ;;  %v1959_v38 = vrot.slane %v1366_v4, 3  ;;  %v798_v36 = vsel %vm782_vm12, %v765_v19, 0.0  ;;  %vm12943_vm6 = vmmov %vm12933_vm10  ;;  %12954 = vst [vmem:[#allocation41_spill] sm:$0xff] %v8353_v11 }
 0x1b7   :  { %vm12939_vm13 = vcmp.ge.s32.totalorder %v7773_v32, 2  ;;  %vm12940_vm1 = vcmp.lt.s32.totalorder %v6495_v42, 121  ;;  %5649 = vmatmul.mubr.msk.f32.gmra.mxu1 %vm12943_vm6, %v8323_v54  ;;  %vm12944_vm12 = vcmask 1043456   ;;  %vm12945_vm2 = vcmp.lt.s32.totalorder %v7771_v17, 121 }
 0x1b8   :  { %v799_v37 = vsel %vm12939_vm13, %v764_v24, 0.0  ;;  %v1412_v57 = vsel %vm12940_vm1, %v8098_v56, %v1392_v8  ;;  %vm12941_vm4 = vmmov %vm12940_vm1  ;;  %v2205_v34 = vsel %vm12944_vm12, %v2189_v14, %v1910_v39  ;;  %vm12946_vm0 = vcmp.lt.s32.totalorder %v7773_v32, 121  ;;  %2673 = vmatprep.mubr.f32.mxu1 %v12938_v33 }
 0x1b9   :  { %v1411_v20 = vsel %vm12941_vm4, %v1392_v8, %v8308_v45  ;;  %v1446_v5 = vsel %vm12945_vm2, %v1412_v57, 0.0  ;;  %vm12947_vm9 = vmmov %vm12944_vm12  ;;  %v1622_v21 = vrot.slane %v717_v2, 4  ;;  %v1623_v47 = vrot.slane %v718_v1, 4  ;;  %v8383_v8 = vld [vmem:[%s12359_s2 + $0x18] sm:$0xff]  ;;  %510 = vrot.lane.b32.xlu1 %v7671_v52, %s6169_s8  ;;  %v12970_v57 = vld [vmem:[#allocation28_spill] sm:$0xff] }
 0x1ba   :  { %v1447_v56 = vsel %vm12946_vm0, %v1411_v20, 0.0  ;;  %v2206_v0 = vsel %vm12947_vm9, %v2190_v49, %v1911_v3  ;;  %v2006_v15 = vrot.slane %v1446_v5, 2  ;;  %v1670_v14 = vrot.slane %v798_v36, 3  ;;  %vm12955_vm13 = vmmov %vm12943_vm6  ;;  %v12958_v3 = vld [vmem:[#allocation7_spill] sm:$0xff]  ;;  %12966 = vst [vmem:[#allocation37_spill] sm:$0xff] %v8383_v8 }
 0x1bb   :  { %v2007_v27 = vrot.slane %v1447_v56, 2  ;;  %v1671_v63 = vrot.slane %v799_v37, 3  ;;  %vm12948_vm8 = vcmask 1044480   ;;  %vm12950_vm11 = vcmp.lt.s32.totalorder %v6495_v42, 1  ;;  %5650 = vmatmul.mubr.msk.f32.gmra.mxu1 %vm12955_vm13, %v8353_v11  ;;  %998 = vrot.lane.b32.xlu0 %v12958_v3, %s6166_s26  ;;  %vm12959_vm6 = vmmov %vm12947_vm9  ;;  %v12968_v36 = vld [vmem:[#allocation35_spill] sm:$0xff]  ;;  %v8405_v56 = vld [vmem:[%s12359_s2 + $0x20] sm:$0xff] }
 0x1bc   :  { %v2222_v53 = vsel %vm12948_vm8, %v2206_v0, %v1959_v38  ;;  %vm12949_vm10 = vmmov %vm12948_vm8  ;;  %v846_v30 = vsel %vm12950_vm11, %v8184_v55, %v823_v61  ;;  %vm12952_vm5 = vcmask 1045504   ;;  %vm12956_vm1 = vcmask 1042432   ;;  %2679 = vmatprep.mubr.f32.mxu1 %v12938_v33  ;;  %12973 = vst [vmem:[#allocation40_spill] sm:$0xff] %v8405_v56 }
 0x1bd   :  { %v2221_v12 = vsel %vm12949_vm10, %v2205_v34, %v1958_v23  ;;  %vm12951_vm7 = vmmov %vm12950_vm11  ;;  %v2238_v43 = vsel %vm12952_vm5, %v2222_v53, %v2007_v27  ;;  %v2073_v16 = vsel %vm12956_vm1, %v2056_v46, %v1574_v29  ;;  %v879_v4 = vsel %vm12474_vm15, %v846_v30, 0.0  ;;  %v8374_v29 = vpop.permute.xlu1 %992  ;;  %1160 = vrot.lane.b32.xlu1 %v12958_v3, %s6171_s10  ;;  %v2270_v53 = vld [vmem:[%s12360_s3 + $0x20] sm:$0xff] }
 0x1be   :  { %v845_v49 = vsel %vm12951_vm7, %v823_v61, %v8338_v25  ;;  %vm12953_vm14 = vmmov %vm12952_vm5  ;;  %v2090_v19 = vsel %vm12959_vm6, %v2073_v16, %v1622_v21  ;;  %v1718_v24 = vrot.slane %v879_v4, 2  ;;  %vm12960_vm12 = vcmask 1046528   ;;  %v2266_v4 = vld [vmem:[%s12360_s3] sm:$0xff] }
 0x1bf   :  { %v2237_v51 = vsel %vm12953_vm14, %v2221_v12, %v2006_v15  ;;  %vm12957_vm4 = vmmov %vm12956_vm1  ;;  %v880_v39 = vsel %vm12477_vm3, %v845_v49, 0.0  ;;  %5653 = vmatprep.subr.msk.mxu0 %vm12960_vm12, %v2238_v43  ;;  %v2107_v1 = vsel %vm12948_vm8, %v2090_v19, %v1670_v14  ;;  %1079 = vrot.lane.b32.xlu0 %v12958_v3, %s6168_s30  ;;  %v2269_v12 = vld [vmem:[%s12360_s3 + $0x18] sm:$0xff]  ;;  %v2268_v43 = vld [vmem:[%s12360_s3 + $0x10] sm:$0xff] }
 0x1c0   :  { %v2074_v55 = vsel %vm12957_vm4, %v2057_v31, %v1575_v58  ;;  %v1719_v2 = vrot.slane %v880_v39, 2  ;;  %vm12961_vm2 = vmmov %vm12959_vm6  ;;  %v8372_v31 = vpop.permute.xlu0 %990 }
 0x1c1   :  { %v2091_v46 = vsel %vm12961_vm2, %v2074_v55, %v1623_v47  ;;  %vm12962_vm0 = vmmov %vm12960_vm12  ;;  %v8398_v5 = vpop.permute.xlu1 %423  ;;  %591 = vrot.lane.b32.xlu1 %v7671_v52, %s6173_s12 }
 0x1c2   :  { %5654 = vmatpush1.msk.msra.mxu0 %vm12962_vm0, %v2237_v51  ;;  %vm12963_vm9 = vmmov %vm12948_vm8  ;;  %v2267_v51 = vld [vmem:[%s12360_s3 + $0x8] sm:$0xff] }
 0x1c3   :  { %v2108_v58 = vsel %vm12963_vm9, %v2091_v46, %v1671_v63  ;;  %vm12964_vm10 = vmmov %vm12952_vm5  ;;  %917 = vrot.lane.b32.xlu0 %v12958_v3, %s6170_s9 }
 0x1c4   :  { %v2125_v23 = vsel %vm12964_vm10, %v2108_v58, %v1719_v2  ;;  %vm12965_vm11 = vmmov %vm12952_vm5  ;;  %v8396_v34 = vpop.permute.xlu0 %421 }
 0x1c5   :  { %v2124_v38 = vsel %vm12965_vm11, %v2107_v1, %v1718_v24  ;;  %vm12967_vm7 = vmmov %vm12955_vm13  ;;  %v8417_v21 = vpop.permute.xlu1 %1073  ;;  %672 = vrot.lane.b32.xlu1 %v7671_v52, %s6175_s14 }
 0x1c6   :  { %5651 = vmatmul.mubr.msk.f32.gmra.mxu1 %vm12967_vm7, %v8383_v8  ;;  %vm12969_vm5 = vmmov %vm12962_vm0 }
 0x1c7   :  { %v2142_v37 = vsel %vm12969_vm5, %v2125_v23, %v12968_v36  ;;  %vm12971_vm14 = vmmov %vm12962_vm0  ;;  %2685 = vmatprep.mubr.f32.mxu1 %v12938_v33  ;;  %348 = vrot.lane.b32.xlu0 %v7671_v52, %s6172_s11 }
 0x1c8   :  { %v2141_v20 = vsel %vm12971_vm14, %v2124_v38, %v12970_v57  ;;  %2722 = vmatprep.subr.mxu0 %v2142_v37  ;;  %vm12972_vm13 = vmmov %vm12967_vm7  ;;  %v8415_v0 = vpop.permute.xlu0 %1071  ;;  %v37_v37 = vadd.s32 1280, %v6495_v42  ;;  %v38_v57 = vadd.s32 1408, %v6495_v42  ;;  %vm12984_vm14 = vcmp.lt.s32.totalorder %v6495_v42, 126 }
 0x1c9   :  { %2723 = vmatpush1.msra.mxu0 %v2141_v20  ;;  %vm12974_vm1 = vmmov %vm12967_vm7  ;;  %v8428_v15 = vpop.permute.xlu1 %504  ;;  %753 = vrot.lane.b32.xlu1 %v7671_v52, %s6177_s16  ;;  %v39_v20 = vadd.s32 1536, %v6495_v42 }
 0x1ca   :  { %5655 = vmatmul.mubr.msk.f32.vlgmr.msra.gmra.mxu0 %vm12972_vm13, %v8285_v7  ;;  %5652 = vmatmul.mubr.msk.f32.gmra.mxu1 %vm12974_vm1, %v8405_v56  ;;  %vm12975_vm4 = vmmov %vm12974_vm1 }
 0x1cb   :  { %2762 = vmatprep.mubr.f32.mxu0 %v12938_v33  ;;  %2851 = vmatprep.mubr.f32.mxu1 %v12938_v33  ;;  %vm12976_vm6 = vmmov %vm12974_vm1  ;;  %v8514_v17 = vand.u32 127, %v39_v20 }
 0x1cc   :  { %v8426_v47 = vpop.permute.xlu0 %502  ;;  %1241 = vrot.lane.b32.xlu0 %v12958_v3, %s6174_s13  ;;  %vm12977_vm12 = vmmov %vm12974_vm1 }
 0x1cd   :  { %v8439_v14 = vpop.permute.xlu1 %911  ;;  %vm12978_vm2 = vmmov %vm12974_vm1  ;;  %834 = vrot.lane.b32.xlu1 %v7671_v52, %s6179_s18  ;;  %12981 = vst [vmem:[#allocation15_spill] sm:$0xff] %v8514_v17  ;;  %v42_v52 = vadd.s32 1920, %v6495_v42 }
 0x1ce   :  { %5656 = vmatmul.mubr.msk.f32.gmra.mxu0 %vm12975_vm4, %v8323_v54  ;;  %vm12985_vm13 = vmmov %vm12984_vm14 }
 0x1cf   :  { %2768 = vmatprep.mubr.f32.mxu0 %v12938_v33  ;;  %v1004_v20 = vsel %vm12985_vm13, %v8372_v31, %v8374_v29 }
 0x1d0   :  { %v8437_v27 = vpop.permute.xlu0 %909  ;;  %1322 = vrot.lane.b32.xlu0 %v12958_v3, %s6176_s15 }
 0x1d1   :  { %v8450_v61 = vpop.permute.xlu1 %996  ;;  %2288 = vperm.xlu1 %6149, %v2269_v12  }
 0x1d2   :  { %5657 = vmatmul.mubr.msk.f32.gmra.mxu0 %vm12976_vm6, %v8353_v11 }
 0x1d3   :  { %2774 = vmatprep.mubr.f32.mxu0 %v12938_v33 }
 0x1d4   :  { %v8448_v63 = vpop.permute.xlu0 %994  ;;  %1403 = vrot.lane.b32.xlu0 %v12958_v3, %s6178_s17 }
 0x1d5   :  { %v8467_v49 = vpop.permute.xlu1 %1154  ;;  %2283 = vperm.xlu1 %6149, %v2268_v43   ;;  %v8509_v43 = vand.u32 127, %v37_v37  ;;  %v12983_v37 = vld [vmem:[#allocation5_spill] sm:$0xff] }
 0x1d6   :  { %5658 = vmatmul.mubr.msk.f32.gmra.mxu0 %vm12977_vm12, %v8383_v8  ;;  %v8574_v8 = vand.u32 127, %v42_v52 }
 0x1d7   :  { %2780 = vmatprep.mubr.f32.mxu0 %v12938_v33  ;;  %12979 = vst [vmem:[#allocation46_spill] sm:$0xff] %v8509_v43  ;;  %vm1027_vm0 = vcmp.lt.s32.totalorder %v8509_v43, 126  ;;  %vm460_vm8 = vcmp.ge.s32.totalorder %v8509_v43, 6  ;;  %vm1108_vm11 = vcmp.lt.s32.totalorder %v8509_v43, 125  ;;  %vm541_vm5 = vcmp.ge.s32.totalorder %v8509_v43, 5 }
 0x1d8   :  { %v8465_v30 = vpop.permute.xlu0 %1152  ;;  %2293 = vperm.xlu0 %6148, %v2270_v53   ;;  %vm12487_vm4 = vcmp.lt.s32.totalorder %v8509_v43, 127  ;;  %vm1189_vm13 = vcmp.lt.s32.totalorder %v8509_v43, 124  ;;  %vm379_vm12 = vcmp.ge.s32.totalorder %v8509_v43, 7  ;;  %12991 = vst [vmem:[#allocation5_spill] sm:$0xff] %v8574_v8 }
 0x1d9   :  { %v8477_v55 = vpop.permute.xlu1 %342  ;;  %2273 = vperm.xlu1 %6149, %v2266_v4   ;;  %v40_v4 = vadd.s32 1664, %v6495_v42 }
 0x1da   :  { %5659 = vmatmul.mubr.msk.f32.gmra.mxu0 %vm12978_vm2, %v8405_v56  ;;  %vm12986_vm2 = vcmp.lt.s32.totalorder %v6495_v42, 6 }
 0x1db   :  { %2946 = vmatprep.mubr.f32.mxu0 %v12938_v33  ;;  %v8523_v48 = vand.u32 127, %v40_v4  ;;  %v41_v4 = vadd.s32 1792, %v6495_v42  ;;  %vm12987_vm3 = vmmov %vm12986_vm2 }
 0x1dc   :  { %v8475_v16 = vpop.permute.xlu0 %340  ;;  %2278 = vperm.xlu0 %6148, %v2267_v51   ;;  %v8511_v51 = vand.u32 127, %v38_v57  ;;  %v1005_v57 = vsel %vm12984_vm14, %v12983_v37, %v8372_v31  ;;  %v439_v31 = vsel %vm12986_vm2, %v7714_v22, %v8396_v34  ;;  %v438_v9 = vsel %vm12987_vm3, %v8396_v34, %v8398_v5 }
 0x1dd   :  { %v8484_v19 = vpop.permute.xlu1 %427  ;;  %12982 = vst [vmem:[#allocation35_spill] sm:$0xff] %v8523_v48  ;;  %v1043_v56 = vsel %vm1027_vm0, %v1005_v57, 0.0  ;;  %vm12988_vm2 = vcmp.lt.s32.totalorder %v6495_v42, 125  ;;  %v8578_v34 = vsel %vm460_vm8, %v439_v31, 0.0  ;;  %vm12992_vm3 = vcmp.lt.s32.totalorder %v6495_v42, 5 }
 0x1de   :  { %12980 = vst [vmem:[#allocation27_spill] sm:$0xff] %v8511_v51  ;;  %vm1028_vm9 = vcmp.lt.s32.totalorder %v8511_v51, 126  ;;  %vm461_vm10 = vcmp.ge.s32.totalorder %v8511_v51, 6  ;;  %vm1109_vm7 = vcmp.lt.s32.totalorder %v8511_v51, 125  ;;  %vm542_vm1 = vcmp.ge.s32.totalorder %v8511_v51, 5  ;;  %vm12989_vm14 = vmmov %vm12988_vm2 }
 0x1df   :  { %vm12488_vm6 = vcmp.lt.s32.totalorder %v8511_v51, 127  ;;  %vm1190_vm15 = vcmp.lt.s32.totalorder %v8511_v51, 124  ;;  %v1044_v18 = vsel %vm1028_vm9, %v1004_v20, 0.0  ;;  %v1086_v22 = vsel %vm12988_vm2, %v7730_v35, %v8415_v0 }
 0x1e0   :  { %v8482_v39 = vpop.permute.xlu0 %425  ;;  %v1085_v57 = vsel %vm12989_vm14, %v8415_v0, %v8417_v21  ;;  %vm380_vm0 = vcmp.ge.s32.totalorder %v8511_v51, 7  ;;  %v8572_v20 = vand.u32 127, %v41_v4  ;;  %v520_v35 = vsel %vm12992_vm3, %v7748_v62, %v8426_v47 }
 0x1e1   :  { %v8488_v2 = vpop.permute.xlu1 %585  ;;  %vm12993_vm9 = vcmp.lt.s32.totalorder %v6495_v42, 127  ;;  %vm622_vm2 = vcmp.ge.s32.totalorder %v8509_v43, 4  ;;  %v1768_v11 = vrot.slane %v1043_v56, 7  ;;  %v1769_v62 = vrot.slane %v1044_v18, 7 }
 0x1e2   :  { %12990 = vst [vmem:[#allocation28_spill] sm:$0xff] %v8572_v20  ;;  %v924_v0 = vsel %vm12993_vm9, %v7777_v41, %v8437_v27  ;;  %vm12994_vm14 = vmmov %vm12993_vm9  ;;  %v8600_v54 = vsel %vm461_vm10, %v438_v9, 0.0  ;;  %v519_v41 = vsel %vm12992_vm3, %v8426_v47, %v8428_v15  ;;  %v1125_v8 = vsel %vm1109_vm7, %v1085_v57, 0.0 }
 0x1e3   :  { %v923_v52 = vsel %vm12994_vm14, %v8437_v27, %v8439_v14  ;;  %v1124_v27 = vsel %vm1108_vm11, %v1086_v22, 0.0  ;;  %vm12995_vm14 = vcmp.lt.s32.totalorder %v6495_v42, 124  ;;  %vm462_vm3 = vcmp.ge.s32.totalorder %v8514_v17, 6 }
 0x1e4   :  { %v8486_v24 = vpop.permute.xlu0 %583  ;;  %v1167_v18 = vsel %vm12995_vm14, %v12893_v40, %v8465_v30  ;;  %vm12996_vm10 = vmmov %vm12995_vm14  ;;  %vm463_vm9 = vcmp.ge.s32.totalorder %v8523_v48, 6  ;;  %vm1271_vm8 = vcmp.lt.s32.totalorder %v8511_v51, 123  ;;  %v1480_v56 = vrot.slane %v8578_v34, 7 }
 0x1e5   :  { %v8492_v58 = vpop.permute.xlu1 %1077  ;;  %v1166_v9 = vsel %vm12996_vm10, %v8465_v30, %v8467_v49  ;;  %v8625_v47 = vsel %vm541_vm5, %v520_v35, 0.0  ;;  %v962_v40 = vsel %vm12487_vm4, %v924_v0, 0.0  ;;  %v963_v22 = vsel %vm12488_vm6, %v923_v52, 0.0 }
 0x1e6   :  { %v1481_v30 = vrot.slane %v8600_v54, 7  ;;  %v8634_v57 = vsel %vm542_vm1, %v519_v41, 0.0  ;;  %vm12997_vm11 = vcmp.lt.s32.totalorder %v6495_v42, 126  ;;  %v1816_v52 = vrot.slane %v1124_v27, 6 }
 0x1e7   :  { %v1003_v34 = vsel %vm12997_vm11, %v8374_v29, %v8448_v63  ;;  %vm12998_vm7 = vmmov %vm12997_vm11  ;;  %v1817_v54 = vrot.slane %v1125_v8, 6  ;;  %v1205_v41 = vsel %vm1189_vm13, %v1167_v18, 0.0  ;;  %v1206_v33 = vsel %vm1190_vm15, %v1166_v9, 0.0 }
 0x1e8   :  { %v8490_v46 = vpop.permute.xlu0 %1075  ;;  %v1002_v35 = vsel %vm12998_vm7, %v8448_v63, %v8450_v61  ;;  %v1528_v7 = vrot.slane %v8625_v47, 6  ;;  %vm12999_vm5 = vcmask 1040384   ;;  %vm13001_vm14 = vcmp.lt.s32.totalorder %v6495_v42, 7 }
 0x1e9   :  { %v8496_v23 = vpop.permute.xlu1 %1235  ;;  %v2159_v29 = vsel %vm12999_vm5, %v962_v40, %v1768_v11  ;;  %vm13000_vm1 = vmmov %vm12999_vm5  ;;  %v358_v63 = vsel %vm13001_vm14, %v7916_v6, %v8475_v16  ;;  %vm1351_vm10 = vcmp.lt.s32.totalorder %v8509_v43, 122  ;;  %vm1352_vm11 = vcmp.lt.s32.totalorder %v8511_v51, 122 }
 0x1ea   :  { %v2160_v60 = vsel %vm13000_vm1, %v963_v22, %v1769_v62  ;;  %v1529_v8 = vrot.slane %v8634_v57, 6  ;;  %vm13002_vm13 = vcmp.lt.s32.totalorder %v8514_v17, 126  ;;  %vm13003_vm15 = vcmp.lt.s32.totalorder %v8523_v48, 126  ;;  %vm13004_vm7 = vmmov %vm13001_vm14 }
 0x1eb   :  { %v8664_v27 = vsel %vm13002_vm13, %v1003_v34, 0.0  ;;  %v8668_v11 = vsel %vm13003_vm15, %v1002_v35, 0.0  ;;  %v357_v62 = vsel %vm13004_vm7, %v8475_v16, %v8477_v55  ;;  %vm703_vm5 = vcmp.ge.s32.totalorder %v8509_v43, 3 }
 0x1ec   :  { %v8494_v1 = vpop.permute.xlu0 %1233  ;;  %vm704_vm1 = vcmp.ge.s32.totalorder %v8511_v51, 3  ;;  %v1864_v6 = vrot.slane %v1205_v41, 5  ;;  %v1865_v18 = vrot.slane %v1206_v33, 5  ;;  %vm13005_vm14 = vcmp.lt.s32.totalorder %v6495_v42, 4 }
 0x1ed   :  { %v8500_v36 = vpop.permute.xlu1 %508  ;;  %v601_v9 = vsel %vm13005_vm14, %v7955_v26, %v8486_v24  ;;  %vm13006_vm13 = vmmov %vm13005_vm14  ;;  %vm1110_vm15 = vcmp.lt.s32.totalorder %v8514_v17, 125  ;;  %vm13007_vm4 = vcmask 1041408   ;;  %v395_v26 = vsel %vm379_vm12, %v358_v63, 0.0 }
 0x1ee   :  { %v600_v47 = vsel %vm13006_vm13, %v8486_v24, %v8488_v2  ;;  %v2175_v33 = vsel %vm13007_vm4, %v2159_v29, %v1816_v52  ;;  %vm13008_vm6 = vmmov %vm13007_vm4  ;;  %vm13009_vm14 = vcmp.lt.s32.totalorder %v6495_v42, 123  ;;  %v396_v57 = vsel %vm380_vm0, %v357_v62, 0.0 }
 0x1ef   :  { %v2176_v22 = vsel %vm13008_vm6, %v2160_v60, %v1817_v54  ;;  %v1248_v24 = vsel %vm13009_vm14, %v8057_v44, %v8494_v1  ;;  %vm13010_vm13 = vcmp.lt.s32.totalorder %v6495_v42, 6  ;;  %vm13012_vm6 = vmmov %vm13009_vm14  ;;  %v638_v54 = vsel %vm622_vm2, %v601_v9, 0.0 }
 0x1f0   :  { %v8498_v38 = vpop.permute.xlu0 %506  ;;  %v437_v34 = vsel %vm13010_vm13, %v8398_v5, %v8482_v39  ;;  %vm13011_vm4 = vmmov %vm13010_vm13  ;;  %v1247_v35 = vsel %vm13012_vm6, %v8494_v1, %v8496_v23  ;;  %vm13013_vm12 = vcmp.ge.s32.totalorder %v8511_v51, 4  ;;  %vm1432_vm0 = vcmp.lt.s32.totalorder %v8509_v43, 121 }
 0x1f1   :  { %v8507_v12 = vpop.permute.xlu1 %666  ;;  %v436_v60 = vsel %vm13011_vm4, %v8482_v39, %v8484_v19  ;;  %v639_v5 = vsel %vm13013_vm12, %v600_v47, 0.0  ;;  %vm1433_vm14 = vcmp.lt.s32.totalorder %v8511_v51, 121  ;;  %v8720_v39 = vpop.f32.mrf.mxu0  ;;  %vm13014_vm13 = vcmask 1042432  }
 0x1f2   :  { %v2191_v41 = vsel %vm13014_vm13, %v2175_v33, %v1864_v6  ;;  %vm13015_vm4 = vmmov %vm13014_vm13  ;;  %vm13016_vm6 = vcmask 1040384   ;;  %vm13017_vm7 = vcmp.lt.s32.totalorder %v8509_v43, 123  ;;  %v8732_v52 = vsel %vm462_vm3, %v437_v34, 0.0 }
 0x1f3   :  { %v2192_v1 = vsel %vm13015_vm4, %v2176_v22, %v1865_v18  ;;  %v2041_v29 = vsel %vm13016_vm6, %v395_v26, %v1480_v56  ;;  %v1286_v63 = vsel %vm13017_vm7, %v1248_v24, 0.0  ;;  %vm13018_vm2 = vmmov %vm13016_vm6  ;;  %v8736_v44 = vsel %vm463_vm9, %v436_v60, 0.0 }
 0x1f4   :  { %v8505_v53 = vpop.permute.xlu0 %664  ;;  %v2042_v47 = vsel %vm13018_vm2, %v396_v57, %v1481_v30  ;;  %v1287_v6 = vsel %vm1271_vm8, %v1247_v35, 0.0  ;;  %v1576_v56 = vrot.slane %v638_v54, 5  ;;  %v1577_v18 = vrot.slane %v639_v5, 5 }
 0x1f5   :  { %v8518_v28 = vpop.permute.xlu1 %915  ;;  %vm13019_vm7 = vcmp.lt.s32.totalorder %v6495_v42, 122  ;;  %vm784_vm3 = vcmp.ge.s32.totalorder %v8509_v43, 2  ;;  %vm785_vm9 = vcmp.ge.s32.totalorder %v8511_v51, 2  ;;  %vm13021_vm13 = vcmask 1041408  }
 0x1f6   :  { %vm13020_vm12 = vmmov %vm13019_vm7  ;;  %v2058_v22 = vsel %vm13021_vm13, %v2041_v29, %v1528_v7  ;;  %v1912_v26 = vrot.slane %v1286_v63, 4  ;;  %vm13022_vm8 = vcmp.lt.s32.totalorder %v6495_v42, 3  ;;  %v1913_v34 = vrot.slane %v1287_v6, 4 }
 0x1f7   :  { %v682_v24 = vsel %vm13022_vm8, %v8139_v59, %v8505_v53  ;;  %vm13023_vm4 = vmmov %vm13022_vm8  ;;  %vm543_vm8 = vcmp.ge.s32.totalorder %v8514_v17, 5  ;;  %vm1191_vm2 = vcmp.lt.s32.totalorder %v8514_v17, 124  ;;  %vm1192_vm6 = vcmp.lt.s32.totalorder %v8523_v48, 124 }
 0x1f8   :  { %v8516_v32 = vpop.permute.xlu0 %913  ;;  %v719_v29 = vsel %vm703_vm5, %v682_v24, 0.0  ;;  %vm12489_vm5 = vcmp.ge.s32.totalorder %v8509_v43, 1 }
 0x1f9   :  { %v8545_v37 = vpop.permute.xlu1 %1158 }
 0x1fc   :  { %v8543_v3 = vpop.permute.xlu0 %1156 }
 0x1fd   :  { %v8596_v31 = vpop.permute.xlu1 %1316 }
 0x200   :  { %v8594_v4 = vpop.permute.xlu0 %1314 }
 0x201   :  { %v8646_v20 = vpop.permute.xlu1 %346  ;;  %v1329_v33 = vsel %vm13019_vm7, %v8225_v10, %v8594_v4  ;;  %v1328_v30 = vsel %vm13020_vm12, %v8594_v4, %v8596_v31  ;;  %v681_v10 = vsel %vm13023_vm4, %v8505_v53, %v8507_v12  ;;  %v8761_v4 = vpop.f32.mrf.mxu0  ;;  %vm13024_vm7 = vmmov %vm13021_vm13  ;;  %vm13025_vm12 = vcmp.lt.s32.totalorder %v6495_v42, 125 }
 0x202   :  { %v2059_v57 = vsel %vm13024_vm7, %v2042_v47, %v1529_v8  ;;  %v1084_v7 = vsel %vm13025_vm12, %v8417_v21, %v8490_v46  ;;  %vm13026_vm13 = vmmov %vm13025_vm12  ;;  %vm544_vm4 = vcmp.ge.s32.totalorder %v8523_v48, 5  ;;  %v1482_v21 = vrot.slane %v8732_v52, 7 }
 0x203   :  { %v1083_v59 = vsel %vm13026_vm13, %v8490_v46, %v8492_v58  ;;  %v1367_v46 = vsel %vm1351_vm10, %v1329_v33, 0.0  ;;  %v1368_v35 = vsel %vm1352_vm11, %v1328_v30, 0.0  ;;  %vm13027_vm7 = vcmask 1042432   ;;  %v8811_v33 = vpop.f32.mrf.mxu0 }
 0x204   :  { %v8644_v0 = vpop.permute.xlu0 %344  ;;  %v2075_v54 = vsel %vm13027_vm7, %v2058_v22, %v1576_v56  ;;  %vm13028_vm12 = vmmov %vm13027_vm7  ;;  %v8794_v63 = vsel %vm704_vm1, %v681_v10, 0.0  ;;  %v8798_v47 = vsel %vm1110_vm15, %v1084_v7, 0.0  ;;  %vm13029_vm10 = vcmp.lt.s32.totalorder %v8523_v48, 125 }
 0x205   :  { %v8688_v40 = vpop.permute.xlu1 %589  ;;  %v8788_v5 = vsel %vm13028_vm12, %v2059_v57, %v1577_v18  ;;  %v8802_v6 = vsel %vm13029_vm10, %v1083_v59, 0.0  ;;  %vm13030_vm11 = vcmask 1043456   ;;  %vm13031_vm13 = vcmp.lt.s32.totalorder %v6495_v42, 5 }
 0x206   :  { %v2207_v56 = vsel %vm13030_vm11, %v2191_v41, %v1912_v26  ;;  %v518_v18 = vsel %vm13031_vm13, %v8428_v15, %v8498_v38  ;;  %vm12490_vm1 = vcmp.ge.s32.totalorder %v8511_v51, 1  ;;  %vm13032_vm15 = vmmov %vm13031_vm13  ;;  %v1960_v22 = vrot.slane %v1367_v46, 3 }
 0x207   :  { %v517_v30 = vsel %vm13032_vm15, %v8498_v38, %v8500_v36  ;;  %v1961_v24 = vrot.slane %v1368_v35, 3  ;;  %vm13033_vm7 = vmmov %vm13030_vm11  ;;  %v1624_v57 = vrot.slane %v719_v29, 4  ;;  %v1625_v15 = vrot.slane %v8794_v63, 4  ;;  %v8845_v63 = vpop.f32.mrf.mxu0 }
 0x208   :  { %v8686_v16 = vpop.permute.xlu0 %587  ;;  %v2208_v26 = vsel %vm13033_vm7, %v2192_v1, %v1913_v34  ;;  %vm13034_vm12 = vcmp.lt.s32.totalorder %v6495_v42, 121  ;;  %vm13036_vm11 = vcmp.lt.s32.totalorder %v6495_v42, 2  ;;  %vm13038_vm15 = vcmp.lt.s32.totalorder %v6495_v42, 127 }
 0x209   :  { %v8727_v9 = vpop.permute.xlu1 %747  ;;  %vm13035_vm10 = vmmov %vm13034_vm12 }
 0x20a   :  { %vm13037_vm13 = vmmov %vm13036_vm11 }
 0x20b   :  { %vm13039_vm7 = vmmov %vm13038_vm15 }
 0x20c   :  { %v746_v62 = vpop.permute.xlu0 %745 }
 0x20d   :  { %v8778_v8 = vpop.permute.xlu1 %1239  ;;  %v763_v38 = vsel %vm13036_vm11, %v8268_v13, %v746_v62  ;;  %v762_v46 = vsel %vm13037_vm13, %v746_v62, %v8727_v9  ;;  %v921_v13 = vsel %vm13039_vm7, %v8516_v32, %v8518_v28  ;;  %vm13042_vm11 = vcmask 1044480  }
 0x20e   :  { %vm13043_vm13 = vmmov %vm13042_vm11  ;;  %vm382_vm7 = vcmp.ge.s32.totalorder %v8523_v48, 7 }
 0x210   :  { %v8776_v53 = vpop.permute.xlu0 %1237 }
 0x211   :  { %v8817_v41 = vpop.permute.xlu1 %1397 }
 0x214   :  { %v1396_v10 = vpop.permute.xlu0 %1395 }
 0x215   :  { %v1410_v7 = vsel %vm13034_vm12, %v8308_v45, %v1396_v10  ;;  %v1409_v59 = vsel %vm13035_vm10, %v1396_v10, %v8817_v41  ;;  %v922_v45 = vsel %vm13038_vm15, %v8439_v14, %v8516_v32  ;;  %v8859_v32 = vpop.permute.xlu1 %670  ;;  %vm381_vm15 = vcmp.ge.s32.totalorder %v8514_v17, 7 }
 0x216   :  { %v1448_v1 = vsel %vm1432_vm0, %v1410_v7, 0.0  ;;  %v1449_v34 = vsel %vm1433_vm14, %v1409_v59, 0.0  ;;  %vm13040_vm0 = vcmp.lt.s32.totalorder %v6495_v42, 124  ;;  %v2224_v7 = vsel %vm13042_vm11, %v2208_v26, %v1961_v24 }
 0x217   :  { %v2008_v35 = vrot.slane %v1448_v1, 2  ;;  %v2009_v29 = vrot.slane %v1449_v34, 2  ;;  %v1165_v62 = vsel %vm13040_vm0, %v8467_v49, %v8543_v3  ;;  %vm13041_vm14 = vmmov %vm13040_vm0  ;;  %v2223_v59 = vsel %vm13043_vm13, %v2207_v56, %v1960_v22 }
 0x218   :  { %v1164_v10 = vsel %vm13041_vm14, %v8543_v3, %v8545_v37  ;;  %v8857_v14 = vpop.permute.xlu0 %668  ;;  %vm624_vm0 = vcmp.ge.s32.totalorder %v8514_v17, 4  ;;  %v800_v3 = vsel %vm784_vm3, %v763_v38, 0.0  ;;  %v801_v49 = vsel %vm785_vm9, %v762_v46, 0.0 }
 0x219   :  { %vm13044_vm10 = vcmask 1045504   ;;  %v1818_v56 = vrot.slane %v8798_v47, 6  ;;  %v1819_v22 = vrot.slane %v8802_v6, 6  ;;  %vm13046_vm11 = vcmp.lt.s32.totalorder %v8514_v17, 127 }
 0x21a   :  { %v2240_v1 = vsel %vm13044_vm10, %v2224_v7, %v2009_v29  ;;  %vm13045_vm12 = vmmov %vm13044_vm10  ;;  %v964_v26 = vsel %vm13046_vm11, %v922_v45, 0.0  ;;  %vm13047_vm13 = vcmp.lt.s32.totalorder %v8523_v48, 127  ;;  %vm13048_vm14 = vcmask 1046528  }
 0x21b   :  { %v2239_v24 = vsel %vm13045_vm12, %v2223_v59, %v2008_v35  ;;  %v965_v34 = vsel %vm13047_vm13, %v921_v13, 0.0  ;;  %5660 = vmatprep.subr.msk.mxu1 %vm13048_vm14, %v2240_v1  ;;  %vm1353_vm3 = vcmp.lt.s32.totalorder %v8514_v17, 122  ;;  %vm1354_vm9 = vcmp.lt.s32.totalorder %v8523_v48, 122  ;;  %vm13049_vm12 = vmmov %vm13048_vm14  ;;  %v8899_v35 = vpop.f32.mrf.mxu0  ;;  %v8902_v1 = vpop.permute.xlu1 %828 }
 0x21c   :  { %v8884_v38 = vsel %vm543_vm8, %v518_v18, 0.0  ;;  %v8888_v46 = vsel %vm544_vm4, %v517_v30, 0.0  ;;  %v8892_v45 = vsel %vm1191_vm2, %v1165_v62, 0.0  ;;  %v8896_v13 = vsel %vm1192_vm6, %v1164_v10, 0.0  ;;  %5661 = vmatpush1.msk.msra.mxu1 %vm13049_vm12, %v2239_v24  ;;  %v827_v59 = vpop.permute.xlu0 %826 }
 0x21d   :  { %vm13050_vm10 = vcmask 1043456   ;;  %v1672_v18 = vrot.slane %v800_v3, 3  ;;  %v1673_v7 = vrot.slane %v801_v49, 3  ;;  %v13052_v62 = vrot.slane %v8664_v27, 7 }
 0x21e   :  { %v2092_v29 = vsel %vm13050_vm10, %v2075_v54, %v1624_v57  ;;  %vm13051_vm8 = vmmov %vm13050_vm10  ;;  %vm13053_vm2 = vcmask 1040384   ;;  %v13054_v10 = vrot.slane %v8668_v11, 7  ;;  %vm13056_vm4 = vcmp.lt.s32.totalorder %v6495_v42, 1 }
 0x21f   :  { %v2093_v30 = vsel %vm13051_vm8, %v8788_v5, %v1625_v15  ;;  %v2161_v60 = vsel %vm13053_vm2, %v964_v26, %v13052_v62  ;;  %vm13055_vm6 = vmmov %vm13053_vm2  ;;  %v844_v54 = vsel %vm13056_vm4, %v8338_v25, %v827_v59  ;;  %v1866_v3 = vrot.slane %v8892_v45, 5 }
 0x220   :  { %v2162_v24 = vsel %vm13055_vm6, %v965_v34, %v13054_v10  ;;  %vm13057_vm14 = vmmov %vm13056_vm4  ;;  %v1867_v5 = vrot.slane %v8896_v13, 5  ;;  %v881_v27 = vsel %vm12489_vm5, %v844_v54, 0.0  ;;  %vm13058_vm11 = vcmp.lt.s32.totalorder %v6495_v42, 7  ;;  %v8934_v34 = vpop.f32.mrf.mxu0  ;;  %v8946_v13 = vpop.permute.xlu1 %1320 }
 0x221   :  { %v843_v57 = vsel %vm13057_vm14, %v827_v59, %v8902_v1  ;;  %v356_v15 = vsel %vm13058_vm11, %v8477_v55, %v8644_v0  ;;  %vm13059_vm13 = vmmov %vm13058_vm11  ;;  %v1720_v49 = vrot.slane %v881_v27, 2  ;;  %vm1434_vm12 = vcmp.lt.s32.totalorder %v8514_v17, 121 }
 0x222   :  { %v882_v11 = vsel %vm12490_vm1, %v843_v57, 0.0  ;;  %v355_v25 = vsel %vm13059_vm13, %v8644_v0, %v8646_v20  ;;  %vm1435_vm10 = vcmp.lt.s32.totalorder %v8523_v48, 121  ;;  %vm13060_vm8 = vcmp.lt.s32.totalorder %v6495_v42, 123  ;;  %v1319_v0 = vpop.permute.xlu0 %1318 }
 0x223   :  { %v1721_v26 = vrot.slane %v882_v11, 2  ;;  %v1246_v45 = vsel %vm13060_vm8, %v8496_v23, %v8776_v53  ;;  %vm13061_vm2 = vmmov %vm13060_vm8  ;;  %vm705_vm6 = vcmp.ge.s32.totalorder %v8514_v17, 3  ;;  %vm13062_vm14 = vcmask 1044480   ;;  %v8980_v11 = vpop.f32.mrf.mxu0 }
 0x224   :  { %v1245_v55 = vsel %vm13061_vm2, %v8776_v53, %v8778_v8  ;;  %v2110_v59 = vsel %vm13062_vm14, %v2093_v30, %v1673_v7  ;;  %vm13063_vm11 = vmmov %vm13062_vm14  ;;  %vm13064_vm13 = vcmp.lt.s32.totalorder %v6495_v42, 4  ;;  %vm13066_vm2 = vcmask 1045504  }
 0x225   :  { %v2109_v62 = vsel %vm13063_vm11, %v2092_v29, %v1672_v18  ;;  %v599_v23 = vsel %vm13064_vm13, %v8488_v2, %v8686_v16  ;;  %vm13065_vm8 = vmmov %vm13064_vm13  ;;  %v2127_v10 = vsel %vm13066_vm2, %v2110_v59, %v1721_v26  ;;  %vm786_vm5 = vcmp.ge.s32.totalorder %v8514_v17, 2 }
 0x226   :  { %v598_v53 = vsel %vm13065_vm8, %v8686_v16, %v8688_v40  ;;  %vm13067_vm1 = vmmov %vm13066_vm2  ;;  %vm787_vm14 = vcmp.ge.s32.totalorder %v8523_v48, 2  ;;  %vm13068_vm11 = vcmp.lt.s32.totalorder %v6495_v42, 122  ;;  %vm13070_vm4 = vcmask 1046528   ;;  %v13071_v16 = vld [vmem:[#allocation36_spill] sm:$0xff] }
 0x227   :  { %v2126_v54 = vsel %vm13067_vm1, %v2109_v62, %v1720_v49  ;;  %v1327_v29 = vsel %vm13068_vm11, %v8596_v31, %v1319_v0  ;;  %vm13069_vm13 = vmmov %vm13068_vm11  ;;  %v2144_v18 = vsel %vm13070_vm4, %v2127_v10, %v12807_v50  ;;  %v1530_v30 = vrot.slane %v8884_v38, 6 }
 0x228   :  { %v1326_v2 = vsel %vm13069_vm13, %v1319_v0, %v8946_v13  ;;  %vm13072_vm8 = vmmov %vm13070_vm4  ;;  %v1531_v57 = vrot.slane %v8888_v46, 6  ;;  %vm13073_vm1 = vcmp.lt.s32.totalorder %v8514_v17, 123  ;;  %vm13074_vm2 = vcmp.lt.s32.totalorder %v8523_v48, 123  ;;  %2817 = vmatprep.subr.mxu1 %v2144_v18  ;;  %v8994_v0 = vpop.permute.xlu1 %751 }
 0x229   :  { %v2143_v7 = vsel %vm13072_vm8, %v2126_v54, %v13071_v16  ;;  %v1288_v27 = vsel %vm13073_vm1, %v1246_v45, 0.0  ;;  %v1289_v31 = vsel %vm13074_vm2, %v1245_v55, 0.0  ;;  %vm12491_vm11 = vcmp.ge.s32.totalorder %v8514_v17, 1  ;;  %v750_v55 = vpop.permute.xlu0 %749  ;;  %v13088_v16 = vld [vmem:[#allocation28_spill] sm:$0xff] }
 0x22a   :  { %vm12492_vm13 = vcmp.ge.s32.totalorder %v8523_v48, 1  ;;  %v397_v50 = vsel %vm381_vm15, %v356_v15, 0.0  ;;  %v398_v49 = vsel %vm382_vm7, %v355_v25, 0.0  ;;  %v8988_v26 = vsel %vm624_vm0, %v599_v23, 0.0  ;;  %2818 = vmatpush1.msra.mxu1 %v2143_v7  ;;  %v13078_v23 = vld [vmem:[#allocation14_spill] sm:$0xff]  ;;  %v13089_v7 = vld [vmem:[#allocation5_spill] sm:$0xff] }
 0x22b   :  { %vm13075_vm4 = vcmp.ge.s32.totalorder %v8523_v48, 4  ;;  %vm13076_vm8 = vcmask 1041408   ;;  %v1369_v25 = vsel %vm1353_vm3, %v1327_v29, 0.0  ;;  %v1370_v62 = vsel %vm1354_vm9, %v1326_v2, 0.0  ;;  %v9019_v2 = vpop.f32.mrf.mxu0 }
 0x22c   :  { %v8992_v45 = vsel %vm13075_vm4, %v598_v53, 0.0  ;;  %v2177_v59 = vsel %vm13076_vm8, %v2161_v60, %v1818_v56  ;;  %vm13077_vm15 = vmmov %vm13076_vm8  ;;  %vm13079_vm7 = vcmask 130048   ;;  %vm13080_vm0 = vcmask 1042432   ;;  %v9029_v18 = vpop.permute.xlu1 %1401 }
 0x22d   :  { %v2178_v15 = vsel %vm13077_vm15, %v2162_v24, %v1819_v22  ;;  %5662 = vmatmul.mubr.msk.f32.vlgmr.msra.gmra.mxu1 %vm13079_vm7, %v13078_v23  ;;  %v2193_v53 = vsel %vm13080_vm0, %v2177_v59, %v1866_v3  ;;  %vm13081_vm1 = vmmov %vm13080_vm0  ;;  %v1914_v47 = vrot.slane %v1288_v27, 4  ;;  %v1915_v54 = vrot.slane %v1289_v31, 4 }
 0x22e   :  { %v2194_v10 = vsel %vm13081_vm1, %v2178_v15, %v1867_v5  ;;  %v13082_v60 = vmov 0.0   ;;  %vm13083_vm2 = vcmask 1040384   ;;  %v13084_v56 = vrot.slane %v8736_v44, 7  ;;  %v1400_v5 = vpop.permute.xlu0 %1399 }
 0x22f   :  { %2857 = vmatprep.mubr.f32.mxu1 %v13082_v60  ;;  %v2043_v6 = vsel %vm13083_vm2, %v397_v50, %v1482_v21  ;;  %vm13085_vm3 = vmmov %vm13083_vm2  ;;  %v1578_v24 = vrot.slane %v8988_v26, 5  ;;  %v1579_v29 = vrot.slane %v8992_v45, 5  ;;  %vm13086_vm9 = vcmp.lt.s32.totalorder %v6495_v42, 3  ;;  %v13094_v50 = vld [vmem:[#allocation11_spill] sm:$0xff] }
 0x230   :  { %v2044_v22 = vsel %vm13085_vm3, %v398_v49, %v13084_v56  ;;  %v680_v3 = vsel %vm13086_vm9, %v8507_v12, %v8857_v14  ;;  %vm13087_vm4 = vmmov %vm13086_vm9  ;;  %v1962_v21 = vrot.slane %v1369_v25, 3  ;;  %v1963_v44 = vrot.slane %v1370_v62, 3  ;;  %v9060_v25 = vpop.f32.mrf.mxu0 }
 0x231   :  { %v679_v52 = vsel %vm13087_vm4, %v8857_v14, %v8859_v32  ;;  %vm1031_vm8 = vcmp.lt.s32.totalorder %v13088_v16, 126  ;;  %vm1032_vm15 = vcmp.lt.s32.totalorder %v13089_v7, 126  ;;  %vm13090_vm7 = vcmp.lt.s32.totalorder %v6495_v42, 2 }
 0x232   :  { %v761_v27 = vsel %vm13090_vm7, %v8727_v9, %v750_v55  ;;  %vm13091_vm0 = vmmov %vm13090_vm7  ;;  %vm13092_vm1 = vcmp.lt.s32.totalorder %v6495_v42, 121  ;;  %vm13095_vm3 = vcmask 130048   ;;  %vm464_vm9 = vcmp.ge.s32.totalorder %v13088_v16, 6 }
 0x233   :  { %v760_v12 = vsel %vm13091_vm0, %v750_v55, %v8994_v0  ;;  %v1408_v14 = vsel %vm13092_vm1, %v8817_v41, %v1400_v5  ;;  %vm13093_vm2 = vmmov %vm13092_vm1  ;;  %5663 = vmatmul.mubr.msk.f32.gmra.mxu1 %vm13095_vm3, %v13094_v50  ;;  %vm465_vm4 = vcmp.ge.s32.totalorder %v13089_v7, 6  ;;  %vm13096_vm7 = vcmask 1043456  }
 0x234   :  { %v1407_v31 = vsel %vm13093_vm2, %v1400_v5, %v9029_v18  ;;  %v2209_v9 = vsel %vm13096_vm7, %v2193_v53, %v1914_v47  ;;  %v1450_v49 = vsel %vm1434_vm12, %v1408_v14, 0.0  ;;  %2863 = vmatprep.mubr.f32.mxu1 %v13082_v60  ;;  %vm13097_vm0 = vmmov %vm13096_vm7  ;;  %v721_v45 = vsel %vm705_vm6, %v680_v3, 0.0  ;;  %v831_v53 = vpop.permute.xlu0 %830  ;;  %v9066_v47 = vpop.permute.xlu1 %832 }
 0x235   :  { %v1451_v26 = vsel %vm1435_vm10, %v1407_v31, 0.0  ;;  %v2210_v41 = vsel %vm13097_vm0, %v2194_v10, %v1915_v54  ;;  %vm13098_vm1 = vcmp.ge.s32.totalorder %v8523_v48, 3  ;;  %v2010_v59 = vrot.slane %v1450_v49, 2  ;;  %v9099_v49 = vpop.f32.mrf.mxu0 }
 0x236   :  { %v722_v55 = vsel %vm13098_vm1, %v679_v52, 0.0  ;;  %v2011_v15 = vrot.slane %v1451_v26, 2  ;;  %v802_v62 = vsel %vm786_vm5, %v761_v27, 0.0  ;;  %v803_v23 = vsel %vm787_vm14, %v760_v12, 0.0  ;;  %v13103_v52 = vld [vmem:[#allocation41_spill] sm:$0xff]  ;;  %vm13104_vm5 = vmmov %vm13095_vm3  ;;  %v9101_v26 = vpop.f32.mrf.mxu1 }
 0x237   :  { %vm13099_vm12 = vcmask 1044480   ;;  %vm13101_vm6 = vcmp.lt.s32.totalorder %v6495_v42, 1  ;;  %5664 = vmatmul.mubr.msk.f32.gmra.mxu1 %vm13104_vm5, %v13103_v52  ;;  %vm13105_vm3 = vcmask 1045504   ;;  %vm1112_vm7 = vcmp.lt.s32.totalorder %v13088_v16, 125 }
 0x238   :  { %v2226_v10 = vsel %vm13099_vm12, %v2210_v41, %v1963_v44  ;;  %vm13100_vm10 = vmmov %vm13099_vm12  ;;  %v842_v56 = vsel %vm13101_vm6, %v8902_v1, %v831_v53  ;;  %vm1113_vm0 = vcmp.lt.s32.totalorder %v13089_v7, 125  ;;  %vm545_vm1 = vcmp.ge.s32.totalorder %v13088_v16, 5  ;;  %2869 = vmatprep.mubr.f32.mxu1 %v13082_v60  ;;  %v999_v41 = vpop.permute.xlu0 %998 }
 0x239   :  { %v2225_v54 = vsel %vm13100_vm10, %v2209_v9, %v1962_v21  ;;  %vm13102_vm2 = vmmov %vm13101_vm6  ;;  %v2242_v5 = vsel %vm13105_vm3, %v2226_v10, %v2011_v15  ;;  %vm546_vm12 = vcmp.ge.s32.totalorder %v13089_v7, 5  ;;  %v1626_v1 = vrot.slane %v721_v45, 4  ;;  %v13114_v45 = vld [vmem:[#allocation16_spill] sm:$0xff] }
 0x23a   :  { %v841_v3 = vsel %vm13102_vm2, %v831_v53, %v9066_v47  ;;  %vm13106_vm14 = vmmov %vm13105_vm3  ;;  %v1627_v21 = vrot.slane %v722_v55, 4  ;;  %v883_v44 = vsel %vm12491_vm11, %v842_v56, 0.0  ;;  %vm13107_vm10 = vcmask 1046528   ;;  %v9134_v56 = vpop.f32.mrf.mxu0 }
 0x23b   :  { %v2241_v27 = vsel %vm13106_vm14, %v2225_v54, %v2010_v59  ;;  %v884_v12 = vsel %vm12492_vm13, %v841_v3, 0.0  ;;  %5667 = vmatprep.subr.msk.mxu0 %vm13107_vm10, %v2242_v5  ;;  %vm13108_vm6 = vcmask 1041408   ;;  %v1674_v50 = vrot.slane %v802_v62, 3  ;;  %vm13110_vm5 = vmmov %vm13107_vm10  ;;  %v13116_v59 = vld [vmem:[#allocation17_spill] sm:$0xff]  ;;  %v9132_v54 = vpop.f32.mrf.mxu1 }
 0x23c   :  { %v2060_v14 = vsel %vm13108_vm6, %v2043_v6, %v1530_v30  ;;  %vm13109_vm2 = vmmov %vm13108_vm6  ;;  %v1675_v9 = vrot.slane %v803_v23, 3  ;;  %5668 = vmatpush1.msk.msra.mxu0 %vm13110_vm5, %v2241_v27  ;;  %vm12493_vm3 = vcmp.lt.s32.totalorder %v13088_v16, 127  ;;  %vm13111_vm10 = vcmask 1042432   ;;  %v1080_v27 = vpop.permute.xlu0 %1079 }
 0x23d   :  { %v2061_v31 = vsel %vm13109_vm2, %v2044_v22, %v1531_v57  ;;  %v2077_v38 = vsel %vm13111_vm10, %v2060_v14, %v1578_v24  ;;  %vm13112_vm11 = vmmov %vm13111_vm10  ;;  %v1722_v6 = vrot.slane %v883_v44, 2  ;;  %v1723_v46 = vrot.slane %v884_v12, 2  ;;  %v430_v57 = vpop.permute.xlu1 %429  ;;  %v13127_v44 = vld [vmem:[#allocation31_spill] sm:$0xff] }
 0x23e   :  { %v2078_v30 = vsel %vm13112_vm11, %v2061_v31, %v1579_v29  ;;  %vm13113_vm6 = vcmp.lt.s32.totalorder %v6495_v42, 126  ;;  %vm13117_vm5 = vcmp.lt.s32.totalorder %v6495_v42, 6  ;;  %v13119_v29 = vld [vmem:[#allocation37_spill] sm:$0xff]  ;;  %vm13120_vm11 = vcmask 130048   ;;  %v13130_v31 = vld [vmem:[#allocation18_spill] sm:$0xff] }
 0x23f   :  { %v1001_v22 = vsel %vm13113_vm6, %v8450_v61, %v999_v41  ;;  %vm13115_vm2 = vmmov %vm13113_vm6  ;;  %v434_v15 = vsel %vm13117_vm5, %v430_v57, %v13116_v59  ;;  %5665 = vmatmul.mubr.msk.f32.gmra.mxu1 %vm13120_vm11, %v13119_v29  ;;  %vm13121_vm13 = vcmask 1043456   ;;  %vm1193_vm6 = vcmp.lt.s32.totalorder %v13088_v16, 124 }
 0x240   :  { %v1016_v55 = vsel %vm13115_vm2, %v999_v41, %v13114_v45  ;;  %vm13118_vm10 = vmmov %vm13117_vm5  ;;  %v2094_v62 = vsel %vm13121_vm13, %v2077_v38, %v1626_v1  ;;  %2875 = vmatprep.mubr.f32.mxu1 %v13082_v60  ;;  %vm1194_vm2 = vcmp.lt.s32.totalorder %v13089_v7, 124  ;;  %v1047_v61 = vsel %vm1031_vm8, %v1001_v22, 0.0 }
 0x241   :  { %v435_v24 = vsel %vm13118_vm10, %v8484_v19, %v430_v57  ;;  %vm13122_vm14 = vmmov %vm13121_vm13  ;;  %v1048_v53 = vsel %vm1032_vm15, %v1016_v55, 0.0  ;;  %vm13123_vm5 = vcmask 1044480   ;;  %vm383_vm13 = vcmp.ge.s32.totalorder %v13088_v16, 7  ;;  %v9171_v55 = vpop.f32.mrf.mxu1 }
 0x242   :  { %v2095_v23 = vsel %vm13122_vm14, %v2078_v30, %v1627_v21  ;;  %vm13124_vm10 = vmmov %vm13123_vm5  ;;  %vm384_vm14 = vcmp.ge.s32.totalorder %v13089_v7, 7  ;;  %v9138_v3 = vsel %vm464_vm9, %v435_v24, 0.0  ;;  %v9142_v52 = vsel %vm465_vm4, %v434_v15, 0.0  ;;  %v511_v21 = vpop.permute.xlu1 %510  ;;  %v13134_v30 = vld [vmem:[#allocation40_spill] sm:$0xff] }
 0x243   :  { %v2112_v19 = vsel %vm13123_vm5, %v2095_v23, %v1675_v9  ;;  %v2111_v10 = vsel %vm13124_vm10, %v2094_v62, %v1674_v50  ;;  %vm13125_vm8 = vcmask 1045504   ;;  %vm13128_vm11 = vcmask 1046528   ;;  %v13132_v9 = vld [vmem:[#allocation48_spill] sm:$0xff]  ;;  %v9186_v62 = vld [vmem:[%s12359_s2] sm:$0xff]  ;;  %v918_v23 = vpop.permute.xlu0 %917 }
 0x244   :  { %v2129_v5 = vsel %vm13125_vm8, %v2112_v19, %v1723_v46  ;;  %vm13126_vm15 = vmmov %vm13125_vm8  ;;  %vm13129_vm5 = vcmp.lt.s32.totalorder %v6495_v42, 125  ;;  %vm13135_vm10 = vcmask 130048   ;;  %vm13137_vm8 = vcmp.lt.s32.totalorder %v6495_v42, 5  ;;  %v13140_v19 = vld [vmem:[#allocation20_spill] sm:$0xff] }
 0x245   :  { %v2128_v1 = vsel %vm13126_vm15, %v2111_v10, %v1722_v6  ;;  %v2146_v12 = vsel %vm13128_vm11, %v2129_v5, %v13127_v44  ;;  %v1082_v14 = vsel %vm13129_vm5, %v8492_v58, %v1080_v27  ;;  %vm13131_vm9 = vmmov %vm13129_vm5  ;;  %5666 = vmatmul.mubr.msk.f32.gmra.mxu1 %vm13135_vm10, %v13134_v30  ;;  %v13136_v6 = vld [vmem:[#allocation19_spill] sm:$0xff]  ;;  %vm627_vm5 = vcmp.ge.s32.totalorder %v13089_v7, 4 }
 0x246   :  { %v1097_v50 = vsel %vm13131_vm9, %v1080_v27, %v13130_v31  ;;  %vm13133_vm4 = vmmov %vm13128_vm11  ;;  %2912 = vmatprep.subr.mxu0 %v2146_v12  ;;  %v515_v46 = vsel %vm13137_vm8, %v511_v21, %v13136_v6  ;;  %vm626_vm11 = vcmp.ge.s32.totalorder %v13088_v16, 4  ;;  %3041 = vmatprep.mubr.f32.mxu1 %v13082_v60  ;;  %v1772_v58 = vrot.slane %v1047_v61, 7  ;;  %v1161_v61 = vpop.permute.xlu1 %1160  ;;  %v9217_v31 = vpop.f32.mrf.mxu1 }
 0x247   :  { %v2145_v38 = vsel %vm13133_vm4, %v2128_v1, %v13132_v9  ;;  %vm13138_vm15 = vmmov %vm13137_vm8  ;;  %v1773_v57 = vrot.slane %v1048_v53, 7  ;;  %v1484_v22 = vrot.slane %v9138_v3, 7  ;;  %v1485_v45 = vrot.slane %v9142_v52, 7  ;;  %v13143_v52 = vld [vmem:[#allocation21_spill] sm:$0xff] }
 0x248   :  { %v516_v41 = vsel %vm13138_vm15, %v8500_v36, %v511_v21  ;;  %2913 = vmatpush1.msra.mxu0 %v2145_v38  ;;  %vm1274_vm9 = vcmp.lt.s32.totalorder %v13088_v16, 123  ;;  %vm1275_vm4 = vcmp.lt.s32.totalorder %v13089_v7, 123  ;;  %v9173_v36 = vpop.f32.mrf.mxu0  ;;  %v1128_v59 = vsel %vm1112_vm7, %v1082_v14, 0.0 }
 0x249   :  { %v1129_v15 = vsel %vm1113_vm0, %v1097_v50, 0.0  ;;  %v561_v24 = vsel %vm545_vm1, %v516_v41, 0.0  ;;  %v562_v29 = vsel %vm546_vm12, %v515_v46, 0.0  ;;  %5669 = vmatmul.mubr.msk.f32.vlgmr.msra.gmra.mxu0 %vm13135_vm10, %v9186_v62  ;;  %vm707_vm7 = vcmp.ge.s32.totalorder %v13088_v16, 3  ;;  %v9224_v46 = vld [vmem:[%s12359_s2 + $0x8] sm:$0xff]  ;;  %v349_v41 = vpop.permute.xlu0 %348 }
 0x24a   :  { %vm708_vm0 = vcmp.ge.s32.totalorder %v13089_v7, 3  ;;  %vm13139_vm1 = vcmp.lt.s32.totalorder %v6495_v42, 127  ;;  %2952 = vmatprep.mubr.f32.mxu0 %v13082_v60  ;;  %vm13142_vm8 = vcmp.lt.s32.totalorder %v6495_v42, 124  ;;  %vm13145_vm10 = vcmp.lt.s32.totalorder %v13089_v7, 127  ;;  %v9219_v50 = vpop.f32.mrf.mxu0 }
 0x24b   :  { %v920_v53 = vsel %vm13139_vm1, %v8518_v28, %v918_v23  ;;  %vm13141_vm12 = vmmov %vm13139_vm1  ;;  %v1163_v3 = vsel %vm13142_vm8, %v8545_v37, %v1161_v61  ;;  %v1820_v44 = vrot.slane %v1128_v59, 6  ;;  %v1821_v12 = vrot.slane %v1129_v15, 6  ;;  %v13151_v15 = vld [vmem:[#allocation22_spill] sm:$0xff] }
 0x24c   :  { %v935_v10 = vsel %vm13141_vm12, %v918_v23, %v13140_v19  ;;  %vm13144_vm15 = vmmov %vm13142_vm8  ;;  %v966_v27 = vsel %vm12493_vm3, %v920_v53, 0.0  ;;  %v1209_v1 = vsel %vm1193_vm6, %v1163_v3, 0.0  ;;  %vm13146_vm1 = vcmask 1040384   ;;  %v13154_v53 = vld [vmem:[#allocation23_spill] sm:$0xff] }
 0x24d   :  { %v1178_v5 = vsel %vm13144_vm15, %v1161_v61, %v13143_v52  ;;  %v967_v28 = vsel %vm13145_vm10, %v935_v10, 0.0  ;;  %v2163_v37 = vsel %vm13146_vm1, %v966_v27, %v1772_v58  ;;  %vm13147_vm12 = vmmov %vm13146_vm1  ;;  %vm1355_vm8 = vcmp.lt.s32.totalorder %v13088_v16, 122  ;;  %v592_v58 = vpop.permute.xlu1 %591  ;;  %v9259_v27 = vpop.f32.mrf.mxu1 }
 0x24e   :  { %v1210_v21 = vsel %vm1194_vm2, %v1178_v5, 0.0  ;;  %v2164_v14 = vsel %vm13147_vm12, %v967_v28, %v1773_v57  ;;  %v1532_v9 = vrot.slane %v561_v24, 6  ;;  %v1533_v38 = vrot.slane %v562_v29, 6 }
 0x24f   :  { %v1868_v30 = vrot.slane %v1209_v1, 5  ;;  %v1869_v6 = vrot.slane %v1210_v21, 5  ;;  %vm13148_vm6 = vcmask 130048   ;;  %vm788_vm2 = vcmp.ge.s32.totalorder %v13088_v16, 2  ;;  %v9268_v21 = vld [vmem:[%s12359_s2 + $0x10] sm:$0xff] }
 0x250   :  { %5670 = vmatmul.mubr.msk.f32.gmra.mxu0 %vm13148_vm6, %v9224_v46  ;;  %vm789_vm10 = vcmp.ge.s32.totalorder %v13089_v7, 2  ;;  %vm13149_vm1 = vcmask 1041408   ;;  %vm13152_vm3 = vcmp.lt.s32.totalorder %v6495_v42, 7  ;;  %vm13155_vm6 = vcmp.lt.s32.totalorder %v6495_v42, 4 }
 0x251   :  { %v2179_v57 = vsel %vm13149_vm1, %v2163_v37, %v1820_v44  ;;  %vm13150_vm12 = vmmov %vm13149_vm1  ;;  %v353_v24 = vsel %vm13152_vm3, %v349_v41, %v13151_v15  ;;  %2958 = vmatprep.mubr.f32.mxu0 %v13082_v60  ;;  %v596_v19 = vsel %vm13155_vm6, %v592_v58, %v13154_v53  ;;  %v1242_v44 = vpop.permute.xlu0 %1241 }
 0x252   :  { %v2180_v59 = vsel %vm13150_vm12, %v2164_v14, %v1821_v12  ;;  %vm13153_vm15 = vmmov %vm13152_vm3  ;;  %v400_v61 = vsel %vm384_vm14, %v353_v24, 0.0  ;;  %vm13157_vm3 = vcmask 1040384   ;;  %v643_v5 = vsel %vm627_vm5, %v596_v19, 0.0  ;;  %v673_v12 = vpop.permute.xlu1 %672  ;;  %v13163_v14 = vld [vmem:[#allocation25_spill] sm:$0xff] }
 0x253   :  { %v354_v29 = vsel %vm13153_vm15, %v8646_v20, %v349_v41  ;;  %vm13156_vm1 = vmmov %vm13155_vm6  ;;  %vm1437_vm14 = vcmp.lt.s32.totalorder %v13089_v7, 121  ;;  %vm869_vm15 = vcmp.ge.s32.totalorder %v13088_v16, 1  ;;  %v1581_v1 = vrot.slane %v643_v5, 5 }
 0x254   :  { %v399_v23 = vsel %vm383_vm13, %v354_v29, 0.0  ;;  %v597_v10 = vsel %vm13156_vm1, %v8688_v40, %v592_v58  ;;  %vm13158_vm12 = vmmov %vm13157_vm3  ;;  %vm1436_vm13 = vcmp.lt.s32.totalorder %v13088_v16, 121  ;;  %v9261_v40 = vpop.f32.mrf.mxu0  ;;  %vm13159_vm1 = vcmask 1041408  }
 0x255   :  { %v2045_v3 = vsel %vm13157_vm3, %v399_v23, %v1484_v22  ;;  %v2046_v20 = vsel %vm13158_vm12, %v400_v61, %v1485_v45  ;;  %v642_v52 = vsel %vm626_vm11, %v597_v10, 0.0  ;;  %vm13160_vm3 = vmmov %vm13159_vm1  ;;  %vm13161_vm11 = vcmask 130048  }
 0x256   :  { %v2062_v22 = vsel %vm13159_vm1, %v2045_v3, %v1532_v9  ;;  %v2063_v45 = vsel %vm13160_vm3, %v2046_v20, %v1533_v38  ;;  %v1580_v28 = vrot.slane %v642_v52, 5  ;;  %5671 = vmatmul.mubr.msk.f32.gmra.mxu0 %vm13161_vm11, %v9268_v21  ;;  %vm13162_vm5 = vcmp.lt.s32.totalorder %v6495_v42, 123  ;;  %v13165_v38 = vld [vmem:[#allocation26_spill] sm:$0xff]  ;;  %v9304_v3 = vld [vmem:[%s12359_s2 + $0x18] sm:$0xff]  ;;  %v1323_v20 = vpop.permute.xlu0 %1322  ;;  %v754_v52 = vpop.permute.xlu1 %753 }
 0x257   :  { %v1244_v37 = vsel %vm13162_vm5, %v8778_v8, %v1242_v44  ;;  %vm13164_vm12 = vmmov %vm13162_vm5  ;;  %2964 = vmatprep.mubr.f32.mxu0 %v13082_v60  ;;  %vm13166_vm1 = vcmp.lt.s32.totalorder %v6495_v42, 3  ;;  %vm13168_vm11 = vcmask 1042432  }
 0x258   :  { %v1259_v9 = vsel %vm13164_vm12, %v1242_v44, %v13163_v14  ;;  %v677_v41 = vsel %vm13166_vm1, %v673_v12, %v13165_v38  ;;  %vm13167_vm3 = vmmov %vm13166_vm1  ;;  %v2195_v15 = vsel %vm13168_vm11, %v2179_v57, %v1868_v30  ;;  %v1290_v8 = vsel %vm1274_vm9, %v1244_v37, 0.0  ;;  %v9298_v30 = vpop.f32.mrf.mxu0 }
 0x259   :  { %v678_v58 = vsel %vm13167_vm3, %v8859_v32, %v673_v12  ;;  %vm13169_vm6 = vmmov %vm13168_vm11  ;;  %v1291_v29 = vsel %vm1275_vm4, %v1259_v9, 0.0  ;;  %v1916_v61 = vrot.slane %v1290_v8, 4  ;;  %v724_v19 = vsel %vm708_vm0, %v677_v41, 0.0  ;;  %v9296_v32 = vpop.f32.mrf.mxu1 }
 0x25a   :  { %v2196_v24 = vsel %vm13169_vm6, %v2180_v59, %v1869_v6  ;;  %vm13170_vm5 = vmmov %vm13169_vm6  ;;  %v723_v53 = vsel %vm707_vm7, %v678_v58, 0.0  ;;  %v1917_v57 = vrot.slane %v1291_v29, 4  ;;  %v1629_v10 = vrot.slane %v724_v19, 4  ;;  %v9331_v8 = vpop.f32.mrf.mxu0 }
 0x25b   :  { %v2079_v23 = vsel %vm13170_vm5, %v2062_v22, %v1580_v28  ;;  %vm13171_vm6 = vmmov %vm13170_vm5  ;;  %v1628_v59 = vrot.slane %v723_v53, 4  ;;  %vm13172_vm9 = vcmask 130048   ;;  %vm13173_vm4 = vcmask 1043456   ;;  %v835_v53 = vpop.permute.xlu1 %834 }
 0x25c   :  { %v2080_v6 = vsel %vm13171_vm6, %v2063_v45, %v1581_v1  ;;  %5672 = vmatmul.mubr.msk.f32.gmra.mxu0 %vm13172_vm9, %v9304_v3  ;;  %v2211_v5 = vsel %vm13173_vm4, %v2195_v15, %v1916_v61  ;;  %vm13174_vm7 = vcmp.lt.s32.totalorder %v6495_v42, 122  ;;  %v13175_v45 = vld [vmem:[#allocation29_spill] sm:$0xff]  ;;  %v13177_v1 = vld [vmem:[#allocation30_spill] sm:$0xff]  ;;  %vm13178_vm12 = vcmp.lt.s32.totalorder %v6495_v42, 2  ;;  %vm13179_vm1 = vmmov %vm13173_vm4  ;;  %v2491_v15 = vpop.f32.mrf.mxu1 }
 0x25d   :  { %v1325_v22 = vsel %vm13174_vm7, %v8946_v13, %v1323_v20  ;;  %vm13176_vm0 = vmmov %vm13174_vm7  ;;  %2970 = vmatprep.mubr.f32.mxu0 %v13082_v60  ;;  %v758_v44 = vsel %vm13178_vm12, %v754_v52, %v13177_v1  ;;  %v2096_v12 = vsel %vm13179_vm1, %v2079_v23, %v1628_v59  ;;  %vm13180_vm3 = vcmp.lt.s32.totalorder %v13089_v7, 122  ;;  %v9336_v61 = vld [vmem:[%s12359_s2 + $0x20] sm:$0xff] }
 0x25e   :  { %v1340_v28 = vsel %vm13176_vm0, %v1323_v20, %v13175_v45  ;;  %v1371_v37 = vsel %vm1355_vm8, %v1325_v22, 0.0  ;;  %vm13181_vm11 = vmmov %vm13178_vm12  ;;  %v805_v58 = vsel %vm789_vm10, %v758_v44, 0.0  ;;  %vm13185_vm10 = vcmp.lt.s32.totalorder %v6495_v42, 121  ;;  %v13188_v45 = vld [vmem:[#allocation33_spill] sm:$0xff] }
 0x25f   :  { %v1372_v14 = vsel %vm13180_vm3, %v1340_v28, 0.0  ;;  %v759_v13 = vsel %vm13181_vm11, %v8994_v0, %v754_v52  ;;  %v1964_v9 = vrot.slane %v1371_v37, 3  ;;  %v1677_v23 = vrot.slane %v805_v58, 3  ;;  %vm13182_vm8 = vmmov %vm13172_vm9  ;;  %v1404_v0 = vpop.permute.xlu0 %1403  ;;  %v13186_v52 = vld [vmem:[#allocation32_spill] sm:$0xff] }
 0x260   :  { %v1965_v38 = vrot.slane %v1372_v14, 3  ;;  %v804_v41 = vsel %vm788_vm2, %v759_v13, 0.0  ;;  %5673 = vmatmul.mubr.msk.f32.gmra.mxu0 %vm13182_vm8, %v9336_v61  ;;  %vm13183_vm5 = vmmov %vm13179_vm1  ;;  %v1406_v20 = vsel %vm13185_vm10, %v9029_v18, %v1404_v0  ;;  %vm13189_vm9 = vcmp.lt.s32.totalorder %v6495_v42, 1  ;;  %v2493_v13 = vpop.f32.mrf.mxu1 }
 0x261   :  { %v1676_v29 = vrot.slane %v804_v41, 3  ;;  %v2212_v19 = vsel %vm13183_vm5, %v2196_v24, %v1917_v57  ;;  %vm13184_vm2 = vmmov %vm13179_vm1  ;;  %v839_v28 = vsel %vm13189_vm9, %v835_v53, %v13188_v45  ;;  %4009 = vmatprep.mubr.f32.mxu0 %v13082_v60  ;;  %v1452_v24 = vsel %vm1436_vm13, %v1406_v20, 0.0 }
 0x262   :  { %v2097_v59 = vsel %vm13184_vm2, %v2080_v6, %v1629_v10  ;;  %vm13187_vm6 = vmmov %vm13185_vm10  ;;  %vm13191_vm7 = vcmp.ge.s32.totalorder %v13089_v7, 1  ;;  %v2012_v10 = vrot.slane %v1452_v24, 2  ;;  %vm13192_vm0 = vcmask 1044480  }
 0x263   :  { %v1421_v22 = vsel %vm13187_vm6, %v1404_v0, %v13186_v52  ;;  %vm13190_vm4 = vmmov %vm13189_vm9  ;;  %v886_v57 = vsel %vm13191_vm7, %v839_v28, 0.0  ;;  %v2228_v41 = vsel %vm13192_vm0, %v2212_v19, %v1965_v38  ;;  %vm13200_vm5 = vcmask 1046528   ;;  %v13201_v28 = vld [vmem:[#allocation7_spill] sm:$0xff]  ;;  %v9382_v19 = vpop.permute.xlu0 %2293 }
 0x264   :  { %v840_v1 = vsel %vm13190_vm4, %v9066_v47, %v835_v53  ;;  %v1453_v18 = vsel %vm1437_vm14, %v1421_v22, 0.0  ;;  %v1725_v14 = vrot.slane %v886_v57, 2  ;;  %v2586_v47 = vpop.f32.mrf.mxu0  ;;  %vm13193_vm12 = vmmov %vm13192_vm0  ;;  %vm13196_vm14 = vcmask 1045504  }
 0x265   :  { %v885_v6 = vsel %vm869_vm15, %v840_v1, 0.0  ;;  %v2013_v44 = vrot.slane %v1453_v18, 2  ;;  %v2227_v58 = vsel %vm13193_vm12, %v2211_v5, %v1964_v9  ;;  %vm13194_vm13 = vmmov %vm13192_vm0  ;;  %v2497_v5 = vpop.f32.mrf.mxu1  ;;  %vm13206_vm9 = vcmask 130048  }
 0x266   :  { %v1724_v37 = vrot.slane %v885_v6, 2  ;;  %v2114_v0 = vsel %vm13194_vm13, %v2097_v59, %v1677_v23  ;;  %vm13195_vm1 = vmmov %vm13192_vm0  ;;  %v9375_v9 = vpop.f32.mrf.mxu0  ;;  %v9384_v59 = vpop.permute.xlu1 %2288  ;;  %v2498_v6 = vadd.f32 %v2497_v5, %v9382_v19  ;;  %vm13225_vm13 = vcmp.lt.s32.totalorder %v6495_v42, 127 }
 0x267   :  { %v2113_v53 = vsel %vm13195_vm1, %v2096_v12, %v1676_v29  ;;  %v2244_v20 = vsel %vm13196_vm14, %v2228_v41, %v2013_v44  ;;  %vm13197_vm3 = vmmov %vm13196_vm14  ;;  %v13204_v12 = vld [vmem:[#allocation10_spill] sm:$0xff]  ;;  %v2499_v29 = vpop.f32.mrf.mxu1  ;;  %v2494_v57 = vadd.f32 %v2493_v13, %v9384_v59 }
 0x268   :  { %v2243_v52 = vsel %vm13197_vm3, %v2227_v58, %v2012_v10  ;;  %vm13198_vm11 = vmmov %vm13197_vm3  ;;  %5674 = vmatprep.subr.msk.mxu1 %vm13200_vm5, %v2244_v20  ;;  %v2592_v23 = vpop.f32.mrf.mxu0  ;;  %v2500_v24 = vadd.f32 %v2499_v29, %v9382_v19  ;;  %v9401_v44 = vmax.f32 %v2498_v6, 0.0  ;;  %v2399_v29 = vadd.f32 %v9019_v2, %v9384_v59 }
 0x269   :  { %v2131_v22 = vsel %vm13198_vm11, %v2114_v0, %v1725_v14  ;;  %vm13199_vm8 = vmmov %vm13197_vm3  ;;  %v2593_v18 = vadd.f32 %v2592_v23, %v9382_v19  ;;  %v2492_v14 = vadd.f32 %v2491_v15, %v9384_v59 }
 0x26a   :  { %v2130_v45 = vsel %vm13199_vm8, %v2113_v53, %v1724_v37  ;;  %vm13202_vm2 = vmmov %vm13200_vm5  ;;  %v9403_v37 = vmax.f32 %v2494_v57, 0.0  ;;  %v9409_v13 = vpop.permute.xlu1 %2283  ;;  %v9514_v57 = vpop.f32.mrf.mxu0 }
 0x26b   :  { %v2148_v1 = vsel %vm13202_vm2, %v2131_v22, %v13201_v28  ;;  %vm13203_vm10 = vmmov %vm13202_vm2  ;;  %v9395_v10 = vmax.f32 %v2593_v18, 0.0  ;;  %v9418_v58 = vmax.f32 %v2492_v14, 0.0  ;;  %v2581_v15 = vadd.f32 %v9298_v30, %v9409_v13 }
 0x26c   :  { %5675 = vmatpush1.msk.msra.mxu1 %vm13203_vm10, %v2243_v52  ;;  %vm13205_vm6 = vmmov %vm13202_vm2  ;;  %v2486_v30 = vadd.f32 %v9259_v27, %v9409_v13  ;;  %v9510_v18 = vmax.f32 %v2399_v29, 0.0  ;;  %v2393_v6 = vadd.f32 %v8934_v34, %v9409_v13 }
 0x26d   :  { %3007 = vmatprep.subr.mxu1 %v2148_v1  ;;  %v2147_v38 = vsel %vm13205_vm6, %v2130_v45, %v13204_v12  ;;  %vm13207_vm4 = vmmov %vm13206_vm9  ;;  %13208 = vst [vmem:[#allocation36_spill] sm:$0xff] %v9395_v10  ;;  %3552 = vrot.lane.b32.xlu1 %v9395_v10, %s6170_s9  ;;  %v9433_v0 = vmax.f32 %v2581_v15, 0.0 }
 0x26e   :  { %3008 = vmatpush1.msra.mxu1 %v2147_v38  ;;  %vm13209_vm7 = vmmov %vm13207_vm4  ;;  %v9450_v20 = vmax.f32 %v2486_v30, 0.0  ;;  %v9456_v52 = vpop.permute.xlu1 %2273  ;;  %v9520_v2 = vmax.f32 %v2393_v6, 0.0 }
 0x26f   :  { %5676 = vmatmul.mubr.msk.f32.vlgmr.msra.gmra.mxu1 %vm13206_vm9, %v9186_v62  ;;  %v9393_v62 = vmax.f32 %v2500_v24, 0.0  ;;  %vm13211_vm0 = vmmov %vm13207_vm4  ;;  %13212 = vst [vmem:[#allocation11_spill] sm:$0xff] %v9433_v0  ;;  %v2569_v45 = vadd.f32 %v9134_v56, %v9456_v52  ;;  %v2474_v1 = vadd.f32 %v9101_v26, %v9456_v52  ;;  %v2405_v56 = vadd.f32 %v9099_v49, %v9382_v19 }
 0x270   :  { %3047 = vmatprep.mubr.f32.mxu1 %v13082_v60  ;;  %vm13213_vm12 = vmmov %vm13211_vm0 }
 0x271   :  { %3542 = vrot.lane.b32.xlu0 %v9393_v62, %s6170_s9  ;;  %3540 = vrot.lane.b32.xlu1 %v9403_v37, %s6170_s9  ;;  %v9494_v26 = vmax.f32 %v2405_v56, 0.0  ;;  %vm13230_vm14 = vmmov %vm13225_vm13 }
 0x272   :  { %v9488_v5 = vpop.f32.mrf.mxu1  ;;  %vm13235_vm11 = vmmov %vm13225_vm13 }
 0x273   :  { %5677 = vmatmul.mubr.msk.f32.gmra.mxu1 %vm13207_vm4, %v9224_v46  ;;  %v2587_v46 = vadd.f32 %v2586_v47, %v9384_v59  ;;  %v9426_v47 = vpop.permute.xlu0 %2278  ;;  %vm13236_vm8 = vmmov %vm13235_vm11 }
 0x274   :  { %3053 = vmatprep.mubr.f32.mxu1 %v13082_v60  ;;  %v2575_v27 = vadd.f32 %v9219_v50, %v9426_v47  ;;  %v9474_v50 = vmax.f32 %v2569_v45, 0.0  ;;  %v9496_v12 = vpop.f32.mrf.mxu1  ;;  %v2381_v45 = vadd.f32 %v8761_v4, %v9456_v52  ;;  %vm13240_vm10 = vmmov %vm13236_vm8 }
 0x275   :  { %3532 = vrot.lane.b32.xlu0 %v9401_v44, %s6170_s9  ;;  %v9416_v41 = vmax.f32 %v2587_v46, 0.0  ;;  %3530 = vrot.lane.b32.xlu1 %v9418_v58, %s6170_s9  ;;  %vm13243_vm9 = vmmov %vm13236_vm8 }
 0x276   :  { %v9464_v22 = vmax.f32 %v2575_v27, 0.0  ;;  %13215 = vst [vmem:[#allocation16_spill] sm:$0xff] %v9474_v50  ;;  %v9547_v29 = vmax.f32 %v2381_v45, 0.0 }
 0x277   :  { %5678 = vmatmul.mubr.msk.f32.gmra.mxu1 %vm13209_vm7, %v9268_v21  ;;  %13210 = vst [vmem:[#allocation14_spill] sm:$0xff] %v9416_v41  ;;  %v2488_v21 = vadd.f32 %v9296_v32, %v9409_v13  ;;  %v2482_v32 = vadd.f32 %v9217_v31, %v9426_v47  ;;  %v2480_v31 = vadd.f32 %v9171_v55, %v9426_v47  ;;  %v9498_v38 = vpop.f32.mrf.mxu1  ;;  %vm13247_vm7 = vmmov %vm13236_vm8 }
 0x278   :  { %3059 = vmatprep.mubr.f32.mxu1 %v13082_v60  ;;  %13214 = vst [vmem:[#allocation41_spill] sm:$0xff] %v9464_v22  ;;  %v2476_v55 = vadd.f32 %v9132_v54, %v9456_v52  ;;  %v9484_v54 = vmax.f32 %v2474_v1, 0.0 }
 0x279   :  { %3550 = vrot.lane.b32.xlu0 %v9416_v41, %s6170_s9  ;;  %v9435_v53 = vmax.f32 %v2488_v21, 0.0  ;;  %3548 = vrot.lane.b32.xlu1 %v9433_v0, %s6170_s9  ;;  %v2671_v49 = vpop.f32.mrf.mxu1  ;;  %v2387_v21 = vadd.f32 %v8845_v63, %v9426_v47 }
 0x27a   :  { %v9476_v28 = vmax.f32 %v2476_v55, 0.0 }
 0x27b   :  { %5679 = vmatmul.mubr.msk.f32.gmra.mxu1 %vm13211_vm0, %v9304_v3  ;;  %v9448_v3 = vmax.f32 %v2482_v32, 0.0  ;;  %v2675_v23 = vpop.f32.mrf.mxu1  ;;  %v9536_v27 = vmax.f32 %v2387_v21, 0.0  ;;  %vm13248_vm0 = vmmov %vm13247_vm7 }
 0x27c   :  { %3065 = vmatprep.mubr.f32.mxu1 %v13082_v60 }
 0x27d   :  { %3538 = vrot.lane.b32.xlu0 %v9435_v53, %s6170_s9  ;;  %3536 = vrot.lane.b32.xlu1 %v9448_v3, %s6170_s9  ;;  %v2677_v24 = vpop.f32.mrf.mxu1 }
 0x27f   :  { %5680 = vmatmul.mubr.msk.f32.gmra.mxu1 %vm13213_vm12, %v9336_v61  ;;  %v9462_v61 = vmax.f32 %v2480_v31, 0.0 }
 0x280   :  { %4080 = vmatprep.mubr.f32.mxu1 %v13082_v60 }
 0x281   :  { %3528 = vrot.lane.b32.xlu0 %v9450_v20, %s6170_s9  ;;  %3526 = vrot.lane.b32.xlu1 %v9462_v61, %s6170_s9 }
 0x285   :  { %3546 = vrot.lane.b32.xlu0 %v9464_v22, %s6170_s9  ;;  %3544 = vrot.lane.b32.xlu1 %v9474_v50, %s6170_s9 }
 0x286   :  { %v2681_v46 = vpop.f32.mrf.mxu1 }
 0x288   :  { %v2683_v15 = vpop.f32.mrf.mxu1 }
 0x289   :  { %3534 = vrot.lane.b32.xlu0 %v9476_v28, %s6170_s9  ;;  %3180 = vrot.lane.b32.xlu1 %v9401_v44, %s6179_s18  ;;  %v2684_v45 = vadd.f32 %v2683_v15, %v9384_v59 }
 0x28a   :  { %v2758_v14 = vpop.f32.mrf.mxu0  ;;  %v2687_v30 = vpop.f32.mrf.mxu1 }
 0x28b   :  { %v2688_v21 = vadd.f32 %v2687_v30, %v9382_v19  ;;  %v2678_v30 = vadd.f32 %v2677_v24, %v9409_v13 }
 0x28c   :  { %v9526_v34 = vpop.f32.mrf.mxu0  ;;  %v2689_v1 = vpop.f32.mrf.mxu1 }
 0x28d   :  { %3524 = vrot.lane.b32.xlu0 %v9484_v54, %s6170_s9  ;;  %3170 = vrot.lane.b32.xlu1 %v9494_v26, %s6179_s18  ;;  %v2690_v56 = vadd.f32 %v2689_v1, %v9382_v19  ;;  %v9562_v1 = vmax.f32 %v2688_v21, 0.0  ;;  %v9582_v15 = vmax.f32 %v2678_v30, 0.0 }
 0x28e   :  { %v2764_v32 = vpop.f32.mrf.mxu0 }
 0x28f   :  { %v9556_v17 = vmax.f32 %v2690_v56, 0.0  ;;  %v9573_v56 = vmax.f32 %v2684_v45, 0.0  ;;  %v2765_v21 = vadd.f32 %v2764_v32, %v9426_v47  ;;  %v2664_v32 = vadd.f32 %v9488_v5, %v9456_v52 }
 0x290   :  { %v9534_v31 = vpop.f32.mrf.mxu0  ;;  %v2595_v5 = vadd.f32 %v9514_v57, %v9382_v19  ;;  %v2583_v57 = vadd.f32 %v9331_v8, %v9409_v13 }
 0x291   :  { %3190 = vrot.lane.b32.xlu0 %v9393_v62, %s6179_s18  ;;  %3188 = vrot.lane.b32.xlu1 %v9403_v37, %s6179_s18 }
 0x292   :  { %v2770_v55 = vpop.f32.mrf.mxu0 }
 0x293   :  { %v2771_v24 = vadd.f32 %v2770_v55, %v9409_v13  ;;  %v2670_v55 = vadd.f32 %v9498_v38, %v9426_v47  ;;  %v9624_v38 = vmax.f32 %v2664_v32, 0.0 }
 0x294   :  { %v9544_v63 = vpop.f32.mrf.mxu0 }
 0x295   :  { %3178 = vrot.lane.b32.xlu0 %v9418_v58, %s6179_s18  ;;  %3176 = vrot.lane.b32.xlu1 %v9450_v20, %s6179_s18  ;;  %v9595_v45 = vmax.f32 %v2771_v24, 0.0 }
 0x296   :  { %v2776_v6 = vpop.f32.mrf.mxu0 }
 0x297   :  { %v2777_v7 = vadd.f32 %v2776_v6, %v9384_v59  ;;  %13218 = vst [vmem:[#allocation31_spill] sm:$0xff] %v9595_v45 }
 0x298   :  { %v9553_v4 = vpop.f32.mrf.mxu0 }
 0x299   :  { %3168 = vrot.lane.b32.xlu0 %v9510_v18, %s6179_s18  ;;  %3166 = vrot.lane.b32.xlu1 %v9520_v2, %s6179_s18  ;;  %v9575_v22 = vmax.f32 %v2777_v7, 0.0  ;;  %v2672_v7 = vadd.f32 %v2671_v49, %v9426_v47  ;;  %v9607_v49 = vmax.f32 %v2765_v21, 0.0 }
 0x29a   :  { %v2782_v48 = vpop.f32.mrf.mxu0 }
 0x29b   :  { %v2783_v16 = vadd.f32 %v2782_v48, %v9382_v19  ;;  %v2682_v48 = vadd.f32 %v2681_v46, %v9384_v59  ;;  %13217 = vst [vmem:[#allocation37_spill] sm:$0xff] %v9575_v22  ;;  %v9605_v30 = vmax.f32 %v2672_v7, 0.0  ;;  %13219 = vst [vmem:[#allocation18_spill] sm:$0xff] %v9607_v49  ;;  %v2589_v7 = vadd.f32 %v9375_v9, %v9384_v59 }
 0x29c   :  { %v9658_v9 = vmax.f32 %v2583_v57, 0.0 }
 0x29d   :  { %3186 = vrot.lane.b32.xlu0 %v9435_v53, %s6179_s18  ;;  %3184 = vrot.lane.b32.xlu1 %v9448_v3, %s6179_s18  ;;  %v9565_v50 = vmax.f32 %v2783_v16, 0.0  ;;  %v2676_v16 = vadd.f32 %v2675_v23, %v9409_v13  ;;  %v9584_v6 = vmax.f32 %v2682_v48, 0.0  ;;  %v2666_v23 = vadd.f32 %v9496_v12, %v9456_v52 }
 0x29e   :  { %v2759_v12 = vadd.f32 %v2758_v14, %v9456_v52  ;;  %v9638_v14 = vmax.f32 %v2595_v5, 0.0  ;;  %v9646_v21 = vmax.f32 %v2589_v7, 0.0  ;;  %13222 = vst [vmem:[#allocation19_spill] sm:$0xff] %v9658_v9  ;;  %v13226_v5 = vld [vmem:[#allocation43_spill] sm:$0xff] }
 0x29f   :  { %13216 = vst [vmem:[#allocation17_spill] sm:$0xff] %v9565_v50  ;;  %v9592_v46 = vmax.f32 %v2676_v16, 0.0  ;;  %v9615_v48 = vmax.f32 %v2666_v23, 0.0  ;;  %v9617_v16 = vmax.f32 %v2670_v55, 0.0  ;;  %v2577_v23 = vadd.f32 %v9261_v40, %v9426_v47 }
 0x2a0   :  { %v9626_v24 = vmax.f32 %v2759_v12, 0.0  ;;  %13221 = vst [vmem:[#allocation40_spill] sm:$0xff] %v9646_v21  ;;  %v2571_v40 = vadd.f32 %v9173_v36, %v9456_v52  ;;  %vm13227_vm1 = vcmp.lt.s32.totalorder %v13226_v5, 127 }
 0x2a1   :  { %3174 = vrot.lane.b32.xlu0 %v9462_v61, %s6179_s18  ;;  %3172 = vrot.lane.b32.xlu1 %v9484_v54, %s6179_s18  ;;  %v9666_v55 = vmax.f32 %v2577_v23, 0.0  ;;  %vm13237_vm5 = vmmov %vm13227_vm1 }
 0x2a2   :  { %13220 = vst [vmem:[#allocation48_spill] sm:$0xff] %v9626_v24  ;;  %v9687_v23 = vmax.f32 %v2571_v40, 0.0  ;;  %vm13241_vm6 = vmmov %vm13227_vm1 }
 0x2a3   :  { %13223 = vst [vmem:[#allocation20_spill] sm:$0xff] %v9666_v55  ;;  %vm13249_vm12 = vmmov %vm13227_vm1 }
 0x2a4   :  { %13229 = vst [vmem:[#allocation23_spill] sm:$0xff] %v9687_v23 }
 0x2a5   :  { %3164 = vrot.lane.b32.xlu0 %v9536_v27, %s6179_s18  ;;  %3162 = vrot.lane.b32.xlu1 %v9547_v29, %s6179_s18 }
 0x2a9   :  { %3182 = vrot.lane.b32.xlu0 %v9476_v28, %s6179_s18  ;;  %3592 = vrot.lane.b32.xlu1 %v9565_v50, %s6170_s9 }
 0x2ad   :  { %3582 = vrot.lane.b32.xlu0 %v9556_v17, %s6170_s9  ;;  %3580 = vrot.lane.b32.xlu1 %v9573_v56, %s6170_s9 }
 0x2b1   :  { %3572 = vrot.lane.b32.xlu0 %v9562_v1, %s6170_s9  ;;  %3570 = vrot.lane.b32.xlu1 %v9584_v6, %s6170_s9 }
 0x2b5   :  { %3590 = vrot.lane.b32.xlu0 %v9575_v22, %s6170_s9  ;;  %3588 = vrot.lane.b32.xlu1 %v9595_v45, %s6170_s9 }
 0x2b9   :  { %3578 = vrot.lane.b32.xlu0 %v9582_v15, %s6170_s9  ;;  %3576 = vrot.lane.b32.xlu1 %v9605_v30, %s6170_s9 }
 0x2bd   :  { %3568 = vrot.lane.b32.xlu0 %v9592_v46, %s6170_s9  ;;  %3566 = vrot.lane.b32.xlu1 %v9617_v16, %s6170_s9 }
 0x2c1   :  { %3586 = vrot.lane.b32.xlu0 %v9607_v49, %s6170_s9  ;;  %3584 = vrot.lane.b32.xlu1 %v9626_v24, %s6170_s9 }
 0x2c5   :  { %3574 = vrot.lane.b32.xlu0 %v9615_v48, %s6170_s9  ;;  %3220 = vrot.lane.b32.xlu1 %v9562_v1, %s6179_s18 }
 0x2c9   :  { %3564 = vrot.lane.b32.xlu0 %v9624_v38, %s6170_s9  ;;  %3210 = vrot.lane.b32.xlu1 %v9638_v14, %s6179_s18 }
 0x2cd   :  { %3230 = vrot.lane.b32.xlu0 %v9556_v17, %s6179_s18  ;;  %3228 = vrot.lane.b32.xlu1 %v9573_v56, %s6179_s18 }
 0x2d1   :  { %3218 = vrot.lane.b32.xlu0 %v9584_v6, %s6179_s18  ;;  %3216 = vrot.lane.b32.xlu1 %v9592_v46, %s6179_s18 }
 0x2d5   :  { %3208 = vrot.lane.b32.xlu0 %v9646_v21, %s6179_s18  ;;  %3206 = vrot.lane.b32.xlu1 %v9658_v9, %s6179_s18 }
 0x2d9   :  { %3226 = vrot.lane.b32.xlu0 %v9582_v15, %s6179_s18  ;;  %3224 = vrot.lane.b32.xlu1 %v9605_v30, %s6179_s18 }
 0x2dd   :  { %3214 = vrot.lane.b32.xlu0 %v9617_v16, %s6179_s18  ;;  %3212 = vrot.lane.b32.xlu1 %v9624_v38, %s6179_s18 }
 0x2df   :  { %v9672_v32 = vpop.permute.xlu1 %3552 }
 0x2e0   :  { %13224 = vst [vmem:[#allocation21_spill] sm:$0xff] %v9672_v32 }
 0x2e1   :  { %3204 = vrot.lane.b32.xlu0 %v9666_v55, %s6179_s18  ;;  %3202 = vrot.lane.b32.xlu1 %v9687_v23, %s6179_s18 }
 0x2e3   :  { %v3543_v8 = vpop.permute.xlu0 %3542  ;;  %v3541_v57 = vpop.permute.xlu1 %3540 }
 0x2e4   :  { %v3723_v12 = vsel %vm13225_vm13, %v3543_v8, %v9672_v32  ;;  %v13231_v32 = vld [vmem:[#allocation42_spill] sm:$0xff] }
 0x2e5   :  { %3222 = vrot.lane.b32.xlu0 %v9615_v48, %s6179_s18  ;;  %5702 = vmatprep.subr.msk.mxu1 %vm13227_vm1, %v3723_v12  ;;  %vm13232_vm3 = vcmp.lt.s32.totalorder %v13231_v32, 127  ;;  %vm13252_vm1 = vmmov %vm13248_vm0 }
 0x2e6   :  { %vm13238_vm2 = vmmov %vm13232_vm3 }
 0x2e7   :  { %v9685_v7 = vpop.permute.xlu0 %3532  ;;  %v9698_v45 = vpop.permute.xlu1 %3530  ;;  %vm13244_vm4 = vmmov %vm13238_vm2 }
 0x2e8   :  { %13228 = vst [vmem:[#allocation22_spill] sm:$0xff] %v9685_v7  ;;  %v3728_v36 = vsel %vm13230_vm14, %v9685_v7, %v3543_v8  ;;  %13234 = vst [vmem:[#allocation26_spill] sm:$0xff] %v9698_v45  ;;  %v3727_v12 = vsel %vm13235_vm11, %v9698_v45, %v3541_v57 }
 0x2e9   :  { %5703 = vmatpush1.msk.msra.mxu1 %vm13232_vm3, %v3728_v36  ;;  %vm13250_vm13 = vmmov %vm13238_vm2 }
 0x2ea   :  { %vm13253_vm14 = vmmov %vm13237_vm5 }
 0x2eb   :  { %v9696_v24 = vpop.permute.xlu0 %3550  ;;  %v9710_v36 = vpop.permute.xlu1 %3548  ;;  %vm13255_vm3 = vmmov %vm13248_vm0 }
 0x2ec   :  { %13233 = vst [vmem:[#allocation25_spill] sm:$0xff] %v9696_v24  ;;  %v3722_v40 = vsel %vm13236_vm8, %v3541_v57, %v9696_v24  ;;  %13239 = vst [vmem:[#allocation29_spill] sm:$0xff] %v9710_v36  ;;  %vm13260_vm8 = vcmp.lt.s32.totalorder %v6495_v42, 1 }
 0x2ed   :  { %5704 = vmatprep.subr.msk.mxu1 %vm13237_vm5, %v3722_v40  ;;  %v9740_v24 = vpop.f32.mrf.mxu1  ;;  %vm13256_vm11 = vmmov %vm13238_vm2 }
 0x2ee   :  { %5705 = vmatpush1.msk.msra.mxu1 %vm13238_vm2, %v3727_v12  ;;  %vm13262_vm5 = vmmov %vm13260_vm8 }
 0x2ef   :  { %v3539_v8 = vpop.permute.xlu0 %3538  ;;  %v3537_v22 = vpop.permute.xlu1 %3536  ;;  %vm13263_vm2 = vmmov %vm13262_vm5 }
 0x2f0   :  { %v3721_v50 = vsel %vm13240_vm10, %v3539_v8, %v9710_v36  ;;  %vm13264_vm10 = vcmp.ge.s32.totalorder %v13226_v5, 1 }
 0x2f1   :  { %5706 = vmatprep.subr.msk.mxu1 %vm13241_vm6, %v3721_v50  ;;  %vm13265_vm6 = vcmp.ge.s32.totalorder %v13231_v32, 1  ;;  %v2403_v32 = vadd.f32 %v9060_v25, %v9382_v19 }
 0x2f3   :  { %v9717_v49 = vpop.permute.xlu0 %3528  ;;  %v9726_v40 = vpop.permute.xlu1 %3526 }
 0x2f4   :  { %13242 = vst [vmem:[#allocation30_spill] sm:$0xff] %v9717_v49  ;;  %v3726_v57 = vsel %vm13243_vm9, %v9717_v49, %v3539_v8  ;;  %13246 = vst [vmem:[#allocation33_spill] sm:$0xff] %v9726_v40  ;;  %v3725_v36 = vsel %vm13247_vm7, %v9726_v40, %v3537_v22  ;;  %v9747_v40 = vpop.f32.mrf.mxu1 }
 0x2f5   :  { %5707 = vmatpush1.msk.msra.mxu1 %vm13244_vm4, %v3726_v57  ;;  %vm13266_vm9 = vmmov %vm13263_vm2 }
 0x2f6   :  { %vm13267_vm4 = vmmov %vm13264_vm10 }
 0x2f7   :  { %v9724_v12 = vpop.permute.xlu0 %3546  ;;  %v9738_v57 = vpop.permute.xlu1 %3544  ;;  %vm13269_vm7 = vmmov %vm13265_vm6 }
 0x2f8   :  { %13245 = vst [vmem:[#allocation32_spill] sm:$0xff] %v9724_v12  ;;  %v3720_v50 = vsel %vm13248_vm0, %v3537_v22, %v9724_v12  ;;  %13251 = vst [vmem:[#allocation7_spill] sm:$0xff] %v9738_v57  ;;  %v9754_v12 = vpop.f32.mrf.mxu1 }
 0x2f9   :  { %5708 = vmatprep.subr.msk.mxu1 %vm13249_vm12, %v3720_v50  ;;  %vm13271_vm0 = vmmov %vm13263_vm2 }
 0x2fa   :  { %5709 = vmatpush1.msk.msra.mxu1 %vm13250_vm13, %v3725_v36  ;;  %v9758_v41 = vpop.f32.mrf.mxu1  ;;  %vm13273_vm12 = vmmov %vm13271_vm0 }
 0x2fb   :  { %v3535_v8 = vpop.permute.xlu0 %3534  ;;  %v3181_v50 = vpop.permute.xlu1 %3180  ;;  %vm13274_vm13 = vmmov %vm13267_vm4 }
 0x2fc   :  { %v3719_v49 = vsel %vm13252_vm1, %v3535_v8, %v9738_v57  ;;  %v9766_v0 = vpop.f32.mrf.mxu1  ;;  %vm13275_vm1 = vmmov %vm13265_vm6 }
 0x2fd   :  { %5710 = vmatprep.subr.msk.mxu1 %vm13253_vm14, %v3719_v49  ;;  %vm13278_vm14 = vmmov %vm13271_vm0 }
 0x2ff   :  { %v9749_v22 = vpop.permute.xlu0 %3524  ;;  %v9764_v49 = vpop.permute.xlu1 %3170 }
 0x300   :  { %13254 = vst [vmem:[#allocation10_spill] sm:$0xff] %v9749_v22  ;;  %v3724_v36 = vsel %vm13255_vm3, %v9749_v22, %v3535_v8  ;;  %13258 = vst [vmem:[#allocation50_spill] sm:$0xff] %v9764_v49  ;;  %v2867_v8 = vpop.f32.mrf.mxu1 }
 0x301   :  { %5711 = vmatpush1.msk.msra.mxu1 %vm13256_vm11, %v3724_v36  ;;  %vm13279_vm3 = vmmov %vm13267_vm4 }
 0x302   :  { %4028 = vmatprep.subr.mxu1 %v9393_v62  ;;  %v9774_v62 = vpop.f32.mrf.mxu1  ;;  %vm13281_vm11 = vmmov %vm13271_vm0 }
 0x303   :  { %v9761_v57 = vpop.permute.xlu0 %3190  ;;  %4029 = vmatpush1.msra.mxu1 %v9401_v44  ;;  %v9772_v22 = vpop.permute.xlu1 %3188 }
 0x304   :  { %13257 = vst [vmem:[#allocation49_spill] sm:$0xff] %v9761_v57  ;;  %4030 = vmatprep.subr.mxu1 %v9403_v37  ;;  %13259 = vst [vmem:[#allocation51_spill] sm:$0xff] %v9772_v22  ;;  %v3376_v44 = vsel %vm13260_vm8, %v3181_v50, %v9761_v57  ;;  %v2873_v37 = vpop.f32.mrf.mxu1  ;;  %v9793_v57 = vpop.f32.mrf.mxu0 }
 0x305   :  { %4031 = vmatpush1.msra.mxu1 %v9418_v58  ;;  %vm13283_vm8 = vmmov %vm13275_vm1 }
 0x306   :  { %4032 = vmatprep.subr.mxu1 %v9435_v53 }
 0x307   :  { %v3179_v36 = vpop.permute.xlu0 %3178  ;;  %4033 = vmatpush1.msra.mxu1 %v9450_v20  ;;  %v3177_v53 = vpop.permute.xlu1 %3176 }
 0x308   :  { %4034 = vmatprep.subr.mxu1 %v9448_v3  ;;  %v3375_v20 = vsel %vm13262_vm5, %v3179_v36, %v9772_v22  ;;  %v3381_v3 = vsel %vm13263_vm2, %v9764_v49, %v3181_v50  ;;  %vm13286_vm5 = vmmov %vm13271_vm0  ;;  %vm3941_vm2 = vcmask 982016  }
 0x309   :  { %4035 = vmatpush1.msra.mxu1 %v9462_v61  ;;  %v2877_v61 = vpop.f32.mrf.mxu1  ;;  %v9802_v22 = vpop.f32.mrf.mxu0 }
 0x30a   :  { %4036 = vmatprep.subr.mxu1 %v9476_v28 }
 0x30b   :  { %v9782_v58 = vpop.permute.xlu0 %3168  ;;  %4037 = vmatpush1.msra.mxu1 %v9484_v54  ;;  %v2879_v54 = vpop.f32.mrf.mxu1 }
 0x30c   :  { %13261 = vst [vmem:[#allocation52_spill] sm:$0xff] %v9782_v58  ;;  %5712 = vmatprep.subr.msk.mxu1 %vm13264_vm10, %v3376_v44  ;;  %v3380_v28 = vsel %vm13266_vm9, %v9782_v58, %v3179_v36  ;;  %v2880_v50 = vadd.f32 %v2879_v54, %v9382_v19  ;;  %v9809_v44 = vpop.permute.xlu1 %3166  ;;  %v2878_v36 = vadd.f32 %v2877_v61, %v9382_v19  ;;  %vm13287_vm10 = vmmov %vm13271_vm0 }
 0x30d   :  { %5713 = vmatpush1.msk.msra.mxu1 %vm13265_vm6, %v3381_v3  ;;  %13270 = vst [vmem:[#allocation54_spill] sm:$0xff] %v9809_v44  ;;  %v3379_v54 = vsel %vm13273_vm12, %v9809_v44, %v3177_v53  ;;  %vm13288_vm6 = vmmov %vm13279_vm3 }
 0x30e   :  { %5714 = vmatprep.subr.msk.mxu1 %vm13267_vm4, %v3375_v20  ;;  %v9815_v58 = vmax.f32 %v2880_v50, 0.0  ;;  %v9817_v20 = vpop.f32.mrf.mxu0  ;;  %v9830_v50 = vmax.f32 %v2878_v36, 0.0  ;;  %vm13289_vm9 = vmmov %vm13275_vm1  ;;  %vm13293_vm4 = vcmp.lt.s32.totalorder %v6495_v42, 127 }
 0x30f   :  { %v9805_v49 = vpop.permute.xlu0 %3186  ;;  %5715 = vmatpush1.msk.msra.mxu1 %vm13269_vm7, %v3380_v28  ;;  %13272 = vst [vmem:[#allocation55_spill] sm:$0xff] %v9817_v20  ;;  %vm13294_vm7 = vmmov %vm13293_vm4 }
 0x310   :  { %13268 = vst [vmem:[#allocation53_spill] sm:$0xff] %v9805_v49  ;;  %v3374_v3 = vsel %vm13271_vm0, %v3177_v53, %v9805_v49  ;;  %v2954_v28 = vpop.f32.mrf.mxu0  ;;  %3622 = vrot.lane.b32.xlu0 %v9815_v58, %s6170_s9  ;;  %v9828_v61 = vpop.permute.xlu1 %3184 }
 0x311   :  { %5716 = vmatprep.subr.msk.mxu1 %vm13274_vm13, %v3374_v3  ;;  %13276 = vst [vmem:[#allocation56_spill] sm:$0xff] %v9828_v61  ;;  %vm13300_vm13 = vmmov %vm13293_vm4 }
 0x312   :  { %5717 = vmatpush1.msk.msra.mxu1 %vm13275_vm1, %v3379_v54  ;;  %v9832_v20 = vpop.f32.mrf.mxu0 }
 0x313   :  { %v3175_v49 = vpop.permute.xlu0 %3174  ;;  %13277 = vst [vmem:[#allocation57_spill] sm:$0xff] %v9832_v20 }
 0x314   :  { %v3373_v53 = vsel %vm13278_vm14, %v3175_v49, %v9828_v61  ;;  %3612 = vrot.lane.b32.xlu0 %v9830_v50, %s6170_s9  ;;  %v3173_v44 = vpop.permute.xlu1 %3172  ;;  %vm13303_vm14 = vmmov %vm13293_vm4 }
 0x315   :  { %5718 = vmatprep.subr.msk.mxu1 %vm13279_vm3, %v3373_v53 }
 0x316   :  { %v2960_v3 = vpop.f32.mrf.mxu0 }
 0x317   :  { %v9841_v54 = vpop.permute.xlu0 %3164 }
 0x318   :  { %13280 = vst [vmem:[#allocation58_spill] sm:$0xff] %v9841_v54  ;;  %v3378_v36 = vsel %vm13281_vm11, %v9841_v54, %v3175_v49  ;;  %v9846_v45 = vpop.f32.mrf.mxu0  ;;  %v9853_v10 = vpop.permute.xlu1 %3162  ;;  %v9861_v49 = vld [vmem:[%s12361_s4] sm:$0x1]  ;;  %vm13308_vm11 = vmmov %vm13293_vm4 }
 0x319   :  { %13282 = vst [vmem:[#allocation59_spill] sm:$0xff] %v9846_v45  ;;  %5719 = vmatpush1.msk.msra.mxu1 %vm13283_vm8, %v3378_v36  ;;  %13285 = vst [vmem:[#allocation61_spill] sm:$0xff] %v9853_v10  ;;  %v3377_v36 = vsel %vm13287_vm10, %v9853_v10, %v3173_v44  ;;  %v13297_v10 = vld [vmem:[#allocation34_spill] sm:$0xff] }
 0x31a   :  { %vm13298_vm12 = vcmp.lt.s32.totalorder %v13297_v10, 127  ;;  %vm13310_vm8 = vmmov %vm13293_vm4 }
 0x31b   :  { %v9850_v20 = vpop.permute.xlu0 %3182  ;;  %vm13306_vm3 = vmmov %vm13298_vm12 }
 0x31c   :  { %v2966_v61 = vpop.f32.mrf.mxu0  ;;  %13284 = vst [vmem:[#allocation60_spill] sm:$0xff] %v9850_v20  ;;  %v3372_v55 = vsel %vm13286_vm5, %v3173_v44, %v9850_v20  ;;  %vm13312_vm10 = vmmov %vm13306_vm3 }
 0x31d   :  { %v2967_v53 = vadd.f32 %v2966_v61, %v9384_v59  ;;  %5720 = vmatprep.subr.msk.mxu1 %vm13288_vm6, %v3372_v55  ;;  %v2868_v61 = vadd.f32 %v2867_v8, %v9409_v13  ;;  %v2874_v8 = vadd.f32 %v2873_v37, %v9384_v59  ;;  %vm13314_vm6 = vmmov %vm13293_vm4 }
 0x31e   :  { %v9863_v54 = vpop.f32.mrf.mxu0  ;;  %5721 = vmatpush1.msk.msra.mxu1 %vm13289_vm9, %v3377_v36  ;;  %v9888_v36 = vpop.permute.xlu1 %3592 }
 0x31f   :  { %v9871_v45 = vmax.f32 %v2967_v53, 0.0  ;;  %v3583_v9 = vpop.permute.xlu0 %3582  ;;  %5722 = vmatmul.mubr.msk.f32.vlgmr.msra.gmra.mxu1 %vm3941_vm2, %v9861_v49  ;;  %v9881_v55 = vmax.f32 %v2868_v61, 0.0  ;;  %13292 = vst [vmem:[#allocation64_spill] sm:$0xff] %v9888_v36  ;;  %v2872_v61 = vadd.f32 %v9774_v62, %v9384_v59  ;;  %v9904_v5 = vmax.f32 %v2874_v8, 0.0 }
 0x320   :  { %v2972_v20 = vpop.f32.mrf.mxu0  ;;  %4222 = vmatprep.mubr.f32.mxu1 %v13082_v60  ;;  %v3703_v37 = vsel %vm13294_vm7, %v3583_v9, %v9888_v36  ;;  %v2955_v62 = vadd.f32 %v2954_v28, %v9426_v47  ;;  %v2961_v8 = vadd.f32 %v2960_v3, %v9409_v13  ;;  %v2860_v28 = vadd.f32 %v9754_v12, %v9426_v47  ;;  %vm13317_vm7 = vmmov %vm13306_vm3 }
 0x321   :  { %v2973_v7 = vadd.f32 %v2972_v20, %v9382_v19  ;;  %3630 = vrot.lane.b32.xlu0 %v9871_v45, %s6170_s9  ;;  %v9921_v25 = vmax.f32 %v2872_v61, 0.0 }
 0x322   :  { %v9940_v3 = vmax.f32 %v2955_v62, 0.0  ;;  %v2856_v62 = vadd.f32 %v9747_v40, %v9456_v52 }
 0x323   :  { %v9884_v44 = vmax.f32 %v2973_v7, 0.0  ;;  %v9886_v53 = vpop.permute.xlu0 %3572  ;;  %v13295_v7 = vld [vmem:[#allocation38_spill] sm:$0xff] }
 0x324   :  { %13291 = vst [vmem:[#allocation63_spill] sm:$0xff] %v9886_v53  ;;  %v3708_v20 = vsel %vm13293_vm4, %v9886_v53, %v3583_v9  ;;  %vm13296_vm0 = vcmp.lt.s32.totalorder %v13295_v7, 127  ;;  %v3581_v53 = vpop.permute.xlu1 %3580  ;;  %13304 = vst [vmem:[#allocation67_spill] sm:$0xff] %v9940_v3 }
 0x325   :  { %13290 = vst [vmem:[#allocation62_spill] sm:$0xff] %v9884_v44  ;;  %3618 = vrot.lane.b32.xlu0 %v9881_v55, %s6170_s9  ;;  %3632 = vrot.lane.b32.xlu1 %v9884_v44, %s6170_s9  ;;  %vm13301_vm1 = vmmov %vm13296_vm0 }
 0x326   :  { %5744 = vmatprep.subr.msk.mxu1 %vm13296_vm0, %v3703_v37  ;;  %vm13311_vm5 = vmmov %vm13296_vm0 }
 0x327   :  { %5745 = vmatpush1.msk.msra.mxu1 %vm13298_vm12, %v3708_v20  ;;  %v9910_v44 = vpop.permute.xlu0 %3590  ;;  %v9925_v20 = vmax.f32 %v2403_v32, 0.0  ;;  %v2866_v32 = vadd.f32 %v9766_v0, %v9409_v13  ;;  %vm13315_vm9 = vmmov %vm13296_vm0 }
 0x328   :  { %13299 = vst [vmem:[#allocation65_spill] sm:$0xff] %v9910_v44  ;;  %v3702_v9 = vsel %vm13300_vm13, %v3581_v53, %v9910_v44  ;;  %v9931_v36 = vpop.permute.xlu1 %3570  ;;  %vm13319_vm0 = vmmov %vm13293_vm4 }
 0x329   :  { %3522 = vrot.lane.b32.xlu0 %v9494_v26, %s6170_s9  ;;  %3620 = vrot.lane.b32.xlu1 %v9904_v5, %s6170_s9  ;;  %13302 = vst [vmem:[#allocation66_spill] sm:$0xff] %v9931_v36  ;;  %v3707_v61 = vsel %vm13303_vm14, %v9931_v36, %v3581_v53  ;;  %v9966_v36 = vmax.f32 %v2866_v32, 0.0  ;;  %vm13321_vm12 = vmmov %vm13319_vm0  ;;  %vm13330_vm14 = vcmp.lt.s32.totalorder %v6495_v42, 1 }
 0x32a   :  { %5746 = vmatprep.subr.msk.mxu1 %vm13301_vm1, %v3702_v9  ;;  %v9942_v9 = vmax.f32 %v2961_v8, 0.0  ;;  %v9962_v8 = vmax.f32 %v2860_v28, 0.0  ;;  %vm13322_vm13 = vmmov %vm13301_vm1 }
 0x32b   :  { %v3579_v37 = vpop.permute.xlu0 %3578  ;;  %5747 = vmatpush1.msk.msra.mxu1 %vm13306_vm3, %v3707_v61  ;;  %v2862_v61 = vadd.f32 %v9758_v41, %v9426_v47  ;;  %vm13323_vm1 = vmmov %vm13306_vm3 }
 0x32c   :  { %13305 = vst [vmem:[#allocation68_spill] sm:$0xff] %v9942_v9  ;;  %v9955_v0 = vpop.permute.xlu1 %3588  ;;  %vm13331_vm3 = vmmov %vm13330_vm14 }
 0x32d   :  { %3512 = vrot.lane.b32.xlu0 %v9925_v20, %s6170_s9  ;;  %3610 = vrot.lane.b32.xlu1 %v9921_v25, %s6170_s9  ;;  %13309 = vst [vmem:[#allocation70_spill] sm:$0xff] %v9955_v0  ;;  %v3701_v53 = vsel %vm13310_vm8, %v3579_v37, %v9955_v0  ;;  %v9983_v28 = vmax.f32 %v2862_v61, 0.0  ;;  %v2397_v61 = vadd.f32 %v8980_v11, %v9384_v59  ;;  %vm13333_vm8 = vcmp.ge.s32.totalorder %v13297_v10, 1 }
 0x32e   :  { %5748 = vmatprep.subr.msk.mxu1 %vm13311_vm5, %v3701_v53  ;;  %v2949_v11 = vadd.f32 %v9802_v22, %v9456_v52  ;;  %vm13334_vm5 = vmmov %vm13331_vm3 }
 0x32f   :  { %v9946_v44 = vpop.permute.xlu0 %3568  ;;  %v10020_v0 = vmax.f32 %v2397_v61, 0.0  ;;  %v2379_v61 = vadd.f32 %v8720_v39, %v9456_v52 }
 0x330   :  { %13307 = vst [vmem:[#allocation69_spill] sm:$0xff] %v9946_v44  ;;  %v3706_v12 = vsel %vm13308_vm11, %v9946_v44, %v3579_v37  ;;  %v3577_v40 = vpop.permute.xlu1 %3576  ;;  %v9981_v37 = vmax.f32 %v2856_v62, 0.0  ;;  %v2391_v62 = vadd.f32 %v8899_v35, %v9409_v13  ;;  %vm13332_vm11 = vcmp.ge.s32.totalorder %v13295_v7, 1 }
 0x331   :  { %3626 = vrot.lane.b32.xlu0 %v9940_v3, %s6170_s9  ;;  %3628 = vrot.lane.b32.xlu1 %v9942_v9, %s6170_s9  ;;  %v10059_v39 = vmax.f32 %v2379_v61, 0.0 }
 0x332   :  { %5749 = vmatpush1.msk.msra.mxu1 %vm13312_vm10, %v3706_v12  ;;  %vm13335_vm10 = vmmov %vm13331_vm3 }
 0x333   :  { %v9972_v44 = vpop.permute.xlu0 %3586 }
 0x334   :  { %13313 = vst [vmem:[#allocation71_spill] sm:$0xff] %v9972_v44  ;;  %v3700_v41 = vsel %vm13314_vm6, %v3577_v40, %v9972_v44  ;;  %v9991_v12 = vpop.permute.xlu1 %3566  ;;  %vm13336_vm6 = vmmov %vm13331_vm3 }
 0x335   :  { %3606 = vrot.lane.b32.xlu0 %v9962_v8, %s6170_s9  ;;  %3608 = vrot.lane.b32.xlu1 %v9966_v36, %s6170_s9  ;;  %13316 = vst [vmem:[#allocation72_spill] sm:$0xff] %v9991_v12  ;;  %v3705_v53 = vsel %vm13293_vm4, %v9991_v12, %v3577_v40  ;;  %v2385_v12 = vadd.f32 %v8811_v33, %v9426_v47  ;;  %v10039_v33 = vmax.f32 %v2949_v11, 0.0  ;;  %vm13338_vm4 = vmmov %vm13333_vm8 }
 0x336   :  { %5750 = vmatprep.subr.msk.mxu1 %vm13315_vm9, %v3700_v41  ;;  %vm13337_vm9 = vmmov %vm13332_vm11 }
 0x337   :  { %v3575_v32 = vpop.permute.xlu0 %3574  ;;  %5751 = vmatpush1.msk.msra.mxu1 %vm13317_vm7, %v3705_v53  ;;  %v10018_v53 = vmax.f32 %v2391_v62, 0.0  ;;  %13325 = vst [vmem:[#allocation76_spill] sm:$0xff] %v10039_v33  ;;  %v10042_v62 = vmax.f32 %v2385_v12, 0.0  ;;  %vm13340_vm7 = vmmov %vm13337_vm9 }
 0x338   :  { %v10011_v44 = vpop.permute.xlu1 %3584 }
 0x339   :  { %3614 = vrot.lane.b32.xlu0 %v9981_v37, %s6170_s9  ;;  %3616 = vrot.lane.b32.xlu1 %v9983_v28, %s6170_s9  ;;  %13320 = vst [vmem:[#allocation74_spill] sm:$0xff] %v10011_v44  ;;  %v3699_v35 = vsel %vm13321_vm12, %v3575_v32, %v10011_v44  ;;  %vm13342_vm12 = vmmov %vm13338_vm4  ;;  %v2974_v44 = vpop.f32.mrf.mxu0 }
 0x33a   :  { %5752 = vmatprep.subr.msk.mxu1 %vm13322_vm13, %v3699_v35 }
 0x33b   :  { %v10002_v41 = vpop.permute.xlu0 %3564 }
 0x33c   :  { %13318 = vst [vmem:[#allocation73_spill] sm:$0xff] %v10002_v41  ;;  %v3704_v40 = vsel %vm13319_vm0, %v10002_v41, %v3575_v32  ;;  %v10026_v41 = vpop.f32.mrf.mxu1  ;;  %v3221_v22 = vpop.permute.xlu1 %3220  ;;  %v2854_v32 = vadd.f32 %v9740_v24, %v9456_v52  ;;  %vm13341_vm0 = vmmov %vm13331_vm3 }
 0x33d   :  { %3518 = vrot.lane.b32.xlu0 %v9520_v2, %s6170_s9  ;;  %3520 = vrot.lane.b32.xlu1 %v9510_v18, %s6170_s9  ;;  %vm13344_vm13 = vmmov %vm13341_vm0 }
 0x33e   :  { %5753 = vmatpush1.msk.msra.mxu1 %vm13323_vm1, %v3704_v40  ;;  %v10046_v40 = vpop.f32.mrf.mxu1  ;;  %vm13346_vm1 = vmmov %vm13341_vm0 }
 0x33f   :  { %v10030_v9 = vpop.permute.xlu0 %3230  ;;  %4170 = vmatprep.subr.mxu1 %v9556_v17 }
 0x340   :  { %13324 = vst [vmem:[#allocation75_spill] sm:$0xff] %v10030_v9  ;;  %4171 = vmatpush1.msra.mxu1 %v9562_v1  ;;  %v10053_v17 = vpop.permute.xlu1 %3210  ;;  %v10056_v1 = vmax.f32 %v2854_v32, 0.0  ;;  %v10061_v24 = vpop.f32.mrf.mxu1 }
 0x341   :  { %3508 = vrot.lane.b32.xlu0 %v10018_v53, %s6170_s9  ;;  %3510 = vrot.lane.b32.xlu1 %v10020_v0, %s6170_s9  ;;  %13326 = vst [vmem:[#allocation77_spill] sm:$0xff] %v10053_v17 }
 0x342   :  { %4172 = vmatprep.subr.mxu1 %v9573_v56 }
 0x343   :  { %v3219_v35 = vpop.permute.xlu0 %3218  ;;  %4173 = vmatpush1.msra.mxu1 %v9584_v6 }
 0x344   :  { %4174 = vmatprep.subr.mxu1 %v9582_v15  ;;  %v10070_v12 = vpop.permute.xlu1 %3228  ;;  %v10074_v15 = vpop.f32.mrf.mxu1 }
 0x345   :  { %3506 = vrot.lane.b32.xlu0 %v10042_v62, %s6170_s9  ;;  %3624 = vrot.lane.b32.xlu1 %v10039_v33, %s6170_s9  ;;  %13328 = vst [vmem:[#allocation79_spill] sm:$0xff] %v10070_v12 }
 0x346   :  { %4175 = vmatpush1.msra.mxu1 %v9592_v46  ;;  %v3356_v46 = vsel %vm13330_vm14, %v3221_v22, %v10030_v9  ;;  %vm13347_vm14 = vmmov %vm13340_vm7 }
 0x347   :  { %v10064_v56 = vpop.permute.xlu0 %3208  ;;  %4176 = vmatprep.subr.mxu1 %v9605_v30  ;;  %v3361_v30 = vsel %vm13331_vm3, %v10053_v17, %v3221_v22  ;;  %v10102_v22 = vpop.f32.mrf.mxu1  ;;  %vm13348_vm3 = vmmov %vm13338_vm4  ;;  %v13382_v17 = vld [vmem:[#allocation57_spill] sm:$0xff] }
 0x348   :  { %13327 = vst [vmem:[#allocation78_spill] sm:$0xff] %v10064_v56  ;;  %4177 = vmatpush1.msra.mxu1 %v9617_v16  ;;  %v3217_v11 = vpop.permute.xlu1 %3216  ;;  %v3360_v32 = vsel %vm13336_vm6, %v10064_v56, %v3219_v35  ;;  %vm13358_vm6 = vcmp.lt.s32.totalorder %v6495_v42, 127  ;;  %v13365_v56 = vld [vmem:[#allocation24_spill] sm:$0xff] }
 0x349   :  { %3604 = vrot.lane.b32.xlu1 %v10056_v1, %s6170_s9  ;;  %3504 = vrot.lane.b32.xlu0 %v10059_v39, %s6170_s9 }
 0x34a   :  { %4178 = vmatprep.subr.mxu1 %v9615_v48  ;;  %v3355_v48 = vsel %vm13334_vm5, %v3219_v35, %v10070_v12  ;;  %v2785_v35 = vadd.f32 %v9793_v57, %v9382_v19  ;;  %vm13353_vm5 = vmmov %vm13341_vm0 }
 0x34b   :  { %v10077_v6 = vpop.permute.xlu0 %3226  ;;  %4179 = vmatpush1.msra.mxu1 %v9624_v38  ;;  %v2779_v38 = vadd.f32 %v9553_v4, %v9384_v59 }
 0x34c   :  { %13329 = vst [vmem:[#allocation80_spill] sm:$0xff] %v10077_v6  ;;  %5754 = vmatprep.subr.msk.mxu1 %vm13332_vm11, %v3356_v46  ;;  %v3354_v16 = vsel %vm13335_vm10, %v3217_v11, %v10077_v6  ;;  %v10113_v46 = vpop.permute.xlu1 %3206  ;;  %vm13350_vm11 = vmmov %vm13341_vm0 }
 0x34d   :  { %3516 = vrot.lane.b32.xlu1 %v9536_v27, %s6170_s9  ;;  %3270 = vrot.lane.b32.xlu0 %v9815_v58, %s6179_s18  ;;  %13339 = vst [vmem:[#allocation81_spill] sm:$0xff] %v10113_v46  ;;  %v3359_v4 = vsel %vm13341_vm0, %v10113_v46, %v3217_v11  ;;  %v10142_v11 = vmax.f32 %v2785_v35, 0.0  ;;  %vm13354_vm10 = vmmov %vm13348_vm3  ;;  %v2975_v46 = vadd.f32 %v2974_v44, %v9382_v19 }
 0x34e   :  { %5755 = vmatpush1.msk.msra.mxu1 %vm13333_vm8, %v3361_v30  ;;  %v10126_v30 = vmax.f32 %v2779_v38, 0.0  ;;  %v2773_v38 = vadd.f32 %v9544_v63, %v9409_v13  ;;  %vm13351_vm8 = vmmov %vm13340_vm7 }
 0x34f   :  { %5756 = vmatprep.subr.msk.mxu1 %vm13337_vm9, %v3355_v48  ;;  %v3215_v61 = vpop.permute.xlu0 %3214  ;;  %v3057_v48 = vpop.f32.mrf.mxu1  ;;  %vm13359_vm9 = vmmov %vm13358_vm6 }
 0x350   :  { %5757 = vmatpush1.msk.msra.mxu1 %vm13338_vm4, %v3360_v32  ;;  %v10135_v6 = vpop.permute.xlu1 %3224  ;;  %v10161_v63 = vmax.f32 %v2773_v38, 0.0  ;;  %vm13360_vm4 = vcmp.lt.s32.totalorder %v8511_v51, 127  ;;  %vm13363_vm0 = vmmov %vm13358_vm6 }
 0x351   :  { %3514 = vrot.lane.b32.xlu1 %v9547_v29, %s6170_s9  ;;  %3258 = vrot.lane.b32.xlu0 %v9921_v25, %s6179_s18  ;;  %13345 = vst [vmem:[#allocation83_spill] sm:$0xff] %v10135_v6  ;;  %v3353_v57 = vsel %vm13346_vm1, %v3215_v61, %v10135_v6  ;;  %vm13368_vm1 = vmmov %vm13360_vm4 }
 0x352   :  { %5758 = vmatprep.subr.msk.mxu1 %vm13340_vm7, %v3354_v16  ;;  %vm13361_vm7 = vcmp.lt.s32.totalorder %v8509_v43, 127 }
 0x353   :  { %5759 = vmatpush1.msk.msra.mxu1 %vm13342_vm12, %v3359_v4  ;;  %v10128_v32 = vpop.permute.xlu0 %3204  ;;  %v3061_v4 = vpop.f32.mrf.mxu1  ;;  %vm13364_vm12 = vmmov %vm13363_vm0 }
 0x354   :  { %13343 = vst [vmem:[#allocation82_spill] sm:$0xff] %v10128_v32  ;;  %v3358_v16 = vsel %vm13344_vm13, %v10128_v32, %v3215_v61  ;;  %5760 = vmatprep.subr.msk.mxu1 %vm13347_vm14, %v3353_v57  ;;  %v3213_v9 = vpop.permute.xlu1 %3212  ;;  %vm13366_vm13 = vcmp.lt.s32.totalorder %v13365_v56, 127  ;;  %vm13370_vm14 = vmmov %vm13363_vm0 }
 0x355   :  { %3260 = vrot.lane.b32.xlu1 %v9830_v50, %s6179_s18  ;;  %3248 = vrot.lane.b32.xlu0 %v10126_v30, %s6179_s18  ;;  %v3063_v35 = vpop.f32.mrf.mxu1 }
 0x356   :  { %5761 = vmatpush1.msk.msra.mxu1 %vm13348_vm3, %v3358_v16  ;;  %vm13371_vm3 = vmmov %vm13363_vm0 }
 0x357   :  { %v10150_v12 = vpop.permute.xlu0 %3222  ;;  %v3067_v7 = vpop.f32.mrf.mxu1 }
 0x358   :  { %13349 = vst [vmem:[#allocation84_spill] sm:$0xff] %v10150_v12  ;;  %v3352_v61 = vsel %vm13350_vm11, %v3213_v9, %v10150_v12  ;;  %v10165_v16 = vpop.permute.xlu1 %3202  ;;  %v2761_v12 = vadd.f32 %v9526_v34, %v9456_v52  ;;  %v3068_v34 = vadd.f32 %v3067_v7, %v9382_v19  ;;  %v3062_v7 = vadd.f32 %v3061_v4, %v9384_v59  ;;  %vm13372_vm11 = vmmov %vm13363_vm0 }
 0x359   :  { %3250 = vrot.lane.b32.xlu1 %v10142_v11, %s6179_s18  ;;  %3266 = vrot.lane.b32.xlu0 %v9881_v55, %s6179_s18  ;;  %13352 = vst [vmem:[#allocation85_spill] sm:$0xff] %v10165_v16  ;;  %v3357_v57 = vsel %vm13353_vm5, %v10165_v16, %v3213_v9  ;;  %v3069_v38 = vpop.f32.mrf.mxu1  ;;  %v3056_v4 = vadd.f32 %v10102_v22, %v9409_v13  ;;  %vm13377_vm5 = vmmov %vm13363_vm0 }
 0x35a   :  { %5762 = vmatprep.subr.msk.mxu1 %vm13351_vm8, %v3352_v61  ;;  %v3070_v9 = vadd.f32 %v3069_v38, %v9382_v19  ;;  %v3064_v61 = vadd.f32 %v3063_v35, %v9384_v59  ;;  %v10205_v38 = vmax.f32 %v2761_v12, 0.0  ;;  %vm13374_vm8 = vmmov %vm13361_vm7 }
 0x35b   :  { %5763 = vmatpush1.msk.msra.mxu1 %vm13354_vm10, %v3357_v57  ;;  %v2767_v57 = vadd.f32 %v9534_v31, %v9426_v47  ;;  %v3058_v31 = vadd.f32 %v3057_v48, %v9409_v13  ;;  %v3052_v48 = vadd.f32 %v10074_v15, %v9426_v47  ;;  %v3046_v15 = vadd.f32 %v10046_v40, %v9456_v52  ;;  %vm13378_vm10 = vmmov %vm13368_vm1 }
 0x35c   :  { %5764 = vmatmul.mubr.msk.f32.vlgmr.msra.gmra.mxu1 %vm3941_vm2, %v9861_v49  ;;  %v10193_v10 = vmax.f32 %v3070_v9, 0.0  ;;  %v10197_v6 = vmax.f32 %v3064_v61, 0.0  ;;  %v10217_v9 = vmax.f32 %v3068_v34, 0.0  ;;  %v10232_v61 = vmax.f32 %v3062_v7, 0.0 }
 0x35d   :  { %3268 = vrot.lane.b32.xlu1 %v9904_v5, %s6179_s18  ;;  %3246 = vrot.lane.b32.xlu0 %v10161_v63, %s6179_s18  ;;  %v10203_v35 = vmax.f32 %v2767_v57, 0.0  ;;  %v10223_v12 = vmax.f32 %v3058_v31, 0.0  ;;  %v10238_v57 = vmax.f32 %v3052_v48, 0.0  ;;  %v10248_v34 = vmax.f32 %v3056_v4, 0.0 }
 0x35e   :  { %4364 = vmatprep.mubr.f32.mxu1 %v13082_v60  ;;  %v10254_v7 = vmax.f32 %v3046_v15, 0.0  ;;  %v3044_v40 = vadd.f32 %v10026_v41, %v9456_v52  ;;  %v3050_v48 = vadd.f32 %v10061_v24, %v9426_v47 }
 0x360   :  { %v10272_v15 = vmax.f32 %v3044_v40, 0.0  ;;  %v10278_v41 = vmax.f32 %v3050_v48, 0.0  ;;  %v2969_v48 = vadd.f32 %v9863_v54, %v9384_v59 }
 0x361   :  { %3256 = vrot.lane.b32.xlu1 %v9966_v36, %s6179_s18  ;;  %3264 = vrot.lane.b32.xlu0 %v9983_v28, %s6179_s18 }
 0x365   :  { %3160 = vrot.lane.b32.xlu1 %v9925_v20, %s6179_s18  ;;  %3158 = vrot.lane.b32.xlu0 %v10020_v0, %s6179_s18 }
 0x369   :  { %3254 = vrot.lane.b32.xlu1 %v9962_v8, %s6179_s18  ;;  %3252 = vrot.lane.b32.xlu0 %v10056_v1, %s6179_s18 }
 0x36d   :  { %3310 = vrot.lane.b32.xlu1 %v10193_v10, %s6179_s18  ;;  %3308 = vrot.lane.b32.xlu0 %v10197_v6, %s6179_s18 }
 0x371   :  { %3244 = vrot.lane.b32.xlu1 %v10203_v35, %s6179_s18  ;;  %3242 = vrot.lane.b32.xlu0 %v10205_v38, %s6179_s18 }
 0x375   :  { %3262 = vrot.lane.b32.xlu1 %v9981_v37, %s6179_s18  ;;  %3662 = vrot.lane.b32.xlu0 %v10193_v10, %s6170_s9 }
 0x379   :  { %3156 = vrot.lane.b32.xlu1 %v10018_v53, %s6179_s18  ;;  %3652 = vrot.lane.b32.xlu0 %v10217_v9, %s6170_s9 }
 0x37d   :  { %3306 = vrot.lane.b32.xlu1 %v10223_v12, %s6179_s18  ;;  %3660 = vrot.lane.b32.xlu0 %v10197_v6, %s6170_s9 }
 0x381   :  { %3154 = vrot.lane.b32.xlu1 %v10042_v62, %s6179_s18  ;;  %3650 = vrot.lane.b32.xlu0 %v10232_v61, %s6170_s9 }
 0x382   :  { %v3623_v31 = vpop.permute.xlu0 %3622 }
 0x385   :  { %3304 = vrot.lane.b32.xlu1 %v10238_v57, %s6179_s18  ;;  %3658 = vrot.lane.b32.xlu0 %v10223_v12, %s6170_s9 }
 0x386   :  { %v10260_v22 = vpop.permute.xlu0 %3612 }
 0x387   :  { %13355 = vst [vmem:[#allocation86_spill] sm:$0xff] %v10260_v22  ;;  %v3688_v40 = vsel %vm13359_vm9, %v10260_v22, %v3623_v31  ;;  %vm13384_vm9 = vmmov %vm13361_vm7 }
 0x389   :  { %3152 = vrot.lane.b32.xlu1 %v10059_v39, %s6179_s18  ;;  %3648 = vrot.lane.b32.xlu0 %v10248_v34, %s6170_s9 }
 0x38d   :  { %3302 = vrot.lane.b32.xlu1 %v10254_v7, %s6179_s18  ;;  %3560 = vrot.lane.b32.xlu0 %v9646_v21, %s6170_s9 }
 0x391   :  { %3562 = vrot.lane.b32.xlu1 %v9638_v14, %s6170_s9  ;;  %3654 = vrot.lane.b32.xlu0 %v10254_v7, %s6170_s9 }
 0x393   :  { %v10270_v4 = vpop.permute.xlu0 %3630 }
 0x394   :  { %13356 = vst [vmem:[#allocation87_spill] sm:$0xff] %v10270_v4 }
 0x395   :  { %3656 = vrot.lane.b32.xlu1 %v10238_v57, %s6170_s9  ;;  %3644 = vrot.lane.b32.xlu0 %v10272_v15, %s6170_s9 }
 0x397   :  { %v3619_v16 = vpop.permute.xlu0 %3618  ;;  %v10280_v32 = vpop.permute.xlu1 %3632 }
 0x398   :  { %13357 = vst [vmem:[#allocation88_spill] sm:$0xff] %v10280_v32  ;;  %v3683_v24 = vsel %vm13358_vm6, %v3623_v31, %v10280_v32  ;;  %v10299_v32 = vmax.f32 %v2975_v46, 0.0  ;;  %v13362_v31 = vld [vmem:[#allocation22_spill] sm:$0xff]  ;;  %v10319_v46 = vmax.f32 %v2969_v48, 0.0  ;;  %vm13383_vm6 = vmmov %vm13363_vm0 }
 0x399   :  { %3646 = vrot.lane.b32.xlu1 %v10278_v41, %s6170_s9  ;;  %5786 = vmatprep.subr.msk.mxu1 %vm13360_vm4, %v3683_v24  ;;  %vm13387_vm4 = vmmov %vm13363_vm0 }
 0x39a   :  { %3554 = vrot.lane.b32.xlu0 %v9687_v23, %s6170_s9  ;;  %5787 = vmatpush1.msk.msra.mxu1 %vm13361_vm7, %v3688_v40  ;;  %v13367_v40 = vld [vmem:[#allocation19_spill] sm:$0xff]  ;;  %vm13388_vm7 = vmmov %vm13363_vm0 }
 0x39b   :  { %v3523_v19 = vpop.permute.xlu0 %3522  ;;  %v3621_v44 = vpop.permute.xlu1 %3620 }
 0x39c   :  { %v3733_v22 = vsel %vm13363_vm0, %v3523_v19, %v13362_v31  ;;  %v3682_v24 = vsel %vm13364_vm12, %v3621_v44, %v10270_v4  ;;  %v13373_v4 = vld [vmem:[#allocation20_spill] sm:$0xff]  ;;  %vm13389_vm0 = vmmov %vm13368_vm1 }
 0x39d   :  { %5681 = vmatprep.subr.msk.mxu0 %vm13366_vm13, %v3733_v22  ;;  %3558 = vrot.lane.b32.xlu1 %v13367_v40, %s6170_s9  ;;  %vm13390_vm12 = vmmov %vm13374_vm8 }
 0x39e   :  { %3290 = vrot.lane.b32.xlu0 %v10299_v32, %s6179_s18  ;;  %5788 = vmatprep.subr.msk.mxu1 %vm13368_vm1, %v3682_v24  ;;  %vm13392_vm13 = vmmov %vm13371_vm3  ;;  %vm13393_vm1 = vcmp.lt.s32.totalorder %v13365_v56, 127 }
 0x39f   :  { %v10315_v59 = vpop.permute.xlu0 %3512  ;;  %v10317_v54 = vpop.permute.xlu1 %3610 }
 0x3a0   :  { %13369 = vst [vmem:[#allocation22_spill] sm:$0xff] %v10317_v54  ;;  %v3738_v31 = vsel %vm13370_vm14, %v10315_v59, %v3523_v19  ;;  %v3687_v22 = vsel %vm13371_vm3, %v10317_v54, %v3621_v44  ;;  %v6182_v19 = vmov 1   ;;  %vm13395_vm14 = vmmov %vm13371_vm3 }
 0x3a1   :  { %5682 = vmatpush1.msk.msra.mxu0 %vm13372_vm11, %v3738_v31  ;;  %3556 = vrot.lane.b32.xlu1 %v13373_v4, %s6170_s9  ;;  %v13379_v31 = vld [vmem:[#allocation36_spill] sm:$0xff]  ;;  %vm13398_vm11 = vmmov %vm13371_vm3 }
 0x3a2   :  { %3288 = vrot.lane.b32.xlu0 %v10319_v46, %s6179_s18  ;;  %5789 = vmatpush1.msk.msra.mxu1 %vm13374_vm8, %v3687_v22  ;;  %vm13399_vm8 = vmmov %vm13371_vm3 }
 0x3a3   :  { %v10335_v48 = vpop.permute.xlu0 %3626  ;;  %v10337_v24 = vpop.permute.xlu1 %3628  ;;  %6150 = vset.pattern.permute.xlu1 %v6182_v19  ;;  %v2957_v19 = vadd.f32 %v13382_v17, %v9426_v47 }
 0x3a4   :  { %13375 = vst [vmem:[#allocation89_spill] sm:$0xff] %v10335_v48  ;;  %13376 = vst [vmem:[#allocation90_spill] sm:$0xff] %v10337_v24  ;;  %v3681_v44 = vsel %vm13377_vm5, %v3619_v16, %v10337_v24 }
 0x3a5   :  { %3300 = vrot.lane.b32.xlu1 %v10217_v9, %s6179_s18  ;;  %5790 = vmatprep.subr.msk.mxu1 %vm13378_vm10, %v3681_v44  ;;  %v13385_v44 = vld [vmem:[#allocation59_spill] sm:$0xff]  ;;  %v10365_v21 = vmax.f32 %v2957_v19, 0.0  ;;  %v13391_v19 = vld [vmem:[#allocation26_spill] sm:$0xff]  ;;  %vm13401_vm5 = vmmov %vm13393_vm1 }
 0x3a6   :  { %3200 = vrot.lane.b32.xlu0 %v13379_v31, %s6179_s18  ;;  %v2963_v23 = vadd.f32 %v13385_v44, %v9409_v13  ;;  %v13394_v44 = vld [vmem:[#allocation11_spill] sm:$0xff]  ;;  %vm13403_vm10 = vmmov %vm13371_vm3 }
 0x3a7   :  { %v10348_v22 = vpop.permute.xlu0 %3606  ;;  %v10350_v54 = vpop.permute.xlu1 %3608  ;;  %13386 = vst [vmem:[#allocation57_spill] sm:$0xff] %v10365_v21 }
 0x3a8   :  { %13380 = vst [vmem:[#allocation36_spill] sm:$0xff] %v10348_v22  ;;  %13381 = vst [vmem:[#allocation91_spill] sm:$0xff] %v10350_v54  ;;  %v3686_v24 = vsel %vm13383_vm6, %v10350_v54, %v3619_v16  ;;  %v10381_v13 = vmax.f32 %v2963_v23, 0.0  ;;  %v13400_v54 = vld [vmem:[#allocation41_spill] sm:$0xff] }
 0x3a9   :  { %3298 = vrot.lane.b32.xlu1 %v10232_v61, %s6179_s18  ;;  %5791 = vmatpush1.msk.msra.mxu1 %vm13384_vm9, %v3686_v24  ;;  %vm13405_vm6 = vmmov %vm13371_vm3 }
 0x3aa   :  { %3294 = vrot.lane.b32.xlu0 %v10278_v41, %s6179_s18  ;;  %vm13406_vm9 = vmmov %vm13389_vm0 }
 0x3ab   :  { %v3615_v4 = vpop.permute.xlu0 %3614  ;;  %v3617_v40 = vpop.permute.xlu1 %3616 }
 0x3ac   :  { %v3685_v47 = vsel %vm13387_vm4, %v10348_v22, %v3617_v40  ;;  %v3680_v17 = vsel %vm13388_vm7, %v3617_v40, %v10335_v48  ;;  %v13396_v48 = vld [vmem:[#allocation14_spill] sm:$0xff]  ;;  %vm13408_vm4 = vmmov %vm13371_vm3 }
 0x3ad   :  { %3296 = vrot.lane.b32.xlu1 %v10248_v34, %s6179_s18  ;;  %5792 = vmatprep.subr.msk.mxu1 %vm13389_vm0, %v3680_v17  ;;  %vm13409_vm7 = vmmov %vm13390_vm12 }
 0x3ae   :  { %3284 = vrot.lane.b32.xlu0 %v10365_v21, %s6179_s18  ;;  %5793 = vmatpush1.msk.msra.mxu1 %vm13390_vm12, %v3685_v47  ;;  %vm13411_vm0 = vmmov %vm13371_vm3 }
 0x3af   :  { %v3519_v16 = vpop.permute.xlu0 %3518  ;;  %v3521_v24 = vpop.permute.xlu1 %3520  ;;  %vm13413_vm12 = vmmov %vm13411_vm0 }
 0x3b0   :  { %v3732_v40 = vsel %vm13392_vm13, %v3521_v24, %v13391_v19  ;;  %v13397_v19 = vld [vmem:[#allocation30_spill] sm:$0xff]  ;;  %vm13415_vm13 = vmmov %vm13393_vm1 }
 0x3b1   :  { %3286 = vrot.lane.b32.xlu1 %v10381_v13, %s6179_s18  ;;  %5683 = vmatprep.subr.msk.mxu0 %vm13393_vm1, %v3732_v40  ;;  %v3731_v40 = vsel %vm13398_vm11, %v3519_v16, %v13397_v19  ;;  %vm13416_vm1 = vmmov %vm13411_vm0 }
 0x3b2   :  { %3196 = vrot.lane.b32.xlu0 %v13394_v44, %s6179_s18  ;;  %vm13421_vm11 = vmmov %vm13401_vm5 }
 0x3b3   :  { %v10392_v17 = vpop.permute.xlu0 %3508  ;;  %v10394_v47 = vpop.permute.xlu1 %3510 }
 0x3b4   :  { %v3737_v23 = vsel %vm13395_vm14, %v10394_v47, %v3521_v24  ;;  %v3736_v22 = vsel %vm13399_vm8, %v10392_v17, %v3519_v16  ;;  %v13402_v24 = vld [vmem:[#allocation55_spill] sm:$0xff]  ;;  %vm13417_vm14 = vmmov %vm13411_vm0 }
 0x3b5   :  { %3198 = vrot.lane.b32.xlu1 %v13396_v48, %s6179_s18  ;;  %5684 = vmatpush1.msk.msra.mxu0 %vm13371_vm3, %v3737_v23  ;;  %v2951_v44 = vadd.f32 %v13402_v24, %v9456_v52  ;;  %vm13419_vm3 = vmmov %vm13411_vm0 }
 0x3b6   :  { %3194 = vrot.lane.b32.xlu0 %v13400_v54, %s6179_s18  ;;  %5685 = vmatprep.subr.msk.mxu0 %vm13401_vm5, %v3731_v40  ;;  %vm13422_vm8 = vmmov %vm13411_vm0  ;;  %vm13423_vm5 = vcmp.lt.s32.totalorder %v6495_v42, 1 }
 0x3b7   :  { %v10415_v48 = vpop.permute.xlu0 %3506  ;;  %5686 = vmatpush1.msk.msra.mxu0 %vm13403_vm10, %v3736_v22  ;;  %v10419_v23 = vpop.permute.xlu1 %3624  ;;  %v10430_v52 = vmax.f32 %v2951_v44, 0.0  ;;  %vm13425_vm10 = vcmp.ge.s32.totalorder %v8511_v51, 1  ;;  %v13476_v51 = vld [vmem:[#allocation58_spill] sm:$0xff] }
 0x3b8   :  { %13404 = vst [vmem:[#allocation59_spill] sm:$0xff] %v10419_v23  ;;  %v3679_v16 = vsel %vm13405_vm6, %v3615_v4, %v10419_v23  ;;  %v13414_v23 = vld [vmem:[#allocation16_spill] sm:$0xff]  ;;  %vm13427_vm6 = vmmov %vm13423_vm5 }
 0x3b9   :  { %3292 = vrot.lane.b32.xlu1 %v10272_v15, %s6179_s18  ;;  %5794 = vmatprep.subr.msk.mxu1 %vm13406_vm9, %v3679_v16  ;;  %13407 = vst [vmem:[#allocation26_spill] sm:$0xff] %v10430_v52  ;;  %v13412_v16 = vld [vmem:[#allocation33_spill] sm:$0xff]  ;;  %vm13428_vm9 = vcmp.ge.s32.totalorder %v8509_v43, 1 }
 0x3ba   :  { %3602 = vrot.lane.b32.xlu0 %v10142_v11, %s6170_s9 }
 0x3bb   :  { %v10432_v19 = vpop.permute.xlu0 %3504  ;;  %v10434_v22 = vpop.permute.xlu1 %3604 }
 0x3bc   :  { %v3684_v40 = vsel %vm13408_vm4, %v10434_v22, %v3615_v4  ;;  %vm13431_vm4 = vmmov %vm13423_vm5 }
 0x3bd   :  { %3282 = vrot.lane.b32.xlu1 %v10430_v52, %s6179_s18  ;;  %5795 = vmatpush1.msk.msra.mxu1 %vm13409_vm7, %v3684_v40  ;;  %vm13432_vm7 = vmmov %vm13425_vm10 }
 0x3be   :  { %3598 = vrot.lane.b32.xlu0 %v10161_v63, %s6170_s9  ;;  %4312 = vmatprep.subr.mxu1 %v9815_v58 }
 0x3bf   :  { %4313 = vmatpush1.msra.mxu1 %v9830_v50  ;;  %v3517_v44 = vpop.permute.xlu1 %3516  ;;  %v10447_v24 = vpop.permute.xlu0 %3270 }
 0x3c0   :  { %13410 = vst [vmem:[#allocation30_spill] sm:$0xff] %v10447_v24  ;;  %v3735_v4 = vsel %vm13411_vm0, %v10415_v48, %v3517_v44  ;;  %4314 = vmatprep.subr.mxu1 %v9904_v5  ;;  %v3730_v40 = vsel %vm13413_vm12, %v3517_v44, %v13412_v16  ;;  %v13418_v44 = vld [vmem:[#allocation10_spill] sm:$0xff]  ;;  %vm13433_vm0 = vmmov %vm13431_vm4 }
 0x3c1   :  { %3192 = vrot.lane.b32.xlu1 %v13414_v23, %s6179_s18  ;;  %5687 = vmatprep.subr.msk.mxu0 %vm13415_vm13, %v3730_v40  ;;  %vm13435_vm12 = vmmov %vm13428_vm9  ;;  %v13441_v40 = vld [vmem:[#allocation48_spill] sm:$0xff] }
 0x3c2   :  { %3594 = vrot.lane.b32.xlu0 %v10205_v38, %s6170_s9  ;;  %4315 = vmatpush1.msra.mxu1 %v9921_v25  ;;  %v13420_v25 = vld [vmem:[#allocation37_spill] sm:$0xff]  ;;  %vm13437_vm13 = vmmov %vm13433_vm0 }
 0x3c3   :  { %5688 = vmatpush1.msk.msra.mxu0 %vm13416_vm1, %v3735_v4  ;;  %4316 = vmatprep.subr.mxu1 %v9881_v55  ;;  %v3515_v5 = vpop.permute.xlu1 %3514  ;;  %v3259_v58 = vpop.permute.xlu0 %3258  ;;  %vm13438_vm1 = vmmov %vm13433_vm0 }
 0x3c4   :  { %4317 = vmatpush1.msra.mxu1 %v9966_v36  ;;  %v3734_v50 = vsel %vm13417_vm14, %v10432_v19, %v3515_v5  ;;  %v3729_v16 = vsel %vm13419_vm3, %v3515_v5, %v13418_v44  ;;  %vm13439_vm14 = vmmov %vm13432_vm7 }
 0x3c5   :  { %4318 = vmatprep.subr.mxu1 %v9983_v28  ;;  %3600 = vrot.lane.b32.xlu1 %v10126_v30, %s6170_s9  ;;  %vm13440_vm3 = vmmov %vm13428_vm9 }
 0x3c6   :  { %3238 = vrot.lane.b32.xlu0 %v13420_v25, %s6179_s18  ;;  %5689 = vmatprep.subr.msk.mxu0 %vm13421_vm11, %v3729_v16  ;;  %vm13443_vm11 = vmmov %vm13433_vm0 }
 0x3c7   :  { %4319 = vmatpush1.msra.mxu1 %v9962_v8  ;;  %5690 = vmatpush1.msk.msra.mxu0 %vm13422_vm8, %v3734_v50  ;;  %v3261_v55 = vpop.permute.xlu1 %3260  ;;  %v10484_v36 = vpop.permute.xlu0 %3248  ;;  %v13424_v8 = vld [vmem:[#allocation18_spill] sm:$0xff]  ;;  %vm13444_vm8 = vcmp.ge.s32.totalorder %v13365_v56, 1 }
 0x3c8   :  { %4320 = vmatprep.subr.mxu1 %v9981_v37  ;;  %3957 = vmatprep.subr.mxu0 %v9494_v26  ;;  %v3336_v28 = vsel %vm13423_vm5, %v3261_v55, %v10447_v24  ;;  %v13442_v50 = vld [vmem:[#allocation50_spill] sm:$0xff]  ;;  %vm13445_vm5 = vmmov %vm13433_vm0 }
 0x3c9   :  { %4321 = vmatpush1.msra.mxu1 %v10056_v1  ;;  %3958 = vmatpush1.msra.mxu0 %v9925_v20 }
 0x3ca   :  { %3234 = vrot.lane.b32.xlu0 %v13424_v8, %s6179_s18  ;;  %3596 = vrot.lane.b32.xlu1 %v10203_v35, %s6170_s9 }
 0x3cb   :  { %3959 = vmatprep.subr.mxu0 %v9510_v18  ;;  %5796 = vmatprep.subr.msk.mxu1 %vm13425_vm10, %v3336_v28  ;;  %v10499_v26 = vpop.permute.xlu1 %3250  ;;  %v10502_v37 = vpop.permute.xlu0 %3266  ;;  %v13429_v18 = vld [vmem:[#allocation17_spill] sm:$0xff]  ;;  %vm13446_vm10 = vmmov %vm13432_vm7 }
 0x3cc   :  { %3960 = vmatpush1.msra.mxu0 %v10020_v0  ;;  %13426 = vst [vmem:[#allocation41_spill] sm:$0xff] %v10502_v37  ;;  %v3341_v20 = vsel %vm13427_vm6, %v10499_v26, %v3261_v55  ;;  %vm13447_vm6 = vmmov %vm13433_vm0 }
 0x3cd   :  { %3961 = vmatprep.subr.mxu0 %v9520_v2  ;;  %5797 = vmatpush1.msk.msra.mxu1 %vm13428_vm9, %v3341_v20  ;;  %vm13449_vm9 = vmmov %vm13433_vm0 }
 0x3ce   :  { %3962 = vmatpush1.msra.mxu0 %v10018_v53  ;;  %3642 = vrot.lane.b32.xlu0 %v10299_v32, %s6170_s9  ;;  %v3340_v53 = vsel %vm13433_vm0, %v10484_v36, %v3259_v58 }
 0x3cf   :  { %3240 = vrot.lane.b32.xlu1 %v13429_v18, %s6179_s18  ;;  %3963 = vmatprep.subr.mxu0 %v9536_v27  ;;  %v10516_v0 = vpop.permute.xlu1 %3268  ;;  %v10519_v1 = vpop.permute.xlu0 %3246  ;;  %v13434_v27 = vld [vmem:[#allocation31_spill] sm:$0xff] }
 0x3d0   :  { %13430 = vst [vmem:[#allocation55_spill] sm:$0xff] %v10516_v0  ;;  %3964 = vmatpush1.msra.mxu0 %v10042_v62  ;;  %v3335_v2 = vsel %vm13431_vm4, %v3259_v58, %v10516_v0  ;;  %vm13450_vm4 = vcmp.ge.s32.totalorder %v6495_v42, 1 }
 0x3d1   :  { %3965 = vmatprep.subr.mxu0 %v9547_v29  ;;  %5798 = vmatprep.subr.msk.mxu1 %vm13432_vm7, %v3335_v2  ;;  %v235_v2 = vld [vmem:[%s12362_s0] sm:$0x1]  ;;  %vm13451_vm7 = vmmov %vm13433_vm0 }
 0x3d2   :  { %3966 = vmatpush1.msra.mxu0 %v10059_v39  ;;  %3638 = vrot.lane.b32.xlu0 %v10381_v13, %s6170_s9  ;;  %vm13452_vm0 = vmmov %vm13444_vm8 }
 0x3d3   :  { %3236 = vrot.lane.b32.xlu1 %v13434_v27, %s6179_s18  ;;  %5799 = vmatpush1.msk.msra.mxu1 %vm13435_vm12, %v3340_v53  ;;  %v3257_v62 = vpop.permute.xlu1 %3256  ;;  %v10537_v29 = vpop.permute.xlu0 %3264  ;;  %vm13454_vm12 = vmmov %vm13450_vm4 }
 0x3d4   :  { %13436 = vst [vmem:[#allocation33_spill] sm:$0xff] %v10537_v29  ;;  %v3339_v4 = vsel %vm13437_vm13, %v10519_v1, %v3257_v62  ;;  %v3334_v39 = vsel %vm13438_vm1, %v3257_v62, %v10502_v37  ;;  %vm13455_vm13 = vmmov %vm13438_vm1 }
 0x3d5   :  { %5800 = vmatprep.subr.msk.mxu1 %vm13439_vm14, %v3334_v39  ;;  %vm13456_vm1 = vmmov %vm13440_vm3 }
 0x3d6   :  { %3634 = vrot.lane.b32.xlu0 %v10430_v52, %s6170_s9  ;;  %5801 = vmatpush1.msk.msra.mxu1 %vm13440_vm3, %v3339_v4  ;;  %v13448_v4 = vld [vmem:[#allocation52_spill] sm:$0xff]  ;;  %vm13459_vm14 = vmmov %vm13445_vm5 }
 0x3d7   :  { %3232 = vrot.lane.b32.xlu1 %v13441_v40, %s6179_s18  ;;  %v3161_v5 = vpop.permute.xlu1 %3160  ;;  %v3159_v58 = vpop.permute.xlu0 %3158  ;;  %vm13460_vm3 = vmmov %vm13445_vm5 }
 0x3d8   :  { %v3386_v44 = vsel %vm13443_vm11, %v3161_v5, %v13442_v50  ;;  %v3385_v39 = vsel %vm13449_vm9, %v3159_v58, %v13448_v4  ;;  %vm13461_vm11 = vmmov %vm13446_vm10 }
 0x3d9   :  { %5691 = vmatprep.subr.msk.mxu0 %vm13444_vm8, %v3386_v44  ;;  %v13453_v44 = vld [vmem:[#allocation62_spill] sm:$0xff]  ;;  %vm13462_vm8 = vcmp.lt.s32.totalorder %v6495_v42, 127 }
 0x3da   :  { %3278 = vrot.lane.b32.xlu0 %v9871_v45, %s6179_s18  ;;  %vm13468_vm9 = vmmov %vm13462_vm8 }
 0x3db   :  { %3640 = vrot.lane.b32.xlu1 %v10319_v46, %s6170_s9  ;;  %v3255_v16 = vpop.permute.xlu1 %3254  ;;  %v3253_v55 = vpop.permute.xlu0 %3252 }
 0x3dc   :  { %v3333_v28 = vsel %vm13445_vm5, %v3255_v16, %v10537_v29  ;;  %vm13463_vm5 = vmmov %vm13456_vm1 }
 0x3dd   :  { %5802 = vmatprep.subr.msk.mxu1 %vm13446_vm10, %v3333_v28 }
 0x3de   :  { %3274 = vrot.lane.b32.xlu0 %v9940_v3, %s6179_s18 }
 0x3df   :  { %3636 = vrot.lane.b32.xlu1 %v10365_v21, %s6170_s9  ;;  %v10571_v20 = vpop.permute.xlu1 %3310  ;;  %v10576_v53 = vpop.permute.xlu0 %3308 }
 0x3e0   :  { %v3391_v62 = vsel %vm13447_vm6, %v10571_v20, %v3161_v5  ;;  %v3390_v50 = vsel %vm13451_vm7, %v10576_v53, %v3159_v58  ;;  %v13457_v58 = vld [vmem:[#allocation68_spill] sm:$0xff]  ;;  %vm13467_vm6 = vmmov %vm13460_vm3  ;;  %v4082_v24 = vpop.f32.mrf.mxu1 }
 0x3e1   :  { %5692 = vmatpush1.msk.msra.mxu0 %vm13450_vm4, %v3391_v62  ;;  %vm13469_vm4 = vmmov %vm13452_vm0 }
 0x3e2   :  { %4659 = vperm.xlu0 %6148, %v235_v2   ;;  %5693 = vmatprep.subr.msk.mxu0 %vm13452_vm0, %v3385_v39  ;;  %vm13472_vm0 = vmmov %vm13460_vm3  ;;  %v4084_v52 = vpop.f32.mrf.mxu1 }
 0x3e3   :  { %3280 = vrot.lane.b32.xlu1 %v13453_v44, %s6179_s18  ;;  %5694 = vmatpush1.msk.msra.mxu0 %vm13454_vm12, %v3390_v50  ;;  %v10595_v5 = vpop.permute.xlu1 %3244  ;;  %v10597_v28 = vpop.permute.xlu0 %3242  ;;  %vm13473_vm12 = vmmov %vm13462_vm8 }
 0x3e4   :  { %v3338_v62 = vsel %vm13455_vm13, %v10595_v5, %v3255_v16  ;;  %v3337_v29 = vsel %vm13460_vm3, %v10597_v28, %v3253_v55  ;;  %vm13474_vm13 = vcmp.ge.s32.totalorder %v6495_v42, 1  ;;  %vm13478_vm3 = vmmov %vm13462_vm8 }
 0x3e5   :  { %5803 = vmatpush1.msk.msra.mxu1 %vm13456_vm1, %v3338_v62  ;;  %v13464_v62 = vld [vmem:[#allocation5_spill] sm:$0xff] }
 0x3e6   :  { %vm13465_vm10 = vcmp.lt.s32.totalorder %v13464_v62, 127 }
 0x3e7   :  { %3276 = vrot.lane.b32.xlu1 %v13457_v58, %s6179_s18  ;;  %v10606_v4 = vpop.permute.xlu1 %3262  ;;  %v3663_v39 = vpop.permute.xlu0 %3662  ;;  %vm13475_vm1 = vmmov %vm13465_vm10 }
 0x3e8   :  { %13458 = vst [vmem:[#allocation16_spill] sm:$0xff] %v10606_v4  ;;  %v3332_v50 = vsel %vm13459_vm14, %v3253_v55, %v10606_v4  ;;  %v3743_v16 = vsel %vm13462_vm8, %v3663_v39, %v10315_v59  ;;  %v13466_v55 = vld [vmem:[#allocation54_spill] sm:$0xff]  ;;  %vm13477_vm14 = vmmov %vm13472_vm0 }
 0x3e9   :  { %5804 = vmatprep.subr.msk.mxu1 %vm13461_vm11, %v3332_v50  ;;  %vm13479_vm11 = vmmov %vm13469_vm4 }
 0x3ea   :  { %5805 = vmatpush1.msk.msra.mxu1 %vm13463_vm5, %v3337_v29  ;;  %v13470_v29 = vld [vmem:[#allocation28_spill] sm:$0xff]  ;;  %vm13484_vm5 = vmmov %vm13472_vm0 }
 0x3eb   :  { %3272 = vrot.lane.b32.xlu1 %v10039_v33, %s6179_s18  ;;  %5828 = vmatprep.subr.msk.mxu1 %vm13465_vm10, %v3743_v16  ;;  %v3157_v4 = vpop.permute.xlu1 %3156  ;;  %v10625_v37 = vpop.permute.xlu0 %3652  ;;  %vm13471_vm7 = vcmp.lt.s32.totalorder %v13470_v29, 127  ;;  %v13483_v33 = vld [vmem:[#allocation8_spill] sm:$0xff]  ;;  %vm13485_vm10 = vmmov %vm13478_vm3 }
 0x3ec   :  { %v3384_v50 = vsel %vm13467_vm6, %v3157_v4, %v13466_v55  ;;  %5806 = vmatmul.mubr.msk.f32.vlgmr.msra.gmra.mxu1 %vm3941_vm2, %v9861_v49  ;;  %v3668_v59 = vsel %vm13468_vm9, %v10625_v37, %v3663_v39  ;;  %vm13481_vm8 = vmmov %vm13471_vm7 }
 0x3ed   :  { %5695 = vmatprep.subr.msk.mxu0 %vm13469_vm4, %v3384_v50  ;;  %4506 = vmatprep.mubr.f32.mxu1 %v13082_v60  ;;  %vm13486_vm6 = vmmov %vm13474_vm13 }
 0x3ee   :  { %5829 = vmatpush1.msk.msra.mxu1 %vm13471_vm7, %v3668_v59  ;;  %vm13487_vm9 = vmmov %vm13475_vm1 }
 0x3ef   :  { %v10640_v16 = vpop.permute.xlu1 %3306  ;;  %4683 = vperm.xlu1 %6150, %v235_v2   ;;  %v3661_v43 = vpop.permute.xlu0 %3660  ;;  %vm13490_vm4 = vmmov %vm13472_vm0 }
 0x3f0   :  { %v3389_v55 = vsel %vm13472_vm0, %v10640_v16, %v3157_v4  ;;  %v3742_v39 = vsel %vm13473_vm12, %v3661_v43, %v10394_v47  ;;  %v6183_v47 = vmov 2   ;;  %vm13491_vm7 = vmmov %vm13478_vm3 }
 0x3f1   :  { %5696 = vmatpush1.msk.msra.mxu0 %vm13474_vm13, %v3389_v55  ;;  %5830 = vmatprep.subr.msk.mxu1 %vm13475_vm1, %v3742_v39  ;;  %v10665_v55 = vld [vmem:[%s12363_s5] sm:$0xff]  ;;  %vm13492_vm0 = vmmov %vm13479_vm11 }
 0x3f2   :  { %6151 = vset.pattern.permute.xlu0 %v6183_v47  ;;  %13480 = vst [vmem:[#allocation10_spill] sm:$0xff] %v10665_v55  ;;  %vm13493_vm12 = vmmov %vm13481_vm8 }
 0x3f3   :  { %v3155_v50 = vpop.permute.xlu1 %3154  ;;  %v10652_v59 = vpop.permute.xlu0 %3650  ;;  %4723 = vperm.xlu0 %6151, %v235_v2   ;;  %vm13494_vm13 = vmmov %vm13490_vm4 }
 0x3f4   :  { %v3383_v0 = vsel %vm13477_vm14, %v3155_v50, %v13476_v51  ;;  %v3667_v4 = vsel %vm13478_vm3, %v10652_v59, %v3661_v43  ;;  %v13482_v51 = vld [vmem:[#allocation4_spill] sm:$0xff]  ;;  %v3876_v43 = vrot.slane %v10665_v55, %v13483_v33  ;;  %vm13495_vm1 = vmmov %vm13486_vm6 }
 0x3f5   :  { %5697 = vmatprep.subr.msk.mxu0 %vm13479_vm11, %v3383_v0  ;;  %5831 = vmatpush1.msk.msra.mxu1 %vm13481_vm8, %v3667_v4  ;;  %v3872_v39 = vrot.slane %v10665_v55, %v13482_v51  ;;  %v13489_v55 = vld [vmem:[#allocation61_spill] sm:$0xff]  ;;  %vm13497_vm14 = vmmov %vm13478_vm3 }
 0x3f6   :  { %v4085_v58 = vadd.f32 %v4084_v52, %v3876_v43  ;;  %v13496_v43 = vld [vmem:[#allocation63_spill] sm:$0xff]  ;;  %vm13502_vm8 = vmmov %vm13478_vm3 }
 0x3f7   :  { %v10673_v3 = vpop.permute.xlu1 %3304  ;;  %v3659_v0 = vpop.permute.xlu0 %3658  ;;  %v4083_v21 = vadd.f32 %v4082_v24, %v3872_v39 }
 0x3f8   :  { %v3388_v47 = vsel %vm13484_vm5, %v10673_v3, %v3155_v50  ;;  %v3741_v2 = vsel %vm13485_vm10, %v3659_v0, %v10392_v17  ;;  %v10685_v4 = vmax.f32 %v4085_v58, 0.0  ;;  %vm13506_vm10 = vmmov %vm13478_vm3 }
 0x3f9   :  { %5698 = vmatpush1.msk.msra.mxu0 %vm13486_vm6, %v3388_v47  ;;  %5832 = vmatprep.subr.msk.mxu1 %vm13487_vm9, %v3741_v2  ;;  %v10692_v52 = vmax.f32 %v4083_v21, 0.0  ;;  %v13498_v47 = vld [vmem:[#allocation21_spill] sm:$0xff]  ;;  %vm13508_vm9 = vmmov %vm13478_vm3 }
 0x3fa   :  { %13488 = vst [vmem:[#allocation37_spill] sm:$0xff] %v10685_v4  ;;  %4535 = vrot.lane.b32.xlu0 %v10685_v4, %s6179_s18  ;;  %v13499_v2 = vld [vmem:[#allocation45_spill] sm:$0xff] }
 0x3fb   :  { %v3153_v33 = vpop.permute.xlu1 %3152  ;;  %v10687_v51 = vpop.permute.xlu0 %3648  ;;  %vm13500_vm11 = vcmp.lt.s32.totalorder %v13499_v2, 127 }
 0x3fc   :  { %v3382_v24 = vsel %vm13490_vm4, %v3153_v33, %v13489_v55  ;;  %v3666_v17 = vsel %vm13491_vm7, %v10687_v51, %v3659_v0  ;;  %vm13507_vm6 = vmmov %vm13500_vm11  ;;  %vm13510_vm7 = vcmp.lt.s32.totalorder %v13464_v62, 127 }
 0x3fd   :  { %5699 = vmatprep.subr.msk.mxu0 %vm13492_vm0, %v3382_v24  ;;  %5833 = vmatpush1.msk.msra.mxu1 %vm13493_vm12, %v3666_v17  ;;  %v13501_v24 = vld [vmem:[#allocation66_spill] sm:$0xff]  ;;  %vm13511_vm0 = vmmov %vm13478_vm3 }
 0x3fe   :  { %4597 = vrot.lane.b32.xlu0 %v10692_v52, %s6170_s9  ;;  %vm13512_vm12 = vmmov %vm13511_vm0 }
 0x3ff   :  { %v10703_v58 = vpop.permute.xlu1 %3302  ;;  %v3561_v50 = vpop.permute.xlu0 %3560 }
 0x400   :  { %v3387_v21 = vsel %vm13494_vm13, %v10703_v58, %v3153_v33  ;;  %v3712_v17 = vsel %vm13502_vm8, %v3561_v50, %v13501_v24  ;;  %vm13513_vm13 = vcmp.lt.s32.totalorder %v13470_v29, 127  ;;  %vm13520_vm8 = vmmov %vm13511_vm0 }
 0x401   :  { %5700 = vmatpush1.msk.msra.mxu0 %vm13495_vm1, %v3387_v21  ;;  %v13505_v21 = vld [vmem:[#allocation25_spill] sm:$0xff]  ;;  %vm13514_vm1 = vmmov %vm13511_vm0 }
 0x402   :  { %5701 = vmatmul.mubr.msk.f32.vlgmr.msra.gmra.mxu0 %vm3941_vm2, %v9861_v49  ;;  %v13503_v49 = vld [vmem:[#allocation44_spill] sm:$0xff]  ;;  %v3717_v56 = vsel %vm13506_vm10, %v13505_v21, %v3561_v50  ;;  %v13519_v21 = vld [vmem:[#allocation29_spill] sm:$0xff] }
 0x403   :  { %v3563_v55 = vpop.permute.xlu1 %3562  ;;  %4151 = vmatprep.mubr.f32.mxu0 %v13082_v60  ;;  %v3655_v39 = vpop.permute.xlu0 %3654  ;;  %vm13504_vm5 = vcmp.lt.s32.totalorder %v13503_v49, 127 }
 0x404   :  { %v3713_v0 = vsel %vm13497_vm14, %v3563_v55, %v13496_v43  ;;  %v3718_v33 = vsel %vm13478_vm3, %v13498_v47, %v3563_v55  ;;  %vm13509_vm4 = vmmov %vm13504_vm5 }
 0x405   :  { %5723 = vmatprep.subr.msk.mxu0 %vm13500_vm11, %v3713_v0  ;;  %vm13515_vm14 = vmmov %vm13510_vm7 }
 0x406   :  { %5724 = vmatpush1.msk.msra.mxu0 %vm13504_vm5, %v3718_v33  ;;  %v3739_v33 = vsel %vm13512_vm12, %v3655_v39, %v10432_v19  ;;  %vm13516_vm3 = vmmov %vm13513_vm13 }
 0x407   :  { %5725 = vmatprep.subr.msk.mxu0 %vm13507_vm6, %v3712_v17  ;;  %v3657_v43 = vpop.permute.xlu1 %3656  ;;  %v10733_v4 = vpop.permute.xlu0 %3644  ;;  %v13517_v17 = vld [vmem:[#allocation69_spill] sm:$0xff]  ;;  %vm13518_vm11 = vmmov %vm13511_vm0 }
 0x408   :  { %v3740_v55 = vsel %vm13508_vm9, %v3657_v43, %v10415_v48  ;;  %5726 = vmatpush1.msk.msra.mxu0 %vm13509_vm4, %v3717_v56  ;;  %v3664_v56 = vsel %vm13514_vm1, %v10733_v4, %v3655_v39  ;;  %vm13521_vm5 = vmmov %vm13507_vm6 }
 0x409   :  { %5834 = vmatprep.subr.msk.mxu1 %vm13510_vm7, %v3740_v55  ;;  %vm13522_vm10 = vmmov %vm13509_vm4 }
 0x40a   :  { %vm13524_vm6 = vmmov %vm13511_vm0 }
 0x40b   :  { %v10742_v0 = vpop.permute.xlu1 %3646  ;;  %vm13526_vm9 = vmmov %vm13511_vm0 }
 0x40c   :  { %v3555_v47 = vpop.permute.xlu0 %3554  ;;  %v3665_v50 = vsel %vm13511_vm0, %v10742_v0, %v3657_v43  ;;  %vm13527_vm4 = vmmov %vm13521_vm5 }
 0x40d   :  { %5835 = vmatpush1.msk.msra.mxu1 %vm13513_vm13, %v3665_v50  ;;  %v13523_v50 = vld [vmem:[#allocation72_spill] sm:$0xff]  ;;  %vm13529_vm7 = vmmov %vm13511_vm0 }
 0x40e   :  { %5836 = vmatprep.subr.msk.mxu1 %vm13515_vm14, %v3739_v33  ;;  %vm13530_vm0 = vmmov %vm13522_vm10 }
 0x40f   :  { %5837 = vmatpush1.msk.msra.mxu1 %vm13516_vm3, %v3664_v56  ;;  %v3559_v48 = vpop.permute.xlu1 %3558  ;;  %vm13532_vm12 = vmmov %vm13514_vm1  ;;  %vm13534_vm1 = vcmp.lt.s32.totalorder %v6495_v42, 1 }
 0x410   :  { %v10759_v24 = vpop.permute.xlu0 %3290  ;;  %v3711_v19 = vsel %vm13518_vm11, %v3559_v48, %v13517_v17  ;;  %v3716_v43 = vsel %vm13520_vm8, %v13519_v21, %v3559_v48  ;;  %4454 = vmatprep.subr.mxu1 %v10193_v10  ;;  %v13525_v10 = vld [vmem:[#allocation32_spill] sm:$0xff]  ;;  %vm13533_vm13 = vmmov %vm13527_vm4  ;;  %vm13537_vm11 = vcmp.ge.s32.totalorder %v13464_v62, 1 }
 0x411   :  { %5727 = vmatprep.subr.msk.mxu0 %vm13521_vm5, %v3711_v19  ;;  %4455 = vmatpush1.msra.mxu1 %v10217_v9  ;;  %vm13535_vm14 = vmmov %vm13530_vm0  ;;  %v13544_v19 = vld [vmem:[#allocation11_spill] sm:$0xff]  ;;  %v13545_v21 = vld [vmem:[#allocation20_spill] sm:$0xff] }
 0x412   :  { %5728 = vmatpush1.msk.msra.mxu0 %vm13522_vm10, %v3716_v43  ;;  %4456 = vmatprep.subr.mxu1 %v10197_v6  ;;  %v13528_v6 = vld [vmem:[#allocation73_spill] sm:$0xff]  ;;  %vm13536_vm3 = vmmov %vm13534_vm1 }
 0x413   :  { %4457 = vmatpush1.msra.mxu1 %v10232_v61  ;;  %v3557_v39 = vpop.permute.xlu1 %3556  ;;  %v3709_v9 = vsel %vm13529_vm7, %v3555_v47, %v13528_v6  ;;  %v13531_v61 = vld [vmem:[#allocation7_spill] sm:$0xff]  ;;  %vm13539_vm8 = vmmov %vm13534_vm1 }
 0x414   :  { %v10775_v55 = vpop.permute.xlu0 %3288  ;;  %v3710_v33 = vsel %vm13524_vm6, %v3557_v39, %v13523_v50  ;;  %v3715_v56 = vsel %vm13526_vm9, %v13525_v10, %v3557_v39  ;;  %4458 = vmatprep.subr.mxu1 %v10223_v12  ;;  %v3714_v48 = vsel %vm13532_vm12, %v13531_v61, %v3555_v47  ;;  %vm13540_vm5 = vmmov %vm13534_vm1  ;;  %v13541_v47 = vld [vmem:[#allocation14_spill] sm:$0xff]  ;;  %v13547_v50 = vld [vmem:[#allocation23_spill] sm:$0xff] }
 0x415   :  { %5729 = vmatprep.subr.msk.mxu0 %vm13527_vm4, %v3710_v33  ;;  %4459 = vmatpush1.msra.mxu1 %v10248_v34  ;;  %vm13543_vm10 = vmmov %vm13537_vm11  ;;  %v13549_v33 = vld [vmem:[#allocation77_spill] sm:$0xff] }
 0x416   :  { %5730 = vmatpush1.msk.msra.mxu0 %vm13530_vm0, %v3715_v56  ;;  %4460 = vmatprep.subr.mxu1 %v10238_v57  ;;  %vm13546_vm6 = vmmov %vm13534_vm1  ;;  %v13551_v56 = vld [vmem:[#allocation49_spill] sm:$0xff]  ;;  %vm13553_vm0 = vcmp.ge.s32.totalorder %v13499_v2, 1 }
 0x417   :  { %5731 = vmatprep.subr.msk.mxu0 %vm13533_vm13, %v3709_v9  ;;  %4461 = vmatpush1.msra.mxu1 %v10278_v41  ;;  %v3301_v12 = vpop.permute.xlu1 %3300  ;;  %v13538_v41 = vld [vmem:[#allocation40_spill] sm:$0xff]  ;;  %vm13548_vm9 = vmmov %vm13543_vm10  ;;  %vm13555_vm13 = vcmp.ge.s32.totalorder %v13503_v49, 1 }
 0x418   :  { %v3201_v34 = vpop.permute.xlu0 %3200  ;;  %v3316_v17 = vsel %vm13534_vm1, %v3301_v12, %v10571_v20  ;;  %5732 = vmatpush1.msk.msra.mxu0 %vm13535_vm14, %v3714_v48  ;;  %4462 = vmatprep.subr.mxu1 %v10254_v7  ;;  %v3321_v57 = vsel %vm13536_vm3, %v10759_v24, %v3301_v12  ;;  %vm13550_vm4 = vmmov %vm13534_vm1  ;;  %v13558_v12 = vld [vmem:[#allocation78_spill] sm:$0xff] }
 0x419   :  { %4099 = vmatprep.subr.mxu0 %v9638_v14  ;;  %4463 = vmatpush1.msra.mxu1 %v10272_v15  ;;  %v3366_v10 = vsel %vm13550_vm4, %v3201_v34, %v13549_v33  ;;  %vm13552_vm7 = vmmov %vm13534_vm1  ;;  %v10912_v33 = vld [vmem:[%s12361_s4] sm:$0x1] }
 0x41a   :  { %4100 = vmatpush1.msra.mxu0 %v13379_v31  ;;  %5838 = vmatprep.subr.msk.mxu1 %vm13537_vm11, %v3316_v17  ;;  %v13542_v31 = vld [vmem:[#allocation19_spill] sm:$0xff]  ;;  %v3371_v6 = vsel %vm13552_vm7, %v13551_v56, %v3201_v34  ;;  %vm13554_vm12 = vmmov %vm13534_vm1  ;;  %v13579_v56 = vld [vmem:[#allocation85_spill] sm:$0xff] }
 0x41b   :  { %4101 = vmatprep.subr.mxu0 %v13538_v41  ;;  %5839 = vmatpush1.msk.msra.mxu1 %vm869_vm15, %v3321_v57  ;;  %v3299_v20 = vpop.permute.xlu1 %3298  ;;  %vm13556_vm14 = vmmov %vm13534_vm1  ;;  %v13560_v17 = vld [vmem:[#allocation51_spill] sm:$0xff]  ;;  %v13563_v41 = vld [vmem:[#allocation81_spill] sm:$0xff] }
 0x41c   :  { %v3295_v7 = vpop.permute.xlu0 %3294  ;;  %v3315_v14 = vsel %vm13539_vm8, %v3299_v20, %v10576_v53  ;;  %v3320_v15 = vsel %vm13540_vm5, %v10775_v55, %v3299_v20  ;;  %4102 = vmatpush1.msra.mxu0 %v13541_v47  ;;  %vm13557_vm3 = vmmov %vm13548_vm9  ;;  %v13569_v47 = vld [vmem:[#allocation82_spill] sm:$0xff] }
 0x41d   :  { %4103 = vmatprep.subr.mxu0 %v13542_v31  ;;  %5840 = vmatprep.subr.msk.mxu1 %vm13543_vm10, %v3315_v14  ;;  %vm13559_vm11 = vmmov %vm13534_vm1 }
 0x41e   :  { %4104 = vmatpush1.msra.mxu0 %v13544_v19  ;;  %5841 = vmatpush1.msk.msra.mxu1 %vm869_vm15, %v3320_v15  ;;  %vm13561_vm8 = vmmov %vm13534_vm1 }
 0x41f   :  { %4105 = vmatprep.subr.mxu0 %v13545_v21  ;;  %v3297_v43 = vpop.permute.xlu1 %3296  ;;  %vm13562_vm5 = vmmov %vm13553_vm0  ;;  %v13573_v21 = vld [vmem:[#allocation56_spill] sm:$0xff] }
 0x420   :  { %v10830_v53 = vpop.permute.xlu0 %3284  ;;  %v3314_v39 = vsel %vm13546_vm6, %v3297_v43, %v10640_v16  ;;  %4106 = vmatpush1.msra.mxu0 %v13400_v54  ;;  %vm13564_vm10 = vmmov %vm13534_vm1 }
 0x421   :  { %4107 = vmatprep.subr.mxu0 %v13547_v50  ;;  %5842 = vmatprep.subr.msk.mxu1 %vm13548_vm9, %v3314_v39  ;;  %v3318_v61 = vsel %vm13556_vm14, %v10830_v53, %v3295_v7  ;;  %vm13565_vm6 = vmmov %vm13555_vm13 }
 0x422   :  { %4108 = vmatpush1.msra.mxu0 %v13414_v23  ;;  %v3313_v23 = vsel %vm13534_vm1, %v3295_v7, %v10673_v3  ;;  %v13566_v7 = vld [vmem:[#allocation53_spill] sm:$0xff]  ;;  %vm13567_vm9 = vmmov %vm13534_vm1 }
 0x423   :  { %5733 = vmatprep.subr.msk.mxu0 %vm13553_vm0, %v3366_v10  ;;  %v10848_v16 = vpop.permute.xlu1 %3286  ;;  %vm13568_vm4 = vmmov %vm13553_vm0 }
 0x424   :  { %v3197_v54 = vpop.permute.xlu0 %3196  ;;  %v3319_v9 = vsel %vm13554_vm12, %v10848_v16, %v3297_v43  ;;  %5734 = vmatpush1.msk.msra.mxu0 %vm13555_vm13, %v3371_v6  ;;  %vm13570_vm7 = vmmov %vm13534_vm1 }
 0x425   :  { %5843 = vmatpush1.msk.msra.mxu1 %vm869_vm15, %v3319_v9  ;;  %v3364_v20 = vsel %vm13564_vm10, %v3197_v54, %v13563_v41  ;;  %v3369_v14 = vsel %vm13567_vm9, %v13566_v7, %v3197_v54  ;;  %vm13571_vm0 = vmmov %vm13534_vm1  ;;  %v13581_v54 = vld [vmem:[#allocation60_spill] sm:$0xff] }
 0x426   :  { %5844 = vmatprep.subr.msk.mxu1 %vm13557_vm3, %v3313_v23  ;;  %vm13572_vm12 = vmmov %vm13565_vm6  ;;  %v13584_v23 = vld [vmem:[#allocation86_spill] sm:$0xff] }
 0x427   :  { %5845 = vmatpush1.msk.msra.mxu1 %vm869_vm15, %v3318_v61  ;;  %v3199_v48 = vpop.permute.xlu1 %3198  ;;  %vm13574_vm13 = vmmov %vm13571_vm0 }
 0x428   :  { %v3365_v34 = vsel %vm13559_vm11, %v3199_v48, %v13558_v12  ;;  %v3370_v3 = vsel %vm13561_vm8, %v13560_v17, %v3199_v48  ;;  %v3195_v57 = vpop.permute.xlu0 %3194  ;;  %vm13575_vm1 = vmmov %vm13568_vm4  ;;  %v13587_v12 = vld [vmem:[#allocation64_spill] sm:$0xff]  ;;  %v13589_v17 = vld [vmem:[#allocation47_spill] sm:$0xff] }
 0x429   :  { %5735 = vmatprep.subr.msk.mxu0 %vm13562_vm5, %v3365_v34  ;;  %v3363_v31 = vsel %vm13570_vm7, %v3195_v57, %v13569_v47  ;;  %v3368_v43 = vsel %vm13574_vm13, %v13573_v21, %v3195_v57  ;;  %vm13576_vm14 = vmmov %vm13557_vm3  ;;  %vm13590_vm7 = vcmp.lt.s32.totalorder %v13589_v17, 127  ;;  %v13591_v57 = vld [vmem:[#allocation22_spill] sm:$0xff] }
 0x42a   :  { %5736 = vmatpush1.msk.msra.mxu0 %vm13565_vm6, %v3370_v3  ;;  %vm13577_vm3 = vmmov %vm13565_vm6  ;;  %vm13585_vm6 = vcmp.lt.s32.totalorder %v6495_v42, 127 }
 0x42b   :  { %5737 = vmatprep.subr.msk.mxu0 %vm13568_vm4, %v3364_v20  ;;  %v3293_v15 = vpop.permute.xlu1 %3292  ;;  %vm13578_vm11 = vmmov %vm13571_vm0  ;;  %v13593_v20 = vld [vmem:[#allocation65_spill] sm:$0xff] }
 0x42c   :  { %v3312_v19 = vsel %vm13571_vm0, %v3293_v15, %v10703_v58  ;;  %5738 = vmatpush1.msk.msra.mxu0 %vm13572_vm12, %v3369_v14  ;;  %v3603_v50 = vpop.permute.xlu0 %3602  ;;  %vm13580_vm8 = vmmov %vm13571_vm0  ;;  %v13595_v14 = vld [vmem:[#allocation39_spill] sm:$0xff] }
 0x42d   :  { %5739 = vmatprep.subr.msk.mxu0 %vm13575_vm1, %v3363_v31  ;;  %5846 = vmatprep.subr.msk.mxu1 %vm13576_vm14, %v3312_v19  ;;  %vm13582_vm5 = vmmov %vm13571_vm0  ;;  %v3693_v61 = vsel %vm13585_vm6, %v3603_v50, %v13584_v23  ;;  %vm13596_vm13 = vcmp.lt.s32.totalorder %v13595_v14, 127  ;;  %v13601_v31 = vld [vmem:[#allocation70_spill] sm:$0xff] }
 0x42e   :  { %5740 = vmatpush1.msk.msra.mxu0 %vm13577_vm3, %v3368_v43  ;;  %vm13583_vm10 = vmmov %vm13575_vm1 }
 0x42f   :  { %v10902_v39 = vpop.permute.xlu1 %3282  ;;  %vm13586_vm9 = vmmov %vm13577_vm3 }
 0x430   :  { %v3317_v58 = vsel %vm13578_vm11, %v10902_v39, %v3293_v15  ;;  %v3599_v48 = vpop.permute.xlu0 %3598  ;;  %vm13588_vm4 = vmmov %vm13585_vm6  ;;  %v13598_v15 = vld [vmem:[#allocation91_spill] sm:$0xff] }
 0x431   :  { %5847 = vmatpush1.msk.msra.mxu1 %vm869_vm15, %v3317_v58  ;;  %v3698_v34 = vsel %vm13588_vm4, %v13587_v12, %v3603_v50  ;;  %vm13592_vm0 = vmmov %vm13588_vm4  ;;  %v13605_v50 = vld [vmem:[#allocation36_spill] sm:$0xff]  ;;  %v13631_v12 = vld [vmem:[#allocation83_spill] sm:$0xff] }
 0x432   :  { %5848 = vmatmul.mubr.msk.f32.vlgmr.msra.gmra.mxu1 %vm3941_vm2, %v10912_v33  ;;  %vm13594_vm12 = vmmov %vm13592_vm0 }
 0x433   :  { %v3193_v10 = vpop.permute.xlu1 %3192  ;;  %vm13597_vm1 = vmmov %vm13590_vm7 }
 0x434   :  { %v3362_v6 = vsel %vm13580_vm8, %v3193_v10, %v13579_v56  ;;  %v3367_v9 = vsel %vm13582_vm5, %v13581_v54, %v3193_v10  ;;  %vm13599_vm14 = vmmov %vm13592_vm0  ;;  %v3595_v21 = vpop.permute.xlu0 %3594  ;;  %v13607_v10 = vld [vmem:[#allocation71_spill] sm:$0xff]  ;;  %v13612_v54 = vld [vmem:[#allocation74_spill] sm:$0xff] }
 0x435   :  { %5741 = vmatprep.subr.msk.mxu0 %vm13583_vm10, %v3362_v6  ;;  %v3691_v47 = vsel %vm13599_vm14, %v3599_v48, %v13598_v15  ;;  %vm13600_vm3 = vmmov %vm13596_vm13  ;;  %v13643_v15 = vld [vmem:[#allocation35_spill] sm:$0xff] }
 0x436   :  { %5742 = vmatpush1.msk.msra.mxu0 %vm13586_vm9, %v3367_v9  ;;  %vm13602_vm11 = vmmov %vm13592_vm0  ;;  %v3694_v9 = vsel %vm13592_vm0, %v13612_v54, %v3595_v21 }
 0x437   :  { %5743 = vmatmul.mubr.msk.f32.vlgmr.msra.gmra.mxu0 %vm3941_vm2, %v10912_v33  ;;  %5765 = vmatprep.subr.msk.mxu0 %vm13590_vm7, %v3693_v61  ;;  %v3601_v3 = vpop.permute.xlu1 %3600  ;;  %v3696_v19 = vsel %vm13602_vm11, %v13601_v31, %v3599_v48  ;;  %vm13603_vm8 = vmmov %vm13597_vm1  ;;  %v13646_v31 = vld [vmem:[#allocation15_spill] sm:$0xff] }
 0x438   :  { %v3692_v41 = vsel %vm13592_vm0, %v3601_v3, %v13591_v57  ;;  %v3697_v7 = vsel %vm13594_vm12, %v13593_v20, %v3601_v3  ;;  %5766 = vmatpush1.msk.msra.mxu0 %vm13596_vm13, %v3698_v34  ;;  %4293 = vmatprep.mubr.f32.mxu0 %v13082_v60  ;;  %vm13604_vm5 = vmmov %vm13600_vm3  ;;  %v3239_v61 = vpop.permute.xlu0 %3238 }
 0x439   :  { %5767 = vmatprep.subr.msk.mxu0 %vm13597_vm1, %v3692_v41  ;;  %vm13606_vm10 = vmmov %vm13592_vm0 }
 0x43a   :  { %5768 = vmatpush1.msk.msra.mxu0 %vm13600_vm3, %v3697_v7  ;;  %vm13608_vm6 = vmmov %vm13592_vm0  ;;  %v13641_v7 = vld [vmem:[#allocation88_spill] sm:$0xff] }
 0x43b   :  { %5769 = vmatprep.subr.msk.mxu0 %vm13603_vm8, %v3691_v47  ;;  %vm13609_vm9 = vmmov %vm13597_vm1  ;;  %vm13620_vm8 = vcmp.ge.s32.totalorder %v13595_v14, 1 }
 0x43c   :  { %v3597_v43 = vpop.permute.xlu1 %3596  ;;  %5770 = vmatpush1.msk.msra.mxu0 %vm13604_vm5, %v3696_v19  ;;  %vm13610_vm4 = vmmov %vm13592_vm0  ;;  %v3235_v48 = vpop.permute.xlu0 %3234 }
 0x43d   :  { %v3690_v58 = vsel %vm13606_vm10, %v3597_v43, %v13605_v50  ;;  %v3695_v56 = vsel %vm13608_vm6, %v13607_v10, %v3597_v43  ;;  %v3689_v6 = vsel %vm13610_vm4, %v3595_v21, %v10434_v22  ;;  %vm13611_vm7 = vmmov %vm13600_vm3  ;;  %v13658_v10 = vld [vmem:[#allocation89_spill] sm:$0xff] }
 0x43e   :  { %5771 = vmatprep.subr.msk.mxu0 %vm13609_vm9, %v3690_v58  ;;  %vm13613_vm12 = vmmov %vm13597_vm1  ;;  %vm13615_vm1 = vcmp.lt.s32.totalorder %v6495_v42, 1 }
 0x43f   :  { %5772 = vmatpush1.msk.msra.mxu0 %vm13611_vm7, %v3695_v56  ;;  %vm13614_vm13 = vmmov %vm13600_vm3  ;;  %vm13618_vm3 = vcmp.ge.s32.totalorder %v13589_v17, 1 }
 0x440   :  { %5773 = vmatprep.subr.msk.mxu0 %vm13613_vm12, %v3689_v6  ;;  %vm13617_vm14 = vmmov %vm13615_vm1  ;;  %v13663_v6 = vld [vmem:[#allocation59_spill] sm:$0xff] }
 0x441   :  { %v3241_v23 = vpop.permute.xlu1 %3240  ;;  %5774 = vmatpush1.msk.msra.mxu0 %vm13614_vm13, %v3694_v9  ;;  %vm13619_vm11 = vmmov %vm13615_vm1 }
 0x442   :  { %4241 = vmatprep.subr.mxu0 %v10142_v11  ;;  %v3346_v11 = vsel %vm13615_vm1, %v3241_v23, %v10499_v26  ;;  %vm13622_vm5 = vmmov %vm13615_vm1  ;;  %v3643_v26 = vpop.permute.xlu0 %3642 }
 0x443   :  { %4242 = vmatpush1.msra.mxu0 %v13429_v18  ;;  %vm13623_vm10 = vmmov %vm13618_vm3 }
 0x444   :  { %4243 = vmatprep.subr.mxu0 %v10126_v30  ;;  %v13616_v30 = vld [vmem:[#allocation75_spill] sm:$0xff]  ;;  %vm13624_vm6 = vmmov %vm13615_vm1 }
 0x445   :  { %4244 = vmatpush1.msra.mxu0 %v13420_v25  ;;  %v3237_v22 = vpop.permute.xlu1 %3236  ;;  %v3351_v25 = vsel %vm13617_vm14, %v13616_v30, %v3241_v23  ;;  %vm13625_vm9 = vmmov %vm13620_vm8  ;;  %v13668_v23 = vld [vmem:[#allocation57_spill] sm:$0xff] }
 0x446   :  { %4245 = vmatprep.subr.mxu0 %v10161_v63  ;;  %v3344_v18 = vsel %vm13624_vm6, %v3237_v22, %v10519_v1  ;;  %vm13627_vm4 = vmmov %vm13615_vm1  ;;  %v3639_v57 = vpop.permute.xlu0 %3638 }
 0x447   :  { %4246 = vmatpush1.msra.mxu0 %v13434_v27  ;;  %v13626_v27 = vld [vmem:[#allocation80_spill] sm:$0xff]  ;;  %vm13628_vm7 = vmmov %vm13618_vm3 }
 0x448   :  { %4247 = vmatprep.subr.mxu0 %v10203_v35  ;;  %v3345_v35 = vsel %vm13619_vm11, %v3239_v61, %v10484_v36  ;;  %v3349_v36 = vsel %vm13627_vm4, %v13626_v27, %v3237_v22  ;;  %vm13629_vm0 = vmmov %vm13615_vm1  ;;  %v13697_v27 = vld [vmem:[#allocation3_spill] sm:$0xff] }
 0x449   :  { %4248 = vmatpush1.msra.mxu0 %v13424_v8  ;;  %v3233_v63 = vpop.permute.xlu1 %3232  ;;  %vm13630_vm12 = vmmov %vm13620_vm8 }
 0x44a   :  { %4249 = vmatprep.subr.mxu0 %v10205_v38  ;;  %v13621_v38 = vld [vmem:[#allocation79_spill] sm:$0xff]  ;;  %vm13632_vm13 = vmmov %vm13629_vm0 }
 0x44b   :  { %4250 = vmatpush1.msra.mxu0 %v13441_v40  ;;  %v3350_v8 = vsel %vm13622_vm5, %v13621_v38, %v3239_v61  ;;  %v3343_v40 = vsel %vm13629_vm0, %v3235_v48, %v10595_v5  ;;  %v3348_v1 = vsel %vm13632_vm13, %v13631_v12, %v3235_v48  ;;  %vm13633_vm1 = vmmov %vm13618_vm3  ;;  %v13636_v5 = vld [vmem:[#allocation84_spill] sm:$0xff]  ;;  %vm13639_vm5 = vcmp.lt.s32.totalorder %v6495_v42, 127  ;;  %v13669_v61 = vld [vmem:[#allocation67_spill] sm:$0xff] }
 0x44c   :  { %5775 = vmatprep.subr.msk.mxu0 %vm13618_vm3, %v3346_v11  ;;  %vm13634_vm14 = vmmov %vm13629_vm0  ;;  %v3673_v20 = vsel %vm13639_vm5, %v3643_v26, %v10625_v37  ;;  %v13648_v37 = vld [vmem:[#allocation87_spill] sm:$0xff]  ;;  %v13670_v48 = vld [vmem:[#allocation26_spill] sm:$0xff] }
 0x44d   :  { %5776 = vmatpush1.msk.msra.mxu0 %vm13620_vm8, %v3351_v25  ;;  %v3641_v34 = vpop.permute.xlu1 %3640  ;;  %v3342_v3 = vsel %vm13634_vm14, %v3233_v63, %v10597_v28  ;;  %vm13635_vm3 = vmmov %vm13620_vm8  ;;  %v13678_v11 = vld [vmem:[#allocation55_spill] sm:$0xff] }
 0x44e   :  { %5777 = vmatprep.subr.msk.mxu0 %vm13623_vm10, %v3345_v35  ;;  %vm13637_vm11 = vmmov %vm13629_vm0 }
 0x44f   :  { %5778 = vmatpush1.msk.msra.mxu0 %vm13625_vm9, %v3350_v8  ;;  %v3347_v41 = vsel %vm13637_vm11, %v13636_v5, %v3233_v63  ;;  %vm13638_vm8 = vmmov %vm13633_vm1  ;;  %vm13644_vm9 = vcmp.lt.s32.totalorder %v13643_v15, 127  ;;  %v13683_v63 = vld [vmem:[#allocation41_spill] sm:$0xff] }
 0x450   :  { %5779 = vmatprep.subr.msk.mxu0 %vm13628_vm7, %v3344_v18  ;;  %vm13640_vm10 = vmmov %vm13635_vm3  ;;  %vm13647_vm7 = vcmp.lt.s32.totalorder %v13646_v31, 127  ;;  %v13688_v8 = vld [vmem:[#allocation33_spill] sm:$0xff]  ;;  %v13693_v18 = vld [vmem:[#allocation16_spill] sm:$0xff] }
 0x451   :  { %5780 = vmatpush1.msk.msra.mxu0 %vm13630_vm12, %v3349_v36  ;;  %vm13642_vm6 = vmmov %vm13639_vm5  ;;  %v3637_v21 = vpop.permute.xlu1 %3636  ;;  %v13698_v36 = vld [vmem:[#allocation10_spill] sm:$0xff] }
 0x452   :  { %5781 = vmatprep.subr.msk.mxu0 %vm13633_vm1, %v3343_v40  ;;  %v3678_v28 = vsel %vm13642_vm6, %v13641_v7, %v3643_v26  ;;  %vm13645_vm4 = vmmov %vm13639_vm5  ;;  %v3864_v40 = vrot.slane %v13698_v36, %v13697_v27  ;;  %v4792_v7 = vld [vmem:[%s12364_s6 + $0xf0] sm:$0xff] }
 0x453   :  { %5782 = vmatpush1.msk.msra.mxu0 %vm13635_vm3, %v3348_v1  ;;  %v3672_v47 = vsel %vm13645_vm4, %v3641_v34, %v10652_v59  ;;  %vm13649_vm0 = vmmov %vm13645_vm4  ;;  %v13653_v59 = vld [vmem:[#allocation90_spill] sm:$0xff] }
 0x454   :  { %5783 = vmatprep.subr.msk.mxu0 %vm13638_vm8, %v3342_v3  ;;  %v3677_v19 = vsel %vm13649_vm0, %v13648_v37, %v3641_v34  ;;  %vm13650_vm12 = vmmov %vm13644_vm9  ;;  %v4791_v37 = vld [vmem:[%s12364_s6 + $0xe8] sm:$0xff] }
 0x455   :  { %5784 = vmatpush1.msk.msra.mxu0 %vm13640_vm10, %v3347_v41  ;;  %vm13651_vm13 = vmmov %vm13649_vm0  ;;  %v3281_v54 = vpop.permute.xlu1 %3280 }
 0x456   :  { %5785 = vmatmul.mubr.msk.f32.vlgmr.msra.gmra.mxu0 %vm3941_vm2, %v10912_v33  ;;  %5807 = vmatprep.subr.msk.mxu0 %vm13644_vm9, %v3673_v20  ;;  %v3671_v43 = vsel %vm13651_vm13, %v3639_v57, %v10687_v51  ;;  %vm13652_vm1 = vmmov %vm13647_vm7  ;;  %v4777_v20 = vld [vmem:[%s12364_s6 + $0x78] sm:$0xff] }
 0x457   :  { %5808 = vmatpush1.msk.msra.mxu0 %vm13647_vm7, %v3678_v28  ;;  %4435 = vmatprep.mubr.f32.mxu0 %v13082_v60  ;;  %vm13654_vm14 = vmmov %vm13649_vm0  ;;  %v3635_v60 = vpop.permute.xlu0 %3634  ;;  %v4776_v28 = vld [vmem:[%s12364_s6 + $0x70] sm:$0xff] }
 0x458   :  { %5809 = vmatprep.subr.msk.mxu0 %vm13650_vm12, %v3672_v47  ;;  %v3676_v50 = vsel %vm13654_vm14, %v13653_v59, %v3639_v57  ;;  %vm13655_vm3 = vmmov %vm13644_vm9  ;;  %vm13671_vm12 = vcmp.lt.s32.totalorder %v6495_v42, 1  ;;  %v4825_v47 = vld [vmem:[%s12364_s6 + $0x1f8] sm:$0xff]  ;;  %v4790_v59 = vld [vmem:[%s12364_s6 + $0xe0] sm:$0xff] }
 0x459   :  { %5810 = vmatpush1.msk.msra.mxu0 %vm13652_vm1, %v3677_v19  ;;  %vm13656_vm11 = vmmov %vm13649_vm0  ;;  %v3277_v22 = vpop.permute.xlu1 %3276  ;;  %v4809_v19 = vld [vmem:[%s12364_s6 + $0x178] sm:$0xff]  ;;  %5884 = vmatprep.subr.mxu1 %v4825_v47  ;;  %v4798_v47 = vld [vmem:[%s12364_s6 + $0x120] sm:$0xff] }
 0x45a   :  { %5811 = vmatprep.subr.msk.mxu0 %vm13655_vm3, %v3671_v43  ;;  %v3670_v58 = vsel %vm13656_vm11, %v3637_v21, %v10742_v0  ;;  %vm13657_vm8 = vmmov %vm13652_vm1  ;;  %v4775_v43 = vld [vmem:[%s12364_s6 + $0x68] sm:$0xff]  ;;  %5885 = vmatpush3.msra.mxu1 %v4809_v19  ;;  %v4813_v19 = vld [vmem:[%s12364_s6 + $0x198] sm:$0xff] }
 0x45b   :  { %5812 = vmatpush1.msk.msra.mxu0 %vm13657_vm8, %v3676_v50  ;;  %vm13659_vm5 = vmmov %vm13649_vm0  ;;  %v3279_v9 = vpop.permute.xlu0 %3278  ;;  %v4808_v50 = vld [vmem:[%s12364_s6 + $0x170] sm:$0xff] }
 0x45c   :  { %v3675_v51 = vsel %vm13659_vm5, %v13658_v10, %v3637_v21  ;;  %vm13660_vm10 = vmmov %vm13655_vm3  ;;  %v4824_v21 = vld [vmem:[%s12364_s6 + $0x1f0] sm:$0xff]  ;;  %v4789_v10 = vld [vmem:[%s12364_s6 + $0xd8] sm:$0xff] }
 0x45d   :  { %5813 = vmatprep.subr.msk.mxu0 %vm13660_vm10, %v3670_v58  ;;  %vm13661_vm6 = vmmov %vm13649_vm0  ;;  %v3273_v35 = vpop.permute.xlu1 %3272  ;;  %5886 = vmatprep.subr.mxu1 %v4824_v21  ;;  %v4823_v58 = vld [vmem:[%s12364_s6 + $0x1e8] sm:$0xff] }
 0x45e   :  { %v3669_v56 = vsel %vm13661_vm6, %v3635_v60, %v10733_v4  ;;  %vm13662_vm9 = vmmov %vm13652_vm1  ;;  %v13667_v4 = vld [vmem:[#allocation68_spill] sm:$0xff]  ;;  %5887 = vmatpush3.msra.mxu1 %v4808_v50  ;;  %v11338_v21 = vld [vmem:[%s12363_s5 + $0x8] sm:$0xff] }
 0x45f   :  { %5814 = vmatpush1.msk.msra.mxu0 %vm13662_vm9, %v3675_v51  ;;  %vm13664_vm4 = vmmov %vm13649_vm0  ;;  %v3275_v30 = vpop.permute.xlu0 %3274  ;;  %v4807_v51 = vld [vmem:[%s12364_s6 + $0x168] sm:$0xff]  ;;  %5888 = vmatprep.subr.mxu1 %v4823_v58  ;;  %v4797_v50 = vld [vmem:[%s12364_s6 + $0x118] sm:$0xff] }
 0x460   :  { %v3674_v0 = vsel %vm13664_vm4, %v13663_v6, %v3635_v60  ;;  %vm13665_vm7 = vmmov %vm13655_vm3  ;;  %vm13677_vm3 = vcmp.ge.s32.totalorder %v13646_v31, 1  ;;  %v4774_v60 = vld [vmem:[%s12364_s6 + $0x60] sm:$0xff]  ;;  %5889 = vmatpush3.msra.mxu1 %v4807_v51  ;;  %v4812_v51 = vld [vmem:[%s12364_s6 + $0x190] sm:$0xff] }
 0x461   :  { %5815 = vmatprep.subr.msk.mxu0 %vm13665_vm7, %v3669_v56  ;;  %vm13666_vm0 = vmmov %vm13652_vm1  ;;  %vm13675_vm1 = vcmp.ge.s32.totalorder %v13643_v15, 1  ;;  %v4773_v56 = vld [vmem:[%s12364_s6 + $0x58] sm:$0xff]  ;;  %v4822_v6 = vld [vmem:[%s12364_s6 + $0x1e0] sm:$0xff] }
 0x462   :  { %5816 = vmatpush1.msk.msra.mxu0 %vm13666_vm0, %v3674_v0  ;;  %vm13674_vm13 = vmmov %vm13671_vm12  ;;  %v4788_v0 = vld [vmem:[%s12364_s6 + $0xd0] sm:$0xff]  ;;  %5890 = vmatprep.subr.mxu1 %v4822_v6  ;;  %v4778_v6 = vld [vmem:[%s12364_s6 + $0x80] sm:$0xff] }
 0x463   :  { %4383 = vmatprep.subr.mxu0 %v10299_v32  ;;  %v3326_v32 = vsel %vm13671_vm12, %v3281_v54, %v10759_v24  ;;  %vm13676_vm14 = vmmov %vm13671_vm12 }
 0x464   :  { %4384 = vmatpush1.msra.mxu0 %v13453_v44  ;;  %v13672_v44 = vld [vmem:[#allocation76_spill] sm:$0xff]  ;;  %vm13679_vm11 = vmmov %vm13671_vm12 }
 0x465   :  { %4385 = vmatprep.subr.mxu0 %v10319_v46  ;;  %v13673_v46 = vld [vmem:[#allocation30_spill] sm:$0xff]  ;;  %v3330_v24 = vsel %vm13679_vm11, %v13678_v11, %v3279_v9  ;;  %vm13680_vm8 = vmmov %vm13675_vm1  ;;  %v4803_v11 = vld [vmem:[%s12364_s6 + $0x148] sm:$0xff] }
 0x466   :  { %4386 = vmatpush1.msra.mxu0 %v9871_v45  ;;  %v3331_v45 = vsel %vm13674_vm13, %v13673_v46, %v3281_v54  ;;  %vm13681_vm5 = vmmov %vm13679_vm11  ;;  %v4806_v54 = vld [vmem:[%s12364_s6 + $0x160] sm:$0xff] }
 0x467   :  { %4387 = vmatprep.subr.mxu0 %v10381_v13  ;;  %v3325_v13 = vsel %vm13676_vm14, %v3279_v9, %v10775_v55  ;;  %v3324_v25 = vsel %vm13681_vm5, %v3277_v22, %v10848_v16  ;;  %vm13682_vm10 = vmmov %vm13677_vm3  ;;  %v4821_v9 = vld [vmem:[%s12364_s6 + $0x1d8] sm:$0xff]  ;;  %5891 = vmatpush3.msra.mxu1 %v4806_v54  ;;  %v4770_v46 = vld [vmem:[%s12364_s6 + $0x40] sm:$0xff] }
 0x468   :  { %4388 = vmatpush1.msra.mxu0 %v13667_v4  ;;  %vm13684_vm6 = vmmov %vm13681_vm5  ;;  %v4772_v4 = vld [vmem:[%s12364_s6 + $0x50] sm:$0xff]  ;;  %5892 = vmatprep.subr.mxu1 %v4821_v9  ;;  %v4762_v54 = vld [vmem:[%s12364_s6] sm:$0xff] }
 0x469   :  { %4389 = vmatprep.subr.mxu0 %v13668_v23  ;;  %v3329_v55 = vsel %vm13684_vm6, %v13683_v63, %v3277_v22  ;;  %vm13685_vm9 = vmmov %vm13675_vm1  ;;  %v4787_v23 = vld [vmem:[%s12364_s6 + $0xc8] sm:$0xff]  ;;  %v4802_v63 = vld [vmem:[%s12364_s6 + $0x140] sm:$0xff] }
 0x46a   :  { %4390 = vmatpush1.msra.mxu0 %v13669_v61  ;;  %vm13686_vm4 = vmmov %vm13681_vm5  ;;  %v4805_v61 = vld [vmem:[%s12364_s6 + $0x158] sm:$0xff]  ;;  %v4771_v22 = vld [vmem:[%s12364_s6 + $0x48] sm:$0xff]  ;;  %vm13710_vm5 = vcmp.lt.s32.totalorder %v6495_v42, 127 }
 0x46b   :  { %4391 = vmatprep.subr.mxu0 %v13670_v48  ;;  %v3323_v38 = vsel %vm13686_vm4, %v3275_v30, %v10830_v53  ;;  %vm13687_vm7 = vmmov %vm13677_vm3  ;;  %v4820_v48 = vld [vmem:[%s12364_s6 + $0x1d0] sm:$0xff]  ;;  %5893 = vmatpush3.msra.mxu1 %v4805_v61 }
 0x46c   :  { %4392 = vmatpush1.msra.mxu0 %v13672_v44  ;;  %vm13689_vm0 = vmmov %vm13686_vm4  ;;  %v4804_v44 = vld [vmem:[%s12364_s6 + $0x150] sm:$0xff]  ;;  %5894 = vmatprep.subr.mxu1 %v4820_v48  ;;  %v4857_v48 = vld [vmem:[%s12364_s6 + $0x2f8] sm:$0xff] }
 0x46d   :  { %5817 = vmatprep.subr.msk.mxu0 %vm13675_vm1, %v3326_v32  ;;  %v3328_v16 = vsel %vm13689_vm0, %v13688_v8, %v3275_v30  ;;  %vm13690_vm12 = vmmov %vm13675_vm1  ;;  %v4786_v32 = vld [vmem:[%s12364_s6 + $0xc0] sm:$0xff]  ;;  %5895 = vmatpush3.msra.mxu1 %v4804_v44  ;;  %v4801_v8 = vld [vmem:[%s12364_s6 + $0x138] sm:$0xff] }
 0x46e   :  { %5818 = vmatpush1.msk.msra.mxu0 %vm13677_vm3, %v3331_v45  ;;  %vm13691_vm13 = vmmov %vm13689_vm0  ;;  %v4819_v45 = vld [vmem:[%s12364_s6 + $0x1c8] sm:$0xff]  ;;  %v4818_v30 = vld [vmem:[%s12364_s6 + $0x1c0] sm:$0xff] }
 0x46f   :  { %5819 = vmatprep.subr.msk.mxu0 %vm13680_vm8, %v3325_v13  ;;  %v3322_v26 = vsel %vm13691_vm13, %v3273_v35, %v10902_v39  ;;  %vm13692_vm1 = vmmov %vm13677_vm3  ;;  %v13699_v39 = vld [vmem:[#allocation2_spill] sm:$0xff]  ;;  %v4785_v13 = vld [vmem:[%s12364_s6 + $0xb8] sm:$0xff]  ;;  %5896 = vmatprep.subr.mxu1 %v4819_v45 }
 0x470   :  { %5820 = vmatpush1.msk.msra.mxu0 %vm13682_vm10, %v3330_v24  ;;  %vm13694_vm14 = vmmov %vm13689_vm0  ;;  %v3868_v12 = vrot.slane %v13698_v36, %v13699_v39  ;;  %v4769_v24 = vld [vmem:[%s12364_s6 + $0x38] sm:$0xff]  ;;  %5897 = vmatpush3.msra.mxu1 %v4803_v11  ;;  %v4810_v44 = vld [vmem:[%s12364_s6 + $0x180] sm:$0xff] }
 0x471   :  { %5821 = vmatprep.subr.msk.mxu0 %vm13685_vm9, %v3324_v25  ;;  %v3327_v53 = vsel %vm13694_vm14, %v13693_v18, %v3273_v35  ;;  %vm13695_vm3 = vmmov %vm13680_vm8  ;;  %v4784_v25 = vld [vmem:[%s12364_s6 + $0xb0] sm:$0xff]  ;;  %v4817_v35 = vld [vmem:[%s12364_s6 + $0x1b8] sm:$0xff]  ;;  %5898 = vmatprep.subr.mxu1 %v4818_v30 }
 0x472   :  { %5822 = vmatpush1.msk.msra.mxu0 %vm13687_vm7, %v3329_v55  ;;  %vm13696_vm11 = vmmov %vm13692_vm1  ;;  %v4768_v55 = vld [vmem:[%s12364_s6 + $0x30] sm:$0xff]  ;;  %5899 = vmatpush3.msra.mxu1 %v4802_v63  ;;  %v4782_v18 = vld [vmem:[%s12364_s6 + $0xa0] sm:$0xff] }
 0x473   :  { %5823 = vmatprep.subr.msk.mxu0 %vm13690_vm12, %v3323_v38  ;;  %v4783_v38 = vld [vmem:[%s12364_s6 + $0xa8] sm:$0xff]  ;;  %5900 = vmatprep.subr.mxu1 %v4817_v35  ;;  %v4889_v30 = vld [vmem:[%s12364_s6 + $0x3f8] sm:$0xff]  ;;  %vm13712_vm6 = vmmov %vm13689_vm0 }
 0x474   :  { %5824 = vmatpush1.msk.msra.mxu0 %vm13692_vm1, %v3328_v16  ;;  %v4767_v16 = vld [vmem:[%s12364_s6 + $0x28] sm:$0xff]  ;;  %5901 = vmatpush3.msra.mxu1 %v4801_v8  ;;  %v13703_v8 = vld [vmem:[#allocation13_spill] sm:$0xff]  ;;  %vm13713_vm9 = vmmov %vm13689_vm0  ;;  %vm13721_vm1 = vcmp.ge.s32.totalorder %v6495_v42, 1 }
 0x475   :  { %5825 = vmatprep.subr.msk.mxu0 %vm13695_vm3, %v3322_v26  ;;  %v4816_v26 = vld [vmem:[%s12364_s6 + $0x1b0] sm:$0xff]  ;;  %vm13716_vm7 = vmmov %vm13710_vm5 }
 0x476   :  { %5826 = vmatpush1.msk.msra.mxu0 %vm13696_vm11, %v3327_v53  ;;  %v4800_v53 = vld [vmem:[%s12364_s6 + $0x130] sm:$0xff]  ;;  %5902 = vmatprep.subr.mxu1 %v4816_v26  ;;  %v13704_v26 = vld [vmem:[#allocation37_spill] sm:$0xff]  ;;  %vm13720_vm13 = vmmov %vm13710_vm5 }
 0x477   :  { %5827 = vmatmul.mubr.msk.f32.vlgmr.msra.gmra.mxu0 %vm3941_vm2, %v10912_v33  ;;  %v4793_v33 = vld [vmem:[%s12364_s6 + $0xf8] sm:$0xff]  ;;  %5903 = vmatpush3.msra.mxu1 %v4800_v53  ;;  %vm13707_vm2 = vmmov %vm13689_vm0  ;;  %v4956_v42 = vld [vmem:[%s12364_s6 + $0x610] sm:$0xff] }
 0x478   :  { %5849 = vmatprep.subr.mxu0 %v4793_v33  ;;  %vm13719_vm12 = vmmov %vm13707_vm2 }
 0x479   :  { %5850 = vmatpush3.msra.mxu0 %v4777_v20  ;;  %v4765_v20 = vld [vmem:[%s12364_s6 + $0x18] sm:$0xff]  ;;  %vm13722_vm14 = vmmov %vm13710_vm5 }
 0x47a   :  { %5851 = vmatprep.subr.mxu0 %v4792_v7  ;;  %v4814_v7 = vld [vmem:[%s12364_s6 + $0x1a0] sm:$0xff]  ;;  %vm13723_vm3 = vmmov %vm13710_vm5 }
 0x47b   :  { %5852 = vmatpush3.msra.mxu0 %v4776_v28  ;;  %v4780_v28 = vld [vmem:[%s12364_s6 + $0x90] sm:$0xff] }
 0x47c   :  { %5853 = vmatprep.subr.mxu0 %v4791_v37  ;;  %v4764_v37 = vld [vmem:[%s12364_s6 + $0x10] sm:$0xff] }
 0x47d   :  { %5854 = vmatpush3.msra.mxu0 %v4775_v43 }
 0x47e   :  { %5855 = vmatprep.subr.mxu0 %v4790_v59  ;;  %v4779_v59 = vld [vmem:[%s12364_s6 + $0x88] sm:$0xff] }
 0x47f   :  { %5856 = vmatpush3.msra.mxu0 %v4774_v60  ;;  %v13700_v60 = vld [vmem:[#allocation6_spill] sm:$0xff] }
 0x480   :  { %5857 = vmatprep.subr.mxu0 %v4789_v10  ;;  %v3924_v58 = vrot.slane %v11338_v21, %v13700_v60  ;;  %v4763_v10 = vld [vmem:[%s12364_s6 + $0x8] sm:$0xff] }
 0x481   :  { %5858 = vmatpush3.msra.mxu0 %v4773_v56 }
 0x482   :  { %5859 = vmatprep.subr.mxu0 %v4788_v0  ;;  %v4796_v0 = vld [vmem:[%s12364_s6 + $0x110] sm:$0xff] }
 0x483   :  { %5860 = vmatpush3.msra.mxu0 %v4772_v4  ;;  %v4811_v4 = vld [vmem:[%s12364_s6 + $0x188] sm:$0xff] }
 0x484   :  { %5861 = vmatprep.subr.mxu0 %v4787_v23  ;;  %v13701_v23 = vld [vmem:[#allocation9_spill] sm:$0xff] }
 0x485   :  { %5862 = vmatpush3.msra.mxu0 %v4771_v22  ;;  %v3880_v61 = vrot.slane %v13698_v36, %v13701_v23  ;;  %v4795_v22 = vld [vmem:[%s12364_s6 + $0x108] sm:$0xff] }
 0x486   :  { %5863 = vmatprep.subr.mxu0 %v4786_v32 }
 0x487   :  { %5864 = vmatpush3.msra.mxu0 %v4770_v46  ;;  %v13702_v46 = vld [vmem:[#allocation12_spill] sm:$0xff] }
 0x488   :  { %5865 = vmatprep.subr.mxu0 %v4785_v13  ;;  %v3884_v45 = vrot.slane %v13698_v36, %v13702_v46  ;;  %v4794_v13 = vld [vmem:[%s12364_s6 + $0x100] sm:$0xff] }
 0x489   :  { %5866 = vmatpush3.msra.mxu0 %v4769_v24 }
 0x48a   :  { %5867 = vmatprep.subr.mxu0 %v4784_v25 }
 0x48b   :  { %5868 = vmatpush3.msra.mxu0 %v4768_v55  ;;  %v3892_v55 = vrot.slane %v13698_v36, %v13700_v60 }
 0x48c   :  { %5869 = vmatprep.subr.mxu0 %v4783_v38 }
 0x48d   :  { %5870 = vmatpush3.msra.mxu0 %v4767_v16  ;;  %v3888_v16 = vrot.slane %v13698_v36, %v13703_v8 }
 0x48e   :  { %5871 = vmatprep.subr.mxu0 %v4782_v18 }
 0x4c2   :  { %v4011_v1 = vpop.f32.mrf.mxu0 }
 0x4c3   :  { %v4012_v34 = vadd.f32 %v4011_v1, %v3864_v40  ;;  %v4766_v40 = vld [vmem:[%s12364_s6 + $0x20] sm:$0xff]  ;;  %v4781_v1 = vld [vmem:[%s12364_s6 + $0x98] sm:$0xff] }
 0x4c4   :  { %v4013_v3 = vpop.f32.mrf.mxu0  ;;  %5872 = vmatpush3.msra.mxu0 %v4766_v40 }
 0x4c5   :  { %v11158_v57 = vmax.f32 %v4012_v34, 0.0  ;;  %v4014_v5 = vadd.f32 %v4013_v3, %v3868_v12  ;;  %v4815_v12 = vld [vmem:[%s12364_s6 + $0x1a8] sm:$0xff]  ;;  %v11313_v3 = vpop.f32.mrf.mxu1  ;;  %5873 = vmatprep.subr.mxu0 %v4781_v1  ;;  %v3896_v1 = vrot.slane %v11338_v21, %v13697_v27 }
 0x4c6   :  { %v4799_v34 = vld [vmem:[%s12364_s6 + $0x128] sm:$0xff]  ;;  %5904 = vmatprep.subr.mxu1 %v4815_v12  ;;  %5874 = vmatpush3.msra.mxu0 %v4765_v20  ;;  %v4225_v40 = vadd.f32 %v11313_v3, %v3888_v16 }
 0x4c7   :  { %v11160_v41 = vmax.f32 %v4014_v5, 0.0  ;;  %4529 = vrot.lane.b32.xlu1 %v11158_v57, %s6179_s18  ;;  %5905 = vmatpush3.msra.mxu1 %v4799_v34  ;;  %v4226_v5 = vpop.f32.mrf.mxu1  ;;  %v13705_v34 = vld [vmem:[#allocation4_spill] sm:$0xff] }
 0x4c8   :  { %5906 = vmatprep.subr.mxu1 %v4814_v7  ;;  %5875 = vmatprep.subr.mxu0 %v4780_v28  ;;  %v4227_v18 = vadd.f32 %v4226_v5, %v3892_v55  ;;  %v11412_v36 = vmax.f32 %v4225_v40, 0.0  ;;  %v3904_v3 = vrot.slane %v11338_v21, %v13705_v34  ;;  %v3900_v5 = vrot.slane %v11338_v21, %v13699_v39  ;;  %v6165_v40 = vld [vmem:[%s12362_s0] sm:$0x1] }
 0x4c9   :  { %v11315_v33 = vpop.f32.mrf.mxu1  ;;  %5907 = vmatpush3.msra.mxu1 %v4798_v47  ;;  %5876 = vmatpush3.msra.mxu0 %v4764_v37  ;;  %v13706_v37 = vld [vmem:[#allocation8_spill] sm:$0xff] }
 0x4ca   :  { %5908 = vmatprep.subr.mxu1 %v4813_v19  ;;  %5877 = vmatprep.subr.mxu0 %v4779_v59  ;;  %v11410_v12 = vmax.f32 %v4227_v18, 0.0  ;;  %v4367_v47 = vadd.f32 %v11315_v33, %v3904_v3  ;;  %v3908_v19 = vrot.slane %v11338_v21, %v13706_v37  ;;  %v13714_v37 = vld [vmem:[#allocation42_spill] sm:$0xff] }
 0x4cb   :  { %4531 = vrot.lane.b32.xlu1 %v11160_v41, %s6179_s18  ;;  %v11340_v43 = vpop.f32.mrf.mxu1  ;;  %5909 = vmatpush3.msra.mxu1 %v4797_v50  ;;  %vm13715_vm4 = vcmp.ge.s32.totalorder %v13714_v37, 1  ;;  %vm13724_vm11 = vcmp.lt.s32.totalorder %v13714_v37, 127  ;;  %v4873_v37 = vld [vmem:[%s12364_s6 + $0x378] sm:$0xff] }
 0x4cc   :  { %5878 = vmatpush3.msra.mxu0 %v4763_v10  ;;  %5910 = vmatprep.subr.mxu1 %v4812_v51  ;;  %v11441_v39 = vmax.f32 %v4367_v47, 0.0  ;;  %v3920_v10 = vrot.slane %v11338_v21, %v13703_v8  ;;  %v3916_v51 = vrot.slane %v11338_v21, %v13702_v46 }
 0x4cd   :  { %5879 = vmatprep.subr.mxu0 %v4778_v6  ;;  %5911 = vmatpush3.msra.mxu1 %v4796_v0  ;;  %v4660_v0 = vpop.permute.xlu0 %4659 }
 0x4ce   :  { %5880 = vmatpush3.msra.mxu0 %v4762_v54  ;;  %5912 = vmatprep.subr.mxu1 %v4811_v4  ;;  %v4684_v54 = vpop.permute.xlu1 %4683 }
 0x4cf   :  { %4533 = vrot.lane.b32.xlu1 %v10692_v52, %s6179_s18  ;;  %5913 = vmatpush3.msra.mxu1 %v4795_v22  ;;  %v11493_v55 = vrot.slane %v4684_v54, %v13697_v27 }
 0x4d0   :  { %5919 = vmatprep.subr.mxu0 %v4857_v48  ;;  %5914 = vmatprep.subr.mxu1 %v4810_v44 }
 0x4d1   :  { %5915 = vmatpush3.msra.mxu1 %v4794_v13  ;;  %v6184_v13 = vmov 3  }
 0x4d2   :  { %5954 = vmatprep.subr.mxu1 %v4889_v30  ;;  %6152 = vset.pattern.permute.xlu0 %v6184_v13 }
 0x4d3   :  { %4595 = vrot.lane.b32.xlu1 %v11160_v41, %s6170_s9 }
 0x4d7   :  { %4593 = vrot.lane.b32.xlu1 %v11158_v57, %s6170_s9 }
 0x4f2   :  { %v11356_v56 = vpop.f32.mrf.mxu1 }
 0x4f4   :  { %v4510_v9 = vpop.f32.mrf.mxu1 }
 0x4f5   :  { %v4511_v32 = vadd.f32 %v4510_v9, %v3924_v58  ;;  %v4369_v58 = vadd.f32 %v11340_v43, %v3908_v19  ;;  %v3912_v43 = vrot.slane %v11338_v21, %v13701_v23 }
 0x4f7   :  { %v11386_v11 = vmax.f32 %v4511_v32, 0.0  ;;  %v4153_v24 = vpop.f32.mrf.mxu0  ;;  %v11448_v33 = vmax.f32 %v4369_v58, 0.0  ;;  %v4724_v32 = vpop.permute.xlu0 %4723  ;;  %v13717_v58 = vld [vmem:[#allocation43_spill] sm:$0xff] }
 0x4f8   :  { %v4154_v25 = vadd.f32 %v4153_v24, %v3880_v61  ;;  %v4509_v61 = vadd.f32 %v11356_v56, %v3920_v10  ;;  %v13708_v24 = vld [vmem:[#allocation24_spill] sm:$0xff]  ;;  %vm13718_vm0 = vcmp.ge.s32.totalorder %v13717_v58, 1 }
 0x4f9   :  { %4559 = vrot.lane.b32.xlu0 %v11386_v11, %s6179_s18  ;;  %v4155_v63 = vpop.f32.mrf.mxu0  ;;  %vm13709_vm8 = vcmp.ge.s32.totalorder %v13708_v24, 1  ;;  %vm13711_vm10 = vcmp.lt.s32.totalorder %v13708_v24, 127 }
 0x4fa   :  { %v11395_v35 = vmax.f32 %v4154_v25, 0.0  ;;  %v4156_v38 = vadd.f32 %v4155_v63, %v3884_v45  ;;  %v11473_v23 = vmax.f32 %v4509_v61, 0.0  ;;  %v11490_v63 = vrot.slane %v4660_v0, %v13697_v27 }
 0x4fb   :  { %v11481_v45 = vpop.permute.xlu0 %4535 }
 0x4fc   :  { %4601 = vrot.lane.b32.xlu1 %v11395_v35, %s6170_s9  ;;  %v11403_v53 = vmax.f32 %v4156_v38, 0.0  ;;  %v11496_v38 = vrot.slane %v4724_v32, %v13697_v27  ;;  %v4692_v32 = vmul.f32 %v11493_v55, %v10692_v52 }
 0x4fd   :  { %4599 = vrot.lane.b32.xlu0 %v13704_v26, %s6170_s9 }
 0x4ff   :  { %v4598_v16 = vpop.permute.xlu0 %4597 }
 0x500   :  { %4539 = vrot.lane.b32.xlu1 %v11403_v53, %s6179_s18 }
 0x501   :  { %4537 = vrot.lane.b32.xlu0 %v11395_v35, %s6179_s18 }
 0x504   :  { %4543 = vrot.lane.b32.xlu1 %v11410_v12, %s6179_s18 }
 0x505   :  { %4541 = vrot.lane.b32.xlu0 %v11412_v36, %s6179_s18 }
 0x508   :  { %4605 = vrot.lane.b32.xlu1 %v11412_v36, %s6170_s9 }
 0x509   :  { %4603 = vrot.lane.b32.xlu0 %v11403_v53, %s6170_s9 }
 0x50d   :  { %4607 = vrot.lane.b32.xlu0 %v11410_v12, %s6170_s9 }
 0x516   :  { %v4295_v20 = vpop.f32.mrf.mxu0 }
 0x517   :  { %v4296_v7 = vadd.f32 %v4295_v20, %v3896_v1  ;;  %v4691_v1 = vmul.f32 %v11493_v55, %v11160_v41 }
 0x518   :  { %v4297_v28 = vpop.f32.mrf.mxu0 }
 0x519   :  { %v11433_v59 = vmax.f32 %v4296_v7, 0.0  ;;  %v4298_v50 = vadd.f32 %v4297_v28, %v3900_v5 }
 0x51b   :  { %v11435_v60 = vmax.f32 %v4298_v50, 0.0  ;;  %4609 = vrot.lane.b32.xlu1 %v11433_v59, %s6170_s9  ;;  %4545 = vrot.lane.b32.xlu0 %v11433_v59, %s6179_s18 }
 0x51f   :  { %4547 = vrot.lane.b32.xlu1 %v11435_v60, %s6179_s18  ;;  %4549 = vrot.lane.b32.xlu0 %v11441_v39, %s6179_s18 }
 0x523   :  { %4551 = vrot.lane.b32.xlu1 %v11448_v33, %s6179_s18  ;;  %4611 = vrot.lane.b32.xlu0 %v11435_v60, %s6170_s9 }
 0x527   :  { %4613 = vrot.lane.b32.xlu1 %v11441_v39, %s6170_s9  ;;  %4615 = vrot.lane.b32.xlu0 %v11448_v33, %s6170_s9 }
 0x537   :  { %v4437_v6 = vpop.f32.mrf.mxu0 }
 0x538   :  { %v4438_v4 = vadd.f32 %v4437_v6, %v3912_v43 }
 0x539   :  { %v4439_v9 = vpop.f32.mrf.mxu0  ;;  %v4530_v21 = vpop.permute.xlu1 %4529 }
 0x53a   :  { %v11465_v22 = vmax.f32 %v4438_v4, 0.0  ;;  %v4440_v48 = vadd.f32 %v4439_v9, %v3916_v51  ;;  %v4690_v4 = vmul.f32 %v11493_v55, %v11158_v57 }
 0x53c   :  { %v11467_v44 = vmax.f32 %v4440_v48, 0.0  ;;  %4617 = vrot.lane.b32.xlu1 %v11465_v22, %s6170_s9  ;;  %4553 = vrot.lane.b32.xlu0 %v11465_v22, %s6179_s18 }
 0x53d   :  { %v4532_v56 = vpop.permute.xlu1 %4531 }
 0x53e   :  { %v4575_v46 = vsel %vm13707_vm2, %v4530_v21, %v4532_v56  ;;  %vm13725_vm2 = vcmp.lt.s32.totalorder %v13717_v58, 127  ;;  %v4888_v58 = vld [vmem:[%s12364_s6 + $0x3f0] sm:$0xff] }
 0x53f   :  { %v4578_v30 = vsel %vm13709_vm8, %v4575_v46, 0.0  ;;  %vm13726_vm8 = vmmov %vm13712_vm6 }
 0x540   :  { %4555 = vrot.lane.b32.xlu1 %v11467_v44, %s6179_s18  ;;  %4557 = vrot.lane.b32.xlu0 %v11473_v23, %s6179_s18  ;;  %v4667_v8 = vmul.f32 %v11490_v63, %v4578_v30 }
 0x541   :  { %v4534_v25 = vpop.permute.xlu1 %4533 }
 0x542   :  { %v4707_v5 = vadd.f32 %v4691_v1, %v4667_v8  ;;  %v4574_v28 = vsel %vm13712_vm6, %v4532_v56, %v4534_v25  ;;  %v4573_v41 = vsel %vm13713_vm9, %v4534_v25, %v11481_v45  ;;  %vm13729_vm6 = vcmp.lt.s32.totalorder %v13499_v2, 127  ;;  %vm13730_vm9 = vmmov %vm13726_vm8 }
 0x543   :  { %v4579_v19 = vsel %vm13715_vm4, %v4574_v28, 0.0  ;;  %v4580_v43 = vsel %vm13718_vm0, %v4573_v41, 0.0  ;;  %v4840_v28 = vld [vmem:[%s12364_s6 + $0x270] sm:$0xff]  ;;  %v4855_v41 = vld [vmem:[%s12364_s6 + $0x2e8] sm:$0xff]  ;;  %vm13731_vm4 = vmmov %vm13726_vm8  ;;  %vm13733_vm0 = vcmp.ge.s32.totalorder %v13503_v49, 1 }
 0x544   :  { %4619 = vrot.lane.b32.xlu1 %v11467_v44, %s6170_s9  ;;  %4621 = vrot.lane.b32.xlu0 %v11473_v23, %s6170_s9  ;;  %v4668_v6 = vmul.f32 %v11490_v63, %v4579_v19  ;;  %v4669_v9 = vmul.f32 %v11490_v63, %v4580_v43 }
 0x545   :  { %v4596_v18 = vpop.permute.xlu1 %4595 }
 0x546   :  { %v4638_v34 = vsel %vm13710_vm5, %v4596_v18, %v4598_v16  ;;  %v4708_v30 = vadd.f32 %v4692_v32, %v4668_v6  ;;  %vm13727_vm5 = vcmp.ge.s32.totalorder %v13499_v2, 1  ;;  %v4854_v6 = vld [vmem:[%s12364_s6 + $0x2e0] sm:$0xff]  ;;  %v4835_v2 = vld [vmem:[%s12364_s6 + $0x248] sm:$0xff] }
 0x547   :  { %v4642_v3 = vsel %vm13711_vm10, %v4638_v34, 0.0  ;;  %v4841_v34 = vld [vmem:[%s12364_s6 + $0x278] sm:$0xff]  ;;  %vm13728_vm10 = vmmov %vm13723_vm3 }
 0x548   :  { %4623 = vrot.lane.b32.xlu1 %v11386_v11, %s6170_s9  ;;  %5019 = vperm.xlu0 %6152, %v6165_v40   ;;  %v4731_v20 = vmul.f32 %v11496_v38, %v4642_v3  ;;  %v4856_v3 = vld [vmem:[%s12364_s6 + $0x2f0] sm:$0xff] }
 0x549   :  { %v11513_v47 = vpop.permute.xlu1 %4593 }
 0x54a   :  { %v4747_v7 = vadd.f32 %v4731_v20, %v4707_v5  ;;  %v4639_v50 = vsel %vm13716_vm7, %v11513_v47, %v4596_v18  ;;  %vm13732_vm7 = vmmov %vm13723_vm3 }
 0x54b   :  { %v4641_v0 = vsel %vm13720_vm13, %v4639_v50, 0.0  ;;  %v4839_v50 = vld [vmem:[%s12364_s6 + $0x268] sm:$0xff] }
 0x54c   :  { %5090 = vmatprep.mubr.f32.mxu0 %v4747_v7  ;;  %v4730_v46 = vmul.f32 %v11496_v38, %v4641_v0  ;;  %v4872_v0 = vld [vmem:[%s12364_s6 + $0x370] sm:$0xff] }
 0x56b   :  { %v11525_v10 = vpop.permute.xlu0 %4559 }
 0x56c   :  { %v4576_v51 = vsel %vm13719_vm12, %v11525_v10, %v4530_v21  ;;  %v4693_v21 = vmul.f32 %v11493_v55, %v13704_v26  ;;  %vm13734_vm12 = vmmov %vm13731_vm4 }
 0x56d   :  { %v4577_v54 = vsel %vm13721_vm1, %v4576_v51, 0.0  ;;  %vm13737_vm1 = vcmp.lt.s32.totalorder %v13503_v49, 127  ;;  %v4862_v49 = vld [vmem:[%s12364_s6 + $0x320] sm:$0xff] }
 0x56e   :  { %v4666_v61 = vmul.f32 %v11490_v63, %v4577_v54  ;;  %v11539_v48 = vpop.permute.xlu1 %4601  ;;  %v4709_v8 = vadd.f32 %v4693_v21, %v4669_v9  ;;  %v4838_v54 = vld [vmem:[%s12364_s6 + $0x260] sm:$0xff]  ;;  %v4853_v9 = vld [vmem:[%s12364_s6 + $0x2d8] sm:$0xff] }
 0x56f   :  { %v4600_v56 = vpop.permute.xlu0 %4599 }
 0x570   :  { %v4706_v13 = vadd.f32 %v4690_v4, %v4666_v61  ;;  %v4636_v57 = vsel %vm13722_vm14, %v4600_v56, %v11539_v48  ;;  %v4637_v24 = vsel %vm13723_vm3, %v4598_v16, %v4600_v56  ;;  %v4887_v4 = vld [vmem:[%s12364_s6 + $0x3e8] sm:$0xff]  ;;  %v4837_v56 = vld [vmem:[%s12364_s6 + $0x258] sm:$0xff]  ;;  %vm13738_vm14 = vmmov %vm13723_vm3 }
 0x571   :  { %v4643_v25 = vsel %vm13724_vm11, %v4637_v24, 0.0  ;;  %v4644_v52 = vsel %vm13725_vm2, %v4636_v57, 0.0  ;;  %v4871_v61 = vld [vmem:[%s12364_s6 + $0x368] sm:$0xff]  ;;  %v4852_v57 = vld [vmem:[%s12364_s6 + $0x2d0] sm:$0xff]  ;;  %v4870_v24 = vld [vmem:[%s12364_s6 + $0x360] sm:$0xff] }
 0x572   :  { %v4732_v26 = vmul.f32 %v11496_v38, %v4643_v25  ;;  %v4733_v18 = vmul.f32 %v11496_v38, %v4644_v52  ;;  %v11557_v40 = vpop.permute.xlu1 %4539  ;;  %v4746_v1 = vadd.f32 %v4730_v46, %v4706_v13  ;;  %v4886_v46 = vld [vmem:[%s12364_s6 + $0x3e0] sm:$0xff]  ;;  %v4836_v52 = vld [vmem:[%s12364_s6 + $0x250] sm:$0xff]  ;;  %vm13741_vm11 = vmmov %vm13732_vm7 }
 0x573   :  { %v11562_v16 = vpop.permute.xlu0 %4537 }
 0x574   :  { %v4748_v5 = vadd.f32 %v4732_v26, %v4708_v30  ;;  %v4571_v20 = vsel %vm13726_vm8, %v11562_v16, %v11557_v40  ;;  %5091 = vmatmul.mubr.f32.vlgmr.msra.gmra.mxu0 %v4746_v1  ;;  %v4749_v7 = vadd.f32 %v4733_v18, %v4709_v8  ;;  %v4695_v30 = vmul.f32 %v11493_v55, %v11403_v53  ;;  %v4885_v8 = vld [vmem:[%s12364_s6 + $0x3d8] sm:$0xff]  ;;  %v4851_v53 = vld [vmem:[%s12364_s6 + $0x2c8] sm:$0xff] }
 0x575   :  { %5920 = vmatpush3.msra.mxu0 %v4841_v34  ;;  %v4582_v43 = vsel %vm13727_vm5, %v4571_v20, 0.0  ;;  %v4869_v18 = vld [vmem:[%s12364_s6 + $0x358] sm:$0xff]  ;;  %v4868_v20 = vld [vmem:[%s12364_s6 + $0x350] sm:$0xff]  ;;  %vm13744_vm5 = vmmov %vm13731_vm4 }
 0x576   :  { %5921 = vmatprep.subr.mxu0 %v4856_v3  ;;  %v11580_v19 = vpop.permute.xlu1 %4543  ;;  %5160 = vmatprep.mubr.f32.mxu1 %v4749_v7  ;;  %v4671_v32 = vmul.f32 %v11490_v63, %v4582_v43  ;;  %v4884_v3 = vld [vmem:[%s12364_s6 + $0x3d0] sm:$0xff]  ;;  %v4834_v7 = vld [vmem:[%s12364_s6 + $0x240] sm:$0xff] }
 0x577   :  { %5922 = vmatpush3.msra.mxu0 %v4840_v28  ;;  %5161 = vmatmul.mubr.f32.vlgmr.msra.gmra.mxu1 %v4748_v5  ;;  %v11590_v51 = vpop.permute.xlu0 %4541  ;;  %v4850_v5 = vld [vmem:[%s12364_s6 + $0x2c0] sm:$0xff] }
 0x578   :  { %5923 = vmatprep.subr.mxu0 %v4855_v41  ;;  %5955 = vmatpush3.msra.mxu1 %v4873_v37  ;;  %v4711_v1 = vadd.f32 %v4695_v30, %v4671_v32  ;;  %v4883_v41 = vld [vmem:[%s12364_s6 + $0x3c8] sm:$0xff]  ;;  %v4849_v37 = vld [vmem:[%s12364_s6 + $0x2b8] sm:$0xff]  ;;  %v4882_v43 = vld [vmem:[%s12364_s6 + $0x3c0] sm:$0xff] }
 0x579   :  { %5924 = vmatpush3.msra.mxu0 %v4839_v50  ;;  %5956 = vmatprep.subr.mxu1 %v4888_v58  ;;  %v4867_v50 = vld [vmem:[%s12364_s6 + $0x348] sm:$0xff]  ;;  %v4833_v58 = vld [vmem:[%s12364_s6 + $0x238] sm:$0xff]  ;;  %v4830_v30 = vld [vmem:[%s12364_s6 + $0x220] sm:$0xff] }
 0x57a   :  { %5925 = vmatprep.subr.mxu0 %v4854_v6  ;;  %5957 = vmatpush3.msra.mxu1 %v4872_v0  ;;  %v11611_v21 = vpop.permute.xlu1 %4605  ;;  %v4848_v6 = vld [vmem:[%s12364_s6 + $0x2b0] sm:$0xff]  ;;  %v4866_v0 = vld [vmem:[%s12364_s6 + $0x340] sm:$0xff]  ;;  %v4865_v32 = vld [vmem:[%s12364_s6 + $0x338] sm:$0xff] }
 0x57b   :  { %5926 = vmatpush3.msra.mxu0 %v4838_v54  ;;  %5958 = vmatprep.subr.mxu1 %v4887_v4  ;;  %v4604_v13 = vpop.permute.xlu0 %4603  ;;  %v4832_v54 = vld [vmem:[%s12364_s6 + $0x230] sm:$0xff]  ;;  %v4881_v4 = vld [vmem:[%s12364_s6 + $0x3b8] sm:$0xff] }
 0x57c   :  { %5927 = vmatprep.subr.mxu0 %v4853_v9  ;;  %5959 = vmatpush3.msra.mxu1 %v4871_v61  ;;  %v4634_v25 = vsel %vm13728_vm10, %v4604_v13, %v11611_v21  ;;  %v4847_v9 = vld [vmem:[%s12364_s6 + $0x2a8] sm:$0xff]  ;;  %v4572_v61 = vsel %vm13730_vm9, %v11481_v45, %v11562_v16  ;;  %v4880_v45 = vld [vmem:[%s12364_s6 + $0x3b0] sm:$0xff]  ;;  %v4846_v16 = vld [vmem:[%s12364_s6 + $0x2a0] sm:$0xff]  ;;  %vm13745_vm10 = vcmp.ge.s32.totalorder %v13589_v17, 1  ;;  %vm13747_vm9 = vcmp.lt.s32.totalorder %v13589_v17, 127 }
 0x57d   :  { %v4646_v26 = vsel %vm13729_vm6, %v4634_v25, 0.0  ;;  %5928 = vmatpush3.msra.mxu0 %v4837_v56  ;;  %5960 = vmatprep.subr.mxu1 %v4886_v46  ;;  %v4831_v56 = vld [vmem:[%s12364_s6 + $0x228] sm:$0xff]  ;;  %v4569_v46 = vsel %vm13731_vm4, %v11590_v51, %v11580_v19  ;;  %v4581_v25 = vsel %vm13733_vm0, %v4572_v61, 0.0  ;;  %v4876_v61 = vld [vmem:[%s12364_s6 + $0x390] sm:$0xff]  ;;  %vm13746_vm6 = vmmov %vm13732_vm7 }
 0x57e   :  { %v4735_v34 = vmul.f32 %v11496_v38, %v4646_v26  ;;  %5929 = vmatprep.subr.mxu0 %v4852_v57  ;;  %5961 = vmatpush3.msra.mxu1 %v4870_v24  ;;  %v4635_v57 = vsel %vm13732_vm7, %v11539_v48, %v4604_v13  ;;  %v4864_v24 = vld [vmem:[%s12364_s6 + $0x330] sm:$0xff]  ;;  %v4879_v48 = vld [vmem:[%s12364_s6 + $0x3a8] sm:$0xff]  ;;  %v4845_v13 = vld [vmem:[%s12364_s6 + $0x298] sm:$0xff] }
 0x57f   :  { %5930 = vmatpush3.msra.mxu0 %v4836_v52  ;;  %5962 = vmatprep.subr.mxu1 %v4885_v8  ;;  %v4608_v52 = vpop.permute.xlu0 %4607  ;;  %v4570_v8 = vsel %vm13734_vm12, %v11557_v40, %v11590_v51  ;;  %v13735_v26 = vld [vmem:[#allocation38_spill] sm:$0xff]  ;;  %v4844_v51 = vld [vmem:[%s12364_s6 + $0x290] sm:$0xff]  ;;  %v4901_v17 = vld [vmem:[%s12364_s6 + $0x458] sm:$0xff] }
 0x580   :  { %5931 = vmatprep.subr.mxu0 %v4851_v53  ;;  %5963 = vmatpush3.msra.mxu1 %v4869_v18  ;;  %v4751_v28 = vadd.f32 %v4735_v34, %v4711_v1  ;;  %vm13736_vm13 = vcmp.ge.s32.totalorder %v13735_v26, 1  ;;  %v4863_v18 = vld [vmem:[%s12364_s6 + $0x328] sm:$0xff]  ;;  %v4829_v1 = vld [vmem:[%s12364_s6 + $0x218] sm:$0xff]  ;;  %v4645_v34 = vsel %vm13737_vm1, %v4635_v57, 0.0  ;;  %v4878_v40 = vld [vmem:[%s12364_s6 + $0x3a0] sm:$0xff]  ;;  %vm13743_vm8 = vcmp.lt.s32.totalorder %v13735_v26, 127 }
 0x581   :  { %5932 = vmatpush3.msra.mxu0 %v4835_v2  ;;  %5964 = vmatprep.subr.mxu1 %v4884_v3  ;;  %v4584_v53 = vsel %vm13736_vm13, %v4569_v46, 0.0  ;;  %v4670_v2 = vmul.f32 %v11490_v63, %v4581_v25  ;;  %v4633_v3 = vsel %vm13738_vm14, %v11611_v21, %v4608_v52  ;;  %v4696_v57 = vmul.f32 %v11493_v55, %v11412_v36  ;;  %v4875_v25 = vld [vmem:[%s12364_s6 + $0x388] sm:$0xff]  ;;  %vm13750_vm0 = vmmov %vm13731_vm4 }
 0x582   :  { %5933 = vmatprep.subr.mxu0 %v4850_v5  ;;  %5965 = vmatpush3.msra.mxu1 %v4868_v20  ;;  %v4828_v5 = vld [vmem:[%s12364_s6 + $0x210] sm:$0xff]  ;;  %v13739_v20 = vld [vmem:[#allocation34_spill] sm:$0xff]  ;;  %v4859_v36 = vld [vmem:[%s12364_s6 + $0x308] sm:$0xff]  ;;  %vm13752_vm13 = vcmp.ge.s32.totalorder %v13595_v14, 1 }
 0x583   :  { %5934 = vmatpush3.msra.mxu0 %v4834_v7  ;;  %5230 = vmatprep.mubr.f32.mxu0 %v4751_v28  ;;  %vm13740_vm3 = vcmp.ge.s32.totalorder %v13739_v20, 1  ;;  %v4673_v28 = vmul.f32 %v11490_v63, %v4584_v53  ;;  %vm13742_vm2 = vcmp.lt.s32.totalorder %v13739_v20, 127  ;;  %v4921_v53 = vld [vmem:[%s12364_s6 + $0x4f8] sm:$0xff]  ;;  %vm13751_vm12 = vmmov %vm13746_vm6 }
 0x584   :  { %5966 = vmatprep.subr.mxu1 %v4883_v41  ;;  %5935 = vmatprep.subr.mxu0 %v4849_v37  ;;  %v4583_v7 = vsel %vm13740_vm3, %v4570_v8, 0.0  ;;  %v4877_v37 = vld [vmem:[%s12364_s6 + $0x398] sm:$0xff]  ;;  %vm13753_vm1 = vmmov %vm13750_vm0 }
 0x585   :  { %5967 = vmatpush3.msra.mxu1 %v4867_v50  ;;  %5936 = vmatpush3.msra.mxu0 %v4833_v58  ;;  %v4843_v50 = vld [vmem:[%s12364_s6 + $0x288] sm:$0xff]  ;;  %v4694_v58 = vmul.f32 %v11493_v55, %v11395_v35  ;;  %v4647_v35 = vsel %vm13742_vm2, %v4633_v3, 0.0  ;;  %v4672_v46 = vmul.f32 %v11490_v63, %v4583_v7  ;;  %v4920_v3 = vld [vmem:[%s12364_s6 + $0x4f0] sm:$0xff]  ;;  %v4953_v20 = vld [vmem:[%s12364_s6 + $0x5f8] sm:$0xff] }
 0x586   :  { %5968 = vmatprep.subr.mxu1 %v4882_v43  ;;  %5937 = vmatprep.subr.mxu0 %v4848_v6  ;;  %v4734_v43 = vmul.f32 %v11496_v38, %v4645_v34  ;;  %v4905_v34 = vld [vmem:[%s12364_s6 + $0x478] sm:$0xff]  ;;  %v4919_v7 = vld [vmem:[%s12364_s6 + $0x4e8] sm:$0xff]  ;;  %vm13754_vm14 = vmmov %vm13746_vm6 }
 0x587   :  { %5969 = vmatpush3.msra.mxu1 %v4866_v0  ;;  %5938 = vmatpush3.msra.mxu0 %v4832_v54  ;;  %v4861_v0 = vld [vmem:[%s12364_s6 + $0x318] sm:$0xff]  ;;  %v4827_v54 = vld [vmem:[%s12364_s6 + $0x208] sm:$0xff]  ;;  %vm13757_vm2 = vmmov %vm13746_vm6 }
 0x588   :  { %5970 = vmatprep.subr.mxu1 %v4881_v4  ;;  %5939 = vmatprep.subr.mxu0 %v4847_v9  ;;  %v4697_v4 = vmul.f32 %v11493_v55, %v11410_v12 }
 0x589   :  { %5971 = vmatpush3.msra.mxu1 %v4865_v32  ;;  %5940 = vmatpush3.msra.mxu0 %v4831_v56  ;;  %v4842_v32 = vld [vmem:[%s12364_s6 + $0x280] sm:$0xff]  ;;  %v4710_v56 = vadd.f32 %v4694_v58, %v4670_v2  ;;  %v4952_v58 = vld [vmem:[%s12364_s6 + $0x5f0] sm:$0xff] }
 0x58a   :  { %5972 = vmatprep.subr.mxu1 %v4880_v45  ;;  %5941 = vmatprep.subr.mxu0 %v4846_v16  ;;  %v4860_v45 = vld [vmem:[%s12364_s6 + $0x310] sm:$0xff]  ;;  %v4826_v16 = vld [vmem:[%s12364_s6 + $0x200] sm:$0xff] }
 0x58b   :  { %5973 = vmatpush3.msra.mxu1 %v4864_v24  ;;  %5942 = vmatpush3.msra.mxu0 %v4830_v30  ;;  %v4713_v24 = vadd.f32 %v4697_v4, %v4673_v28  ;;  %v4937_v28 = vld [vmem:[%s12364_s6 + $0x578] sm:$0xff]  ;;  %v4699_v4 = vmul.f32 %v11493_v55, %v11435_v60 }
 0x58c   :  { %5974 = vmatprep.subr.mxu1 %v4879_v48  ;;  %5943 = vmatprep.subr.mxu0 %v4845_v13  ;;  %v4736_v48 = vmul.f32 %v11496_v38, %v4647_v35  ;;  %v4917_v60 = vld [vmem:[%s12364_s6 + $0x4d8] sm:$0xff] }
 0x58d   :  { %5975 = vmatpush3.msra.mxu1 %v4863_v18  ;;  %v11760_v41 = vpop.permute.xlu1 %4609  ;;  %5944 = vmatpush3.msra.mxu0 %v4829_v1  ;;  %v11762_v21 = vpop.permute.xlu0 %4545  ;;  %v4874_v18 = vld [vmem:[%s12364_s6 + $0x380] sm:$0xff]  ;;  %v4712_v1 = vadd.f32 %v4696_v57, %v4672_v46 }
 0x58e   :  { %v4632_v6 = vsel %vm13741_vm11, %v4608_v52, %v11760_v41  ;;  %5976 = vmatprep.subr.mxu1 %v4878_v40  ;;  %5945 = vmatprep.subr.mxu0 %v4844_v51  ;;  %v4750_v52 = vadd.f32 %v4734_v43, %v4710_v56  ;;  %v4858_v40 = vld [vmem:[%s12364_s6 + $0x300] sm:$0xff]  ;;  %v4935_v56 = vld [vmem:[%s12364_s6 + $0x568] sm:$0xff]  ;;  %vm13756_vm11 = vcmp.lt.s32.totalorder %v13595_v14, 127 }
 0x58f   :  { %v4648_v9 = vsel %vm13743_vm8, %v4632_v6, 0.0  ;;  %5977 = vmatpush3.msra.mxu1 %v4862_v49  ;;  %5946 = vmatpush3.msra.mxu0 %v4828_v5  ;;  %v4752_v49 = vadd.f32 %v4736_v48, %v4712_v1  ;;  %v4904_v5 = vld [vmem:[%s12364_s6 + $0x470] sm:$0xff]  ;;  %v4934_v57 = vld [vmem:[%s12364_s6 + $0x560] sm:$0xff]  ;;  %v4915_v48 = vld [vmem:[%s12364_s6 + $0x4c8] sm:$0xff] }
 0x590   :  { %v4737_v12 = vmul.f32 %v11496_v38, %v4648_v9  ;;  %5978 = vmatprep.subr.mxu1 %v4877_v37  ;;  %5947 = vmatprep.subr.mxu0 %v4843_v50  ;;  %v4903_v50 = vld [vmem:[%s12364_s6 + $0x468] sm:$0xff]  ;;  %v4902_v9 = vld [vmem:[%s12364_s6 + $0x460] sm:$0xff] }
 0x591   :  { %5979 = vmatpush3.msra.mxu1 %v4861_v0  ;;  %v11804_v30 = vpop.permute.xlu1 %4547  ;;  %5948 = vmatpush3.msra.mxu0 %v4827_v54  ;;  %v11817_v8 = vpop.permute.xlu0 %4549  ;;  %v4918_v0 = vld [vmem:[%s12364_s6 + $0x4e0] sm:$0xff]  ;;  %v4936_v54 = vld [vmem:[%s12364_s6 + $0x570] sm:$0xff] }
 0x592   :  { %v4567_v13 = vsel %vm13744_vm5, %v11762_v21, %v11804_v30  ;;  %5980 = vmatprep.subr.mxu1 %v4876_v61  ;;  %5949 = vmatprep.subr.mxu0 %v4842_v32  ;;  %v4753_v26 = vadd.f32 %v4737_v12, %v4713_v24  ;;  %v4951_v61 = vld [vmem:[%s12364_s6 + $0x5e8] sm:$0xff]  ;;  %v4900_v24 = vld [vmem:[%s12364_s6 + $0x450] sm:$0xff]  ;;  %v4898_v1 = vld [vmem:[%s12364_s6 + $0x440] sm:$0xff] }
 0x593   :  { %5981 = vmatpush3.msra.mxu1 %v4860_v45  ;;  %5950 = vmatpush3.msra.mxu0 %v4826_v16  ;;  %v4586_v51 = vsel %vm13745_vm10, %v4567_v13, 0.0  ;;  %v4950_v45 = vld [vmem:[%s12364_s6 + $0x5e0] sm:$0xff]  ;;  %v4916_v16 = vld [vmem:[%s12364_s6 + $0x4d0] sm:$0xff]  ;;  %v4933_v13 = vld [vmem:[%s12364_s6 + $0x558] sm:$0xff] }
 0x594   :  { %5982 = vmatprep.subr.mxu1 %v4875_v25  ;;  %5231 = vmatmul.mubr.f32.vlgmr.msra.gmra.mxu0 %v4750_v52  ;;  %v4675_v37 = vmul.f32 %v11490_v63, %v4586_v51  ;;  %v4949_v25 = vld [vmem:[%s12364_s6 + $0x5d8] sm:$0xff]  ;;  %v4931_v51 = vld [vmem:[%s12364_s6 + $0x548] sm:$0xff]  ;;  %v13758_v14 = vld [vmem:[#allocation46_spill] sm:$0xff] }
 0x595   :  { %5983 = vmatpush3.msra.mxu1 %v4859_v36  ;;  %5300 = vmatprep.mubr.f32.mxu1 %v4753_v26  ;;  %v11833_v2 = vpop.permute.xlu1 %4551  ;;  %v11857_v43 = vpop.permute.xlu0 %4611  ;;  %v4899_v36 = vld [vmem:[%s12364_s6 + $0x448] sm:$0xff]  ;;  %v4948_v26 = vld [vmem:[%s12364_s6 + $0x5d0] sm:$0xff]  ;;  %vm13759_vm8 = vcmp.ge.s32.totalorder %v13758_v14, 1  ;;  %vm13760_vm5 = vmmov %vm13750_vm0  ;;  %vm13761_vm10 = vcmp.lt.s32.totalorder %v13758_v14, 127 }
 0x596   :  { %5989 = vmatprep.subr.mxu0 %v4921_v53  ;;  %5984 = vmatprep.subr.mxu1 %v4874_v18  ;;  %v4715_v46 = vadd.f32 %v4699_v4, %v4675_v37  ;;  %v4914_v53 = vld [vmem:[%s12364_s6 + $0x4c0] sm:$0xff]  ;;  %v4932_v18 = vld [vmem:[%s12364_s6 + $0x550] sm:$0xff]  ;;  %v4929_v4 = vld [vmem:[%s12364_s6 + $0x538] sm:$0xff] }
 0x597   :  { %5990 = vmatpush3.msra.mxu0 %v4905_v34  ;;  %5985 = vmatpush3.msra.mxu1 %v4858_v40  ;;  %v4947_v34 = vld [vmem:[%s12364_s6 + $0x5c8] sm:$0xff]  ;;  %v4913_v40 = vld [vmem:[%s12364_s6 + $0x4b8] sm:$0xff] }
 0x598   :  { %5991 = vmatprep.subr.mxu0 %v4920_v3  ;;  %5301 = vmatmul.mubr.f32.vlgmr.msra.gmra.mxu1 %v4752_v49  ;;  %v4897_v3 = vld [vmem:[%s12364_s6 + $0x438] sm:$0xff]  ;;  %v4565_v49 = vsel %vm13731_vm4, %v11817_v8, %v11833_v2  ;;  %vm13764_vm4 = vmmov %vm13757_vm2  ;;  %v4983_v14 = vld [vmem:[%s12364_s6 + $0x6e8] sm:$0xff] }
 0x599   :  { %5992 = vmatpush3.msra.mxu0 %v4904_v5  ;;  %6024 = vmatprep.subr.mxu1 %v4953_v20  ;;  %v11859_v6 = vpop.permute.xlu1 %4613  ;;  %v4946_v5 = vld [vmem:[%s12364_s6 + $0x5c0] sm:$0xff]  ;;  %v4912_v20 = vld [vmem:[%s12364_s6 + $0x4b0] sm:$0xff]  ;;  %v4616_v37 = vpop.permute.xlu0 %4615 }
 0x59a   :  { %5993 = vmatprep.subr.mxu0 %v4919_v7  ;;  %6025 = vmatpush3.msra.mxu1 %v4937_v28  ;;  %v4630_v35 = vsel %vm13746_vm6, %v11857_v43, %v11859_v6  ;;  %v4930_v7 = vld [vmem:[%s12364_s6 + $0x540] sm:$0xff]  ;;  %v4896_v28 = vld [vmem:[%s12364_s6 + $0x430] sm:$0xff]  ;;  %vm13762_vm6 = vcmp.ge.s32.totalorder %v13643_v15, 1 }
 0x59b   :  { %v4650_v32 = vsel %vm13747_vm9, %v4630_v35, 0.0  ;;  %5994 = vmatpush3.msra.mxu0 %v4903_v50  ;;  %6026 = vmatprep.subr.mxu1 %v4952_v58  ;;  %v4945_v50 = vld [vmem:[%s12364_s6 + $0x5b8] sm:$0xff]  ;;  %v4911_v58 = vld [vmem:[%s12364_s6 + $0x4a8] sm:$0xff]  ;;  %vm13763_vm9 = vmmov %vm13750_vm0 }
 0x59c   :  { %v4739_v12 = vmul.f32 %v11496_v38, %v4650_v32  ;;  %5995 = vmatprep.subr.mxu0 %v4918_v0  ;;  %6027 = vmatpush3.msra.mxu1 %v4936_v54  ;;  %v13748_v0 = vld [vmem:[#allocation27_spill] sm:$0xff]  ;;  %v4910_v32 = vld [vmem:[%s12364_s6 + $0x4a0] sm:$0xff] }
 0x59d   :  { %5996 = vmatpush3.msra.mxu0 %v4902_v9  ;;  %6028 = vmatprep.subr.mxu1 %v4951_v61  ;;  %vm13749_vm7 = vcmp.ge.s32.totalorder %v13748_v0, 1  ;;  %v4895_v35 = vld [vmem:[%s12364_s6 + $0x428] sm:$0xff]  ;;  %v4568_v9 = vsel %vm13750_vm0, %v11580_v19, %v11762_v21  ;;  %v4944_v61 = vld [vmem:[%s12364_s6 + $0x5b0] sm:$0xff]  ;;  %v4894_v19 = vld [vmem:[%s12364_s6 + $0x420] sm:$0xff]  ;;  %vm13755_vm3 = vcmp.lt.s32.totalorder %v13748_v0, 127  ;;  %vm13766_vm0 = vcmp.lt.s32.totalorder %v13643_v15, 127 }
 0x59e   :  { %5997 = vmatprep.subr.mxu0 %v4917_v60  ;;  %6029 = vmatpush3.msra.mxu1 %v4935_v56  ;;  %v4755_v52 = vadd.f32 %v4739_v12, %v4715_v46  ;;  %v4588_v54 = vsel %vm13749_vm7, %v4565_v49, 0.0  ;;  %v4928_v60 = vld [vmem:[%s12364_s6 + $0x530] sm:$0xff]  ;;  %v4631_v56 = vsel %vm13751_vm12, %v11760_v41, %v11857_v43  ;;  %v4943_v12 = vld [vmem:[%s12364_s6 + $0x5a8] sm:$0xff]  ;;  %v4566_v41 = vsel %vm13753_vm1, %v11804_v30, %v11817_v8  ;;  %v4942_v8 = vld [vmem:[%s12364_s6 + $0x5a0] sm:$0xff] }
 0x59f   :  { %5998 = vmatpush3.msra.mxu0 %v4901_v17  ;;  %6030 = vmatprep.subr.mxu1 %v4950_v45  ;;  %v4677_v21 = vmul.f32 %v11490_v63, %v4588_v54  ;;  %v4909_v45 = vld [vmem:[%s12364_s6 + $0x498] sm:$0xff]  ;;  %v4924_v54 = vld [vmem:[%s12364_s6 + $0x510] sm:$0xff]  ;;  %vm13765_vm7 = vcmp.ge.s32.totalorder %v13464_v62, 1  ;;  %vm13767_vm12 = vmmov %vm13757_vm2 }
 0x5a0   :  { %5999 = vmatprep.subr.mxu0 %v4916_v16  ;;  %6031 = vmatpush3.msra.mxu1 %v4934_v57  ;;  %v4585_v16 = vsel %vm13752_vm13, %v4568_v9, 0.0  ;;  %v4927_v57 = vld [vmem:[%s12364_s6 + $0x528] sm:$0xff]  ;;  %vm13768_vm13 = vcmp.lt.s32.totalorder %v13464_v62, 127 }
 0x5a1   :  { %6000 = vmatpush3.msra.mxu0 %v4900_v24  ;;  %6032 = vmatprep.subr.mxu1 %v4949_v25  ;;  %v4893_v24 = vld [vmem:[%s12364_s6 + $0x418] sm:$0xff]  ;;  %v4701_v25 = vmul.f32 %v11493_v55, %v11448_v33  ;;  %v4629_v33 = vsel %vm13757_vm2, %v11859_v6, %v4616_v37 }
 0x5a2   :  { %6001 = vmatprep.subr.mxu0 %v4915_v48  ;;  %5370 = vmatprep.mubr.f32.mxu0 %v4755_v52  ;;  %v4908_v52 = vld [vmem:[%s12364_s6 + $0x490] sm:$0xff]  ;;  %v4649_v48 = vsel %vm13756_vm11, %v4631_v56, 0.0  ;;  %v4923_v56 = vld [vmem:[%s12364_s6 + $0x508] sm:$0xff]  ;;  %vm13771_vm11 = vmmov %vm13753_vm1 }
 0x5a3   :  { %6033 = vmatpush3.msra.mxu1 %v4933_v13  ;;  %6002 = vmatpush3.msra.mxu0 %v4899_v36  ;;  %v4926_v36 = vld [vmem:[%s12364_s6 + $0x520] sm:$0xff] }
 0x5a4   :  { %6034 = vmatprep.subr.mxu1 %v4948_v26  ;;  %6003 = vmatprep.subr.mxu0 %v4914_v53  ;;  %v4892_v26 = vld [vmem:[%s12364_s6 + $0x410] sm:$0xff]  ;;  %v4674_v53 = vmul.f32 %v11490_v63, %v4585_v16  ;;  %v4938_v16 = vld [vmem:[%s12364_s6 + $0x580] sm:$0xff] }
 0x5a5   :  { %6035 = vmatpush3.msra.mxu1 %v4932_v18  ;;  %6004 = vmatpush3.msra.mxu0 %v4898_v1  ;;  %v4587_v18 = vsel %vm13759_vm8, %v4566_v41, 0.0  ;;  %v4717_v1 = vadd.f32 %v4701_v25, %v4677_v21  ;;  %v4703_v41 = vmul.f32 %v11493_v55, %v11467_v44  ;;  %v4969_v25 = vld [vmem:[%s12364_s6 + $0x678] sm:$0xff]  ;;  %v4984_v44 = vld [vmem:[%s12364_s6 + $0x6f0] sm:$0xff]  ;;  %vm13773_vm8 = vmmov %vm13764_vm4 }
 0x5a6   :  { %6036 = vmatprep.subr.mxu1 %v4947_v34  ;;  %6005 = vmatprep.subr.mxu0 %v4913_v40  ;;  %v4941_v34 = vld [vmem:[%s12364_s6 + $0x598] sm:$0xff]  ;;  %v4676_v0 = vmul.f32 %v11490_v63, %v4587_v18  ;;  %v4967_v18 = vld [vmem:[%s12364_s6 + $0x668] sm:$0xff] }
 0x5a7   :  { %6037 = vmatpush3.msra.mxu1 %v4931_v51  ;;  %6006 = vmatpush3.msra.mxu0 %v4897_v3  ;;  %v4907_v51 = vld [vmem:[%s12364_s6 + $0x488] sm:$0xff]  ;;  %v4698_v3 = vmul.f32 %v11493_v55, %v11433_v59  ;;  %v4651_v59 = vsel %vm13761_vm10, %v4629_v33, 0.0 }
 0x5a8   :  { %6038 = vmatprep.subr.mxu1 %v4946_v5  ;;  %6007 = vmatprep.subr.mxu0 %v4912_v20  ;;  %v4925_v5 = vld [vmem:[%s12364_s6 + $0x518] sm:$0xff]  ;;  %v4891_v20 = vld [vmem:[%s12364_s6 + $0x408] sm:$0xff]  ;;  %v4740_v21 = vmul.f32 %v11496_v38, %v4651_v59 }
 0x5a9   :  { %6039 = vmatpush3.msra.mxu1 %v4930_v7  ;;  %6008 = vmatpush3.msra.mxu0 %v4896_v28  ;;  %v4738_v7 = vmul.f32 %v11496_v38, %v4649_v48  ;;  %v4999_v59 = vld [vmem:[%s12364_s6 + $0x768] sm:$0xff] }
 0x5aa   :  { %6040 = vmatprep.subr.mxu1 %v4945_v50  ;;  %6009 = vmatprep.subr.mxu0 %v4911_v58  ;;  %v4906_v50 = vld [vmem:[%s12364_s6 + $0x480] sm:$0xff] }
 0x5ab   :  { %6041 = vmatpush3.msra.mxu1 %v4929_v4  ;;  %6010 = vmatpush3.msra.mxu0 %v4895_v35  ;;  %v4714_v4 = vadd.f32 %v4698_v3, %v4674_v53  ;;  %v4982_v3 = vld [vmem:[%s12364_s6 + $0x6e0] sm:$0xff] }
 0x5ac   :  { %6042 = vmatprep.subr.mxu1 %v4944_v61  ;;  %6011 = vmatprep.subr.mxu0 %v4910_v32  ;;  %v4890_v61 = vld [vmem:[%s12364_s6 + $0x400] sm:$0xff]  ;;  %v4939_v32 = vld [vmem:[%s12364_s6 + $0x588] sm:$0xff] }
 0x5ad   :  { %6043 = vmatpush3.msra.mxu1 %v4928_v60  ;;  %6012 = vmatpush3.msra.mxu0 %v4894_v19  ;;  %v4700_v19 = vmul.f32 %v11493_v55, %v11441_v39  ;;  %v4985_v39 = vld [vmem:[%s12364_s6 + $0x6f8] sm:$0xff] }
 0x5ae   :  { %v11990_v46 = vpop.permute.xlu1 %4617  ;;  %v11995_v17 = vpop.permute.xlu0 %4553  ;;  %6044 = vmatprep.subr.mxu1 %v4943_v12  ;;  %6013 = vmatprep.subr.mxu0 %v4909_v45  ;;  %v4754_v12 = vadd.f32 %v4738_v7, %v4714_v4  ;;  %v4981_v7 = vld [vmem:[%s12364_s6 + $0x6d8] sm:$0xff] }
 0x5af   :  { %v4628_v43 = vsel %vm13754_vm14, %v4616_v37, %v11990_v46  ;;  %6045 = vmatpush3.msra.mxu1 %v4927_v57  ;;  %6014 = vmatpush3.msra.mxu0 %v4893_v24  ;;  %v4940_v37 = vld [vmem:[%s12364_s6 + $0x590] sm:$0xff]  ;;  %v5013_v4 = vld [vmem:[%s12364_s6 + $0x7d8] sm:$0xff]  ;;  %vm13769_vm14 = vmmov %vm13757_vm2  ;;  %vm13772_vm2 = vcmp.lt.s32.totalorder %v13646_v31, 127 }
 0x5b0   :  { %v4652_v30 = vsel %vm13755_vm3, %v4628_v43, 0.0  ;;  %6046 = vmatprep.subr.mxu1 %v4942_v8  ;;  %6015 = vmatprep.subr.mxu0 %v4908_v52  ;;  %v4716_v43 = vadd.f32 %v4700_v19, %v4676_v0  ;;  %v4998_v0 = vld [vmem:[%s12364_s6 + $0x760] sm:$0xff]  ;;  %v5012_v19 = vld [vmem:[%s12364_s6 + $0x7d0] sm:$0xff]  ;;  %vm13770_vm3 = vcmp.ge.s32.totalorder %v13646_v31, 1 }
 0x5b1   :  { %v4741_v13 = vmul.f32 %v11496_v38, %v4652_v30  ;;  %6047 = vmatpush3.msra.mxu1 %v4926_v36  ;;  %6016 = vmatpush3.msra.mxu0 %v4892_v26  ;;  %v4922_v30 = vld [vmem:[%s12364_s6 + $0x500] sm:$0xff]  ;;  %v5017_v36 = vld [vmem:[%s12364_s6 + $0x7f8] sm:$0xff] }
 0x5b2   :  { %v12040_v6 = vpop.permute.xlu1 %4555  ;;  %v12045_v40 = vpop.permute.xlu0 %4557  ;;  %6048 = vmatprep.subr.mxu1 %v4941_v34  ;;  %6017 = vmatprep.subr.mxu0 %v4907_v51  ;;  %v4756_v15 = vadd.f32 %v4740_v21, %v4716_v43  ;;  %v4705_v34 = vmul.f32 %v11493_v55, %v11386_v11  ;;  %v5015_v11 = vld [vmem:[%s12364_s6 + $0x7e8] sm:$0xff]  ;;  %v4978_v21 = vld [vmem:[%s12364_s6 + $0x6c0] sm:$0xff]  ;;  %v4976_v43 = vld [vmem:[%s12364_s6 + $0x6b0] sm:$0xff] }
 0x5b3   :  { %v4563_v49 = vsel %vm13760_vm5, %v11995_v17, %v12040_v6  ;;  %v4757_v58 = vadd.f32 %v4741_v13, %v4717_v1  ;;  %v4561_v35 = vsel %vm13763_vm9, %v12045_v40, %v11525_v10  ;;  %6049 = vmatpush3.msra.mxu1 %v4925_v5  ;;  %6018 = vmatpush3.msra.mxu0 %v4891_v20  ;;  %v4968_v13 = vld [vmem:[%s12364_s6 + $0x670] sm:$0xff]  ;;  %v4966_v5 = vld [vmem:[%s12364_s6 + $0x660] sm:$0xff]  ;;  %vm5618_vm5 = vcmask 7168  }
 0x5b4   :  { %v4590_v28 = vsel %vm13762_vm6, %v4563_v49, 0.0  ;;  %6050 = vmatprep.subr.mxu1 %v4940_v37  ;;  %6019 = vmatprep.subr.mxu0 %v4906_v50  ;;  %v4592_v57 = vsel %vm13765_vm7, %v4561_v35, 0.0  ;;  %v5016_v1 = vld [vmem:[%s12364_s6 + $0x7f0] sm:$0xff]  ;;  %v5014_v37 = vld [vmem:[%s12364_s6 + $0x7e0] sm:$0xff]  ;;  %v4979_v35 = vld [vmem:[%s12364_s6 + $0x6c8] sm:$0xff] }
 0x5b5   :  { %v4679_v10 = vmul.f32 %v11490_v63, %v4590_v28  ;;  %6051 = vmatpush3.msra.mxu1 %v4924_v54  ;;  %5440 = vmatprep.mubr.f32.mxu1 %v4757_v58  ;;  %v4681_v26 = vmul.f32 %v11490_v63, %v4592_v57  ;;  %v5000_v49 = vld [vmem:[%s12364_s6 + $0x770] sm:$0xff]  ;;  %v4965_v28 = vld [vmem:[%s12364_s6 + $0x658] sm:$0xff]  ;;  %v4994_v57 = vld [vmem:[%s12364_s6 + $0x740] sm:$0xff] }
 0x5b6   :  { %v12081_v9 = vpop.permute.xlu1 %4619  ;;  %v12089_v60 = vpop.permute.xlu0 %4621  ;;  %6020 = vmatpush3.msra.mxu0 %v4890_v61  ;;  %6052 = vmatprep.subr.mxu1 %v4939_v32  ;;  %v4980_v50 = vld [vmem:[%s12364_s6 + $0x6d0] sm:$0xff]  ;;  %v4997_v61 = vld [vmem:[%s12364_s6 + $0x758] sm:$0xff]  ;;  %v4963_v32 = vld [vmem:[%s12364_s6 + $0x648] sm:$0xff] }
 0x5b7   :  { %v4626_v45 = vsel %vm13764_vm4, %v12081_v9, %v12089_v60  ;;  %5371 = vmatmul.mubr.f32.vlgmr.msra.gmra.mxu0 %v4754_v12  ;;  %6053 = vmatpush3.msra.mxu1 %v4923_v56  ;;  %v4719_v48 = vadd.f32 %v4703_v41, %v4679_v10  ;;  %v4721_v20 = vadd.f32 %v4705_v34, %v4681_v26  ;;  %v4964_v54 = vld [vmem:[%s12364_s6 + $0x650] sm:$0xff]  ;;  %v4962_v56 = vld [vmem:[%s12364_s6 + $0x640] sm:$0xff]  ;;  %v5011_v12 = vld [vmem:[%s12364_s6 + $0x7c8] sm:$0xff] }
 0x5b8   :  { %v4654_v24 = vsel %vm13766_vm0, %v4626_v45, 0.0  ;;  %6059 = vmatprep.subr.mxu0 %v4985_v39  ;;  %6054 = vmatprep.subr.mxu1 %v4938_v16  ;;  %v4996_v10 = vld [vmem:[%s12364_s6 + $0x750] sm:$0xff]  ;;  %v4977_v45 = vld [vmem:[%s12364_s6 + $0x6b8] sm:$0xff]  ;;  %v4995_v39 = vld [vmem:[%s12364_s6 + $0x748] sm:$0xff] }
 0x5b9   :  { %v4743_v8 = vmul.f32 %v11496_v38, %v4654_v24  ;;  %6060 = vmatpush3.msra.mxu0 %v4969_v25  ;;  %6055 = vmatpush3.msra.mxu1 %v4922_v30  ;;  %v4961_v16 = vld [vmem:[%s12364_s6 + $0x638] sm:$0xff]  ;;  %v5010_v41 = vld [vmem:[%s12364_s6 + $0x7c0] sm:$0xff]  ;;  %v4960_v24 = vld [vmem:[%s12364_s6 + $0x630] sm:$0xff] }
 0x5ba   :  { %v12124_v52 = vpop.permute.xlu1 %4623  ;;  %6061 = vmatprep.subr.mxu0 %v4984_v44  ;;  %5441 = vmatmul.mubr.f32.vlgmr.msra.gmra.mxu1 %v4756_v15  ;;  %v5009_v25 = vld [vmem:[%s12364_s6 + $0x7b8] sm:$0xff]  ;;  %v4975_v30 = vld [vmem:[%s12364_s6 + $0x6a8] sm:$0xff]  ;;  %v4564_v44 = vsel %vm13753_vm1, %v11833_v2, %v11995_v17  ;;  %v4992_v2 = vld [vmem:[%s12364_s6 + $0x730] sm:$0xff]  ;;  %v4627_v17 = vsel %vm13769_vm14, %v11990_v46, %v12081_v9 }
 0x5bb   :  { %v4640_v33 = vsel %vm13767_vm12, %v12124_v52, %v11513_v47  ;;  %v5001_v47 = vld [vmem:[%s12364_s6 + $0x778] sm:$0xff]  ;;  %v4759_v62 = vadd.f32 %v4743_v8, %v4719_v48  ;;  %6062 = vmatpush3.msra.mxu0 %v4968_v13  ;;  %6094 = vmatprep.subr.mxu1 %v5017_v36  ;;  %v4959_v15 = vld [vmem:[%s12364_s6 + $0x628] sm:$0xff]  ;;  %v5008_v48 = vld [vmem:[%s12364_s6 + $0x7b0] sm:$0xff]  ;;  %v4589_v26 = vsel %vm13770_vm3, %v4564_v44, 0.0 }
 0x5bc   :  { %v4656_v53 = vsel %vm13768_vm13, %v4640_v33, 0.0  ;;  %6063 = vmatprep.subr.mxu0 %v4983_v14  ;;  %6095 = vmatpush3.msra.mxu1 %v5001_v47  ;;  %v4993_v8 = vld [vmem:[%s12364_s6 + $0x738] sm:$0xff]  ;;  %v4974_v33 = vld [vmem:[%s12364_s6 + $0x6a0] sm:$0xff]  ;;  %v5007_v36 = vld [vmem:[%s12364_s6 + $0x7a8] sm:$0xff]  ;;  %v4625_v47 = vsel %vm13773_vm8, %v12089_v60, %v12124_v52 }
 0x5bd   :  { %v4745_v51 = vmul.f32 %v11496_v38, %v4656_v53  ;;  %6064 = vmatpush3.msra.mxu0 %v4967_v18  ;;  %6096 = vmatprep.subr.mxu1 %v5016_v1  ;;  %v4958_v13 = vld [vmem:[%s12364_s6 + $0x620] sm:$0xff]  ;;  %v4562_v53 = vsel %vm13771_vm11, %v12040_v6, %v12045_v40  ;;  %v4973_v46 = vld [vmem:[%s12364_s6 + $0x698] sm:$0xff]  ;;  %v4991_v9 = vld [vmem:[%s12364_s6 + $0x728] sm:$0xff]  ;;  %v4653_v40 = vsel %vm13772_vm2, %v4627_v17, 0.0 }
 0x5be   :  { %6065 = vmatprep.subr.mxu0 %v4982_v3  ;;  %5510 = vmatprep.mubr.f32.mxu0 %v4759_v62  ;;  %v4957_v14 = vld [vmem:[%s12364_s6 + $0x618] sm:$0xff]  ;;  %v5006_v6 = vld [vmem:[%s12364_s6 + $0x7a0] sm:$0xff]  ;;  %v4972_v18 = vld [vmem:[%s12364_s6 + $0x690] sm:$0xff]  ;;  %v4678_v62 = vmul.f32 %v11490_v63, %v4589_v26  ;;  %v4591_v31 = vsel %vm869_vm15, %v4562_v53, 0.0  ;;  %v4742_v3 = vmul.f32 %v11496_v38, %v4653_v40  ;;  %vm13774_vm15 = vcmp.lt.s32.totalorder %v13470_v29, 127 }
 0x5bf   :  { %6097 = vmatpush3.msra.mxu1 %v5000_v49  ;;  %6066 = vmatpush3.msra.mxu0 %v4966_v5  ;;  %v4761_v58 = vadd.f32 %v4745_v51, %v4721_v20  ;;  %v4990_v1 = vld [vmem:[%s12364_s6 + $0x720] sm:$0xff]  ;;  %v5005_v60 = vld [vmem:[%s12364_s6 + $0x798] sm:$0xff]  ;;  %v4971_v52 = vld [vmem:[%s12364_s6 + $0x688] sm:$0xff]  ;;  %v4702_v51 = vmul.f32 %v11493_v55, %v11465_v22  ;;  %v4655_v49 = vsel %vm13774_vm15, %v4625_v47, 0.0 }
 0x5c0   :  { %6098 = vmatprep.subr.mxu1 %v5015_v11  ;;  %6067 = vmatprep.subr.mxu0 %v4981_v7  ;;  %v4989_v34 = vld [vmem:[%s12364_s6 + $0x718] sm:$0xff]  ;;  %v4955_v5 = vld [vmem:[%s12364_s6 + $0x608] sm:$0xff]  ;;  %v5004_v20 = vld [vmem:[%s12364_s6 + $0x790] sm:$0xff]  ;;  %v4680_v11 = vmul.f32 %v11490_v63, %v4591_v31 }
 0x5c1   :  { %6099 = vmatpush3.msra.mxu1 %v4999_v59  ;;  %6068 = vmatpush3.msra.mxu0 %v4965_v28  ;;  %v4970_v22 = vld [vmem:[%s12364_s6 + $0x680] sm:$0xff]  ;;  %v4988_v29 = vld [vmem:[%s12364_s6 + $0x710] sm:$0xff]  ;;  %v4718_v7 = vadd.f32 %v4702_v51, %v4678_v62  ;;  %v5003_v63 = vld [vmem:[%s12364_s6 + $0x788] sm:$0xff]  ;;  %v4704_v28 = vmul.f32 %v11493_v55, %v11473_v23 }
 0x5c2   :  { %6100 = vmatprep.subr.mxu1 %v5014_v37  ;;  %6069 = vmatprep.subr.mxu0 %v4980_v50  ;;  %v4954_v59 = vld [vmem:[%s12364_s6 + $0x600] sm:$0xff]  ;;  %v4744_v37 = vmul.f32 %v11496_v38, %v4655_v49  ;;  %v4987_v50 = vld [vmem:[%s12364_s6 + $0x708] sm:$0xff] }
 0x5c3   :  { %6101 = vmatpush3.msra.mxu1 %v4998_v0  ;;  %5580 = vmatprep.mubr.f32.mxu1 %v4761_v58  ;;  %v4758_v58 = vadd.f32 %v4742_v3, %v4718_v7  ;;  %v5002_v0 = vld [vmem:[%s12364_s6 + $0x780] sm:$0xff] }
 0x5c4   :  { %6070 = vmatpush3.msra.mxu0 %v4964_v54  ;;  %6102 = vmatprep.subr.mxu1 %v5013_v4  ;;  %v4720_v54 = vadd.f32 %v4704_v28, %v4680_v11  ;;  %v4986_v23 = vld [vmem:[%s12364_s6 + $0x700] sm:$0xff]  ;;  %v5020_v4 = vpop.permute.xlu0 %5019 }
 0x5c5   :  { %6071 = vmatprep.subr.mxu0 %v4979_v35  ;;  %6103 = vmatpush3.msra.mxu1 %v4997_v61 }
 0x5c6   :  { %6072 = vmatpush3.msra.mxu0 %v4963_v32  ;;  %6104 = vmatprep.subr.mxu1 %v5012_v19  ;;  %v4760_v55 = vadd.f32 %v4744_v37, %v4720_v54 }
 0x5c7   :  { %6073 = vmatprep.subr.mxu0 %v4978_v21  ;;  %6105 = vmatpush3.msra.mxu1 %v4996_v10  ;;  %v5025_v21 = vrot.slane %v5020_v4, %v13697_v27 }
 0x5c8   :  { %6074 = vmatpush3.msra.mxu0 %v4962_v56  ;;  %6106 = vmatprep.subr.mxu1 %v5011_v12 }
 0x5c9   :  { %6075 = vmatprep.subr.mxu0 %v4977_v45  ;;  %6107 = vmatpush3.msra.mxu1 %v4995_v39 }
 0x5ca   :  { %6076 = vmatpush3.msra.mxu0 %v4961_v16  ;;  %6108 = vmatprep.subr.mxu1 %v5010_v41 }
 0x5cb   :  { %6077 = vmatprep.subr.mxu0 %v4976_v43  ;;  %6109 = vmatpush3.msra.mxu1 %v4994_v57 }
 0x5cc   :  { %6078 = vmatpush3.msra.mxu0 %v4960_v24  ;;  %6110 = vmatprep.subr.mxu1 %v5009_v25 }
 0x5cd   :  { %6079 = vmatprep.subr.mxu0 %v4975_v30  ;;  %6111 = vmatpush3.msra.mxu1 %v4993_v8 }
 0x5ce   :  { %6080 = vmatpush3.msra.mxu0 %v4959_v15  ;;  %6112 = vmatprep.subr.mxu1 %v5008_v48 }
 0x5cf   :  { %6081 = vmatprep.subr.mxu0 %v4974_v33  ;;  %6113 = vmatpush3.msra.mxu1 %v4992_v2 }
 0x5d0   :  { %6082 = vmatpush3.msra.mxu0 %v4958_v13  ;;  %6114 = vmatprep.subr.mxu1 %v5007_v36 }
 0x5d1   :  { %6083 = vmatprep.subr.mxu0 %v4973_v46  ;;  %6115 = vmatpush3.msra.mxu1 %v4991_v9 }
 0x5d2   :  { %6084 = vmatpush3.msra.mxu0 %v4957_v14  ;;  %6116 = vmatprep.subr.mxu1 %v5006_v6 }
 0x5d3   :  { %6085 = vmatprep.subr.mxu0 %v4972_v18  ;;  %6117 = vmatpush3.msra.mxu1 %v4990_v1 }
 0x5d4   :  { %6086 = vmatpush3.msra.mxu0 %v4956_v42  ;;  %6118 = vmatprep.subr.mxu1 %v5005_v60 }
 0x5d5   :  { %6087 = vmatprep.subr.mxu0 %v4971_v52  ;;  %6119 = vmatpush3.msra.mxu1 %v4989_v34 }
 0x5d6   :  { %6088 = vmatpush3.msra.mxu0 %v4955_v5  ;;  %6120 = vmatprep.subr.mxu1 %v5004_v20 }
 0x5d7   :  { %6089 = vmatprep.subr.mxu0 %v4970_v22  ;;  %6121 = vmatpush3.msra.mxu1 %v4988_v29 }
 0x5d8   :  { %6090 = vmatpush3.msra.mxu0 %v4954_v59  ;;  %6122 = vmatprep.subr.mxu1 %v5003_v63 }
 0x5d9   :  { %5511 = vmatmul.mubr.f32.vlgmr.msra.gmra.mxu0 %v4758_v58  ;;  %6123 = vmatpush3.msra.mxu1 %v4987_v50 }
 0x5da   :  { %6124 = vmatprep.subr.mxu1 %v5002_v0 }
 0x5db   :  { %6125 = vmatpush3.msra.mxu1 %v4986_v23 }
 0x5dc   :  { %5581 = vmatmul.mubr.f32.vlgmr.msra.gmra.mxu1 %v4760_v55 }
 0x634   :  { %v5881_v38 = vpop.f32.mrf.mxu0 }
 0x636   :  { %v5882_v35 = vpop.f32.mrf.mxu0 }
 0x637   :  { %v5916_v61 = vpop.f32.mrf.mxu1  ;;  %v5883_v19 = vadd.f32 %v5882_v35, %v5881_v38 }
 0x639   :  { %v5917_v10 = vpop.f32.mrf.mxu1  ;;  %v5093_v45 = vadd.f32 %v5883_v19, %v5025_v21 }
 0x63a   :  { %v5918_v39 = vadd.f32 %v5917_v10, %v5916_v61 }
 0x63c   :  { %v5163_v57 = vadd.f32 %v5918_v39, %v5093_v45 }
 0x654   :  { %v5951_v32 = vpop.f32.mrf.mxu0 }
 0x656   :  { %v5952_v56 = vpop.f32.mrf.mxu0 }
 0x657   :  { %v5953_v41 = vadd.f32 %v5952_v56, %v5951_v32 }
 0x658   :  { %v5986_v12 = vpop.f32.mrf.mxu1 }
 0x659   :  { %v5233_v30 = vadd.f32 %v5953_v41, %v5163_v57 }
 0x65a   :  { %v5987_v43 = vpop.f32.mrf.mxu1 }
 0x65b   :  { %v5988_v8 = vadd.f32 %v5987_v43, %v5986_v12 }
 0x65d   :  { %v5303_v48 = vadd.f32 %v5988_v8, %v5233_v30 }
 0x677   :  { %v6021_v16 = vpop.f32.mrf.mxu0 }
 0x679   :  { %v6022_v24 = vpop.f32.mrf.mxu0 }
 0x67a   :  { %v6056_v25 = vpop.f32.mrf.mxu1  ;;  %v6023_v44 = vadd.f32 %v6022_v24, %v6021_v16 }
 0x67c   :  { %v6057_v15 = vpop.f32.mrf.mxu1  ;;  %v5373_v33 = vadd.f32 %v6023_v44, %v5303_v48 }
 0x67d   :  { %v6058_v2 = vadd.f32 %v6057_v15, %v6056_v25 }
 0x67f   :  { %v5443_v13 = vadd.f32 %v6058_v2, %v5373_v33 }
 0x699   :  { %v6091_v17 = vpop.f32.mrf.mxu0 }
 0x69b   :  { %v6092_v27 = vpop.f32.mrf.mxu0 }
 0x69c   :  { %v6093_v36 = vadd.f32 %v6092_v27, %v6091_v17  ;;  %v6126_v26 = vpop.f32.mrf.mxu1 }
 0x69e   :  { %v5513_v53 = vadd.f32 %v6093_v36, %v5443_v13  ;;  %v6127_v46 = vpop.f32.mrf.mxu1 }
 0x69f   :  { %v6128_v9 = vadd.f32 %v6127_v46, %v6126_v26 }
 0x6a1   :  { %v5583_v14 = vadd.f32 %v6128_v9, %v5513_v53 }
 0x6a3   :  { %5586 = vxpose.xlu1.b32.start.end [1/1] (short) (narrow) %v5583_v14, 16 }
 0x71f   :  { %v5602_v6 = vpop.trf.xlu1 }
 0x720   :  { %5619 = vst.msk [vmem:[%s12365_s7] sm:$0xff] %vm5618_vm5, %v5602_v6 }
 0x723   :  { %v5603_v40 = vpop.trf.xlu1 }
 0x724   :  { %5620 = vst.msk [vmem:[%s12365_s7 + $0x8] sm:$0xff] %vm5618_vm5, %v5603_v40 }

</bundles_post_ra>
